<compile_context>
chip_gen: v6e
topology: v6e:2x2x1
jax: 0.10.0
libtpu: 0.0.40
codegen_flags: <defaults>
</compile_context>

<pallas_src>
import functools

import jax
import jax.numpy as jnp
from jax.experimental import pallas as pl
from jax.experimental.pallas import tpu as pltpu


# ----------------------------------------------------------------------------
# VMEM budgeting (generation aware, double-buffer aware).
# ----------------------------------------------------------------------------
def _vmem_limit_bytes():
    """Scoped VMEM limit per kernel: half of physical capacity, capped at
    32 MiB (safe on v5e/v6e's 128 MiB and v7x's 64 MiB per-TensorCore VMEM)."""
    cap = 64 * 1024 * 1024  # conservative default (v7x per-TC physical)
    try:
        cap = int(pltpu.get_tpu_info().vmem_capacity_bytes)
    except Exception:
        pass
    return min(cap // 2, 32 * 1024 * 1024)


def _pick_fc1_tile(K, N, itemsize, budget_bytes):
    """K-tile for the streamed fc1 weight: largest multiple of 128 whose
    DOUBLE-BUFFERED (tk, N) block fits `budget_bytes`.
    Returns (tk, num_steps, padded_K); padded_K > K only in the ragged
    fallback (zero-padding the contraction is numerically exact)."""
    per_row = 2 * N * itemsize                       # two pipeline buffers
    max_tk = max(128, (budget_bytes // per_row) // 128 * 128)
    if K <= max_tk:
        return K, 1, K                               # whole K resident
    for steps in range(2, K // 128 + 1):             # exact-divisor tile
        if K % steps:
            continue
        tk = K // steps
        if tk % 128 == 0 and tk <= max_tk:
            return tk, steps, K
    steps = -(-K // max_tk)                          # ragged fallback
    return max_tk, steps, steps * max_tk


# ----------------------------------------------------------------------------
# Pallas kernel 1: fused conv-as-matmul   out = relu(W @ patches + b)
#   W: (C_out, K) bf16, patches: (K, Ho*Wo) bf16, b: (C_out, 1) f32
#   -> out: (C_out, Ho*Wo) bf16   (spatial on the lane axis)
# ----------------------------------------------------------------------------
def _conv_mm_kernel(w_ref, p_ref, b_ref, o_ref):
    acc = jnp.dot(w_ref[...], p_ref[...], preferred_element_type=jnp.float32)
    o_ref[...] = jnp.maximum(acc + b_ref[...], 0.0).astype(o_ref.dtype)


def _conv_matmul(w, patches, b_col, vmem_limit):
    C_out, K = w.shape
    K2, N = patches.shape
    assert K == K2
    # All operands are tiny (< 0.4 MB): grid-less call, everything resident
    # in VMEM as a single block, no pipeline machinery.
    return pl.pallas_call(
        _conv_mm_kernel,
        out_shape=jax.ShapeDtypeStruct((C_out, N), jnp.bfloat16),
        compiler_params=pltpu.CompilerParams(vmem_limit_bytes=vmem_limit),
    )(w, patches, b_col)


# ----------------------------------------------------------------------------
# Pallas kernel 2: fused FC stack  fc3(relu(fc2(relu(fc1(x)))))
#   a:  (1, K) bf16           -- flattened conv3 activation (CHW order)
#   w1: (K, 512) bf16 (K-tiled stream), b1: (1, 512) f32
#   w2: (512, 256) bf16 resident,       b2: (1, 256) f32
#   w3: (256, 128) bf16 resident (zero-padded cols), b3: (1, 128) f32
#   -> out: (1, 128) f32  (first output_dim columns are the Q-values)
# ----------------------------------------------------------------------------
def _fc_stack_kernel(a_ref, w1_ref, b1_ref, w2_ref, b2_ref, w3_ref, b3_ref,
                     o_ref, acc_ref):
    k = pl.program_id(0)

    @pl.when(k == 0)
    def _():
        acc_ref[...] = jnp.zeros_like(acc_ref)

    acc_ref[...] += jnp.dot(a_ref[...], w1_ref[...],
                            preferred_element_type=jnp.float32)

    @pl.when(k == pl.num_programs(0) - 1)
    def _():
        h1 = jnp.maximum(acc_ref[...] + b1_ref[...], 0.0)          # (1, 512) f32
        # TODO(synk): nn.Dropout(0.1) is identity at inference; PyTorch
        # train-mode RNG masking is not reproduced here.
        h2 = jnp.dot(h1.astype(w2_ref.dtype), w2_ref[...],
                     preferred_element_type=jnp.float32) + b2_ref[...]
        h2 = jnp.maximum(h2, 0.0)                                   # (1, 256)
        h3 = jnp.dot(h2.astype(w3_ref.dtype), w3_ref[...],
                     preferred_element_type=jnp.float32) + b3_ref[...]
        o_ref[...] = h3.astype(o_ref.dtype)


def fc_stack(a, w1, b1, w2, b2, w3, b3, vmem_limit):
    M, K = a.shape
    Kw, N1 = w1.shape
    assert K == Kw and M == 1
    tk, nk, kp = _pick_fc1_tile(K, N1, jnp.dtype(w1.dtype).itemsize,
                                budget_bytes=vmem_limit // 2)
    if kp != K:  # ragged fallback: zero-pad the contraction (exact)
        a = jnp.pad(a, ((0, 0), (0, kp - K)))
        w1 = jnp.pad(w1, ((0, kp - K), (0, 0)))
    N2 = w2.shape[1]
    N3 = w3.shape[1]
    return pl.pallas_call(
        _fc_stack_kernel,
        out_shape=jax.ShapeDtypeStruct((M, N3), jnp.float32),
        grid_spec=pltpu.PrefetchScalarGridSpec(
            num_scalar_prefetch=0,
            grid=(nk,),
            in_specs=[
                pl.BlockSpec((M, tk), lambda k: (0, k)),
                pl.BlockSpec((tk, N1), lambda k: (k, 0)),
                pl.BlockSpec((1, N1), lambda k: (0, 0)),
                pl.BlockSpec((N1, N2), lambda k: (0, 0)),
                pl.BlockSpec((1, N2), lambda k: (0, 0)),
                pl.BlockSpec((N2, N3), lambda k: (0, 0)),
                pl.BlockSpec((1, N3), lambda k: (0, 0)),
            ],
            out_specs=pl.BlockSpec((M, N3), lambda k: (0, 0)),
            scratch_shapes=[pltpu.VMEM((M, N1), jnp.float32)],
        ),
        compiler_params=pltpu.CompilerParams(
            dimension_semantics=("arbitrary",),
            vmem_limit_bytes=vmem_limit),
    )(a, w1, b1, w2, b2, w3, b3)


# ----------------------------------------------------------------------------
# Wrapper glue: CHW im2col (static strided slicing, fused by XLA) and forward.
# ----------------------------------------------------------------------------
def im2col_chw(x_chw, kh, kw, stride):
    """Return patches of shape (C*kh*kw, Ho*Wo); row order (c, i, j) matches
    PyTorch's weight.reshape(C_out, C_in*kh*kw) column order."""
    C, H, W = x_chw.shape
    Ho = (H - kh) // stride + 1
    Wo = (W - kw) // stride + 1
    cols = []
    for i in range(kh):
        for j in range(kw):
            cols.append(x_chw[:, i:i + stride * Ho:stride,
                              j:j + stride * Wo:stride])
    p = jnp.stack(cols, axis=1)                  # (C, kh*kw, Ho, Wo)
    return p.reshape(C * kh * kw, Ho * Wo), Ho, Wo


def conv_relu(x_chw, w4, b_col, stride, vmem_limit):
    """w4: PyTorch layout (C_out, C_in, kh, kw), bf16. Returns (C_out, Ho, Wo)."""
    C_out, C_in, kh, kw = w4.shape
    patches, Ho, Wo = im2col_chw(x_chw, kh, kw, stride)
    wm = w4.reshape(C_out, C_in * kh * kw)       # free row-major reshape
    y = _conv_matmul(wm, patches, b_col, vmem_limit)
    return y.reshape(C_out, Ho, Wo)


def prepare_params(p, output_dim, n_pad=128):
    """One-time prep: bf16 weights, FC weights pre-transposed to (K, N), conv
    biases as (C_out, 1) columns, fc3 zero-padded to a lane-dense 128 cols."""
    prepped = {
        "conv1_w": p["conv1_w"].astype(jnp.bfloat16),
        "conv1_b": p["conv1_b"].reshape(-1, 1).astype(jnp.float32),
        "conv2_w": p["conv2_w"].astype(jnp.bfloat16),
        "conv2_b": p["conv2_b"].reshape(-1, 1).astype(jnp.float32),
        "conv3_w": p["conv3_w"].astype(jnp.bfloat16),
        "conv3_b": p["conv3_b"].reshape(-1, 1).astype(jnp.float32),
        # fc1's K order is (c, h, w): identical to the CHW flatten below.
        "fc1_w": p["fc1_w"].T.astype(jnp.bfloat16),          # (12544, 512)
        "fc1_b": p["fc1_b"].reshape(1, -1).astype(jnp.float32),
        "fc2_w": p["fc2_w"].T.astype(jnp.bfloat16),          # (512, 256)
        "fc2_b": p["fc2_b"].reshape(1, -1).astype(jnp.float32),
    }
    k3 = p["fc3_w"].shape[1]
    w3 = jnp.zeros((k3, n_pad), jnp.float32).at[:, :output_dim].set(p["fc3_w"].T)
    b3 = jnp.zeros((1, n_pad), jnp.float32).at[0, :output_dim].set(p["fc3_b"])
    prepped["fc3_w"] = w3.astype(jnp.bfloat16)               # (256, 128)
    prepped["fc3_b"] = b3
    return prepped


def dqn_forward(x_nchw, p, output_dim):
    vmem_limit = _vmem_limit_bytes()
    x = x_nchw.astype(jnp.float32) / 255.0
    x = x[0].astype(jnp.bfloat16)                 # (C=1, H, W), CHW

    x = conv_relu(x, p["conv1_w"], p["conv1_b"], 4, vmem_limit)
    x = conv_relu(x, p["conv2_w"], p["conv2_b"], 2, vmem_limit)
    x = conv_relu(x, p["conv3_w"], p["conv3_b"], 1, vmem_limit)

    # torch.flatten(x, 0) on (1, C, H, W) -> (C, H, W) order == free reshape.
    flat = x.reshape(1, -1)                       # (1, 12544) bf16
    out = fc_stack(flat, p["fc1_w"], p["fc1_b"], p["fc2_w"], p["fc2_b"],
                   p["fc3_w"], p["fc3_b"], vmem_limit)
    return out[0, :output_dim]                    # (output_dim,)


# Pure-JAX reference (independent path, f32 HIGHEST) for correctness checking.
def dqn_reference(x_nchw, params):
    x = x_nchw.astype(jnp.float32) / 255.0

    def conv(x, w, b, stride):
        y = jax.lax.conv_general_dilated(
            x, w, (stride, stride), "VALID",
            dimension_numbers=("NCHW", "OIHW", "NCHW"),
            precision=jax.lax.Precision.HIGHEST)
        return jax.nn.relu(y + b[None, :, None, None])

    x = conv(x, params["conv1_w"], params["conv1_b"], 4)
    x = conv(x, params["conv2_w"], params["conv2_b"], 2)
    x = conv(x, params["conv3_w"], params["conv3_b"], 1)
    f = x.reshape(-1)
    hp = jax.lax.Precision.HIGHEST
    h = jax.nn.relu(jnp.dot(f, params["fc1_w"].T, precision=hp) + params["fc1_b"])
    h = jax.nn.relu(jnp.dot(h, params["fc2_w"].T, precision=hp) + params["fc2_b"])
    return jnp.dot(h, params["fc3_w"].T, precision=hp) + params["fc3_b"]


if __name__ == "__main__":
    output_dim = 6
    key = jax.random.PRNGKey(0)
    ks = jax.random.split(key, 13)
    s = 0.02

    params = {
        "conv1_w": jax.random.normal(ks[0], (32, 1, 8, 8), jnp.float32) * s,
        "conv1_b": jax.random.normal(ks[1], (32,), jnp.float32) * s,
        "conv2_w": jax.random.normal(ks[2], (64, 32, 4, 4), jnp.float32) * s,
        "conv2_b": jax.random.normal(ks[3], (64,), jnp.float32) * s,
        "conv3_w": jax.random.normal(ks[4], (64, 64, 3, 3), jnp.float32) * s,
        "conv3_b": jax.random.normal(ks[5], (64,), jnp.float32) * s,
        "fc1_w": jax.random.normal(ks[6], (512, 12544), jnp.float32) * s,
        "fc1_b": jax.random.normal(ks[7], (512,), jnp.float32) * s,
        "fc2_w": jax.random.normal(ks[8], (256, 512), jnp.float32) * s,
        "fc2_b": jax.random.normal(ks[9], (256,), jnp.float32) * s,
        "fc3_w": jax.random.normal(ks[10], (output_dim, 256), jnp.float32) * s,
        "fc3_b": jax.random.normal(ks[11], (output_dim,), jnp.float32) * s,
    }

    # One-time parameter prep (pre-transpose, bf16 cast, padding).
    prepped = prepare_params(params, output_dim)
    forward = jax.jit(functools.partial(dqn_forward, output_dim=output_dim))

    # Input consistent with the module: fc1 in_features = 12544 = 64*14*14
    # -> (batch=1, C=1, 140, 140) raw image.
    x = jax.random.uniform(ks[12], (1, 1, 140, 140), jnp.float32, 0.0, 255.0)

    out = jax.block_until_ready(forward(x, prepped))
    ref = jax.block_until_ready(dqn_reference(x, params))

    assert out.shape == (output_dim,), out.shape
    err = float(jnp.max(jnp.abs(out - ref)))
    assert err < 1e-2, f"max abs diff vs reference too large: {err}"
    print("KERNEL_OK")
</pallas_src>

<mosaic_0001>
module attributes {stable_mosaic.version = 11 : i64} {
  func.func @_conv_mm_kernel(%arg0: memref<32x64xbf16, #tpu.memory_space<vmem>>, %arg1: memref<64x1156xbf16, #tpu.memory_space<vmem>>, %arg2: memref<32x1xf32, #tpu.memory_space<vmem>>, %arg3: memref<32x1156xbf16, #tpu.memory_space<vmem>>) attributes {dimension_semantics = [], scalar_prefetch = 0 : i64, scratch_operands = 0 : i64, tpu.core_type = #tpu.core_type<tc>} {
    %c0 = arith.constant 0 : index
    %c0_0 = arith.constant 0 : index
    %0 = vector.load %arg0[%c0, %c0_0] : memref<32x64xbf16, #tpu.memory_space<vmem>>, vector<32x64xbf16>
    %c0_1 = arith.constant 0 : index
    %c0_2 = arith.constant 0 : index
    %1 = vector.load %arg1[%c0_1, %c0_2] : memref<64x1156xbf16, #tpu.memory_space<vmem>>, vector<64x1156xbf16>
    %cst = arith.constant dense<0.000000e+00> : vector<32x1156xf32>
    %2 = tpu.matmul %0, %1, %cst {dimension_numbers = #tpu.dot_dimension_numbers<[1], [0], [0], [1], [0, 0, 1, 1], [], []>} : vector<32x64xbf16>, vector<64x1156xbf16>, vector<32x1156xf32> -> vector<32x1156xf32>
    %c0_3 = arith.constant 0 : index
    %c0_4 = arith.constant 0 : index
    %3 = vector.load %arg2[%c0_3, %c0_4] : memref<32x1xf32, #tpu.memory_space<vmem>>, vector<32x1xf32>
    %4 = vector.broadcast %3 : vector<32x1xf32> to vector<32x1156xf32>
    %5 = arith.addf %2, %4 : vector<32x1156xf32>
    %cst_5 = arith.constant 0.000000e+00 : f32
    %6 = vector.broadcast %cst_5 : f32 to vector<32x1156xf32>
    %7 = arith.maximumf %5, %6 : vector<32x1156xf32>
    %8 = arith.truncf %7 : vector<32x1156xf32> to vector<32x1156xbf16>
    %c0_6 = arith.constant 0 : index
    %c0_7 = arith.constant 0 : index
    %9 = vector.load %arg3[%c0_6, %c0_7] : memref<32x1156xbf16, #tpu.memory_space<vmem>>, vector<32x1156xbf16>
    tpu.vector_store %arg3[%c0_6, %c0_7], %8 {strides = array<i32>} : memref<32x1156xbf16, #tpu.memory_space<vmem>>, vector<32x1156xbf16>,
    return
  }
}

module attributes {stable_mosaic.version = 11 : i64} {
  func.func @_conv_mm_kernel(%arg0: memref<64x512xbf16, #tpu.memory_space<vmem>>, %arg1: memref<512x256xbf16, #tpu.memory_space<vmem>>, %arg2: memref<64x1xf32, #tpu.memory_space<vmem>>, %arg3: memref<64x256xbf16, #tpu.memory_space<vmem>>) attributes {dimension_semantics = [], scalar_prefetch = 0 : i64, scratch_operands = 0 : i64, tpu.core_type = #tpu.core_type<tc>} {
    %c0 = arith.constant 0 : index
    %c0_0 = arith.constant 0 : index
    %0 = vector.load %arg0[%c0, %c0_0] : memref<64x512xbf16, #tpu.memory_space<vmem>>, vector<64x512xbf16>
    %c0_1 = arith.constant 0 : index
    %c0_2 = arith.constant 0 : index
    %1 = vector.load %arg1[%c0_1, %c0_2] : memref<512x256xbf16, #tpu.memory_space<vmem>>, vector<512x256xbf16>
    %cst = arith.constant dense<0.000000e+00> : vector<64x256xf32>
    %2 = tpu.matmul %0, %1, %cst {dimension_numbers = #tpu.dot_dimension_numbers<[1], [0], [0], [1], [0, 0, 1, 1], [], []>} : vector<64x512xbf16>, vector<512x256xbf16>, vector<64x256xf32> -> vector<64x256xf32>
    %c0_3 = arith.constant 0 : index
    %c0_4 = arith.constant 0 : index
    %3 = vector.load %arg2[%c0_3, %c0_4] : memref<64x1xf32, #tpu.memory_space<vmem>>, vector<64x1xf32>
    %4 = vector.broadcast %3 : vector<64x1xf32> to vector<64x256xf32>
    %5 = arith.addf %2, %4 : vector<64x256xf32>
    %cst_5 = arith.constant 0.000000e+00 : f32
    %6 = vector.broadcast %cst_5 : f32 to vector<64x256xf32>
    %7 = arith.maximumf %5, %6 : vector<64x256xf32>
    %8 = arith.truncf %7 : vector<64x256xf32> to vector<64x256xbf16>
    %c0_6 = arith.constant 0 : index
    %c0_7 = arith.constant 0 : index
    %9 = vector.load %arg3[%c0_6, %c0_7] : memref<64x256xbf16, #tpu.memory_space<vmem>>, vector<64x256xbf16>
    tpu.vector_store %arg3[%c0_6, %c0_7], %8 {strides = array<i32>} : memref<64x256xbf16, #tpu.memory_space<vmem>>, vector<64x256xbf16>,
    return
  }
}

module attributes {stable_mosaic.version = 11 : i64} {
  func.func @_conv_mm_kernel(%arg0: memref<64x576xbf16, #tpu.memory_space<vmem>>, %arg1: memref<576x196xbf16, #tpu.memory_space<vmem>>, %arg2: memref<64x1xf32, #tpu.memory_space<vmem>>, %arg3: memref<64x196xbf16, #tpu.memory_space<vmem>>) attributes {dimension_semantics = [], scalar_prefetch = 0 : i64, scratch_operands = 0 : i64, tpu.core_type = #tpu.core_type<tc>} {
    %c0 = arith.constant 0 : index
    %c0_0 = arith.constant 0 : index
    %0 = vector.load %arg0[%c0, %c0_0] : memref<64x576xbf16, #tpu.memory_space<vmem>>, vector<64x576xbf16>
    %c0_1 = arith.constant 0 : index
    %c0_2 = arith.constant 0 : index
    %1 = vector.load %arg1[%c0_1, %c0_2] : memref<576x196xbf16, #tpu.memory_space<vmem>>, vector<576x196xbf16>
    %cst = arith.constant dense<0.000000e+00> : vector<64x196xf32>
    %2 = tpu.matmul %0, %1, %cst {dimension_numbers = #tpu.dot_dimension_numbers<[1], [0], [0], [1], [0, 0, 1, 1], [], []>} : vector<64x576xbf16>, vector<576x196xbf16>, vector<64x196xf32> -> vector<64x196xf32>
    %c0_3 = arith.constant 0 : index
    %c0_4 = arith.constant 0 : index
    %3 = vector.load %arg2[%c0_3, %c0_4] : memref<64x1xf32, #tpu.memory_space<vmem>>, vector<64x1xf32>
    %4 = vector.broadcast %3 : vector<64x1xf32> to vector<64x196xf32>
    %5 = arith.addf %2, %4 : vector<64x196xf32>
    %cst_5 = arith.constant 0.000000e+00 : f32
    %6 = vector.broadcast %cst_5 : f32 to vector<64x196xf32>
    %7 = arith.maximumf %5, %6 : vector<64x196xf32>
    %8 = arith.truncf %7 : vector<64x196xf32> to vector<64x196xbf16>
    %c0_6 = arith.constant 0 : index
    %c0_7 = arith.constant 0 : index
    %9 = vector.load %arg3[%c0_6, %c0_7] : memref<64x196xbf16, #tpu.memory_space<vmem>>, vector<64x196xbf16>
    tpu.vector_store %arg3[%c0_6, %c0_7], %8 {strides = array<i32>} : memref<64x196xbf16, #tpu.memory_space<vmem>>, vector<64x196xbf16>,
    return
  }
}

module attributes {stable_mosaic.version = 11 : i64} {
  func.func @_fc_stack_kernel(%arg0: i32, %arg1: memref<1x6272xbf16, #tpu.memory_space<vmem>>, %arg2: memref<6272x512xbf16, #tpu.memory_space<vmem>>, %arg3: memref<1x512xf32, #tpu.memory_space<vmem>>, %arg4: memref<512x256xbf16, #tpu.memory_space<vmem>>, %arg5: memref<1x256xf32, #tpu.memory_space<vmem>>, %arg6: memref<256x128xbf16, #tpu.memory_space<vmem>>, %arg7: memref<1x128xf32, #tpu.memory_space<vmem>>, %arg8: memref<1x128xf32, #tpu.memory_space<vmem>>, %arg9: memref<1x512xf32, #tpu.memory_space<vmem>>) attributes {dimension_semantics = [#tpu.dimension_semantics<arbitrary>], iteration_bounds = array<i64: 2>, scalar_prefetch = 0 : i64, scratch_operands = 1 : i64, tpu.core_type = #tpu.core_type<tc>, window_params = [{transform_indices = @transform_0, window_bounds = array<i64: 1, 6272>}, {transform_indices = @transform_1, window_bounds = array<i64: 6272, 512>}, {pipeline_mode = #tpu.pipeline_mode<synchronous>, transform_indices = @transform_2, window_bounds = array<i64: 1, 512>}, {pipeline_mode = #tpu.pipeline_mode<synchronous>, transform_indices = @transform_3, window_bounds = array<i64: 512, 256>}, {pipeline_mode = #tpu.pipeline_mode<synchronous>, transform_indices = @transform_4, window_bounds = array<i64: 1, 256>}, {pipeline_mode = #tpu.pipeline_mode<synchronous>, transform_indices = @transform_5, window_bounds = array<i64: 256, 128>}, {pipeline_mode = #tpu.pipeline_mode<synchronous>, transform_indices = @transform_6, window_bounds = array<i64: 1, 128>}, {pipeline_mode = #tpu.pipeline_mode<synchronous>, transform_indices = @transform_7, window_bounds = array<i64: 1, 128>}]} {
    %c0_i32 = arith.constant 0 : i32
    %0 = arith.cmpi eq, %arg0, %c0_i32 : i32
    %1 = arith.extui %0 : i1 to i32
    %c0_i32_0 = arith.constant 0 : i32
    %2 = arith.cmpi ne, %1, %c0_i32_0 : i32
    scf.if %2 {
      %cst_9 = arith.constant 0.000000e+00 : f32
      %12 = vector.broadcast %cst_9 : f32 to vector<1x512xf32>
      %c0_10 = arith.constant 0 : index
      %c0_11 = arith.constant 0 : index
      %13 = vector.load %arg9[%c0_10, %c0_11] : memref<1x512xf32, #tpu.memory_space<vmem>>, vector<1x512xf32>
      tpu.vector_store %arg9[%c0_10, %c0_11], %12 {strides = array<i32>} : memref<1x512xf32, #tpu.memory_space<vmem>>, vector<1x512xf32>,
    } else {
    }
    %c0 = arith.constant 0 : index
    %c0_1 = arith.constant 0 : index
    %3 = vector.load %arg9[%c0, %c0_1] : memref<1x512xf32, #tpu.memory_space<vmem>>, vector<1x512xf32>
    %c0_2 = arith.constant 0 : index
    %c0_3 = arith.constant 0 : index
    %4 = vector.load %arg1[%c0_2, %c0_3] : memref<1x6272xbf16, #tpu.memory_space<vmem>>, vector<1x6272xbf16>
    %c0_4 = arith.constant 0 : index
    %c0_5 = arith.constant 0 : index
    %5 = vector.load %arg2[%c0_4, %c0_5] : memref<6272x512xbf16, #tpu.memory_space<vmem>>, vector<6272x512xbf16>
    %cst = arith.constant dense<0.000000e+00> : vector<1x512xf32>
    %6 = tpu.matmul %4, %5, %cst {dimension_numbers = #tpu.dot_dimension_numbers<[1], [0], [0], [1], [0, 0, 1, 1], [], []>} : vector<1x6272xbf16>, vector<6272x512xbf16>, vector<1x512xf32> -> vector<1x512xf32>
    %7 = arith.addf %3, %6 : vector<1x512xf32>
    %c0_6 = arith.constant 0 : index
    %c0_7 = arith.constant 0 : index
    %8 = vector.load %arg9[%c0_6, %c0_7] : memref<1x512xf32, #tpu.memory_space<vmem>>, vector<1x512xf32>
    tpu.vector_store %arg9[%c0_6, %c0_7], %7 {strides = array<i32>} : memref<1x512xf32, #tpu.memory_space<vmem>>, vector<1x512xf32>,
    %c1_i32 = arith.constant 1 : i32
    %9 = arith.cmpi eq, %arg0, %c1_i32 : i32
    %10 = arith.extui %9 : i1 to i32
    %c0_i32_8 = arith.constant 0 : i32
    %11 = arith.cmpi ne, %10, %c0_i32_8 : i32
    scf.if %11 {
      %c0_9 = arith.constant 0 : index
      %c0_10 = arith.constant 0 : index
      %12 = vector.load %arg9[%c0_9, %c0_10] : memref<1x512xf32, #tpu.memory_space<vmem>>, vector<1x512xf32>
      %c0_11 = arith.constant 0 : index
      %c0_12 = arith.constant 0 : index
      %13 = vector.load %arg3[%c0_11, %c0_12] : memref<1x512xf32, #tpu.memory_space<vmem>>, vector<1x512xf32>
      %14 = arith.addf %12, %13 : vector<1x512xf32>
      %cst_13 = arith.constant 0.000000e+00 : f32
      %15 = vector.broadcast %cst_13 : f32 to vector<1x512xf32>
      %16 = arith.maximumf %14, %15 : vector<1x512xf32>
      %17 = arith.truncf %16 : vector<1x512xf32> to vector<1x512xbf16>
      %c0_14 = arith.constant 0 : index
      %c0_15 = arith.constant 0 : index
      %18 = vector.load %arg4[%c0_14, %c0_15] : memref<512x256xbf16, #tpu.memory_space<vmem>>, vector<512x256xbf16>
      %cst_16 = arith.constant dense<0.000000e+00> : vector<1x256xf32>
      %19 = tpu.matmul %17, %18, %cst_16 {dimension_numbers = #tpu.dot_dimension_numbers<[1], [0], [0], [1], [0, 0, 1, 1], [], []>} : vector<1x512xbf16>, vector<512x256xbf16>, vector<1x256xf32> -> vector<1x256xf32>
      %c0_17 = arith.constant 0 : index
      %c0_18 = arith.constant 0 : index
      %20 = vector.load %arg5[%c0_17, %c0_18] : memref<1x256xf32, #tpu.memory_space<vmem>>, vector<1x256xf32>
      %21 = arith.addf %19, %20 : vector<1x256xf32>
      %cst_19 = arith.constant 0.000000e+00 : f32
      %22 = vector.broadcast %cst_19 : f32 to vector<1x256xf32>
      %23 = arith.maximumf %21, %22 : vector<1x256xf32>
      %24 = arith.truncf %23 : vector<1x256xf32> to vector<1x256xbf16>
      %c0_20 = arith.constant 0 : index
      %c0_21 = arith.constant 0 : index
      %25 = vector.load %arg6[%c0_20, %c0_21] : memref<256x128xbf16, #tpu.memory_space<vmem>>, vector<256x128xbf16>
      %cst_22 = arith.constant dense<0.000000e+00> : vector<1x128xf32>
      %26 = tpu.matmul %24, %25, %cst_22 {dimension_numbers = #tpu.dot_dimension_numbers<[1], [0], [0], [1], [0, 0, 1, 1], [], []>} : vector<1x256xbf16>, vector<256x128xbf16>, vector<1x128xf32> -> vector<1x128xf32>
      %c0_23 = arith.constant 0 : index
      %c0_24 = arith.constant 0 : index
      %27 = vector.load %arg7[%c0_23, %c0_24] : memref<1x128xf32, #tpu.memory_space<vmem>>, vector<1x128xf32>
      %28 = arith.addf %26, %27 : vector<1x128xf32>
      %c0_25 = arith.constant 0 : index
      %c0_26 = arith.constant 0 : index
      %29 = vector.load %arg8[%c0_25, %c0_26] : memref<1x128xf32, #tpu.memory_space<vmem>>, vector<1x128xf32>
      tpu.vector_store %arg8[%c0_25, %c0_26], %28 {strides = array<i32>} : memref<1x128xf32, #tpu.memory_space<vmem>>, vector<1x128xf32>,
    } else {
    }
    return
  }
  func.func @transform_0(%arg0: i32) -> (i32, i32) {
    %c0_i32 = arith.constant 0 : i32
    %c0_i32_0 = arith.constant 0 : i32
    return %c0_i32, %arg0 : i32, i32
  }
  func.func @transform_1(%arg0: i32) -> (i32, i32) {
    %c0_i32 = arith.constant 0 : i32
    %c0_i32_0 = arith.constant 0 : i32
    return %arg0, %c0_i32 : i32, i32
  }
  func.func @transform_2(%arg0: i32) -> (i32, i32) {
    %c0_i32 = arith.constant 0 : i32
    %c0_i32_0 = arith.constant 0 : i32
    %c0_i32_1 = arith.constant 0 : i32
    return %c0_i32, %c0_i32_0 : i32, i32
  }
  func.func @transform_3(%arg0: i32) -> (i32, i32) {
    %c0_i32 = arith.constant 0 : i32
    %c0_i32_0 = arith.constant 0 : i32
    %c0_i32_1 = arith.constant 0 : i32
    return %c0_i32, %c0_i32_0 : i32, i32
  }
  func.func @transform_4(%arg0: i32) -> (i32, i32) {
    %c0_i32 = arith.constant 0 : i32
    %c0_i32_0 = arith.constant 0 : i32
    %c0_i32_1 = arith.constant 0 : i32
    return %c0_i32, %c0_i32_0 : i32, i32
  }
  func.func @transform_5(%arg0: i32) -> (i32, i32) {
    %c0_i32 = arith.constant 0 : i32
    %c0_i32_0 = arith.constant 0 : i32
    %c0_i32_1 = arith.constant 0 : i32
    return %c0_i32, %c0_i32_0 : i32, i32
  }
  func.func @transform_6(%arg0: i32) -> (i32, i32) {
    %c0_i32 = arith.constant 0 : i32
    %c0_i32_0 = arith.constant 0 : i32
    %c0_i32_1 = arith.constant 0 : i32
    return %c0_i32, %c0_i32_0 : i32, i32
  }
  func.func @transform_7(%arg0: i32) -> (i32, i32) {
    %c0_i32 = arith.constant 0 : i32
    %c0_i32_0 = arith.constant 0 : i32
    %c0_i32_1 = arith.constant 0 : i32
    return %c0_i32, %c0_i32_0 : i32, i32
  }
}

</mosaic_0001>

<bundles_post_ra>
// kernel: dqn_forward.4
= control target key start
LH: loop header
LB: loop body
LE: loop exit
PB: predicated region body
PF: predicated region fallthrough
CT: control target
= control target key end

     0   :  { %v917_v1 = vmov 0   ;;  %vm293_vm0 = vcmask 523264   ;;  %vm729_vm1 = vcmask 1043456   ;;  %vm730_vm2 = vcmask 31748   ;;  %s1232_s1 = inlined_call_operand.vmem [shape: bf16[64,1156], index: 1, kind: input, shape index: {}]   ;;  %s1233_s0 = inlined_call_operand.vmem [shape: bf16[32,64], index: 0, kind: input, shape index: {}]   ;;  %s1234_s2 = inlined_call_operand.vmem [shape: f32[32,1], index: 2, kind: input, shape index: {}]   ;;  %s1235_s3 = inlined_call_operand.vmem [shape: bf16[32,1156], index: 3, kind: output, shape index: {}]  }
   0x1   :  { %v855_v0 = vld [vmem:[%s1232_s1 + $0xf4] ss:$40 sps:$4 sm:$0xff]   ;;  %332 = vmatprep.mubr.bf16.mxu0 %v917_v1  ;;  %385 = vmatprep.mubr.bf16.mxu1 %v917_v1  ;;  %v859_v3 = vld [vmem:[%s1232_s1 + $0xf0] ss:$40 sps:$4 sm:$0xff]   ;;  %v861_v5 = vld [vmem:[%s1232_s1 + $0xa4] ss:$40 sps:$4 sm:$0xff]  }
   0x2   :  { %v857_v2 = vld [vmem:[%s1232_s1 + $0xfc] ss:$40 sps:$4 sm:$0xff]   ;;  %853 = vset.pattern.permute.xlu0 %v917_v1  ;;  %854 = vset.pattern.permute.xlu1 %v917_v1  ;;  %v860_v4 = vld [vmem:[%s1232_s1 + $0xf8] ss:$40 sps:$4 sm:$0xff]   ;;  %v863_v6 = vld [vmem:[%s1232_s1 + $0xac] ss:$40 sps:$4 sm:$0xff]  }
   0x3   :  { %308 = vmatprep.subr.bf16.mxu0 %v855_v0  ;;  %361 = vmatprep.subr.bf16.mxu1 %v857_v2  ;;  %v865_v7 = vld [vmem:[%s1232_s1 + $0xa0] ss:$40 sps:$4 sm:$0xff]   ;;  %v867_v9 = vld [vmem:[%s1232_s1 + $0x54] ss:$40 sps:$4 sm:$0xff]   ;;  %v871_v11 = vld [vmem:[%s1232_s1 + $0x50] ss:$40 sps:$4 sm:$0xff]  }
   0x4   :  { %309 = vmatpush1.bf16.msra.mxu0 %v859_v3  ;;  %362 = vmatpush1.bf16.msra.mxu1 %v860_v4  ;;  %v866_v8 = vld [vmem:[%s1232_s1 + $0xa8] ss:$40 sps:$4 sm:$0xff]   ;;  %v869_v10 = vld [vmem:[%s1232_s1 + $0x5c] ss:$40 sps:$4 sm:$0xff]   ;;  %v872_v12 = vld [vmem:[%s1232_s1 + $0x58] ss:$40 sps:$4 sm:$0xff]  }
   0x5   :  { %310 = vmatprep.subr.bf16.mxu0 %v861_v5  ;;  %363 = vmatprep.subr.bf16.mxu1 %v863_v6  ;;  %v873_v13 = vld [vmem:[%s1232_s1 + $0x4] ss:$40 sps:$4 sm:$0xff]   ;;  %v877_v15 = vld [vmem:[%s1232_s1] ss:$40 sps:$4 sm:$0xff]   ;;  %v888_v22 = vld [vmem:[%s1232_s1 + $0xb4] ss:$40 sps:$4 sm:$0xff]  }
   0x6   :  { %v875_v14 = vld [vmem:[%s1232_s1 + $0xc] ss:$40 sps:$4 sm:$0xff]   ;;  %v878_v16 = vld [vmem:[%s1232_s1 + $0x8] ss:$40 sps:$4 sm:$0xff]   ;;  %v999_v19 = vld [vmem:[%s1233_s0] sm:$0xff]  }
   0x7   :  { %v882_v17 = vld [vmem:[%s1232_s1 + $0x104] ss:$40 sps:$4 sm:$0xff]   ;;  %v880_v20 = vld [vmem:[%s1232_s1 + $0x100] ss:$40 sps:$4 sm:$0xff]   ;;  %v886_v24 = vld [vmem:[%s1232_s1 + $0xb0] ss:$40 sps:$4 sm:$0xff]  }
   0x8   :  { %311 = vmatpush1.bf16.msra.mxu0 %v865_v7  ;;  %364 = vmatpush1.bf16.msra.mxu1 %v866_v8  ;;  %v885_v18 = vld [vmem:[%s1232_s1 + $0x10c] ss:$40 sps:$4 sm:$0xff]   ;;  %v883_v21 = vld [vmem:[%s1232_s1 + $0x108] ss:$40 sps:$4 sm:$0xff]   ;;  %v891_v23 = vld [vmem:[%s1232_s1 + $0xbc] ss:$40 sps:$4 sm:$0xff]  }
   0x9   :  { %312 = vmatprep.subr.bf16.mxu0 %v867_v9  ;;  %365 = vmatprep.subr.bf16.mxu1 %v869_v10  ;;  %v889_v25 = vld [vmem:[%s1232_s1 + $0xb8] ss:$40 sps:$4 sm:$0xff]   ;;  %v895_v26 = vld [vmem:[%s1232_s1 + $0x64] ss:$40 sps:$4 sm:$0xff]   ;;  %v896_v30 = vld [vmem:[%s1232_s1 + $0x68] ss:$40 sps:$4 sm:$0xff]  }
   0xa   :  { %v898_v27 = vld [vmem:[%s1232_s1 + $0x6c] ss:$40 sps:$4 sm:$0xff]   ;;  %v893_v29 = vld [vmem:[%s1232_s1 + $0x60] ss:$40 sps:$4 sm:$0xff]   ;;  %v904_v32 = vld [vmem:[%s1232_s1 + $0x1c] ss:$40 sps:$4 sm:$0xff]  }
   0xb   :  { %v1034_v28 = vld [vmem:[%s1233_s0 + $0x8] sm:$0xff]   ;;  %v901_v31 = vld [vmem:[%s1232_s1 + $0x14] ss:$40 sps:$4 sm:$0xff]   ;;  %v899_v33 = vld [vmem:[%s1232_s1 + $0x10] ss:$40 sps:$4 sm:$0xff]  }
   0xc   :  { %313 = vmatpush1.bf16.msra.mxu0 %v871_v11  ;;  %366 = vmatpush1.bf16.msra.mxu1 %v872_v12  ;;  %v902_v34 = vld [vmem:[%s1232_s1 + $0x18] ss:$40 sps:$4 sm:$0xff]   ;;  %v907_v36 = vld [vmem:[%s1232_s1 + $0x114] ss:$40 sps:$4 sm:$0xff]   ;;  %v910_v39 = vld [vmem:[%s1232_s1 + $0xc4] ss:$40 sps:$4 sm:$0xff]  }
   0xd   :  { %314 = vmatprep.subr.bf16.mxu0 %v873_v13  ;;  %367 = vmatprep.subr.bf16.mxu1 %v875_v14  ;;  %v59_v35 = vld [vmem:[%s1234_s2] sm:$0xff]  ;;  %v61_v37 = vld [vmem:[%s1234_s2 + $0x10] sm:$0xff]  ;;  %v60_v41 = vld [vmem:[%s1234_s2 + $0x8] sm:$0xff] }
   0xe   :  { %65 = vperm.xlu0 %853, %v59_v35   ;;  %75 = vperm.xlu1 %854, %v61_v37   ;;  %v905_v38 = vld [vmem:[%s1232_s1 + $0x110] ss:$40 sps:$4 sm:$0xff]   ;;  %v908_v40 = vld [vmem:[%s1232_s1 + $0xc0] ss:$40 sps:$4 sm:$0xff]   ;;  %v913_v43 = vld [vmem:[%s1232_s1 + $0x74] ss:$40 sps:$4 sm:$0xff]  }
   0xf   :  { %v62_v42 = vld [vmem:[%s1234_s2 + $0x18] sm:$0xff]  ;;  %v916_v45 = vld [vmem:[%s1232_s1 + $0x24] ss:$40 sps:$4 sm:$0xff]   ;;  %v914_v46 = vld [vmem:[%s1232_s1 + $0x20] ss:$40 sps:$4 sm:$0xff]  }
  0x10   :  { %315 = vmatpush1.bf16.msra.mxu0 %v877_v15  ;;  %368 = vmatpush1.bf16.msra.mxu1 %v878_v16  ;;  %v911_v44 = vld [vmem:[%s1232_s1 + $0x70] ss:$40 sps:$4 sm:$0xff]   ;;  %vm1204_vm3 = vmor %vm730_vm2, %vm729_vm1 }
  0x11   :  { %414 = vmatprep.subr.bf16.mxu0 %v882_v17  ;;  %467 = vmatprep.subr.bf16.mxu1 %v885_v18 }
  0x12   :  { %70 = vperm.xlu0 %853, %v60_v41   ;;  %80 = vperm.xlu1 %854, %v62_v42  }
  0x13   :  { %794 = vmatmul.mubr.msk.bf16.vlgmr.msra.gmra.mxu0 %vm293_vm0, %v999_v19  ;;  %796 = vmatmul.mubr.msk.bf16.vlgmr.msra.gmra.mxu1 %vm293_vm0, %v999_v19 }
  0x14   :  { %415 = vmatpush1.bf16.msra.mxu0 %v880_v20  ;;  %468 = vmatpush1.bf16.msra.mxu1 %v883_v21 }
  0x15   :  { %416 = vmatprep.subr.bf16.mxu0 %v888_v22  ;;  %469 = vmatprep.subr.bf16.mxu1 %v891_v23 }
  0x16   :  { %342 = vmatprep.mubr.bf16.mxu0 %v917_v1  ;;  %395 = vmatprep.mubr.bf16.mxu1 %v917_v1 }
  0x18   :  { %417 = vmatpush1.bf16.msra.mxu0 %v886_v24  ;;  %470 = vmatpush1.bf16.msra.mxu1 %v889_v25 }
  0x19   :  { %418 = vmatprep.subr.bf16.mxu0 %v895_v26  ;;  %471 = vmatprep.subr.bf16.mxu1 %v898_v27 }
  0x1b   :  { %795 = vmatmul.mubr.msk.bf16.gmra.mxu0 %vm293_vm0, %v1034_v28  ;;  %797 = vmatmul.mubr.msk.bf16.gmra.mxu1 %vm293_vm0, %v1034_v28 }
  0x1c   :  { %419 = vmatpush1.bf16.msra.mxu0 %v893_v29  ;;  %472 = vmatpush1.bf16.msra.mxu1 %v896_v30 }
  0x1d   :  { %420 = vmatprep.subr.bf16.mxu0 %v901_v31  ;;  %473 = vmatprep.subr.bf16.mxu1 %v904_v32 }
  0x1e   :  { %438 = vmatprep.mubr.bf16.mxu0 %v917_v1  ;;  %491 = vmatprep.mubr.bf16.mxu1 %v917_v1 }
  0x20   :  { %421 = vmatpush1.bf16.msra.mxu0 %v899_v33  ;;  %474 = vmatpush1.bf16.msra.mxu1 %v902_v34 }
  0x21   :  { %520 = vmatprep.subr.bf16.mxu0 %v907_v36  ;;  %844 = vmatprep.subr.bf16.mxu1 %v907_v36 }
  0x23   :  { %798 = vmatmul.mubr.msk.bf16.vlgmr.msra.gmra.mxu0 %vm293_vm0, %v999_v19  ;;  %800 = vmatmul.mubr.msk.bf16.vlgmr.msra.gmra.mxu1 %vm293_vm0, %v999_v19 }
  0x24   :  { %521 = vmatpush1.bf16.msra.mxu0 %v905_v38  ;;  %848 = vmatpush1.bf16.msra.mxu1 %v905_v38 }
  0x25   :  { %522 = vmatprep.subr.bf16.mxu0 %v910_v39  ;;  %845 = vmatprep.subr.bf16.mxu1 %v910_v39 }
  0x26   :  { %448 = vmatprep.mubr.bf16.mxu0 %v917_v1  ;;  %501 = vmatprep.mubr.bf16.mxu1 %v917_v1 }
  0x28   :  { %523 = vmatpush1.bf16.msra.mxu0 %v908_v40  ;;  %849 = vmatpush1.bf16.msra.mxu1 %v908_v40 }
  0x29   :  { %524 = vmatprep.subr.bf16.mxu0 %v913_v43  ;;  %846 = vmatprep.subr.bf16.mxu1 %v913_v43 }
  0x2b   :  { %799 = vmatmul.mubr.msk.bf16.gmra.mxu0 %vm293_vm0, %v1034_v28  ;;  %801 = vmatmul.mubr.msk.bf16.gmra.mxu1 %vm293_vm0, %v1034_v28 }
  0x2c   :  { %525 = vmatpush1.bf16.msra.mxu0 %v911_v44  ;;  %850 = vmatpush1.bf16.msra.mxu1 %v911_v44 }
  0x2d   :  { %526 = vmatprep.subr.bf16.mxu0 %v916_v45  ;;  %847 = vmatprep.subr.bf16.mxu1 %v916_v45 }
  0x2e   :  { %544 = vmatprep.mubr.bf16.mxu0 %v917_v1  ;;  %554 = vmatprep.mubr.bf16.mxu1 %v917_v1 }
  0x30   :  { %527 = vmatpush1.bf16.msra.mxu0 %v914_v46  ;;  %851 = vmatpush1.bf16.msra.mxu1 %v914_v46 }
  0x33   :  { %802 = vmatmul.mubr.msk.bf16.vlgmr.msra.gmra.mxu0 %vm293_vm0, %v999_v19  ;;  %803 = vmatmul.mubr.msk.bf16.vlgmr.msra.gmra.mxu1 %vm293_vm0, %v1034_v28 }
  0x89   :  { %v1112_v47 = vpop.permute.xlu0 %65  ;;  %v1120_v63 = vpop.permute.xlu1 %75 }
  0x8d   :  { %v1118_v56 = vpop.permute.xlu0 %70  ;;  %v1136_v20 = vpop.permute.xlu1 %80 }
  0xd3   :  { %v334_v48 = vpop.f32.mrf.mxu0  ;;  %v387_v49 = vpop.f32.mrf.mxu1 }
  0xd4   :  { %v335_v50 = vadd.f32 %v334_v48, %v1112_v47  ;;  %v388_v51 = vadd.f32 %v387_v49, %v1112_v47 }
  0xd5   :  { %v336_v52 = vpop.f32.mrf.mxu0  ;;  %v389_v53 = vpop.f32.mrf.mxu1 }
  0xd6   :  { %v337_v54 = vadd.f32 %v336_v52, %v1112_v47  ;;  %v390_v55 = vadd.f32 %v389_v53, %v1112_v47  ;;  %v565_v59 = vmax.f32 %v335_v50, 0.0  ;;  %v567_v60 = vmax.f32 %v388_v51, 0.0 }
  0xd7   :  { %v338_v57 = vpop.f32.mrf.mxu0  ;;  %v391_v58 = vpop.f32.mrf.mxu1 }
  0xd8   :  { %v566_v61 = vmax.f32 %v337_v54, 0.0  ;;  %v568_v62 = vmax.f32 %v390_v55, 0.0  ;;  %v339_v0 = vadd.f32 %v338_v57, %v1118_v56  ;;  %v392_v1 = vadd.f32 %v391_v58, %v1118_v56 }
  0xd9   :  { %v340_v2 = vpop.f32.mrf.mxu0  ;;  %v393_v3 = vpop.f32.mrf.mxu1 }
  0xda   :  { %v824_v4 = vpack.c.bf16 %v566_v61, %v565_v59  ;;  %v825_v5 = vpack.c.bf16 %v568_v62, %v567_v60  ;;  %v341_v6 = vadd.f32 %v340_v2, %v1118_v56  ;;  %v394_v7 = vadd.f32 %v393_v3, %v1118_v56 }
  0xdb   :  { %v344_v8 = vpop.f32.mrf.mxu0  ;;  %v397_v9 = vpop.f32.mrf.mxu1  ;;  %v575_v12 = vmax.f32 %v339_v0, 0.0  ;;  %v577_v13 = vmax.f32 %v392_v1, 0.0 }
  0xdc   :  { %725 = vst [vmem:[%s1235_s3] sm:$0xff] %v824_v4  ;;  %726 = vst [vmem:[%s1235_s3 + $0x8] sm:$0xff] %v825_v5  ;;  %v345_v10 = vadd.f32 %v344_v8, %v1120_v63  ;;  %v398_v11 = vadd.f32 %v397_v9, %v1120_v63  ;;  %v576_v14 = vmax.f32 %v341_v6, 0.0  ;;  %v578_v15 = vmax.f32 %v394_v7, 0.0 }
  0xdd   :  { %v346_v16 = vpop.f32.mrf.mxu0  ;;  %v399_v17 = vpop.f32.mrf.mxu1 }
  0xde   :  { %v347_v18 = vadd.f32 %v346_v16, %v1120_v63  ;;  %v400_v19 = vadd.f32 %v399_v17, %v1120_v63  ;;  %v829_v21 = vpack.c.bf16 %v576_v14, %v575_v12  ;;  %v830_v22 = vpack.c.bf16 %v578_v15, %v577_v13 }
  0xdf   :  { %v348_v23 = vpop.f32.mrf.mxu0  ;;  %v401_v24 = vpop.f32.mrf.mxu1  ;;  %v585_v25 = vmax.f32 %v345_v10, 0.0  ;;  %v587_v26 = vmax.f32 %v398_v11, 0.0 }
  0xe0   :  { %v586_v27 = vmax.f32 %v347_v18, 0.0  ;;  %v588_v28 = vmax.f32 %v400_v19, 0.0  ;;  %733 = vst [vmem:[%s1235_s3 + $0x28] sm:$0xff] %v829_v21  ;;  %734 = vst [vmem:[%s1235_s3 + $0x30] sm:$0xff] %v830_v22  ;;  %v349_v29 = vadd.f32 %v348_v23, %v1136_v20  ;;  %v402_v30 = vadd.f32 %v401_v24, %v1136_v20 }
  0xe1   :  { %v350_v31 = vpop.f32.mrf.mxu0  ;;  %v403_v32 = vpop.f32.mrf.mxu1 }
  0xe2   :  { %v834_v33 = vpack.c.bf16 %v586_v27, %v585_v25  ;;  %v835_v34 = vpack.c.bf16 %v588_v28, %v587_v26  ;;  %v351_v35 = vadd.f32 %v350_v31, %v1136_v20  ;;  %v404_v36 = vadd.f32 %v403_v32, %v1136_v20 }
  0xe3   :  { %v440_v37 = vpop.f32.mrf.mxu0  ;;  %v493_v38 = vpop.f32.mrf.mxu1  ;;  %v595_v41 = vmax.f32 %v349_v29, 0.0  ;;  %v597_v42 = vmax.f32 %v402_v30, 0.0 }
  0xe4   :  { %738 = vst [vmem:[%s1235_s3 + $0x50] sm:$0xff] %v834_v33  ;;  %739 = vst [vmem:[%s1235_s3 + $0x58] sm:$0xff] %v835_v34  ;;  %v441_v39 = vadd.f32 %v440_v37, %v1112_v47  ;;  %v494_v40 = vadd.f32 %v493_v38, %v1112_v47  ;;  %v596_v43 = vmax.f32 %v351_v35, 0.0  ;;  %v598_v44 = vmax.f32 %v404_v36, 0.0 }
  0xe5   :  { %v442_v45 = vpop.f32.mrf.mxu0  ;;  %v495_v46 = vpop.f32.mrf.mxu1 }
  0xe6   :  { %v443_v48 = vadd.f32 %v442_v45, %v1112_v47  ;;  %v496_v49 = vadd.f32 %v495_v46, %v1112_v47  ;;  %v839_v50 = vpack.c.bf16 %v596_v43, %v595_v41  ;;  %v840_v51 = vpack.c.bf16 %v598_v44, %v597_v42 }
  0xe7   :  { %v444_v52 = vpop.f32.mrf.mxu0  ;;  %v497_v53 = vpop.f32.mrf.mxu1  ;;  %v569_v54 = vmax.f32 %v441_v39, 0.0  ;;  %v571_v55 = vmax.f32 %v494_v40, 0.0 }
  0xe8   :  { %v570_v57 = vmax.f32 %v443_v48, 0.0  ;;  %v572_v58 = vmax.f32 %v496_v49, 0.0  ;;  %743 = vst [vmem:[%s1235_s3 + $0x78] sm:$0xff] %v839_v50  ;;  %744 = vst [vmem:[%s1235_s3 + $0x80] sm:$0xff] %v840_v51  ;;  %v445_v59 = vadd.f32 %v444_v52, %v1118_v56  ;;  %v498_v60 = vadd.f32 %v497_v53, %v1118_v56 }
  0xe9   :  { %v446_v61 = vpop.f32.mrf.mxu0  ;;  %v499_v62 = vpop.f32.mrf.mxu1 }
  0xea   :  { %v826_v0 = vpack.c.bf16 %v570_v57, %v569_v54  ;;  %v827_v1 = vpack.c.bf16 %v572_v58, %v571_v55  ;;  %v447_v2 = vadd.f32 %v446_v61, %v1118_v56  ;;  %v500_v3 = vadd.f32 %v499_v62, %v1118_v56 }
  0xeb   :  { %v450_v4 = vpop.f32.mrf.mxu0  ;;  %v503_v5 = vpop.f32.mrf.mxu1  ;;  %v579_v8 = vmax.f32 %v445_v59, 0.0  ;;  %v581_v9 = vmax.f32 %v498_v60, 0.0 }
  0xec   :  { %727 = vst [vmem:[%s1235_s3 + $0x10] sm:$0xff] %v826_v0  ;;  %728 = vst [vmem:[%s1235_s3 + $0x18] sm:$0xff] %v827_v1  ;;  %v451_v6 = vadd.f32 %v450_v4, %v1120_v63  ;;  %v504_v7 = vadd.f32 %v503_v5, %v1120_v63  ;;  %v580_v10 = vmax.f32 %v447_v2, 0.0  ;;  %v582_v11 = vmax.f32 %v500_v3, 0.0 }
  0xed   :  { %v452_v12 = vpop.f32.mrf.mxu0  ;;  %v505_v13 = vpop.f32.mrf.mxu1 }
  0xee   :  { %v453_v14 = vadd.f32 %v452_v12, %v1120_v63  ;;  %v506_v15 = vadd.f32 %v505_v13, %v1120_v63  ;;  %v831_v16 = vpack.c.bf16 %v580_v10, %v579_v8  ;;  %v832_v17 = vpack.c.bf16 %v582_v11, %v581_v9 }
  0xef   :  { %v454_v18 = vpop.f32.mrf.mxu0  ;;  %v507_v19 = vpop.f32.mrf.mxu1  ;;  %v589_v21 = vmax.f32 %v451_v6, 0.0  ;;  %v591_v22 = vmax.f32 %v504_v7, 0.0 }
  0xf0   :  { %v590_v23 = vmax.f32 %v453_v14, 0.0  ;;  %v592_v24 = vmax.f32 %v506_v15, 0.0  ;;  %735 = vst [vmem:[%s1235_s3 + $0x38] sm:$0xff] %v831_v16  ;;  %736 = vst [vmem:[%s1235_s3 + $0x40] sm:$0xff] %v832_v17  ;;  %v455_v25 = vadd.f32 %v454_v18, %v1136_v20  ;;  %v508_v26 = vadd.f32 %v507_v19, %v1136_v20 }
  0xf1   :  { %v456_v27 = vpop.f32.mrf.mxu0  ;;  %v509_v28 = vpop.f32.mrf.mxu1 }
  0xf2   :  { %v836_v29 = vpack.c.bf16 %v590_v23, %v589_v21  ;;  %v837_v30 = vpack.c.bf16 %v592_v24, %v591_v22  ;;  %v457_v31 = vadd.f32 %v456_v27, %v1136_v20  ;;  %v510_v32 = vadd.f32 %v509_v28, %v1136_v20 }
  0xf3   :  { %v546_v33 = vpop.f32.mrf.mxu0  ;;  %v556_v34 = vpop.f32.mrf.mxu1  ;;  %v599_v37 = vmax.f32 %v455_v25, 0.0  ;;  %v601_v38 = vmax.f32 %v508_v26, 0.0 }
  0xf4   :  { %740 = vst [vmem:[%s1235_s3 + $0x60] sm:$0xff] %v836_v29  ;;  %741 = vst [vmem:[%s1235_s3 + $0x68] sm:$0xff] %v837_v30  ;;  %v547_v35 = vadd.f32 %v546_v33, %v1112_v47  ;;  %v557_v36 = vadd.f32 %v556_v34, %v1120_v63  ;;  %v600_v39 = vmax.f32 %v457_v31, 0.0  ;;  %v602_v40 = vmax.f32 %v510_v32, 0.0 }
  0xf5   :  { %v548_v41 = vpop.f32.mrf.mxu0  ;;  %v558_v42 = vpop.f32.mrf.mxu1 }
  0xf6   :  { %v549_v43 = vadd.f32 %v548_v41, %v1112_v47  ;;  %v559_v44 = vadd.f32 %v558_v42, %v1120_v63  ;;  %v841_v45 = vpack.c.bf16 %v600_v39, %v599_v37  ;;  %v842_v46 = vpack.c.bf16 %v602_v40, %v601_v38 }
  0xf7   :  { %v550_v48 = vpop.f32.mrf.mxu0  ;;  %v560_v49 = vpop.f32.mrf.mxu1  ;;  %v573_v50 = vmax.f32 %v547_v35, 0.0  ;;  %v593_v51 = vmax.f32 %v557_v36, 0.0 }
  0xf8   :  { %v574_v52 = vmax.f32 %v549_v43, 0.0  ;;  %v594_v53 = vmax.f32 %v559_v44, 0.0  ;;  %745 = vst [vmem:[%s1235_s3 + $0x88] sm:$0xff] %v841_v45  ;;  %746 = vst [vmem:[%s1235_s3 + $0x90] sm:$0xff] %v842_v46  ;;  %v551_v63 = vadd.f32 %v550_v48, %v1118_v56  ;;  %v561_v54 = vadd.f32 %v560_v49, %v1136_v20 }
  0xf9   :  { %v552_v55 = vpop.f32.mrf.mxu0  ;;  %v562_v57 = vpop.f32.mrf.mxu1 }
  0xfa   :  { %v828_v58 = vpack.c.bf16 %v574_v52, %v573_v50  ;;  %v838_v59 = vpack.c.bf16 %v594_v53, %v593_v51  ;;  %v553_v60 = vadd.f32 %v552_v55, %v1118_v56  ;;  %v563_v61 = vadd.f32 %v562_v57, %v1136_v20 }
  0xfb   :  { %v583_v62 = vmax.f32 %v551_v63, 0.0  ;;  %v603_v0 = vmax.f32 %v561_v54, 0.0 }
  0xfc   :  { %732 = vst.msk [vmem:[%s1235_s3 + $0x20] sm:$0xff] %vm1204_vm3, %v828_v58  ;;  %742 = vst.msk [vmem:[%s1235_s3 + $0x70] sm:$0xff] %vm1204_vm3, %v838_v59  ;;  %v584_v1 = vmax.f32 %v553_v60, 0.0  ;;  %v604_v2 = vmax.f32 %v563_v61, 0.0 }
  0xfe   :  { %v833_v3 = vpack.c.bf16 %v584_v1, %v583_v62  ;;  %v843_v56 = vpack.c.bf16 %v604_v2, %v603_v0 }
 0x100   :  { %737 = vst.msk [vmem:[%s1235_s3 + $0x48] sm:$0xff] %vm1204_vm3, %v833_v3  ;;  %747 = vst.msk [vmem:[%s1235_s3 + $0x98] sm:$0xff] %vm1204_vm3, %v843_v56 }

// kernel: dqn_forward.5
= control target key start
LH: loop header
LB: loop body
LE: loop exit
PB: predicated region body
PF: predicated region fallthrough
CT: control target
= control target key end

     0   :  { %v983_v1 = vmov 0   ;;  %s1292_s1 = inlined_call_operand.vmem [shape: bf16[512,256], index: 1, kind: input, shape index: {}]   ;;  %s1293_s0 = inlined_call_operand.vmem [shape: bf16[64,512], index: 0, kind: input, shape index: {}]   ;;  %s1294_s2 = inlined_call_operand.vmem [shape: f32[64,1], index: 2, kind: input, shape index: {}]   ;;  %s1295_s3 = inlined_call_operand.vmem [shape: bf16[64,256], index: 3, kind: output, shape index: {}]  }
   0x1   :  { %v863_v0 = vld [vmem:[%s1292_s1 + $0x74] ss:$8 sps:$4 sm:$0xff]   ;;  %861 = vset.pattern.permute.xlu0 %v983_v1  ;;  %862 = vset.pattern.permute.xlu1 %v983_v1  ;;  %v867_v3 = vld [vmem:[%s1292_s1 + $0x70] ss:$8 sps:$4 sm:$0xff]   ;;  %v869_v5 = vld [vmem:[%s1292_s1 + $0x64] ss:$8 sps:$4 sm:$0xff]  }
   0x2   :  { %v865_v2 = vld [vmem:[%s1292_s1 + $0x174] ss:$8 sps:$4 sm:$0xff]   ;;  %542 = vmatprep.subr.bf16.mxu0 %v863_v0  ;;  %v868_v4 = vld [vmem:[%s1292_s1 + $0x170] ss:$8 sps:$4 sm:$0xff]   ;;  %v871_v6 = vld [vmem:[%s1292_s1 + $0x164] ss:$8 sps:$4 sm:$0xff]  }
   0x3   :  { %615 = vmatprep.subr.bf16.mxu1 %v865_v2  ;;  %543 = vmatpush1.bf16.msra.mxu0 %v867_v3  ;;  %v873_v7 = vld [vmem:[%s1292_s1 + $0x60] ss:$8 sps:$4 sm:$0xff]   ;;  %v875_v9 = vld [vmem:[%s1292_s1 + $0x54] ss:$8 sps:$4 sm:$0xff]   ;;  %v879_v11 = vld [vmem:[%s1292_s1 + $0x50] ss:$8 sps:$4 sm:$0xff]  }
   0x4   :  { %616 = vmatpush1.bf16.msra.mxu1 %v868_v4  ;;  %544 = vmatprep.subr.bf16.mxu0 %v869_v5  ;;  %v874_v8 = vld [vmem:[%s1292_s1 + $0x160] ss:$8 sps:$4 sm:$0xff]   ;;  %v877_v10 = vld [vmem:[%s1292_s1 + $0x154] ss:$8 sps:$4 sm:$0xff]   ;;  %v880_v12 = vld [vmem:[%s1292_s1 + $0x150] ss:$8 sps:$4 sm:$0xff]  }
   0x5   :  { %617 = vmatprep.subr.bf16.mxu1 %v871_v6  ;;  %v881_v13 = vld [vmem:[%s1292_s1 + $0x44] ss:$8 sps:$4 sm:$0xff]   ;;  %v885_v15 = vld [vmem:[%s1292_s1 + $0x40] ss:$8 sps:$4 sm:$0xff]   ;;  %v887_v17 = vld [vmem:[%s1292_s1 + $0x34] ss:$8 sps:$4 sm:$0xff]  }
   0x6   :  { %v883_v14 = vld [vmem:[%s1292_s1 + $0x144] ss:$8 sps:$4 sm:$0xff]   ;;  %v886_v16 = vld [vmem:[%s1292_s1 + $0x140] ss:$8 sps:$4 sm:$0xff]   ;;  %v889_v18 = vld [vmem:[%s1292_s1 + $0x134] ss:$8 sps:$4 sm:$0xff]  }
   0x7   :  { %545 = vmatpush1.bf16.msra.mxu0 %v873_v7  ;;  %v891_v19 = vld [vmem:[%s1292_s1 + $0x30] ss:$8 sps:$4 sm:$0xff]   ;;  %v893_v21 = vld [vmem:[%s1292_s1 + $0x24] ss:$8 sps:$4 sm:$0xff]   ;;  %v897_v23 = vld [vmem:[%s1292_s1 + $0x20] ss:$8 sps:$4 sm:$0xff]  }
   0x8   :  { %618 = vmatpush1.bf16.msra.mxu1 %v874_v8  ;;  %546 = vmatprep.subr.bf16.mxu0 %v875_v9  ;;  %v892_v20 = vld [vmem:[%s1292_s1 + $0x130] ss:$8 sps:$4 sm:$0xff]   ;;  %v895_v22 = vld [vmem:[%s1292_s1 + $0x124] ss:$8 sps:$4 sm:$0xff]   ;;  %v898_v24 = vld [vmem:[%s1292_s1 + $0x120] ss:$8 sps:$4 sm:$0xff]  }
   0x9   :  { %619 = vmatprep.subr.bf16.mxu1 %v877_v10  ;;  %v899_v25 = vld [vmem:[%s1292_s1 + $0x14] ss:$8 sps:$4 sm:$0xff]   ;;  %v903_v27 = vld [vmem:[%s1292_s1 + $0x10] ss:$8 sps:$4 sm:$0xff]   ;;  %v905_v29 = vld [vmem:[%s1292_s1 + $0x4] ss:$8 sps:$4 sm:$0xff]  }
   0xa   :  { %v901_v26 = vld [vmem:[%s1292_s1 + $0x114] ss:$8 sps:$4 sm:$0xff]   ;;  %v904_v28 = vld [vmem:[%s1292_s1 + $0x110] ss:$8 sps:$4 sm:$0xff]   ;;  %v907_v30 = vld [vmem:[%s1292_s1 + $0x104] ss:$8 sps:$4 sm:$0xff]  }
   0xb   :  { %547 = vmatpush1.bf16.msra.mxu0 %v879_v11  ;;  %v909_v31 = vld [vmem:[%s1292_s1] ss:$8 sps:$4 sm:$0xff]   ;;  %v911_v33 = vld [vmem:[%s1292_s1 + $0xf4] ss:$8 sps:$4 sm:$0xff]   ;;  %v915_v35 = vld [vmem:[%s1292_s1 + $0xf0] ss:$8 sps:$4 sm:$0xff]  }
   0xc   :  { %620 = vmatpush1.bf16.msra.mxu1 %v880_v12  ;;  %548 = vmatprep.subr.bf16.mxu0 %v881_v13  ;;  %v910_v32 = vld [vmem:[%s1292_s1 + $0x100] ss:$8 sps:$4 sm:$0xff]   ;;  %v913_v34 = vld [vmem:[%s1292_s1 + $0x1f4] ss:$8 sps:$4 sm:$0xff]   ;;  %v916_v36 = vld [vmem:[%s1292_s1 + $0x1f0] ss:$8 sps:$4 sm:$0xff]  }
   0xd   :  { %621 = vmatprep.subr.bf16.mxu1 %v883_v14  ;;  %v917_v37 = vld [vmem:[%s1292_s1 + $0xe4] ss:$8 sps:$4 sm:$0xff]   ;;  %v921_v39 = vld [vmem:[%s1292_s1 + $0xe0] ss:$8 sps:$4 sm:$0xff]   ;;  %v923_v41 = vld [vmem:[%s1292_s1 + $0xd4] ss:$8 sps:$4 sm:$0xff]  }
   0xe   :  { %v919_v38 = vld [vmem:[%s1292_s1 + $0x1e4] ss:$8 sps:$4 sm:$0xff]   ;;  %v922_v40 = vld [vmem:[%s1292_s1 + $0x1e0] ss:$8 sps:$4 sm:$0xff]   ;;  %v925_v42 = vld [vmem:[%s1292_s1 + $0x1d4] ss:$8 sps:$4 sm:$0xff]  }
   0xf   :  { %549 = vmatpush1.bf16.msra.mxu0 %v885_v15  ;;  %v927_v43 = vld [vmem:[%s1292_s1 + $0xd0] ss:$8 sps:$4 sm:$0xff]   ;;  %v929_v45 = vld [vmem:[%s1292_s1 + $0xc4] ss:$8 sps:$4 sm:$0xff]   ;;  %v933_v47 = vld [vmem:[%s1292_s1 + $0xc0] ss:$8 sps:$4 sm:$0xff]  }
  0x10   :  { %622 = vmatpush1.bf16.msra.mxu1 %v886_v16  ;;  %550 = vmatprep.subr.bf16.mxu0 %v887_v17  ;;  %v928_v44 = vld [vmem:[%s1292_s1 + $0x1d0] ss:$8 sps:$4 sm:$0xff]   ;;  %v931_v46 = vld [vmem:[%s1292_s1 + $0x1c4] ss:$8 sps:$4 sm:$0xff]   ;;  %v934_v48 = vld [vmem:[%s1292_s1 + $0x1c0] ss:$8 sps:$4 sm:$0xff]  }
  0x11   :  { %623 = vmatprep.subr.bf16.mxu1 %v889_v18  ;;  %v935_v49 = vld [vmem:[%s1292_s1 + $0xb4] ss:$8 sps:$4 sm:$0xff]   ;;  %v939_v53 = vld [vmem:[%s1292_s1 + $0xb0] ss:$8 sps:$4 sm:$0xff]   ;;  %v941_v55 = vld [vmem:[%s1292_s1 + $0xa4] ss:$8 sps:$4 sm:$0xff]  }
  0x12   :  { %v961_v50 = vld [vmem:[%s1293_s0 + $0x4] ss:$16 sps:$4 sm:$0xff]   ;;  %v964_v52 = vld [vmem:[%s1293_s0 + $0xc] ss:$16 sps:$4 sm:$0xff]   ;;  %v940_v54 = vld [vmem:[%s1292_s1 + $0x1b0] ss:$8 sps:$4 sm:$0xff]  }
  0x13   :  { %551 = vmatpush1.bf16.msra.mxu0 %v891_v19  ;;  %v937_v51 = vld [vmem:[%s1292_s1 + $0x1b4] ss:$8 sps:$4 sm:$0xff]   ;;  %574 = vmatprep.mubr.bf16.mxu0 %v961_v50  ;;  %v943_v56 = vld [vmem:[%s1292_s1 + $0x1a4] ss:$8 sps:$4 sm:$0xff]   ;;  %v945_v57 = vld [vmem:[%s1292_s1 + $0xa0] ss:$8 sps:$4 sm:$0xff]  }
  0x14   :  { %624 = vmatpush1.bf16.msra.mxu1 %v892_v20  ;;  %552 = vmatprep.subr.bf16.mxu0 %v893_v21  ;;  %v946_v58 = vld [vmem:[%s1292_s1 + $0x1a0] ss:$8 sps:$4 sm:$0xff]   ;;  %v947_v59 = vld [vmem:[%s1292_s1 + $0x94] ss:$8 sps:$4 sm:$0xff]   ;;  %v951_v0 = vld [vmem:[%s1292_s1 + $0x90] ss:$8 sps:$4 sm:$0xff]  }
  0x15   :  { %625 = vmatprep.subr.bf16.mxu1 %v895_v22  ;;  %647 = vmatprep.mubr.bf16.mxu1 %v964_v52  ;;  %v949_v60 = vld [vmem:[%s1292_s1 + $0x194] ss:$8 sps:$4 sm:$0xff]   ;;  %v94_v61 = vld [vmem:[%s1294_s2] sm:$0xff]  ;;  %v95_v63 = vld [vmem:[%s1294_s2 + $0x8] sm:$0xff] }
  0x16   :  { %104 = vperm.xlu0 %861, %v94_v61   ;;  %v96_v62 = vld [vmem:[%s1294_s2 + $0x10] sm:$0xff]  ;;  %v97_v2 = vld [vmem:[%s1294_s2 + $0x18] sm:$0xff]  ;;  %v953_v3 = vld [vmem:[%s1292_s1 + $0x84] ss:$8 sps:$4 sm:$0xff]  }
  0x17   :  { %553 = vmatpush1.bf16.msra.mxu0 %v897_v23  ;;  %114 = vperm.xlu1 %862, %v96_v62   ;;  %v952_v1 = vld [vmem:[%s1292_s1 + $0x190] ss:$8 sps:$4 sm:$0xff]   ;;  %v955_v4 = vld [vmem:[%s1292_s1 + $0x184] ss:$8 sps:$4 sm:$0xff]   ;;  %v957_v6 = vld [vmem:[%s1292_s1 + $0x80] ss:$8 sps:$4 sm:$0xff]  }
  0x18   :  { %626 = vmatpush1.bf16.msra.mxu1 %v898_v24  ;;  %554 = vmatprep.subr.bf16.mxu0 %v899_v25  ;;  %v98_v5 = vld [vmem:[%s1294_s2 + $0x20] sm:$0xff]  ;;  %v99_v8 = vld [vmem:[%s1294_s2 + $0x28] sm:$0xff]  ;;  %v100_v11 = vld [vmem:[%s1294_s2 + $0x30] sm:$0xff] }
  0x19   :  { %627 = vmatprep.subr.bf16.mxu1 %v901_v26  ;;  %v958_v7 = vld [vmem:[%s1292_s1 + $0x180] ss:$8 sps:$4 sm:$0xff]   ;;  %v965_v12 = vld [vmem:[%s1293_s0 + $0x24] ss:$16 sps:$4 sm:$0xff]   ;;  %v967_v13 = vld [vmem:[%s1293_s0 + $0x2c] ss:$16 sps:$4 sm:$0xff]  }
  0x1a   :  { %109 = vperm.xlu0 %861, %v95_v63   ;;  %v959_v9 = vld [vmem:[%s1293_s0] ss:$16 sps:$4 sm:$0xff]   ;;  %v962_v10 = vld [vmem:[%s1293_s0 + $0x8] ss:$16 sps:$4 sm:$0xff]   ;;  %v971_v17 = vld [vmem:[%s1293_s0 + $0x44] ss:$16 sps:$4 sm:$0xff]  }
  0x1b   :  { %555 = vmatpush1.bf16.msra.mxu0 %v903_v27  ;;  %119 = vperm.xlu1 %862, %v97_v2   ;;  %v101_v14 = vld [vmem:[%s1294_s2 + $0x38] sm:$0xff]  ;;  %v969_v15 = vld [vmem:[%s1293_s0 + $0x20] ss:$16 sps:$4 sm:$0xff]   ;;  %v977_v21 = vld [vmem:[%s1293_s0 + $0x64] ss:$16 sps:$4 sm:$0xff]  }
  0x1c   :  { %628 = vmatpush1.bf16.msra.mxu1 %v904_v28  ;;  %556 = vmatprep.subr.bf16.mxu0 %v905_v29  ;;  %v970_v16 = vld [vmem:[%s1293_s0 + $0x28] ss:$16 sps:$4 sm:$0xff]   ;;  %v973_v18 = vld [vmem:[%s1293_s0 + $0x4c] ss:$16 sps:$4 sm:$0xff]   ;;  %v975_v19 = vld [vmem:[%s1293_s0 + $0x40] ss:$16 sps:$4 sm:$0xff]  }
  0x1d   :  { %629 = vmatprep.subr.bf16.mxu1 %v907_v30  ;;  %v976_v20 = vld [vmem:[%s1293_s0 + $0x48] ss:$16 sps:$4 sm:$0xff]   ;;  %v979_v22 = vld [vmem:[%s1293_s0 + $0x6c] ss:$16 sps:$4 sm:$0xff]   ;;  %v981_v23 = vld [vmem:[%s1293_s0 + $0x60] ss:$16 sps:$4 sm:$0xff]  }
  0x1e   :  { %124 = vperm.xlu0 %861, %v98_v5   ;;  %v982_v24 = vld [vmem:[%s1293_s0 + $0x68] ss:$16 sps:$4 sm:$0xff]  }
  0x1f   :  { %557 = vmatpush1.bf16.msra.mxu0 %v909_v31  ;;  %129 = vperm.xlu1 %862, %v99_v8  }
  0x20   :  { %630 = vmatpush1.bf16.msra.mxu1 %v910_v32  ;;  %558 = vmatprep.subr.bf16.mxu0 %v911_v33 }
  0x21   :  { %631 = vmatprep.subr.bf16.mxu1 %v913_v34 }
  0x22   :  { %134 = vperm.xlu0 %861, %v100_v11  }
  0x23   :  { %559 = vmatpush2.bf16.msra.mxu0 %v915_v35  ;;  %139 = vperm.xlu1 %862, %v101_v14  }
  0x24   :  { %632 = vmatpush2.bf16.msra.mxu1 %v916_v36  ;;  %560 = vmatprep.subr.bf16.mxu0 %v917_v37 }
  0x25   :  { %633 = vmatprep.subr.bf16.mxu1 %v919_v38 }
  0x27   :  { %561 = vmatpush2.bf16.msra.mxu0 %v921_v39 }
  0x28   :  { %634 = vmatpush2.bf16.msra.mxu1 %v922_v40  ;;  %562 = vmatprep.subr.bf16.mxu0 %v923_v41 }
  0x29   :  { %635 = vmatprep.subr.bf16.mxu1 %v925_v42 }
  0x2b   :  { %563 = vmatpush2.bf16.msra.mxu0 %v927_v43 }
  0x2c   :  { %636 = vmatpush2.bf16.msra.mxu1 %v928_v44  ;;  %564 = vmatprep.subr.bf16.mxu0 %v929_v45 }
  0x2d   :  { %637 = vmatprep.subr.bf16.mxu1 %v931_v46 }
  0x2f   :  { %565 = vmatpush2.bf16.msra.mxu0 %v933_v47 }
  0x30   :  { %638 = vmatpush2.bf16.msra.mxu1 %v934_v48  ;;  %566 = vmatprep.subr.bf16.mxu0 %v935_v49 }
  0x31   :  { %639 = vmatprep.subr.bf16.mxu1 %v937_v51 }
  0x33   :  { %567 = vmatpush2.bf16.msra.mxu0 %v939_v53 }
  0x34   :  { %640 = vmatpush2.bf16.msra.mxu1 %v940_v54  ;;  %568 = vmatprep.subr.bf16.mxu0 %v941_v55 }
  0x35   :  { %641 = vmatprep.subr.bf16.mxu1 %v943_v56 }
  0x37   :  { %569 = vmatpush2.bf16.msra.mxu0 %v945_v57 }
  0x38   :  { %642 = vmatpush2.bf16.msra.mxu1 %v946_v58  ;;  %570 = vmatprep.subr.bf16.mxu0 %v947_v59 }
  0x39   :  { %643 = vmatprep.subr.bf16.mxu1 %v949_v60 }
  0x3b   :  { %571 = vmatpush2.bf16.msra.mxu0 %v951_v0 }
  0x3c   :  { %644 = vmatpush2.bf16.msra.mxu1 %v952_v1  ;;  %572 = vmatprep.subr.bf16.mxu0 %v953_v3 }
  0x3d   :  { %645 = vmatprep.subr.bf16.mxu1 %v955_v4 }
  0x3f   :  { %573 = vmatpush2.bf16.msra.mxu0 %v957_v6 }
  0x40   :  { %646 = vmatpush2.bf16.msra.mxu1 %v958_v7 }
  0x42   :  { %575 = vmatmul.mubr.bf16.vlgmr.msra.gmra.mxu0 %v959_v9 }
  0x43   :  { %648 = vmatmul.mubr.bf16.vlgmr.msra.gmra.mxu1 %v962_v10  ;;  %584 = vmatprep.mubr.bf16.mxu0 %v965_v12 }
  0x44   :  { %657 = vmatprep.mubr.bf16.mxu1 %v967_v13 }
  0x4a   :  { %585 = vmatmul.mubr.bf16.gmra.mxu0 %v969_v15 }
  0x4b   :  { %658 = vmatmul.mubr.bf16.gmra.mxu1 %v970_v16  ;;  %594 = vmatprep.mubr.bf16.mxu0 %v971_v17 }
  0x4c   :  { %667 = vmatprep.mubr.bf16.mxu1 %v973_v18 }
  0x52   :  { %595 = vmatmul.mubr.bf16.gmra.mxu0 %v975_v19 }
  0x53   :  { %668 = vmatmul.mubr.bf16.gmra.mxu1 %v976_v20  ;;  %604 = vmatprep.mubr.bf16.mxu0 %v977_v21 }
  0x54   :  { %677 = vmatprep.mubr.bf16.mxu1 %v979_v22 }
  0x5a   :  { %605 = vmatmul.mubr.bf16.gmra.mxu0 %v981_v23 }
  0x5b   :  { %678 = vmatmul.mubr.bf16.gmra.mxu1 %v982_v24 }
  0x91   :  { %v105_v25 = vpop.permute.xlu0 %104 }
  0x92   :  { %v115_v38 = vpop.permute.xlu1 %114 }
  0x95   :  { %v110_v29 = vpop.permute.xlu0 %109 }
  0x96   :  { %v120_v55 = vpop.permute.xlu1 %119 }
  0x99   :  { %v125_v3 = vpop.permute.xlu0 %124 }
  0x9a   :  { %v130_v13 = vpop.permute.xlu1 %129 }
 0x102   :  { %v576_v26 = vpop.f32.mrf.mxu0 }
 0x103   :  { %v649_v27 = vpop.f32.mrf.mxu1  ;;  %v577_v28 = vadd.f32 %v576_v26, %v105_v25 }
 0x104   :  { %v578_v30 = vpop.f32.mrf.mxu0 }
 0x105   :  { %v651_v31 = vpop.f32.mrf.mxu1  ;;  %v650_v32 = vadd.f32 %v649_v27, %v577_v28  ;;  %v579_v33 = vadd.f32 %v578_v30, %v105_v25  ;;  %v135_v25 = vpop.permute.xlu0 %134 }
 0x106   :  { %v580_v34 = vpop.f32.mrf.mxu0 }
 0x107   :  { %v653_v35 = vpop.f32.mrf.mxu1  ;;  %v652_v36 = vadd.f32 %v651_v31, %v579_v33  ;;  %v581_v37 = vadd.f32 %v580_v34, %v110_v29  ;;  %v688_v41 = vmax.f32 %v650_v32, 0.0 }
 0x108   :  { %v582_v39 = vpop.f32.mrf.mxu0 }
 0x109   :  { %v655_v40 = vpop.f32.mrf.mxu1  ;;  %v689_v42 = vmax.f32 %v652_v36, 0.0  ;;  %v654_v43 = vadd.f32 %v653_v35, %v581_v37  ;;  %v583_v44 = vadd.f32 %v582_v39, %v110_v29  ;;  %v140_v36 = vpop.permute.xlu1 %139 }
 0x10a   :  { %v586_v45 = vpop.f32.mrf.mxu0 }
 0x10b   :  { %v659_v46 = vpop.f32.mrf.mxu1  ;;  %v852_v47 = vpack.c.bf16 %v689_v42, %v688_v41  ;;  %v656_v48 = vadd.f32 %v655_v40, %v583_v44  ;;  %v587_v49 = vadd.f32 %v586_v45, %v115_v38  ;;  %v690_v52 = vmax.f32 %v654_v43, 0.0 }
 0x10c   :  { %v588_v50 = vpop.f32.mrf.mxu0 }
 0x10d   :  { %v661_v51 = vpop.f32.mrf.mxu1  ;;  %752 = vst [vmem:[%s1295_s3] sm:$0xff] %v852_v47  ;;  %v691_v53 = vmax.f32 %v656_v48, 0.0  ;;  %v660_v54 = vadd.f32 %v659_v46, %v587_v49  ;;  %v589_v56 = vadd.f32 %v588_v50, %v115_v38 }
 0x10e   :  { %v590_v57 = vpop.f32.mrf.mxu0 }
 0x10f   :  { %v663_v58 = vpop.f32.mrf.mxu1  ;;  %v853_v59 = vpack.c.bf16 %v691_v53, %v690_v52  ;;  %v662_v60 = vadd.f32 %v661_v51, %v589_v56  ;;  %v591_v61 = vadd.f32 %v590_v57, %v120_v55  ;;  %v692_v0 = vmax.f32 %v660_v54, 0.0 }
 0x110   :  { %v592_v62 = vpop.f32.mrf.mxu0 }
 0x111   :  { %v665_v63 = vpop.f32.mrf.mxu1  ;;  %753 = vst [vmem:[%s1295_s3 + $0x8] sm:$0xff] %v853_v59  ;;  %v693_v1 = vmax.f32 %v662_v60, 0.0  ;;  %v664_v2 = vadd.f32 %v663_v58, %v591_v61  ;;  %v593_v4 = vadd.f32 %v592_v62, %v120_v55 }
 0x112   :  { %v596_v5 = vpop.f32.mrf.mxu0 }
 0x113   :  { %v669_v6 = vpop.f32.mrf.mxu1  ;;  %v854_v7 = vpack.c.bf16 %v693_v1, %v692_v0  ;;  %v666_v8 = vadd.f32 %v665_v63, %v593_v4  ;;  %v597_v9 = vadd.f32 %v596_v5, %v125_v3  ;;  %v694_v12 = vmax.f32 %v664_v2, 0.0 }
 0x114   :  { %v598_v10 = vpop.f32.mrf.mxu0 }
 0x115   :  { %v671_v11 = vpop.f32.mrf.mxu1  ;;  %754 = vst [vmem:[%s1295_s3 + $0x10] sm:$0xff] %v854_v7  ;;  %v695_v14 = vmax.f32 %v666_v8, 0.0  ;;  %v670_v15 = vadd.f32 %v669_v6, %v597_v9  ;;  %v599_v16 = vadd.f32 %v598_v10, %v125_v3 }
 0x116   :  { %v600_v17 = vpop.f32.mrf.mxu0 }
 0x117   :  { %v673_v18 = vpop.f32.mrf.mxu1  ;;  %v855_v19 = vpack.c.bf16 %v695_v14, %v694_v12  ;;  %v672_v20 = vadd.f32 %v671_v11, %v599_v16  ;;  %v601_v21 = vadd.f32 %v600_v17, %v130_v13  ;;  %v696_v24 = vmax.f32 %v670_v15, 0.0 }
 0x118   :  { %v602_v22 = vpop.f32.mrf.mxu0 }
 0x119   :  { %v675_v23 = vpop.f32.mrf.mxu1  ;;  %755 = vst [vmem:[%s1295_s3 + $0x18] sm:$0xff] %v855_v19  ;;  %v697_v26 = vmax.f32 %v672_v20, 0.0  ;;  %v674_v27 = vadd.f32 %v673_v18, %v601_v21  ;;  %v603_v28 = vadd.f32 %v602_v22, %v130_v13 }
 0x11a   :  { %v606_v29 = vpop.f32.mrf.mxu0 }
 0x11b   :  { %v679_v30 = vpop.f32.mrf.mxu1  ;;  %v856_v31 = vpack.c.bf16 %v697_v26, %v696_v24  ;;  %v676_v32 = vadd.f32 %v675_v23, %v603_v28  ;;  %v607_v33 = vadd.f32 %v606_v29, %v135_v25  ;;  %v698_v37 = vmax.f32 %v674_v27, 0.0 }
 0x11c   :  { %v608_v34 = vpop.f32.mrf.mxu0 }
 0x11d   :  { %v681_v35 = vpop.f32.mrf.mxu1  ;;  %756 = vst [vmem:[%s1295_s3 + $0x20] sm:$0xff] %v856_v31  ;;  %v699_v38 = vmax.f32 %v676_v32, 0.0  ;;  %v680_v39 = vadd.f32 %v679_v30, %v607_v33  ;;  %v609_v40 = vadd.f32 %v608_v34, %v135_v25 }
 0x11e   :  { %v610_v41 = vpop.f32.mrf.mxu0 }
 0x11f   :  { %v683_v42 = vpop.f32.mrf.mxu1  ;;  %v857_v43 = vpack.c.bf16 %v699_v38, %v698_v37  ;;  %v682_v44 = vadd.f32 %v681_v35, %v609_v40  ;;  %v611_v45 = vadd.f32 %v610_v41, %v140_v36  ;;  %v700_v47 = vmax.f32 %v680_v39, 0.0 }
 0x120   :  { %v612_v46 = vpop.f32.mrf.mxu0 }
 0x121   :  { %757 = vst [vmem:[%s1295_s3 + $0x28] sm:$0xff] %v857_v43  ;;  %v701_v48 = vmax.f32 %v682_v44, 0.0  ;;  %v684_v49 = vadd.f32 %v683_v42, %v611_v45  ;;  %v613_v50 = vadd.f32 %v612_v46, %v140_v36  ;;  %v685_v51 = vpop.f32.mrf.mxu1 }
 0x123   :  { %v858_v52 = vpack.c.bf16 %v701_v48, %v700_v47  ;;  %v686_v53 = vadd.f32 %v685_v51, %v613_v50  ;;  %v702_v54 = vmax.f32 %v684_v49, 0.0 }
 0x125   :  { %758 = vst [vmem:[%s1295_s3 + $0x30] sm:$0xff] %v858_v52  ;;  %v703_v55 = vmax.f32 %v686_v53, 0.0 }
 0x127   :  { %v859_v56 = vpack.c.bf16 %v703_v55, %v702_v54 }
 0x129   :  { %759 = vst [vmem:[%s1295_s3 + $0x38] sm:$0xff] %v859_v56 }

// kernel: dqn_forward.6
= control target key start
LH: loop header
LB: loop body
LE: loop exit
PB: predicated region body
PF: predicated region fallthrough
CT: control target
= control target key end

     0   :  { %v1189_v1 = vmov 0   ;;  %vm619_vm0 = vcmask 523264   ;;  %vm915_vm1 = vcmask 1043456   ;;  %vm916_vm2 = vcmask 556036   ;;  %s1583_s1 = inlined_call_operand.vmem [shape: bf16[576,196], index: 1, kind: input, shape index: {}]   ;;  %s1584_s0 = inlined_call_operand.vmem [shape: bf16[64,576], index: 0, kind: input, shape index: {}]   ;;  %s1585_s2 = inlined_call_operand.vmem [shape: f32[64,1], index: 2, kind: input, shape index: {}]   ;;  %s1586_s3 = inlined_call_operand.vmem [shape: bf16[64,196], index: 3, kind: output, shape index: {}]  }
   0x1   :  { %v1053_v0 = vld [vmem:[%s1583_s1 + $0x74] ss:$8 sps:$4 sm:$0xff]   ;;  %1051 = vset.pattern.permute.xlu0 %v1189_v1  ;;  %1052 = vset.pattern.permute.xlu1 %v1189_v1  ;;  %v1057_v3 = vld [vmem:[%s1583_s1 + $0x70] ss:$8 sps:$4 sm:$0xff]   ;;  %v1059_v5 = vld [vmem:[%s1583_s1 + $0x64] ss:$8 sps:$4 sm:$0xff]  }
   0x2   :  { %v1055_v2 = vld [vmem:[%s1583_s1 + $0x174] ss:$8 sps:$4 sm:$0xff]   ;;  %632 = vmatprep.subr.bf16.mxu0 %v1053_v0  ;;  %v1058_v4 = vld [vmem:[%s1583_s1 + $0x170] ss:$8 sps:$4 sm:$0xff]   ;;  %v1061_v6 = vld [vmem:[%s1583_s1 + $0x164] ss:$8 sps:$4 sm:$0xff]  }
   0x3   :  { %705 = vmatprep.subr.bf16.mxu1 %v1055_v2  ;;  %633 = vmatpush1.bf16.msra.mxu0 %v1057_v3  ;;  %v1063_v7 = vld [vmem:[%s1583_s1 + $0x60] ss:$8 sps:$4 sm:$0xff]   ;;  %v1065_v9 = vld [vmem:[%s1583_s1 + $0x54] ss:$8 sps:$4 sm:$0xff]   ;;  %v1069_v11 = vld [vmem:[%s1583_s1 + $0x50] ss:$8 sps:$4 sm:$0xff]  }
   0x4   :  { %706 = vmatpush1.bf16.msra.mxu1 %v1058_v4  ;;  %634 = vmatprep.subr.bf16.mxu0 %v1059_v5  ;;  %v1064_v8 = vld [vmem:[%s1583_s1 + $0x160] ss:$8 sps:$4 sm:$0xff]   ;;  %v1067_v10 = vld [vmem:[%s1583_s1 + $0x154] ss:$8 sps:$4 sm:$0xff]   ;;  %v1070_v12 = vld [vmem:[%s1583_s1 + $0x150] ss:$8 sps:$4 sm:$0xff]  }
   0x5   :  { %707 = vmatprep.subr.bf16.mxu1 %v1061_v6  ;;  %v1071_v13 = vld [vmem:[%s1583_s1 + $0x44] ss:$8 sps:$4 sm:$0xff]   ;;  %v1075_v15 = vld [vmem:[%s1583_s1 + $0x40] ss:$8 sps:$4 sm:$0xff]   ;;  %v1077_v17 = vld [vmem:[%s1583_s1 + $0x34] ss:$8 sps:$4 sm:$0xff]  }
   0x6   :  { %v1073_v14 = vld [vmem:[%s1583_s1 + $0x144] ss:$8 sps:$4 sm:$0xff]   ;;  %v1076_v16 = vld [vmem:[%s1583_s1 + $0x140] ss:$8 sps:$4 sm:$0xff]   ;;  %v1079_v18 = vld [vmem:[%s1583_s1 + $0x134] ss:$8 sps:$4 sm:$0xff]  }
   0x7   :  { %635 = vmatpush1.bf16.msra.mxu0 %v1063_v7  ;;  %v1081_v19 = vld [vmem:[%s1583_s1 + $0x30] ss:$8 sps:$4 sm:$0xff]   ;;  %v1083_v21 = vld [vmem:[%s1583_s1 + $0x24] ss:$8 sps:$4 sm:$0xff]   ;;  %v1087_v23 = vld [vmem:[%s1583_s1 + $0x20] ss:$8 sps:$4 sm:$0xff]  }
   0x8   :  { %708 = vmatpush1.bf16.msra.mxu1 %v1064_v8  ;;  %636 = vmatprep.subr.bf16.mxu0 %v1065_v9  ;;  %v1082_v20 = vld [vmem:[%s1583_s1 + $0x130] ss:$8 sps:$4 sm:$0xff]   ;;  %v1085_v22 = vld [vmem:[%s1583_s1 + $0x124] ss:$8 sps:$4 sm:$0xff]   ;;  %v1088_v24 = vld [vmem:[%s1583_s1 + $0x120] ss:$8 sps:$4 sm:$0xff]  }
   0x9   :  { %709 = vmatprep.subr.bf16.mxu1 %v1067_v10  ;;  %v1089_v25 = vld [vmem:[%s1583_s1 + $0x14] ss:$8 sps:$4 sm:$0xff]   ;;  %v1093_v27 = vld [vmem:[%s1583_s1 + $0x10] ss:$8 sps:$4 sm:$0xff]   ;;  %v1095_v29 = vld [vmem:[%s1583_s1 + $0x4] ss:$8 sps:$4 sm:$0xff]  }
   0xa   :  { %v1091_v26 = vld [vmem:[%s1583_s1 + $0x114] ss:$8 sps:$4 sm:$0xff]   ;;  %v1094_v28 = vld [vmem:[%s1583_s1 + $0x110] ss:$8 sps:$4 sm:$0xff]   ;;  %v1097_v30 = vld [vmem:[%s1583_s1 + $0x104] ss:$8 sps:$4 sm:$0xff]  }
   0xb   :  { %637 = vmatpush1.bf16.msra.mxu0 %v1069_v11  ;;  %v1099_v31 = vld [vmem:[%s1583_s1] ss:$8 sps:$4 sm:$0xff]   ;;  %v1101_v33 = vld [vmem:[%s1583_s1 + $0xf4] ss:$8 sps:$4 sm:$0xff]   ;;  %v1105_v35 = vld [vmem:[%s1583_s1 + $0xf0] ss:$8 sps:$4 sm:$0xff]  }
   0xc   :  { %710 = vmatpush1.bf16.msra.mxu1 %v1070_v12  ;;  %638 = vmatprep.subr.bf16.mxu0 %v1071_v13  ;;  %v1100_v32 = vld [vmem:[%s1583_s1 + $0x100] ss:$8 sps:$4 sm:$0xff]   ;;  %v1103_v34 = vld [vmem:[%s1583_s1 + $0x1f4] ss:$8 sps:$4 sm:$0xff]   ;;  %v1106_v36 = vld [vmem:[%s1583_s1 + $0x1f0] ss:$8 sps:$4 sm:$0xff]  }
   0xd   :  { %711 = vmatprep.subr.bf16.mxu1 %v1073_v14  ;;  %v1107_v37 = vld [vmem:[%s1583_s1 + $0xe4] ss:$8 sps:$4 sm:$0xff]   ;;  %v1111_v39 = vld [vmem:[%s1583_s1 + $0xe0] ss:$8 sps:$4 sm:$0xff]   ;;  %v1113_v41 = vld [vmem:[%s1583_s1 + $0xd4] ss:$8 sps:$4 sm:$0xff]  }
   0xe   :  { %v1109_v38 = vld [vmem:[%s1583_s1 + $0x1e4] ss:$8 sps:$4 sm:$0xff]   ;;  %v1112_v40 = vld [vmem:[%s1583_s1 + $0x1e0] ss:$8 sps:$4 sm:$0xff]   ;;  %v1115_v42 = vld [vmem:[%s1583_s1 + $0x1d4] ss:$8 sps:$4 sm:$0xff]  }
   0xf   :  { %639 = vmatpush1.bf16.msra.mxu0 %v1075_v15  ;;  %v1117_v43 = vld [vmem:[%s1583_s1 + $0xd0] ss:$8 sps:$4 sm:$0xff]   ;;  %v1119_v45 = vld [vmem:[%s1583_s1 + $0xc4] ss:$8 sps:$4 sm:$0xff]   ;;  %v1123_v47 = vld [vmem:[%s1583_s1 + $0xc0] ss:$8 sps:$4 sm:$0xff]  }
  0x10   :  { %712 = vmatpush1.bf16.msra.mxu1 %v1076_v16  ;;  %640 = vmatprep.subr.bf16.mxu0 %v1077_v17  ;;  %v1118_v44 = vld [vmem:[%s1583_s1 + $0x1d0] ss:$8 sps:$4 sm:$0xff]   ;;  %v1121_v46 = vld [vmem:[%s1583_s1 + $0x1c4] ss:$8 sps:$4 sm:$0xff]   ;;  %v1124_v48 = vld [vmem:[%s1583_s1 + $0x1c0] ss:$8 sps:$4 sm:$0xff]  }
  0x11   :  { %713 = vmatprep.subr.bf16.mxu1 %v1079_v18  ;;  %v1125_v49 = vld [vmem:[%s1583_s1 + $0xb4] ss:$8 sps:$4 sm:$0xff]   ;;  %v1151_v50 = vld [vmem:[%s1584_s0 + $0x4] ss:$20 sps:$4 sm:$0xff]   ;;  %v1154_v52 = vld [vmem:[%s1584_s0 + $0xc] ss:$20 sps:$4 sm:$0xff]  }
  0x12   :  { %v1127_v51 = vld [vmem:[%s1583_s1 + $0x1b4] ss:$8 sps:$4 sm:$0xff]   ;;  %664 = vmatprep.mubr.bf16.mxu0 %v1151_v50  ;;  %v1129_v53 = vld [vmem:[%s1583_s1 + $0xb0] ss:$8 sps:$4 sm:$0xff]   ;;  %737 = vmatprep.mubr.bf16.mxu1 %v1154_v52  ;;  %v1131_v55 = vld [vmem:[%s1583_s1 + $0xa4] ss:$8 sps:$4 sm:$0xff]  }
  0x13   :  { %641 = vmatpush1.bf16.msra.mxu0 %v1081_v19  ;;  %v1130_v54 = vld [vmem:[%s1583_s1 + $0x1b0] ss:$8 sps:$4 sm:$0xff]   ;;  %v1133_v56 = vld [vmem:[%s1583_s1 + $0x1a4] ss:$8 sps:$4 sm:$0xff]   ;;  %v1135_v57 = vld [vmem:[%s1583_s1 + $0xa0] ss:$8 sps:$4 sm:$0xff]  }
  0x14   :  { %714 = vmatpush1.bf16.msra.mxu1 %v1082_v20  ;;  %642 = vmatprep.subr.bf16.mxu0 %v1083_v21  ;;  %v1136_v58 = vld [vmem:[%s1583_s1 + $0x1a0] ss:$8 sps:$4 sm:$0xff]   ;;  %v1137_v59 = vld [vmem:[%s1583_s1 + $0x94] ss:$8 sps:$4 sm:$0xff]   ;;  %v1141_v61 = vld [vmem:[%s1583_s1 + $0x90] ss:$8 sps:$4 sm:$0xff]  }
  0x15   :  { %715 = vmatprep.subr.bf16.mxu1 %v1085_v22  ;;  %v1139_v60 = vld [vmem:[%s1583_s1 + $0x194] ss:$8 sps:$4 sm:$0xff]   ;;  %v1142_v62 = vld [vmem:[%s1583_s1 + $0x190] ss:$8 sps:$4 sm:$0xff]   ;;  %v1143_v63 = vld [vmem:[%s1583_s1 + $0x84] ss:$8 sps:$4 sm:$0xff]  }
  0x16   :  { %v1145_v0 = vld [vmem:[%s1583_s1 + $0x184] ss:$8 sps:$4 sm:$0xff]   ;;  %v1147_v2 = vld [vmem:[%s1583_s1 + $0x80] ss:$8 sps:$4 sm:$0xff]   ;;  %v1157_v4 = vld [vmem:[%s1583_s1 + $0x234] ss:$8 sps:$4 sm:$0xff]  }
  0x17   :  { %643 = vmatpush1.bf16.msra.mxu0 %v1087_v23  ;;  %v1148_v3 = vld [vmem:[%s1583_s1 + $0x180] ss:$8 sps:$4 sm:$0xff]   ;;  %v113_v8 = vld [vmem:[%s1585_s2 + $0x10] sm:$0xff]  ;;  %v1166_v12 = vld [vmem:[%s1583_s1 + $0x224] ss:$8 sps:$4 sm:$0xff]  }
  0x18   :  { %716 = vmatpush1.bf16.msra.mxu1 %v1088_v24  ;;  %644 = vmatprep.subr.bf16.mxu0 %v1089_v25  ;;  %v111_v5 = vld [vmem:[%s1585_s2] sm:$0xff]  ;;  %v1152_v7 = vld [vmem:[%s1584_s0 + $0x8] ss:$20 sps:$4 sm:$0xff]   ;;  %v1155_v9 = vld [vmem:[%s1583_s1 + $0x230] ss:$8 sps:$4 sm:$0xff]  }
  0x19   :  { %717 = vmatprep.subr.bf16.mxu1 %v1091_v26  ;;  %v1149_v6 = vld [vmem:[%s1584_s0] ss:$20 sps:$4 sm:$0xff]   ;;  %121 = vperm.xlu0 %1051, %v111_v5   ;;  %v112_v14 = vld [vmem:[%s1585_s2 + $0x8] sm:$0xff]  ;;  %v114_v15 = vld [vmem:[%s1585_s2 + $0x18] sm:$0xff] }
  0x1a   :  { %v1158_v10 = vld [vmem:[%s1584_s0 + $0x2c] ss:$20 sps:$4 sm:$0xff]   ;;  %v1160_v11 = vld [vmem:[%s1584_s0 + $0x34] ss:$20 sps:$4 sm:$0xff]   ;;  %131 = vperm.xlu1 %1052, %v113_v8   ;;  %v1163_v18 = vld [vmem:[%s1584_s0 + $0x30] ss:$20 sps:$4 sm:$0xff]  }
  0x1b   :  { %645 = vmatpush1.bf16.msra.mxu0 %v1093_v27  ;;  %v1164_v13 = vld [vmem:[%s1583_s1 + $0x220] ss:$8 sps:$4 sm:$0xff]   ;;  %v1175_v16 = vld [vmem:[%s1583_s1 + $0x214] ss:$8 sps:$4 sm:$0xff]   ;;  %v1173_v21 = vld [vmem:[%s1583_s1 + $0x210] ss:$8 sps:$4 sm:$0xff]  }
  0x1c   :  { %718 = vmatpush1.bf16.msra.mxu1 %v1094_v28  ;;  %646 = vmatprep.subr.bf16.mxu0 %v1095_v29  ;;  %v1162_v17 = vld [vmem:[%s1584_s0 + $0x28] ss:$20 sps:$4 sm:$0xff]   ;;  %v1184_v22 = vld [vmem:[%s1583_s1 + $0x204] ss:$8 sps:$4 sm:$0xff]   ;;  %vm1533_vm3 = vmor %vm916_vm2, %vm915_vm1 }
  0x1d   :  { %719 = vmatprep.subr.bf16.mxu1 %v1097_v30  ;;  %126 = vperm.xlu0 %1051, %v112_v14   ;;  %v1167_v19 = vld [vmem:[%s1584_s0 + $0x54] ss:$20 sps:$4 sm:$0xff]   ;;  %v1169_v20 = vld [vmem:[%s1584_s0 + $0x5c] ss:$20 sps:$4 sm:$0xff]   ;;  %v115_v23 = vld [vmem:[%s1585_s2 + $0x20] sm:$0xff] }
  0x1e   :  { %136 = vperm.xlu1 %1052, %v114_v15   ;;  %v116_v24 = vld [vmem:[%s1585_s2 + $0x28] sm:$0xff]  ;;  %v1171_v26 = vld [vmem:[%s1584_s0 + $0x50] ss:$20 sps:$4 sm:$0xff]  }
  0x1f   :  { %647 = vmatpush1.bf16.msra.mxu0 %v1099_v31  ;;  %v1182_v25 = vld [vmem:[%s1583_s1 + $0x200] ss:$8 sps:$4 sm:$0xff]   ;;  %v1172_v27 = vld [vmem:[%s1584_s0 + $0x58] ss:$20 sps:$4 sm:$0xff]   ;;  %v1176_v28 = vld [vmem:[%s1584_s0 + $0x7c] ss:$20 sps:$4 sm:$0xff]  }
  0x20   :  { %720 = vmatpush1.bf16.msra.mxu1 %v1100_v32  ;;  %648 = vmatprep.subr.bf16.mxu0 %v1101_v33  ;;  %v1178_v29 = vld [vmem:[%s1584_s0 + $0x84] ss:$20 sps:$4 sm:$0xff]   ;;  %v117_v30 = vld [vmem:[%s1585_s2 + $0x30] sm:$0xff] }
  0x21   :  { %721 = vmatprep.subr.bf16.mxu1 %v1103_v34  ;;  %141 = vperm.xlu0 %1051, %v115_v23   ;;  %v118_v31 = vld [vmem:[%s1585_s2 + $0x38] sm:$0xff]  ;;  %v1181_v33 = vld [vmem:[%s1584_s0 + $0x80] ss:$20 sps:$4 sm:$0xff]   ;;  %v1185_v34 = vld [vmem:[%s1584_s0 + $0x10] ss:$20 sps:$4 sm:$0xff]  }
  0x22   :  { %146 = vperm.xlu1 %1052, %v116_v24   ;;  %v1180_v32 = vld [vmem:[%s1584_s0 + $0x78] ss:$20 sps:$4 sm:$0xff]  }
  0x23   :  { %649 = vmatpush2.bf16.msra.mxu0 %v1105_v35  ;;  %v1186_v35 = vld [vmem:[%s1584_s0 + $0x60] ss:$20 sps:$4 sm:$0xff]  }
  0x24   :  { %722 = vmatpush2.bf16.msra.mxu1 %v1106_v36  ;;  %650 = vmatprep.subr.bf16.mxu0 %v1107_v37  ;;  %v1187_v36 = vld [vmem:[%s1584_s0 + $0x38] ss:$20 sps:$4 sm:$0xff]   ;;  %v1188_v37 = vld [vmem:[%s1584_s0 + $0x88] ss:$20 sps:$4 sm:$0xff]  }
  0x25   :  { %723 = vmatprep.subr.bf16.mxu1 %v1109_v38  ;;  %151 = vperm.xlu0 %1051, %v117_v30  }
  0x26   :  { %156 = vperm.xlu1 %1052, %v118_v31  }
  0x27   :  { %651 = vmatpush2.bf16.msra.mxu0 %v1111_v39 }
  0x28   :  { %724 = vmatpush2.bf16.msra.mxu1 %v1112_v40  ;;  %652 = vmatprep.subr.bf16.mxu0 %v1113_v41 }
  0x29   :  { %725 = vmatprep.subr.bf16.mxu1 %v1115_v42 }
  0x2b   :  { %653 = vmatpush2.bf16.msra.mxu0 %v1117_v43 }
  0x2c   :  { %726 = vmatpush2.bf16.msra.mxu1 %v1118_v44  ;;  %654 = vmatprep.subr.bf16.mxu0 %v1119_v45 }
  0x2d   :  { %727 = vmatprep.subr.bf16.mxu1 %v1121_v46 }
  0x2f   :  { %655 = vmatpush2.bf16.msra.mxu0 %v1123_v47 }
  0x30   :  { %728 = vmatpush2.bf16.msra.mxu1 %v1124_v48  ;;  %656 = vmatprep.subr.bf16.mxu0 %v1125_v49 }
  0x31   :  { %729 = vmatprep.subr.bf16.mxu1 %v1127_v51 }
  0x33   :  { %657 = vmatpush2.bf16.msra.mxu0 %v1129_v53 }
  0x34   :  { %730 = vmatpush2.bf16.msra.mxu1 %v1130_v54  ;;  %658 = vmatprep.subr.bf16.mxu0 %v1131_v55 }
  0x35   :  { %731 = vmatprep.subr.bf16.mxu1 %v1133_v56 }
  0x37   :  { %659 = vmatpush2.bf16.msra.mxu0 %v1135_v57 }
  0x38   :  { %732 = vmatpush2.bf16.msra.mxu1 %v1136_v58  ;;  %660 = vmatprep.subr.bf16.mxu0 %v1137_v59 }
  0x39   :  { %733 = vmatprep.subr.bf16.mxu1 %v1139_v60 }
  0x3b   :  { %661 = vmatpush2.bf16.msra.mxu0 %v1141_v61 }
  0x3c   :  { %734 = vmatpush2.bf16.msra.mxu1 %v1142_v62  ;;  %662 = vmatprep.subr.bf16.mxu0 %v1143_v63 }
  0x3d   :  { %735 = vmatprep.subr.bf16.mxu1 %v1145_v0 }
  0x3f   :  { %663 = vmatpush2.bf16.msra.mxu0 %v1147_v2 }
  0x40   :  { %736 = vmatpush2.bf16.msra.mxu1 %v1148_v3  ;;  %786 = vmatprep.subr.bf16.mxu0 %v1157_v4 }
  0x41   :  { %1042 = vmatprep.subr.bf16.mxu1 %v1157_v4 }
  0x42   :  { %665 = vmatmul.mubr.bf16.vlgmr.msra.gmra.mxu0 %v1149_v6 }
  0x43   :  { %738 = vmatmul.mubr.bf16.vlgmr.msra.gmra.mxu1 %v1152_v7  ;;  %787 = vmatpush1.bf16.msra.mxu0 %v1155_v9 }
  0x44   :  { %1046 = vmatpush1.bf16.msra.mxu1 %v1155_v9  ;;  %674 = vmatprep.mubr.bf16.mxu0 %v1158_v10 }
  0x45   :  { %747 = vmatprep.mubr.bf16.mxu1 %v1160_v11  ;;  %788 = vmatprep.subr.bf16.mxu0 %v1166_v12 }
  0x46   :  { %1043 = vmatprep.subr.bf16.mxu1 %v1166_v12 }
  0x47   :  { %789 = vmatpush1.bf16.msra.mxu0 %v1164_v13 }
  0x48   :  { %1047 = vmatpush1.bf16.msra.mxu1 %v1164_v13  ;;  %790 = vmatprep.subr.bf16.mxu0 %v1175_v16 }
  0x49   :  { %1044 = vmatprep.subr.bf16.mxu1 %v1175_v16 }
  0x4a   :  { %675 = vmatmul.mubr.bf16.gmra.mxu0 %v1162_v17 }
  0x4b   :  { %748 = vmatmul.mubr.bf16.gmra.mxu1 %v1163_v18  ;;  %684 = vmatprep.mubr.bf16.mxu0 %v1167_v19 }
  0x4c   :  { %757 = vmatprep.mubr.bf16.mxu1 %v1169_v20  ;;  %791 = vmatpush1.bf16.msra.mxu0 %v1173_v21 }
  0x4d   :  { %1048 = vmatpush1.bf16.msra.mxu1 %v1173_v21  ;;  %792 = vmatprep.subr.bf16.mxu0 %v1184_v22 }
  0x4e   :  { %1045 = vmatprep.subr.bf16.mxu1 %v1184_v22 }
  0x50   :  { %793 = vmatpush1.bf16.msra.mxu0 %v1182_v25 }
  0x51   :  { %1049 = vmatpush1.bf16.msra.mxu1 %v1182_v25 }
  0x52   :  { %685 = vmatmul.mubr.bf16.gmra.mxu0 %v1171_v26 }
  0x53   :  { %758 = vmatmul.mubr.bf16.gmra.mxu1 %v1172_v27  ;;  %694 = vmatprep.mubr.bf16.mxu0 %v1176_v28 }
  0x54   :  { %767 = vmatprep.mubr.bf16.mxu1 %v1178_v29 }
  0x5a   :  { %695 = vmatmul.mubr.bf16.gmra.mxu0 %v1180_v32 }
  0x5b   :  { %768 = vmatmul.mubr.bf16.gmra.mxu1 %v1181_v33  ;;  %810 = vmatprep.mubr.bf16.mxu0 %v1189_v1 }
  0x5c   :  { %830 = vmatprep.mubr.bf16.mxu1 %v1189_v1 }
  0x62   :  { %1022 = vmatmul.mubr.msk.bf16.vlgmr.msra.gmra.mxu0 %vm619_vm0, %v1185_v34 }
  0x63   :  { %1024 = vmatmul.mubr.msk.bf16.vlgmr.msra.gmra.mxu1 %vm619_vm0, %v1186_v35  ;;  %820 = vmatprep.mubr.bf16.mxu0 %v1189_v1 }
  0x64   :  { %840 = vmatprep.mubr.bf16.mxu1 %v1189_v1 }
  0x6a   :  { %1023 = vmatmul.mubr.msk.bf16.gmra.mxu0 %vm619_vm0, %v1187_v36 }
  0x6b   :  { %1025 = vmatmul.mubr.msk.bf16.gmra.mxu1 %vm619_vm0, %v1188_v37 }
  0x94   :  { %v122_v51 = vpop.permute.xlu0 %121 }
  0x95   :  { %v132_v59 = vpop.permute.xlu1 %131 }
  0x98   :  { %v127_v58 = vpop.permute.xlu0 %126 }
  0x99   :  { %v137_v4 = vpop.permute.xlu1 %136 }
  0x9c   :  { %v142_v0 = vpop.permute.xlu0 %141 }
  0x9d   :  { %v147_v13 = vpop.permute.xlu1 %146 }
  0xa0   :  { %v152_v19 = vpop.permute.xlu0 %151 }
 0x102   :  { %v666_v38 = vpop.f32.mrf.mxu0 }
 0x103   :  { %v739_v39 = vpop.f32.mrf.mxu1  ;;  %v667_v7 = vadd.f32 %v666_v38, %v122_v51 }
 0x104   :  { %v668_v40 = vpop.f32.mrf.mxu0 }
 0x105   :  { %v741_v41 = vpop.f32.mrf.mxu1  ;;  %v669_v11 = vadd.f32 %v668_v40, %v122_v51  ;;  %v740_v16 = vadd.f32 %v739_v39, %v667_v7 }
 0x106   :  { %v670_v42 = vpop.f32.mrf.mxu0 }
 0x107   :  { %v743_v43 = vpop.f32.mrf.mxu1  ;;  %v671_v17 = vadd.f32 %v670_v42, %v127_v58  ;;  %v742_v25 = vadd.f32 %v741_v41, %v669_v11  ;;  %v157_v41 = vpop.permute.xlu1 %156 }
 0x108   :  { %v672_v44 = vpop.f32.mrf.mxu0 }
 0x109   :  { %v745_v45 = vpop.f32.mrf.mxu1  ;;  %v673_v20 = vadd.f32 %v672_v44, %v127_v58  ;;  %v744_v33 = vadd.f32 %v743_v43, %v671_v17 }
 0x10a   :  { %v676_v46 = vpop.f32.mrf.mxu0 }
 0x10b   :  { %v749_v1 = vpop.f32.mrf.mxu1  ;;  %v677_v21 = vadd.f32 %v676_v46, %v132_v59  ;;  %v746_v37 = vadd.f32 %v745_v45, %v673_v20 }
 0x10c   :  { %v678_v47 = vpop.f32.mrf.mxu0 }
 0x10d   :  { %v1516_v48 = vpop.f32.mrf.mxu1  ;;  %v679_v29 = vadd.f32 %v678_v47, %v132_v59  ;;  %v750_v38 = vadd.f32 %v749_v1, %v677_v21 }
 0x10e   :  { %v1518_v49 = vpop.f32.mrf.mxu0 }
 0x10f   :  { %v1520_v50 = vpop.f32.mrf.mxu1  ;;  %v681_v59 = vadd.f32 %v1518_v49, %v137_v4 }
 0x110   :  { %v1522_v52 = vpop.f32.mrf.mxu0 }
 0x111   :  { %v1524_v53 = vpop.f32.mrf.mxu1  ;;  %v754_v17 = vadd.f32 %v1520_v50, %v681_v59 }
 0x112   :  { %v686_v54 = vpop.f32.mrf.mxu0 }
 0x113   :  { %v759_v55 = vpop.f32.mrf.mxu1  ;;  %v687_v8 = vadd.f32 %v686_v54, %v142_v0 }
 0x114   :  { %v688_v56 = vpop.f32.mrf.mxu0 }
 0x115   :  { %v761_v57 = vpop.f32.mrf.mxu1  ;;  %v689_v12 = vadd.f32 %v688_v56, %v142_v0  ;;  %v760_v18 = vadd.f32 %v759_v55, %v687_v8  ;;  %v752_v55 = vadd.f32 %v1516_v48, %v679_v29  ;;  %v683_v0 = vadd.f32 %v1522_v52, %v137_v4 }
 0x116   :  { %v690_v60 = vpop.f32.mrf.mxu0 }
 0x117   :  { %v763_v61 = vpop.f32.mrf.mxu1  ;;  %v691_v22 = vadd.f32 %v690_v60, %v147_v13  ;;  %v762_v26 = vadd.f32 %v761_v57, %v689_v12 }
 0x118   :  { %v692_v62 = vpop.f32.mrf.mxu0 }
 0x119   :  { %v765_v63 = vpop.f32.mrf.mxu1  ;;  %v693_v30 = vadd.f32 %v692_v62, %v147_v13  ;;  %v764_v39 = vadd.f32 %v763_v61, %v691_v22 }
 0x11a   :  { %v696_v2 = vpop.f32.mrf.mxu0 }
 0x11b   :  { %v769_v3 = vpop.f32.mrf.mxu1  ;;  %v697_v34 = vadd.f32 %v696_v2, %v152_v19  ;;  %v766_v56 = vadd.f32 %v765_v63, %v693_v30 }
 0x11c   :  { %v698_v5 = vpop.f32.mrf.mxu0 }
 0x11d   :  { %v771_v6 = vpop.f32.mrf.mxu1  ;;  %v699_v40 = vadd.f32 %v698_v5, %v152_v19  ;;  %v770_v60 = vadd.f32 %v769_v3, %v697_v34 }
 0x11e   :  { %v700_v9 = vpop.f32.mrf.mxu0 }
 0x11f   :  { %v1526_v10 = vpop.f32.mrf.mxu1  ;;  %v701_v2 = vadd.f32 %v700_v9, %v157_v41  ;;  %v772_v8 = vadd.f32 %v771_v6, %v699_v40 }
 0x120   :  { %v702_v14 = vpop.f32.mrf.mxu0 }
 0x121   :  { %v1528_v15 = vpop.f32.mrf.mxu1  ;;  %v703_v11 = vadd.f32 %v702_v14, %v157_v41 }
 0x122   :  { %v812_v23 = vpop.f32.mrf.mxu0 }
 0x123   :  { %v832_v24 = vpop.f32.mrf.mxu1  ;;  %v813_v27 = vadd.f32 %v812_v23, %v740_v16 }
 0x124   :  { %v833_v28 = vadd.f32 %v832_v24, %v760_v18  ;;  %v814_v31 = vpop.f32.mrf.mxu0  ;;  %v774_v18 = vadd.f32 %v1526_v10, %v701_v2 }
 0x125   :  { %v834_v32 = vpop.f32.mrf.mxu1  ;;  %v815_v35 = vadd.f32 %v814_v31, %v742_v25  ;;  %v851_v46 = vmax.f32 %v813_v27, 0.0  ;;  %v756_v27 = vadd.f32 %v1524_v53, %v683_v0 }
 0x126   :  { %v835_v36 = vadd.f32 %v834_v32, %v762_v26  ;;  %v816_v42 = vpop.f32.mrf.mxu0  ;;  %v859_v51 = vmax.f32 %v833_v28, 0.0  ;;  %v776_v28 = vadd.f32 %v1528_v15, %v703_v11 }
 0x127   :  { %v836_v44 = vpop.f32.mrf.mxu1  ;;  %v852_v54 = vmax.f32 %v815_v35, 0.0  ;;  %v817_v45 = vadd.f32 %v816_v42, %v744_v33 }
 0x128   :  { %v860_v47 = vmax.f32 %v835_v36, 0.0  ;;  %v837_v1 = vadd.f32 %v836_v44, %v764_v39  ;;  %v818_v57 = vpop.f32.mrf.mxu0 }
 0x129   :  { %v838_v58 = vpop.f32.mrf.mxu1  ;;  %v1034_v61 = vpack.c.bf16 %v852_v54, %v851_v46  ;;  %v819_v48 = vadd.f32 %v818_v57, %v746_v37  ;;  %v853_v3 = vmax.f32 %v817_v45, 0.0 }
 0x12a   :  { %v1038_v62 = vpack.c.bf16 %v860_v47, %v859_v51  ;;  %v839_v63 = vadd.f32 %v838_v58, %v766_v56  ;;  %v822_v5 = vpop.f32.mrf.mxu0  ;;  %v861_v4 = vmax.f32 %v837_v1, 0.0 }
 0x12b   :  { %v842_v7 = vpop.f32.mrf.mxu1  ;;  %918 = vst.msk [vmem:[%s1586_s3] sm:$0xff] %vm1533_vm3, %v1034_v61  ;;  %v823_v49 = vadd.f32 %v822_v5, %v750_v38  ;;  %v854_v9 = vmax.f32 %v819_v48, 0.0 }
 0x12c   :  { %922 = vst.msk [vmem:[%s1586_s3 + $0x20] sm:$0xff] %vm1533_vm3, %v1038_v62  ;;  %v843_v52 = vadd.f32 %v842_v7, %v770_v60  ;;  %v862_v12 = vmax.f32 %v839_v63, 0.0  ;;  %v824_v6 = vpop.f32.mrf.mxu0 }
 0x12d   :  { %v844_v13 = vpop.f32.mrf.mxu1  ;;  %v825_v14 = vadd.f32 %v824_v6, %v752_v55  ;;  %v1035_v19 = vpack.c.bf16 %v854_v9, %v853_v3  ;;  %v855_v23 = vmax.f32 %v823_v49, 0.0 }
 0x12e   :  { %v845_v16 = vadd.f32 %v844_v13, %v772_v8  ;;  %v1039_v20 = vpack.c.bf16 %v862_v12, %v861_v4  ;;  %v826_v21 = vpop.f32.mrf.mxu0  ;;  %v863_v24 = vmax.f32 %v843_v52, 0.0 }
 0x12f   :  { %v846_v22 = vpop.f32.mrf.mxu1  ;;  %v856_v25 = vmax.f32 %v825_v14, 0.0  ;;  %919 = vst.msk [vmem:[%s1586_s3 + $0x8] sm:$0xff] %vm1533_vm3, %v1035_v19  ;;  %v827_v50 = vadd.f32 %v826_v21, %v754_v17 }
 0x130   :  { %v864_v26 = vmax.f32 %v845_v16, 0.0  ;;  %923 = vst.msk [vmem:[%s1586_s3 + $0x28] sm:$0xff] %vm1533_vm3, %v1039_v20  ;;  %v847_v10 = vadd.f32 %v846_v22, %v774_v18  ;;  %v828_v29 = vpop.f32.mrf.mxu0 }
 0x131   :  { %v848_v30 = vpop.f32.mrf.mxu1  ;;  %v1036_v31 = vpack.c.bf16 %v856_v25, %v855_v23  ;;  %v829_v32 = vadd.f32 %v828_v29, %v756_v27  ;;  %v857_v33 = vmax.f32 %v827_v50, 0.0 }
 0x132   :  { %v1040_v53 = vpack.c.bf16 %v864_v26, %v863_v24  ;;  %v849_v15 = vadd.f32 %v848_v30, %v776_v28  ;;  %v865_v34 = vmax.f32 %v847_v10, 0.0 }
 0x133   :  { %920 = vst.msk [vmem:[%s1586_s3 + $0x10] sm:$0xff] %vm1533_vm3, %v1036_v31  ;;  %v858_v35 = vmax.f32 %v829_v32, 0.0 }
 0x134   :  { %924 = vst.msk [vmem:[%s1586_s3 + $0x30] sm:$0xff] %vm1533_vm3, %v1040_v53  ;;  %v866_v36 = vmax.f32 %v849_v15, 0.0 }
 0x135   :  { %v1037_v37 = vpack.c.bf16 %v858_v35, %v857_v33 }
 0x136   :  { %v1041_v38 = vpack.c.bf16 %v866_v36, %v865_v34 }
 0x137   :  { %921 = vst.msk [vmem:[%s1586_s3 + $0x18] sm:$0xff] %vm1533_vm3, %v1037_v37 }
 0x138   :  { %925 = vst.msk [vmem:[%s1586_s3 + $0x38] sm:$0xff] %vm1533_vm3, %v1041_v38 }

// kernel: dqn_forward.7
= control target key start
LH: loop header
LB: loop body
LE: loop exit
PB: predicated region body
PF: predicated region fallthrough
CT: control target
= control target key end

     0   :  { %s17099_s24 = smov 0   ;;  %s19518_s0 = inlined_call_operand.vmem [shape: bf16[1,12544], index: 0, kind: input, shape index: {}]   ;;  %s19519_s1 = inlined_call_operand.vmem [shape: bf16[12544,512], index: 1, kind: input, shape index: {}]   ;;  %s19520_s2 = inlined_call_operand.vmem [shape: f32[1,512], index: 2, kind: input, shape index: {}]   ;;  %s19521_s3 = inlined_call_operand.vmem [shape: bf16[512,256], index: 3, kind: input, shape index: {}]   ;;  %s19522_s4 = inlined_call_operand.vmem [shape: f32[1,256], index: 4, kind: input, shape index: {}]   ;;  %s19523_s5 = inlined_call_operand.vmem [shape: bf16[256,128], index: 5, kind: input, shape index: {}]   ;;  %s19524_s6 = inlined_call_operand.vmem [shape: f32[1,128], index: 6, kind: input, shape index: {}]   ;;  %s19525_s7 = inlined_call_operand.vmem [shape: f32[1,128], index: 7, kind: output, shape index: {}]  }
   0x1 LB: > { %s17105_s25 = sadd.s32 4294967295, %s17054_s24   ;;  %p12888_p0 = scmp.ge.s32.totalorder %s17054_s24, 1  ;;  %s17054_s24 = sphi %s17099_s24, %s17_s24  }
   0x2   : > { %p244_p1 = scmp.lt.s32.totalorder %s17054_s24, 3 }
   0x4   : > { %p245_p2 = pnand %p12888_p0, %p244_p1 }
   0x6   : > { %248 = sbr.rel (%p245_p2) target bundleno = 2271 (0x8df), region = 48 }
   0xb   : > { %s276_s26 = smul.u32 49, %s17105_s25  ;;  %p12891_p5 = scmp.ne.s32.totalorder %s17105_s25, 0 }
   0xc   : > { %s281_s27 = smul.u32 784, %s17105_s25 }
   0xd   : > { %p277_p3 = scmp.lt.s32.totalorder %s276_s26, 97 }
   0xe   : > { %p282_p4 = scmp.lt.s32.totalorder %s281_s27, 1567  ;;  %292 = sbr.rel (%p12891_p5) target bundleno = 23 (0x17), region = 52 }
   0xf   : > { %s19548_s26 = smov (!%p277_p3, %s276_s26), 97 }
  0x10   : > { %s19550_s27 = smov (!%p282_p4, %s281_s27), 1567  ;;  %s17114_s30 = scalar_lea.vmem %s19518_s0, %s19548_s26 }
  0x11   : > { %s14544_s8 = sshll.u32 %s19550_s27, 4 }
  0x12   : > { %s17119_s11 = scalar_lea.vmem %s19519_s1, %s14544_s8 }
  0x13   : > { %v293_v0 = vlaneseq  ;;  %v17056_v1 = vmov 0.0  }
  0x15   : > { %vm295_vm0 = vcmp.lt.s32.totalorder %v293_v0, 512 }
  0x16   : > { %297 = vst.msk [vmem:[#allocation2] sm:$0xf] %vm295_vm0, %v17056_v1 }
  0x17 PF: > { %v14578_v2 = vld [vmem:[%s17119_s11 + $0xe4] ss:$16 sps:$4 sm:$0xff]   ;;  %v14582_v4 = vld [vmem:[%s17119_s11 + $0xe0] ss:$16 sps:$4 sm:$0xff]   ;;  %v17057_v38 = vmov 1966171168   ;;  %v19526_v40 = vlaneseq }
  0x18   : > { %v14580_v3 = vld [vmem:[%s17119_s11 + $0x2e4] ss:$16 sps:$4 sm:$0xff]   ;;  %10078 = vmatprep.subr.bf16.mxu0 %v14578_v2  ;;  %v14583_v5 = vld [vmem:[%s17119_s11 + $0x2e0] ss:$16 sps:$4 sm:$0xff]   ;;  %v1883_v39 = vunpack.c.l.s4 %v17057_v38  ;;  %p14461_p6 = scmp.ne.s32.totalorder %s17105_s25, 1 }
  0x19   : > { %10119 = vmatprep.subr.bf16.mxu1 %v14580_v3  ;;  %v14584_v6 = vld [vmem:[%s17119_s11 + $0xc4] ss:$16 sps:$4 sm:$0xff]   ;;  %10079 = vmatpush1.bf16.msra.mxu0 %v14582_v4  ;;  %v14588_v8 = vld [vmem:[%s17119_s11 + $0xc0] ss:$16 sps:$4 sm:$0xff]   ;;  %v17162_v45 = vshrl.u32 %v19526_v40, 7 }
  0x1a   : > { %10120 = vmatpush1.bf16.msra.mxu1 %v14583_v5  ;;  %v14586_v7 = vld [vmem:[%s17119_s11 + $0x2c4] ss:$16 sps:$4 sm:$0xff]   ;;  %10080 = vmatprep.subr.bf16.mxu0 %v14584_v6  ;;  %v14589_v9 = vld [vmem:[%s17119_s11 + $0x2c0] ss:$16 sps:$4 sm:$0xff]   ;;  %v1884_v44 = vunpack.c.0.s8 %v1883_v39 }
  0x1b   : > { %10121 = vmatprep.subr.bf16.mxu1 %v14586_v7  ;;  %v14590_v10 = vld [vmem:[%s17119_s11 + $0xa4] ss:$16 sps:$4 sm:$0xff]   ;;  %v14594_v12 = vld [vmem:[%s17119_s11 + $0xa0] ss:$16 sps:$4 sm:$0xff]   ;;  %19534 = vst [vmem:[#allocation3_spill] sm:$0xff] %v17162_v45 }
  0x1c   : > { %v14592_v11 = vld [vmem:[%s17119_s11 + $0x2a4] ss:$16 sps:$4 sm:$0xff]   ;;  %v14595_v13 = vld [vmem:[%s17119_s11 + $0x2a0] ss:$16 sps:$4 sm:$0xff]   ;;  %v17170_v51 = vsub.s32 %v1884_v44, %v17162_v45 }
  0x1d   : > { %10081 = vmatpush1.bf16.msra.mxu0 %v14588_v8  ;;  %v14596_v14 = vld [vmem:[%s17119_s11 + $0x84] ss:$16 sps:$4 sm:$0xff]   ;;  %v14600_v16 = vld [vmem:[%s17119_s11 + $0x80] ss:$16 sps:$4 sm:$0xff]  }
  0x1e   : > { %10122 = vmatpush1.bf16.msra.mxu1 %v14589_v9  ;;  %10082 = vmatprep.subr.bf16.mxu0 %v14590_v10  ;;  %v14598_v15 = vld [vmem:[%s17119_s11 + $0x284] ss:$16 sps:$4 sm:$0xff]   ;;  %v14601_v17 = vld [vmem:[%s17119_s11 + $0x280] ss:$16 sps:$4 sm:$0xff]  }
  0x1f   : > { %10123 = vmatprep.subr.bf16.mxu1 %v14592_v11  ;;  %v14602_v18 = vld [vmem:[%s17119_s11 + $0x64] ss:$16 sps:$4 sm:$0xff]   ;;  %v14606_v20 = vld [vmem:[%s17119_s11 + $0x60] ss:$16 sps:$4 sm:$0xff]  }
  0x20   : > { %v14604_v19 = vld [vmem:[%s17119_s11 + $0x264] ss:$16 sps:$4 sm:$0xff]   ;;  %v14607_v21 = vld [vmem:[%s17119_s11 + $0x260] ss:$16 sps:$4 sm:$0xff]  }
  0x21   : > { %10083 = vmatpush1.bf16.msra.mxu0 %v14594_v12  ;;  %v14608_v22 = vld [vmem:[%s17119_s11 + $0x44] ss:$16 sps:$4 sm:$0xff]   ;;  %v14612_v24 = vld [vmem:[%s17119_s11 + $0x40] ss:$16 sps:$4 sm:$0xff]  }
  0x22   : > { %10124 = vmatpush1.bf16.msra.mxu1 %v14595_v13  ;;  %10084 = vmatprep.subr.bf16.mxu0 %v14596_v14  ;;  %v14610_v23 = vld [vmem:[%s17119_s11 + $0x244] ss:$16 sps:$4 sm:$0xff]   ;;  %v14613_v25 = vld [vmem:[%s17119_s11 + $0x240] ss:$16 sps:$4 sm:$0xff]  }
  0x23   : > { %10125 = vmatprep.subr.bf16.mxu1 %v14598_v15  ;;  %v14614_v26 = vld [vmem:[%s17119_s11 + $0x24] ss:$16 sps:$4 sm:$0xff]   ;;  %v14618_v28 = vld [vmem:[%s17119_s11 + $0x20] ss:$16 sps:$4 sm:$0xff]  }
  0x24   : > { %v14616_v27 = vld [vmem:[%s17119_s11 + $0x224] ss:$16 sps:$4 sm:$0xff]   ;;  %v14619_v29 = vld [vmem:[%s17119_s11 + $0x220] ss:$16 sps:$4 sm:$0xff]  }
  0x25   : > { %10085 = vmatpush1.bf16.msra.mxu0 %v14600_v16  ;;  %v14620_v30 = vld [vmem:[%s17119_s11 + $0x4] ss:$16 sps:$4 sm:$0xff]   ;;  %v14624_v32 = vld [vmem:[%s17119_s11] ss:$16 sps:$4 sm:$0xff]  }
  0x26   : > { %10126 = vmatpush1.bf16.msra.mxu1 %v14601_v17  ;;  %10086 = vmatprep.subr.bf16.mxu0 %v14602_v18  ;;  %v14622_v31 = vld [vmem:[%s17119_s11 + $0x204] ss:$16 sps:$4 sm:$0xff]   ;;  %v14625_v33 = vld [vmem:[%s17119_s11 + $0x200] ss:$16 sps:$4 sm:$0xff]  }
  0x27   : > { %10127 = vmatprep.subr.bf16.mxu1 %v14604_v19  ;;  %v14626_v34 = vld [vmem:[%s17119_s11 + $0x1e4] ss:$16 sps:$4 sm:$0xff]   ;;  %v14630_v36 = vld [vmem:[%s17119_s11 + $0x1e0] ss:$16 sps:$4 sm:$0xff]  }
  0x28   : > { %v14628_v35 = vld [vmem:[%s17119_s11 + $0x3e4] ss:$16 sps:$4 sm:$0xff]   ;;  %v14631_v37 = vld [vmem:[%s17119_s11 + $0x3e0] ss:$16 sps:$4 sm:$0xff]  }
  0x29   : > { %10087 = vmatpush1.bf16.msra.mxu0 %v14606_v20  ;;  %v14632_v41 = vld [vmem:[%s17119_s11 + $0x1c4] ss:$16 sps:$4 sm:$0xff]   ;;  %v14636_v43 = vld [vmem:[%s17119_s11 + $0x1c0] ss:$16 sps:$4 sm:$0xff]  }
  0x2a   : > { %10128 = vmatpush1.bf16.msra.mxu1 %v14607_v21  ;;  %10088 = vmatprep.subr.bf16.mxu0 %v14608_v22  ;;  %v14634_v42 = vld [vmem:[%s17119_s11 + $0x3c4] ss:$16 sps:$4 sm:$0xff]   ;;  %v14637_v46 = vld [vmem:[%s17119_s11 + $0x3c0] ss:$16 sps:$4 sm:$0xff]  }
  0x2b   : > { %10129 = vmatprep.subr.bf16.mxu1 %v14610_v23  ;;  %v14638_v47 = vld [vmem:[%s17119_s11 + $0x1a4] ss:$16 sps:$4 sm:$0xff]   ;;  %v14642_v49 = vld [vmem:[%s17119_s11 + $0x1a0] ss:$16 sps:$4 sm:$0xff]  }
  0x2c   : > { %v14640_v48 = vld [vmem:[%s17119_s11 + $0x3a4] ss:$16 sps:$4 sm:$0xff]   ;;  %v14643_v50 = vld [vmem:[%s17119_s11 + $0x3a0] ss:$16 sps:$4 sm:$0xff]  }
  0x2d   : > { %10089 = vmatpush1.bf16.msra.mxu0 %v14612_v24  ;;  %v14644_v52 = vld [vmem:[%s17119_s11 + $0x184] ss:$16 sps:$4 sm:$0xff]   ;;  %v14648_v55 = vld [vmem:[%s17119_s11 + $0x180] ss:$16 sps:$4 sm:$0xff]  }
  0x2e   : > { %10130 = vmatpush1.bf16.msra.mxu1 %v14613_v25  ;;  %10090 = vmatprep.subr.bf16.mxu0 %v14614_v26  ;;  %v14646_v53 = vld [vmem:[%s17119_s11 + $0x384] ss:$16 sps:$4 sm:$0xff]   ;;  %v14649_v57 = vld [vmem:[%s17119_s11 + $0x380] ss:$16 sps:$4 sm:$0xff]  }
  0x2f   : > { %10131 = vmatprep.subr.bf16.mxu1 %v14616_v27  ;;  %v299_v54 = vld [vmem:[%s17114_s30] sm:$0xff] }
  0x30   : > { %v1888_v56 = vrot.slane %v299_v54, %v17170_v51  ;;  %v14650_v58 = vld [vmem:[%s17119_s11 + $0x164] ss:$16 sps:$4 sm:$0xff]   ;;  %v14654_v61 = vld [vmem:[%s17119_s11 + $0x160] ss:$16 sps:$4 sm:$0xff]   ;;  %v1881_v3 = vcombine.high %v299_v54, %v299_v54 }
  0x31   : > { %10091 = vmatpush1.bf16.msra.mxu0 %v14618_v28  ;;  %v14652_v59 = vld [vmem:[%s17119_s11 + $0x364] ss:$16 sps:$4 sm:$0xff]   ;;  %v14655_v63 = vld [vmem:[%s17119_s11 + $0x360] ss:$16 sps:$4 sm:$0xff]  }
  0x32   : > { %10132 = vmatpush1.bf16.msra.mxu1 %v14619_v29  ;;  %10092 = vmatprep.subr.bf16.mxu0 %v14620_v30  ;;  %v1896_v60 = vcombine.high %v1888_v56, %v1888_v56  ;;  %v14656_v0 = vld [vmem:[%s17119_s11 + $0x144] ss:$16 sps:$4 sm:$0xff]   ;;  %v14660_v4 = vld [vmem:[%s17119_s11 + $0x140] ss:$16 sps:$4 sm:$0xff]   ;;  %v17198_v8 = vrot.slane %v1881_v3, %v17170_v51  ;;  %v17208_v15 = vrot.slane %v1888_v56, %v17170_v51 }
  0x33   : > { %10133 = vmatprep.subr.bf16.mxu1 %v14622_v31  ;;  %v14658_v1 = vld [vmem:[%s17119_s11 + $0x344] ss:$16 sps:$4 sm:$0xff]   ;;  %v14661_v5 = vld [vmem:[%s17119_s11 + $0x340] ss:$16 sps:$4 sm:$0xff]  }
  0x34   : > { %v17182_v62 = vrot.slane %v1896_v60, %v17170_v51  ;;  %v14662_v6 = vld [vmem:[%s17119_s11 + $0x124] ss:$16 sps:$4 sm:$0xff]   ;;  %v14666_v9 = vld [vmem:[%s17119_s11 + $0x120] ss:$16 sps:$4 sm:$0xff]   ;;  %v1897_v13 = vcombine.high %v17198_v8, %v17198_v8  ;;  %v17218_v20 = vcombine.high %v17208_v15, %v17208_v15 }
  0x35   : > { %10093 = vmatpush1.bf16.msra.mxu0 %v14624_v32  ;;  %v14664_v7 = vld [vmem:[%s17119_s11 + $0x324] ss:$16 sps:$4 sm:$0xff]   ;;  %v14667_v10 = vld [vmem:[%s17119_s11 + $0x320] ss:$16 sps:$4 sm:$0xff]  }
  0x36   : > { %10134 = vmatpush1.bf16.msra.mxu1 %v14625_v33  ;;  %10094 = vmatprep.subr.bf16.mxu0 %v14626_v34  ;;  %v17189_v2 = vcombine.high %v17182_v62, %v17182_v62  ;;  %v14668_v11 = vld [vmem:[%s17119_s11 + $0x104] ss:$16 sps:$4 sm:$0xff]   ;;  %v14672_v14 = vld [vmem:[%s17119_s11 + $0x100] ss:$16 sps:$4 sm:$0xff]   ;;  %v17214_v19 = vrot.slane %v1897_v13, %v17170_v51 }
  0x37   : > { %10135 = vmatprep.subr.bf16.mxu1 %v14628_v35  ;;  %10110 = vmatprep.mubr.bf16.mxu0 %v17182_v62  ;;  %v14670_v12 = vld [vmem:[%s17119_s11 + $0x304] ss:$16 sps:$4 sm:$0xff]   ;;  %v14673_v16 = vld [vmem:[%s17119_s11 + $0x300] ss:$16 sps:$4 sm:$0xff]  }
  0x38   : > { %10151 = vmatprep.mubr.bf16.mxu1 %v17189_v2  ;;  %v14676_v17 = vld [vmem:[%s17119_s11 + $0x4e4] ss:$16 sps:$4 sm:$0xff]   ;;  %v14674_v21 = vld [vmem:[%s17119_s11 + $0x4e0] ss:$16 sps:$4 sm:$0xff]   ;;  %v17226_v25 = vcombine.high %v17214_v19, %v17214_v19 }
  0x39   : > { %10095 = vmatpush2.bf16.msra.mxu0 %v14630_v36  ;;  %v14679_v18 = vld [vmem:[%s17119_s11 + $0x6e4] ss:$16 sps:$4 sm:$0xff]   ;;  %v14677_v22 = vld [vmem:[%s17119_s11 + $0x6e0] ss:$16 sps:$4 sm:$0xff]  }
  0x3a   : > { %10136 = vmatpush2.bf16.msra.mxu1 %v14631_v37  ;;  %10096 = vmatprep.subr.bf16.mxu0 %v14632_v41  ;;  %v14682_v23 = vld [vmem:[%s17119_s11 + $0x4c4] ss:$16 sps:$4 sm:$0xff]   ;;  %v14680_v26 = vld [vmem:[%s17119_s11 + $0x4c0] ss:$16 sps:$4 sm:$0xff]  }
  0x3b   : > { %10137 = vmatprep.subr.bf16.mxu1 %v14634_v42  ;;  %v14685_v24 = vld [vmem:[%s17119_s11 + $0x6c4] ss:$16 sps:$4 sm:$0xff]   ;;  %v14683_v27 = vld [vmem:[%s17119_s11 + $0x6c0] ss:$16 sps:$4 sm:$0xff]  }
  0x3c   : > { %v14688_v28 = vld [vmem:[%s17119_s11 + $0x4a4] ss:$16 sps:$4 sm:$0xff]   ;;  %v14686_v30 = vld [vmem:[%s17119_s11 + $0x4a0] ss:$16 sps:$4 sm:$0xff]  }
  0x3d   : > { %10097 = vmatpush2.bf16.msra.mxu0 %v14636_v43  ;;  %v14691_v29 = vld [vmem:[%s17119_s11 + $0x6a4] ss:$16 sps:$4 sm:$0xff]   ;;  %v14689_v31 = vld [vmem:[%s17119_s11 + $0x6a0] ss:$16 sps:$4 sm:$0xff]  }
  0x3e   : > { %10138 = vmatpush2.bf16.msra.mxu1 %v14637_v46  ;;  %10098 = vmatprep.subr.bf16.mxu0 %v14638_v47  ;;  %v14694_v32 = vld [vmem:[%s17119_s11 + $0x484] ss:$16 sps:$4 sm:$0xff]   ;;  %v14692_v34 = vld [vmem:[%s17119_s11 + $0x480] ss:$16 sps:$4 sm:$0xff]  }
  0x3f   : > { %10139 = vmatprep.subr.bf16.mxu1 %v14640_v48  ;;  %v14697_v33 = vld [vmem:[%s17119_s11 + $0x684] ss:$16 sps:$4 sm:$0xff]   ;;  %v14695_v35 = vld [vmem:[%s17119_s11 + $0x680] ss:$16 sps:$4 sm:$0xff]  }
  0x40   : > { %v14700_v36 = vld [vmem:[%s17119_s11 + $0x464] ss:$16 sps:$4 sm:$0xff]   ;;  %v14698_v38 = vld [vmem:[%s17119_s11 + $0x460] ss:$16 sps:$4 sm:$0xff]  }
  0x41   : > { %10099 = vmatpush2.bf16.msra.mxu0 %v14642_v49  ;;  %v14703_v37 = vld [vmem:[%s17119_s11 + $0x664] ss:$16 sps:$4 sm:$0xff]   ;;  %v14701_v39 = vld [vmem:[%s17119_s11 + $0x660] ss:$16 sps:$4 sm:$0xff]  }
  0x42   : > { %10140 = vmatpush2.bf16.msra.mxu1 %v14643_v50  ;;  %10100 = vmatprep.subr.bf16.mxu0 %v14644_v52  ;;  %v14706_v41 = vld [vmem:[%s17119_s11 + $0x444] ss:$16 sps:$4 sm:$0xff]   ;;  %v14704_v43 = vld [vmem:[%s17119_s11 + $0x440] ss:$16 sps:$4 sm:$0xff]  }
  0x43   : > { %10141 = vmatprep.subr.bf16.mxu1 %v14646_v53  ;;  %v14709_v42 = vld [vmem:[%s17119_s11 + $0x644] ss:$16 sps:$4 sm:$0xff]   ;;  %v14707_v44 = vld [vmem:[%s17119_s11 + $0x640] ss:$16 sps:$4 sm:$0xff]  }
  0x44   : > { %v14712_v46 = vld [vmem:[%s17119_s11 + $0x424] ss:$16 sps:$4 sm:$0xff]   ;;  %v14710_v48 = vld [vmem:[%s17119_s11 + $0x420] ss:$16 sps:$4 sm:$0xff]  }
  0x45   : > { %10101 = vmatpush2.bf16.msra.mxu0 %v14648_v55  ;;  %v14715_v47 = vld [vmem:[%s17119_s11 + $0x624] ss:$16 sps:$4 sm:$0xff]   ;;  %v14713_v49 = vld [vmem:[%s17119_s11 + $0x620] ss:$16 sps:$4 sm:$0xff]  }
  0x46   : > { %10142 = vmatpush2.bf16.msra.mxu1 %v14649_v57  ;;  %10102 = vmatprep.subr.bf16.mxu0 %v14650_v58  ;;  %v14718_v50 = vld [vmem:[%s17119_s11 + $0x404] ss:$16 sps:$4 sm:$0xff]   ;;  %v14716_v53 = vld [vmem:[%s17119_s11 + $0x400] ss:$16 sps:$4 sm:$0xff]  }
  0x47   : > { %10143 = vmatprep.subr.bf16.mxu1 %v14652_v59  ;;  %v14721_v52 = vld [vmem:[%s17119_s11 + $0x604] ss:$16 sps:$4 sm:$0xff]   ;;  %v14719_v54 = vld [vmem:[%s17119_s11 + $0x600] ss:$16 sps:$4 sm:$0xff]  }
  0x48   : > { %v14724_v55 = vld [vmem:[%s17119_s11 + $0x5e4] ss:$16 sps:$4 sm:$0xff]   ;;  %v14722_v57 = vld [vmem:[%s17119_s11 + $0x5e0] ss:$16 sps:$4 sm:$0xff]  }
  0x49   : > { %10103 = vmatpush2.bf16.msra.mxu0 %v14654_v61  ;;  %v14727_v56 = vld [vmem:[%s17119_s11 + $0x7e4] ss:$16 sps:$4 sm:$0xff]   ;;  %v14725_v58 = vld [vmem:[%s17119_s11 + $0x7e0] ss:$16 sps:$4 sm:$0xff]  }
  0x4a   : > { %10144 = vmatpush2.bf16.msra.mxu1 %v14655_v63  ;;  %10104 = vmatprep.subr.bf16.mxu0 %v14656_v0  ;;  %v14730_v59 = vld [vmem:[%s17119_s11 + $0x5c4] ss:$16 sps:$4 sm:$0xff]   ;;  %v14728_v61 = vld [vmem:[%s17119_s11 + $0x5c0] ss:$16 sps:$4 sm:$0xff]  }
  0x4b   : > { %10145 = vmatprep.subr.bf16.mxu1 %v14658_v1  ;;  %v14733_v60 = vld [vmem:[%s17119_s11 + $0x7c4] ss:$16 sps:$4 sm:$0xff]   ;;  %v14731_v63 = vld [vmem:[%s17119_s11 + $0x7c0] ss:$16 sps:$4 sm:$0xff]  }
  0x4c   : > { %v14736_v0 = vld [vmem:[%s17119_s11 + $0x5a4] ss:$16 sps:$4 sm:$0xff]   ;;  %v14734_v3 = vld [vmem:[%s17119_s11 + $0x5a0] ss:$16 sps:$4 sm:$0xff]  }
  0x4d   : > { %10105 = vmatpush2.bf16.msra.mxu0 %v14660_v4  ;;  %v14739_v1 = vld [vmem:[%s17119_s11 + $0x7a4] ss:$16 sps:$4 sm:$0xff]   ;;  %v14737_v4 = vld [vmem:[%s17119_s11 + $0x7a0] ss:$16 sps:$4 sm:$0xff]  }
  0x4e   : > { %10146 = vmatpush2.bf16.msra.mxu1 %v14661_v5  ;;  %10106 = vmatprep.subr.bf16.mxu0 %v14662_v6  ;;  %v14742_v5 = vld [vmem:[%s17119_s11 + $0x584] ss:$16 sps:$4 sm:$0xff]   ;;  %v14749_v13 = vld [vmem:[%s17119_s11 + $0x760] ss:$16 sps:$4 sm:$0xff]  }
  0x4f   : > { %10147 = vmatprep.subr.bf16.mxu1 %v14664_v7  ;;  %v14745_v6 = vld [vmem:[%s17119_s11 + $0x784] ss:$16 sps:$4 sm:$0xff]   ;;  %v14740_v7 = vld [vmem:[%s17119_s11 + $0x580] ss:$16 sps:$4 sm:$0xff]  }
  0x50   : > { %v15555_v40 = vld [vmem:[%s17119_s11 + $0x28a0] ss:$16 sps:$4 sm:$0xff]  }
  0x51   : > { %10107 = vmatpush2.bf16.msra.mxu0 %v14666_v9  ;;  %v14743_v9 = vld [vmem:[%s17119_s11 + $0x780] ss:$16 sps:$4 sm:$0xff]  }
  0x52   : > { %10148 = vmatpush2.bf16.msra.mxu1 %v14667_v10  ;;  %10108 = vmatprep.subr.bf16.mxu0 %v14668_v11  ;;  %v14748_v10 = vld [vmem:[%s17119_s11 + $0x564] ss:$16 sps:$4 sm:$0xff]   ;;  %v15558_v45 = vld [vmem:[%s17119_s11 + $0x2aa0] ss:$16 sps:$4 sm:$0xff]  }
  0x53   : > { %10149 = vmatprep.subr.bf16.mxu1 %v14670_v12  ;;  %v14751_v11 = vld [vmem:[%s17119_s11 + $0x764] ss:$16 sps:$4 sm:$0xff]   ;;  %v14746_v12 = vld [vmem:[%s17119_s11 + $0x560] ss:$16 sps:$4 sm:$0xff]  }
  0x55   : > { %10109 = vmatpush2.bf16.msra.mxu0 %v14672_v14  ;;  %v14754_v14 = vld [vmem:[%s17119_s11 + $0x544] ss:$16 sps:$4 sm:$0xff]  }
  0x56   : > { %10150 = vmatpush2.bf16.msra.mxu1 %v14673_v16  ;;  %10160 = vmatprep.subr.bf16.mxu0 %v14676_v17  ;;  %v14757_v16 = vld [vmem:[%s17119_s11 + $0x744] ss:$16 sps:$4 sm:$0xff]   ;;  %v14752_v17 = vld [vmem:[%s17119_s11 + $0x540] ss:$16 sps:$4 sm:$0xff]  }
  0x57   : > { %10201 = vmatprep.subr.bf16.mxu1 %v14679_v18  ;;  %v14755_v18 = vld [vmem:[%s17119_s11 + $0x740] ss:$16 sps:$4 sm:$0xff]  }
  0x58   : > { %10111 = vmatmul.mubr.bf16.vlgmr.msra.gmra.mxu0 %v17208_v15 }
  0x59   : > { %10152 = vmatmul.mubr.bf16.vlgmr.msra.gmra.mxu1 %v17218_v20  ;;  %10161 = vmatpush1.bf16.msra.mxu0 %v14674_v21  ;;  %v14760_v21 = vld [vmem:[%s17119_s11 + $0x524] ss:$16 sps:$4 sm:$0xff]  }
  0x5a   : > { %10202 = vmatpush1.bf16.msra.mxu1 %v14677_v22  ;;  %10162 = vmatprep.subr.bf16.mxu0 %v14682_v23  ;;  %v14763_v22 = vld [vmem:[%s17119_s11 + $0x724] ss:$16 sps:$4 sm:$0xff]   ;;  %v14758_v23 = vld [vmem:[%s17119_s11 + $0x520] ss:$16 sps:$4 sm:$0xff]  }
  0x5b   : > { %10203 = vmatprep.subr.bf16.mxu1 %v14685_v24  ;;  %10192 = vmatprep.mubr.bf16.mxu0 %v17214_v19  ;;  %v14761_v24 = vld [vmem:[%s17119_s11 + $0x720] ss:$16 sps:$4 sm:$0xff]  }
  0x5c   : > { %10233 = vmatprep.mubr.bf16.mxu1 %v17226_v25 }
  0x5d   : > { %10163 = vmatpush1.bf16.msra.mxu0 %v14680_v26  ;;  %v14766_v26 = vld [vmem:[%s17119_s11 + $0x504] ss:$16 sps:$4 sm:$0xff]  }
  0x5e   : > { %10204 = vmatpush1.bf16.msra.mxu1 %v14683_v27  ;;  %10164 = vmatprep.subr.bf16.mxu0 %v14688_v28  ;;  %v14769_v27 = vld [vmem:[%s17119_s11 + $0x704] ss:$16 sps:$4 sm:$0xff]   ;;  %v14764_v28 = vld [vmem:[%s17119_s11 + $0x500] ss:$16 sps:$4 sm:$0xff]  }
  0x5f   : > { %10205 = vmatprep.subr.bf16.mxu1 %v14691_v29  ;;  %v17291_v29 = vrot.slane %v17198_v8, %v17170_v51  ;;  %v14774_v8 = vld [vmem:[%s17119_s11 + $0xae0] ss:$16 sps:$4 sm:$0xff]  }
  0x61   : > { %10165 = vmatpush1.bf16.msra.mxu0 %v14686_v30  ;;  %v14767_v30 = vld [vmem:[%s17119_s11 + $0x700] ss:$16 sps:$4 sm:$0xff]  }
  0x62   : > { %10206 = vmatpush1.bf16.msra.mxu1 %v14689_v31  ;;  %10166 = vmatprep.subr.bf16.mxu0 %v14694_v32  ;;  %v14773_v31 = vld [vmem:[%s17119_s11 + $0x8e4] ss:$16 sps:$4 sm:$0xff]  }
  0x63   : > { %10207 = vmatprep.subr.bf16.mxu1 %v14697_v33  ;;  %v14776_v32 = vld [vmem:[%s17119_s11 + $0xae4] ss:$16 sps:$4 sm:$0xff]   ;;  %v17298_v33 = vcombine.high %v17291_v29, %v17291_v29 }
  0x65   : > { %10167 = vmatpush1.bf16.msra.mxu0 %v14692_v34  ;;  %v14771_v34 = vld [vmem:[%s17119_s11 + $0x8e0] ss:$16 sps:$4 sm:$0xff]  }
  0x66   : > { %10208 = vmatpush1.bf16.msra.mxu1 %v14695_v35  ;;  %10168 = vmatprep.subr.bf16.mxu0 %v14700_v36  ;;  %v17303_v35 = vld [vmem:[%s17114_s30 + $0x8] sm:$0xff]  ;;  %v14779_v36 = vld [vmem:[%s17119_s11 + $0x8c4] ss:$16 sps:$4 sm:$0xff]  }
  0x67   : > { %10209 = vmatprep.subr.bf16.mxu1 %v14703_v37  ;;  %v14782_v37 = vld [vmem:[%s17119_s11 + $0xac4] ss:$16 sps:$4 sm:$0xff]  }
  0x69   : > { %10169 = vmatpush1.bf16.msra.mxu0 %v14698_v38  ;;  %v17309_v38 = vrot.slane %v17303_v35, %v17170_v51 }
  0x6a   : > { %10210 = vmatpush1.bf16.msra.mxu1 %v14701_v39  ;;  %10170 = vmatprep.subr.bf16.mxu0 %v14706_v41  ;;  %v14777_v41 = vld [vmem:[%s17119_s11 + $0x8c0] ss:$16 sps:$4 sm:$0xff]  }
  0x6b   : > { %10211 = vmatprep.subr.bf16.mxu1 %v14709_v42  ;;  %v1945_v39 = vcombine.high %v17309_v38, %v17309_v38  ;;  %v14780_v42 = vld [vmem:[%s17119_s11 + $0xac0] ss:$16 sps:$4 sm:$0xff]  }
  0x6d   : > { %10171 = vmatpush1.bf16.msra.mxu0 %v14704_v43  ;;  %v14785_v43 = vld [vmem:[%s17119_s11 + $0x8a4] ss:$16 sps:$4 sm:$0xff]  }
  0x6e   : > { %10212 = vmatpush1.bf16.msra.mxu1 %v14707_v44  ;;  %10172 = vmatprep.subr.bf16.mxu0 %v14712_v46  ;;  %v14788_v44 = vld [vmem:[%s17119_s11 + $0xaa4] ss:$16 sps:$4 sm:$0xff]   ;;  %v17320_v46 = vrot.slane %v1945_v39, %v17170_v51  ;;  %v1930_v39 = vcombine.high %v17303_v35, %v17303_v35  ;;  %v14855_v35 = vld [vmem:[%s17119_s11 + $0x920] ss:$16 sps:$4 sm:$0xff]  }
  0x6f   : > { %10213 = vmatprep.subr.bf16.mxu1 %v14715_v47 }
  0x70   : > { %v17325_v47 = vcombine.high %v17320_v46, %v17320_v46 }
  0x71   : > { %10173 = vmatpush1.bf16.msra.mxu0 %v14710_v48  ;;  %v14783_v48 = vld [vmem:[%s17119_s11 + $0x8a0] ss:$16 sps:$4 sm:$0xff]  }
  0x72   : > { %10214 = vmatpush1.bf16.msra.mxu1 %v14713_v49  ;;  %10174 = vmatprep.subr.bf16.mxu0 %v14718_v50  ;;  %v14786_v49 = vld [vmem:[%s17119_s11 + $0xaa0] ss:$16 sps:$4 sm:$0xff]   ;;  %v14791_v50 = vld [vmem:[%s17119_s11 + $0x884] ss:$16 sps:$4 sm:$0xff]  }
  0x73   : > { %10215 = vmatprep.subr.bf16.mxu1 %v14721_v52  ;;  %v14794_v52 = vld [vmem:[%s17119_s11 + $0xa84] ss:$16 sps:$4 sm:$0xff]  }
  0x75   : > { %10175 = vmatpush1.bf16.msra.mxu0 %v14716_v53  ;;  %v14789_v53 = vld [vmem:[%s17119_s11 + $0x880] ss:$16 sps:$4 sm:$0xff]  }
  0x76   : > { %10216 = vmatpush1.bf16.msra.mxu1 %v14719_v54  ;;  %10176 = vmatprep.subr.bf16.mxu0 %v14724_v55  ;;  %v14792_v54 = vld [vmem:[%s17119_s11 + $0xa80] ss:$16 sps:$4 sm:$0xff]   ;;  %v14797_v55 = vld [vmem:[%s17119_s11 + $0x864] ss:$16 sps:$4 sm:$0xff]  }
  0x77   : > { %10217 = vmatprep.subr.bf16.mxu1 %v14727_v56  ;;  %v14800_v56 = vld [vmem:[%s17119_s11 + $0xa64] ss:$16 sps:$4 sm:$0xff]  }
  0x79   : > { %10177 = vmatpush2.bf16.msra.mxu0 %v14722_v57  ;;  %v14795_v57 = vld [vmem:[%s17119_s11 + $0x860] ss:$16 sps:$4 sm:$0xff]  }
  0x7a   : > { %10218 = vmatpush2.bf16.msra.mxu1 %v14725_v58  ;;  %10178 = vmatprep.subr.bf16.mxu0 %v14730_v59  ;;  %v14798_v58 = vld [vmem:[%s17119_s11 + $0xa60] ss:$16 sps:$4 sm:$0xff]   ;;  %v14803_v59 = vld [vmem:[%s17119_s11 + $0x844] ss:$16 sps:$4 sm:$0xff]  }
  0x7b   : > { %10219 = vmatprep.subr.bf16.mxu1 %v14733_v60  ;;  %v14806_v60 = vld [vmem:[%s17119_s11 + $0xa44] ss:$16 sps:$4 sm:$0xff]  }
  0x7d   : > { %10179 = vmatpush2.bf16.msra.mxu0 %v14728_v61  ;;  %v14801_v61 = vld [vmem:[%s17119_s11 + $0x840] ss:$16 sps:$4 sm:$0xff]  }
  0x7e   : > { %10220 = vmatpush2.bf16.msra.mxu1 %v14731_v63  ;;  %10180 = vmatprep.subr.bf16.mxu0 %v14736_v0  ;;  %v14804_v63 = vld [vmem:[%s17119_s11 + $0xa40] ss:$16 sps:$4 sm:$0xff]   ;;  %v14809_v0 = vld [vmem:[%s17119_s11 + $0x824] ss:$16 sps:$4 sm:$0xff]  }
  0x7f   : > { %10221 = vmatprep.subr.bf16.mxu1 %v14739_v1  ;;  %v14812_v1 = vld [vmem:[%s17119_s11 + $0xa24] ss:$16 sps:$4 sm:$0xff]  }
  0x81   : > { %10181 = vmatpush2.bf16.msra.mxu0 %v14734_v3  ;;  %v14807_v3 = vld [vmem:[%s17119_s11 + $0x820] ss:$16 sps:$4 sm:$0xff]  }
  0x82   : > { %10222 = vmatpush2.bf16.msra.mxu1 %v14737_v4  ;;  %10182 = vmatprep.subr.bf16.mxu0 %v14742_v5  ;;  %v14810_v4 = vld [vmem:[%s17119_s11 + $0xa20] ss:$16 sps:$4 sm:$0xff]   ;;  %v14815_v5 = vld [vmem:[%s17119_s11 + $0x804] ss:$16 sps:$4 sm:$0xff]  }
  0x83   : > { %10223 = vmatprep.subr.bf16.mxu1 %v14745_v6  ;;  %v14818_v6 = vld [vmem:[%s17119_s11 + $0xa04] ss:$16 sps:$4 sm:$0xff]  }
  0x85   : > { %10183 = vmatpush2.bf16.msra.mxu0 %v14740_v7  ;;  %v14813_v7 = vld [vmem:[%s17119_s11 + $0x800] ss:$16 sps:$4 sm:$0xff]  }
  0x86   : > { %10224 = vmatpush2.bf16.msra.mxu1 %v14743_v9  ;;  %10184 = vmatprep.subr.bf16.mxu0 %v14748_v10  ;;  %v14816_v9 = vld [vmem:[%s17119_s11 + $0xa00] ss:$16 sps:$4 sm:$0xff]   ;;  %v14821_v10 = vld [vmem:[%s17119_s11 + $0x9e4] ss:$16 sps:$4 sm:$0xff]  }
  0x87   : > { %10225 = vmatprep.subr.bf16.mxu1 %v14751_v11  ;;  %v14824_v11 = vld [vmem:[%s17119_s11 + $0xbe4] ss:$16 sps:$4 sm:$0xff]  }
  0x89   : > { %10185 = vmatpush2.bf16.msra.mxu0 %v14746_v12  ;;  %v14819_v12 = vld [vmem:[%s17119_s11 + $0x9e0] ss:$16 sps:$4 sm:$0xff]  }
  0x8a   : > { %10226 = vmatpush2.bf16.msra.mxu1 %v14749_v13  ;;  %10186 = vmatprep.subr.bf16.mxu0 %v14754_v14  ;;  %v14822_v13 = vld [vmem:[%s17119_s11 + $0xbe0] ss:$16 sps:$4 sm:$0xff]   ;;  %v14827_v14 = vld [vmem:[%s17119_s11 + $0x9c4] ss:$16 sps:$4 sm:$0xff]  }
  0x8b   : > { %10227 = vmatprep.subr.bf16.mxu1 %v14757_v16  ;;  %v14830_v16 = vld [vmem:[%s17119_s11 + $0xbc4] ss:$16 sps:$4 sm:$0xff]  }
  0x8d   : > { %10187 = vmatpush2.bf16.msra.mxu0 %v14752_v17  ;;  %v14825_v17 = vld [vmem:[%s17119_s11 + $0x9c0] ss:$16 sps:$4 sm:$0xff]  }
  0x8e   : > { %10228 = vmatpush2.bf16.msra.mxu1 %v14755_v18  ;;  %10188 = vmatprep.subr.bf16.mxu0 %v14760_v21  ;;  %v14828_v18 = vld [vmem:[%s17119_s11 + $0xbc0] ss:$16 sps:$4 sm:$0xff]   ;;  %v14833_v21 = vld [vmem:[%s17119_s11 + $0x9a4] ss:$16 sps:$4 sm:$0xff]  }
  0x8f   : > { %10229 = vmatprep.subr.bf16.mxu1 %v14763_v22  ;;  %v14836_v22 = vld [vmem:[%s17119_s11 + $0xba4] ss:$16 sps:$4 sm:$0xff]  }
  0x91   : > { %10189 = vmatpush2.bf16.msra.mxu0 %v14758_v23  ;;  %v14831_v23 = vld [vmem:[%s17119_s11 + $0x9a0] ss:$16 sps:$4 sm:$0xff]  }
  0x92   : > { %10230 = vmatpush2.bf16.msra.mxu1 %v14761_v24  ;;  %10190 = vmatprep.subr.bf16.mxu0 %v14766_v26  ;;  %v14834_v24 = vld [vmem:[%s17119_s11 + $0xba0] ss:$16 sps:$4 sm:$0xff]   ;;  %v14839_v26 = vld [vmem:[%s17119_s11 + $0x984] ss:$16 sps:$4 sm:$0xff]  }
  0x93   : > { %10231 = vmatprep.subr.bf16.mxu1 %v14769_v27  ;;  %v14842_v27 = vld [vmem:[%s17119_s11 + $0xb84] ss:$16 sps:$4 sm:$0xff]  }
  0x95   : > { %10191 = vmatpush2.bf16.msra.mxu0 %v14764_v28  ;;  %v14837_v28 = vld [vmem:[%s17119_s11 + $0x980] ss:$16 sps:$4 sm:$0xff]  }
  0x96   : > { %10232 = vmatpush2.bf16.msra.mxu1 %v14767_v30  ;;  %10242 = vmatprep.subr.bf16.mxu0 %v14773_v31  ;;  %v14840_v30 = vld [vmem:[%s17119_s11 + $0xb80] ss:$16 sps:$4 sm:$0xff]   ;;  %v14845_v31 = vld [vmem:[%s17119_s11 + $0x964] ss:$16 sps:$4 sm:$0xff]  }
  0x97   : > { %10283 = vmatprep.subr.bf16.mxu1 %v14776_v32  ;;  %v14848_v32 = vld [vmem:[%s17119_s11 + $0xb64] ss:$16 sps:$4 sm:$0xff]  }
  0x98   : > { %10193 = vmatmul.mubr.bf16.vlgmr.msra.gmra.mxu0 %v17291_v29 }
  0x99   : > { %10234 = vmatmul.mubr.bf16.vlgmr.msra.gmra.mxu1 %v17298_v33  ;;  %10243 = vmatpush1.bf16.msra.mxu0 %v14771_v34  ;;  %v14843_v34 = vld [vmem:[%s17119_s11 + $0x960] ss:$16 sps:$4 sm:$0xff]  }
  0x9a   : > { %10284 = vmatpush1.bf16.msra.mxu1 %v14774_v8  ;;  %10244 = vmatprep.subr.bf16.mxu0 %v14779_v36  ;;  %v14846_v8 = vld [vmem:[%s17119_s11 + $0xb60] ss:$16 sps:$4 sm:$0xff]   ;;  %v14851_v36 = vld [vmem:[%s17119_s11 + $0x944] ss:$16 sps:$4 sm:$0xff]  }
  0x9b   : > { %10285 = vmatprep.subr.bf16.mxu1 %v14782_v37  ;;  %10274 = vmatprep.mubr.bf16.mxu0 %v17320_v46  ;;  %v14854_v37 = vld [vmem:[%s17119_s11 + $0xb44] ss:$16 sps:$4 sm:$0xff]  }
  0x9c   : > { %10315 = vmatprep.mubr.bf16.mxu1 %v17325_v47 }
  0x9d   : > { %10245 = vmatpush1.bf16.msra.mxu0 %v14777_v41  ;;  %v14849_v41 = vld [vmem:[%s17119_s11 + $0x940] ss:$16 sps:$4 sm:$0xff]  }
  0x9e   : > { %10286 = vmatpush1.bf16.msra.mxu1 %v14780_v42  ;;  %10246 = vmatprep.subr.bf16.mxu0 %v14785_v43  ;;  %v14852_v42 = vld [vmem:[%s17119_s11 + $0xb40] ss:$16 sps:$4 sm:$0xff]   ;;  %v14857_v43 = vld [vmem:[%s17119_s11 + $0x924] ss:$16 sps:$4 sm:$0xff]  }
  0x9f   : > { %10287 = vmatprep.subr.bf16.mxu1 %v14788_v44  ;;  %v14860_v44 = vld [vmem:[%s17119_s11 + $0xb24] ss:$16 sps:$4 sm:$0xff]  }
  0xa1   : > { %10247 = vmatpush1.bf16.msra.mxu0 %v14783_v48  ;;  %v17379_v48 = vrot.slane %v1930_v39, %v17170_v51  ;;  %v14915_v39 = vld [vmem:[%s17119_s11 + $0xde0] ss:$16 sps:$4 sm:$0xff]  }
  0xa2   : > { %10288 = vmatpush1.bf16.msra.mxu1 %v14786_v49  ;;  %10248 = vmatprep.subr.bf16.mxu0 %v14791_v50  ;;  %v14858_v49 = vld [vmem:[%s17119_s11 + $0xb20] ss:$16 sps:$4 sm:$0xff]   ;;  %v14863_v50 = vld [vmem:[%s17119_s11 + $0x904] ss:$16 sps:$4 sm:$0xff]  }
  0xa3   : > { %10289 = vmatprep.subr.bf16.mxu1 %v14794_v52  ;;  %v14866_v52 = vld [vmem:[%s17119_s11 + $0xb04] ss:$16 sps:$4 sm:$0xff]  }
  0xa5   : > { %10249 = vmatpush1.bf16.msra.mxu0 %v14789_v53  ;;  %v1946_v53 = vcombine.high %v17379_v48, %v17379_v48 }
  0xa6   : > { %10290 = vmatpush1.bf16.msra.mxu1 %v14792_v54  ;;  %10250 = vmatprep.subr.bf16.mxu0 %v14797_v55  ;;  %v17389_v54 = vrot.slane %v17309_v38, %v17170_v51  ;;  %v14861_v55 = vld [vmem:[%s17119_s11 + $0x900] ss:$16 sps:$4 sm:$0xff]  }
  0xa7   : > { %10291 = vmatprep.subr.bf16.mxu1 %v14800_v56  ;;  %v14864_v56 = vld [vmem:[%s17119_s11 + $0xb00] ss:$16 sps:$4 sm:$0xff]  }
  0xa8   : > { %v14867_v38 = vld [vmem:[%s17119_s11 + $0xce0] ss:$16 sps:$4 sm:$0xff]  }
  0xa9   : > { %10251 = vmatpush1.bf16.msra.mxu0 %v14795_v57  ;;  %v14869_v57 = vld [vmem:[%s17119_s11 + $0xce4] ss:$16 sps:$4 sm:$0xff]  }
  0xaa   : > { %10292 = vmatpush1.bf16.msra.mxu1 %v14798_v58  ;;  %10252 = vmatprep.subr.bf16.mxu0 %v14803_v59  ;;  %v14872_v58 = vld [vmem:[%s17119_s11 + $0xee4] ss:$16 sps:$4 sm:$0xff]   ;;  %v17396_v59 = vrot.slane %v1946_v53, %v17170_v51  ;;  %v14930_v53 = vld [vmem:[%s17119_s11 + $0xfa0] ss:$16 sps:$4 sm:$0xff]  }
  0xab   : > { %10293 = vmatprep.subr.bf16.mxu1 %v14806_v60  ;;  %v17400_v60 = vcombine.high %v17389_v54, %v17389_v54 }
  0xad   : > { %10253 = vmatpush1.bf16.msra.mxu0 %v14801_v61  ;;  %v14870_v61 = vld [vmem:[%s17119_s11 + $0xee0] ss:$16 sps:$4 sm:$0xff]  }
  0xae   : > { %10294 = vmatpush1.bf16.msra.mxu1 %v14804_v63  ;;  %10254 = vmatprep.subr.bf16.mxu0 %v14809_v0  ;;  %v14875_v63 = vld [vmem:[%s17119_s11 + $0xcc4] ss:$16 sps:$4 sm:$0xff]  }
  0xaf   : > { %10295 = vmatprep.subr.bf16.mxu1 %v14812_v1  ;;  %v14878_v0 = vld [vmem:[%s17119_s11 + $0xec4] ss:$16 sps:$4 sm:$0xff]   ;;  %v17408_v1 = vcombine.high %v17396_v59, %v17396_v59 }
  0xb1   : > { %10255 = vmatpush1.bf16.msra.mxu0 %v14807_v3  ;;  %v14873_v3 = vld [vmem:[%s17119_s11 + $0xcc0] ss:$16 sps:$4 sm:$0xff]  }
  0xb2   : > { %10296 = vmatpush1.bf16.msra.mxu1 %v14810_v4  ;;  %10256 = vmatprep.subr.bf16.mxu0 %v14815_v5  ;;  %v14876_v4 = vld [vmem:[%s17119_s11 + $0xec0] ss:$16 sps:$4 sm:$0xff]   ;;  %v14881_v5 = vld [vmem:[%s17119_s11 + $0xca4] ss:$16 sps:$4 sm:$0xff]  }
  0xb3   : > { %10297 = vmatprep.subr.bf16.mxu1 %v14818_v6  ;;  %v14884_v6 = vld [vmem:[%s17119_s11 + $0xea4] ss:$16 sps:$4 sm:$0xff]  }
  0xb5   : > { %10257 = vmatpush1.bf16.msra.mxu0 %v14813_v7  ;;  %v14879_v7 = vld [vmem:[%s17119_s11 + $0xca0] ss:$16 sps:$4 sm:$0xff]  }
  0xb6   : > { %10298 = vmatpush1.bf16.msra.mxu1 %v14816_v9  ;;  %10258 = vmatprep.subr.bf16.mxu0 %v14821_v10  ;;  %v14882_v9 = vld [vmem:[%s17119_s11 + $0xea0] ss:$16 sps:$4 sm:$0xff]   ;;  %v14887_v10 = vld [vmem:[%s17119_s11 + $0xc84] ss:$16 sps:$4 sm:$0xff]  }
  0xb7   : > { %10299 = vmatprep.subr.bf16.mxu1 %v14824_v11  ;;  %v14890_v11 = vld [vmem:[%s17119_s11 + $0xe84] ss:$16 sps:$4 sm:$0xff]  }
  0xb9   : > { %10259 = vmatpush2.bf16.msra.mxu0 %v14819_v12  ;;  %v14885_v12 = vld [vmem:[%s17119_s11 + $0xc80] ss:$16 sps:$4 sm:$0xff]  }
  0xba   : > { %10300 = vmatpush2.bf16.msra.mxu1 %v14822_v13  ;;  %10260 = vmatprep.subr.bf16.mxu0 %v14827_v14  ;;  %v14888_v13 = vld [vmem:[%s17119_s11 + $0xe80] ss:$16 sps:$4 sm:$0xff]   ;;  %v14893_v14 = vld [vmem:[%s17119_s11 + $0xc64] ss:$16 sps:$4 sm:$0xff]  }
  0xbb   : > { %10301 = vmatprep.subr.bf16.mxu1 %v14830_v16  ;;  %v14896_v16 = vld [vmem:[%s17119_s11 + $0xe64] ss:$16 sps:$4 sm:$0xff]  }
  0xbd   : > { %10261 = vmatpush2.bf16.msra.mxu0 %v14825_v17  ;;  %v14891_v17 = vld [vmem:[%s17119_s11 + $0xc60] ss:$16 sps:$4 sm:$0xff]  }
  0xbe   : > { %10302 = vmatpush2.bf16.msra.mxu1 %v14828_v18  ;;  %10262 = vmatprep.subr.bf16.mxu0 %v14833_v21  ;;  %v14894_v18 = vld [vmem:[%s17119_s11 + $0xe60] ss:$16 sps:$4 sm:$0xff]   ;;  %v14899_v21 = vld [vmem:[%s17119_s11 + $0xc44] ss:$16 sps:$4 sm:$0xff]  }
  0xbf   : > { %10303 = vmatprep.subr.bf16.mxu1 %v14836_v22  ;;  %v14902_v22 = vld [vmem:[%s17119_s11 + $0xe44] ss:$16 sps:$4 sm:$0xff]  }
  0xc1   : > { %10263 = vmatpush2.bf16.msra.mxu0 %v14831_v23  ;;  %v14897_v23 = vld [vmem:[%s17119_s11 + $0xc40] ss:$16 sps:$4 sm:$0xff]  }
  0xc2   : > { %10304 = vmatpush2.bf16.msra.mxu1 %v14834_v24  ;;  %10264 = vmatprep.subr.bf16.mxu0 %v14839_v26  ;;  %v14900_v24 = vld [vmem:[%s17119_s11 + $0xe40] ss:$16 sps:$4 sm:$0xff]   ;;  %v14905_v26 = vld [vmem:[%s17119_s11 + $0xc24] ss:$16 sps:$4 sm:$0xff]  }
  0xc3   : > { %10305 = vmatprep.subr.bf16.mxu1 %v14842_v27  ;;  %v14908_v27 = vld [vmem:[%s17119_s11 + $0xe24] ss:$16 sps:$4 sm:$0xff]  }
  0xc5   : > { %10265 = vmatpush2.bf16.msra.mxu0 %v14837_v28  ;;  %v14903_v28 = vld [vmem:[%s17119_s11 + $0xc20] ss:$16 sps:$4 sm:$0xff]  }
  0xc6   : > { %10306 = vmatpush2.bf16.msra.mxu1 %v14840_v30  ;;  %10266 = vmatprep.subr.bf16.mxu0 %v14845_v31  ;;  %v14906_v30 = vld [vmem:[%s17119_s11 + $0xe20] ss:$16 sps:$4 sm:$0xff]   ;;  %v14911_v31 = vld [vmem:[%s17119_s11 + $0xc04] ss:$16 sps:$4 sm:$0xff]  }
  0xc7   : > { %10307 = vmatprep.subr.bf16.mxu1 %v14848_v32  ;;  %v14914_v32 = vld [vmem:[%s17119_s11 + $0xe04] ss:$16 sps:$4 sm:$0xff]  }
  0xc9   : > { %10267 = vmatpush2.bf16.msra.mxu0 %v14843_v34  ;;  %v14909_v34 = vld [vmem:[%s17119_s11 + $0xc00] ss:$16 sps:$4 sm:$0xff]  }
  0xca   : > { %10308 = vmatpush2.bf16.msra.mxu1 %v14846_v8  ;;  %10268 = vmatprep.subr.bf16.mxu0 %v14851_v36  ;;  %v14912_v8 = vld [vmem:[%s17119_s11 + $0xe00] ss:$16 sps:$4 sm:$0xff]   ;;  %v14917_v36 = vld [vmem:[%s17119_s11 + $0xde4] ss:$16 sps:$4 sm:$0xff]  }
  0xcb   : > { %10309 = vmatprep.subr.bf16.mxu1 %v14854_v37  ;;  %v14920_v37 = vld [vmem:[%s17119_s11 + $0xfe4] ss:$16 sps:$4 sm:$0xff]  }
  0xcd   : > { %10269 = vmatpush2.bf16.msra.mxu0 %v14849_v41  ;;  %v14918_v41 = vld [vmem:[%s17119_s11 + $0xfe0] ss:$16 sps:$4 sm:$0xff]  }
  0xce   : > { %10310 = vmatpush2.bf16.msra.mxu1 %v14852_v42  ;;  %10270 = vmatprep.subr.bf16.mxu0 %v14857_v43  ;;  %v14923_v42 = vld [vmem:[%s17119_s11 + $0xdc4] ss:$16 sps:$4 sm:$0xff]  }
  0xcf   : > { %10311 = vmatprep.subr.bf16.mxu1 %v14860_v44  ;;  %v14926_v43 = vld [vmem:[%s17119_s11 + $0xfc4] ss:$16 sps:$4 sm:$0xff]   ;;  %v14921_v44 = vld [vmem:[%s17119_s11 + $0xdc0] ss:$16 sps:$4 sm:$0xff]  }
  0xd1   : > { %10271 = vmatpush2.bf16.msra.mxu0 %v14855_v35  ;;  %v14924_v35 = vld [vmem:[%s17119_s11 + $0xfc0] ss:$16 sps:$4 sm:$0xff]  }
  0xd2   : > { %10312 = vmatpush2.bf16.msra.mxu1 %v14858_v49  ;;  %10272 = vmatprep.subr.bf16.mxu0 %v14863_v50  ;;  %v14929_v49 = vld [vmem:[%s17119_s11 + $0xda4] ss:$16 sps:$4 sm:$0xff]  }
  0xd3   : > { %10313 = vmatprep.subr.bf16.mxu1 %v14866_v52  ;;  %v14932_v50 = vld [vmem:[%s17119_s11 + $0xfa4] ss:$16 sps:$4 sm:$0xff]   ;;  %v14927_v52 = vld [vmem:[%s17119_s11 + $0xda0] ss:$16 sps:$4 sm:$0xff]  }
  0xd5   : > { %10273 = vmatpush2.bf16.msra.mxu0 %v14861_v55  ;;  %v14935_v55 = vld [vmem:[%s17119_s11 + $0xd84] ss:$16 sps:$4 sm:$0xff]  }
  0xd6   : > { %10314 = vmatpush2.bf16.msra.mxu1 %v14864_v56  ;;  %10324 = vmatprep.subr.bf16.mxu0 %v14869_v57  ;;  %v14938_v56 = vld [vmem:[%s17119_s11 + $0xf84] ss:$16 sps:$4 sm:$0xff]   ;;  %v14933_v57 = vld [vmem:[%s17119_s11 + $0xd80] ss:$16 sps:$4 sm:$0xff]  }
  0xd7   : > { %10365 = vmatprep.subr.bf16.mxu1 %v14872_v58  ;;  %v14936_v58 = vld [vmem:[%s17119_s11 + $0xf80] ss:$16 sps:$4 sm:$0xff]  }
  0xd8   : > { %10275 = vmatmul.mubr.bf16.vlgmr.msra.gmra.mxu0 %v17389_v54 }
  0xd9   : > { %10316 = vmatmul.mubr.bf16.vlgmr.msra.gmra.mxu1 %v17400_v60  ;;  %10325 = vmatpush1.bf16.msra.mxu0 %v14867_v38  ;;  %v14941_v38 = vld [vmem:[%s17119_s11 + $0xd64] ss:$16 sps:$4 sm:$0xff]  }
  0xda   : > { %10366 = vmatpush1.bf16.msra.mxu1 %v14870_v61  ;;  %10326 = vmatprep.subr.bf16.mxu0 %v14875_v63  ;;  %v14944_v61 = vld [vmem:[%s17119_s11 + $0xf64] ss:$16 sps:$4 sm:$0xff]   ;;  %v14939_v63 = vld [vmem:[%s17119_s11 + $0xd60] ss:$16 sps:$4 sm:$0xff]  }
  0xdb   : > { %10367 = vmatprep.subr.bf16.mxu1 %v14878_v0  ;;  %10356 = vmatprep.mubr.bf16.mxu0 %v17396_v59  ;;  %v14942_v0 = vld [vmem:[%s17119_s11 + $0xf60] ss:$16 sps:$4 sm:$0xff]  }
  0xdc   : > { %10397 = vmatprep.mubr.bf16.mxu1 %v17408_v1 }
  0xdd   : > { %10327 = vmatpush1.bf16.msra.mxu0 %v14873_v3  ;;  %v14947_v3 = vld [vmem:[%s17119_s11 + $0xd44] ss:$16 sps:$4 sm:$0xff]  }
  0xde   : > { %10368 = vmatpush1.bf16.msra.mxu1 %v14876_v4  ;;  %10328 = vmatprep.subr.bf16.mxu0 %v14881_v5  ;;  %v14950_v4 = vld [vmem:[%s17119_s11 + $0xf44] ss:$16 sps:$4 sm:$0xff]   ;;  %v14945_v5 = vld [vmem:[%s17119_s11 + $0xd40] ss:$16 sps:$4 sm:$0xff]  }
  0xdf   : > { %10369 = vmatprep.subr.bf16.mxu1 %v14884_v6  ;;  %v17464_v6 = vld [vmem:[%s17114_s30 + $0x10] sm:$0xff] }
  0xe1   : > { %10329 = vmatpush1.bf16.msra.mxu0 %v14879_v7  ;;  %v14948_v7 = vld [vmem:[%s17119_s11 + $0xf40] ss:$16 sps:$4 sm:$0xff]  }
  0xe2   : > { %10370 = vmatpush1.bf16.msra.mxu1 %v14882_v9  ;;  %10330 = vmatprep.subr.bf16.mxu0 %v14887_v10  ;;  %v14953_v9 = vld [vmem:[%s17119_s11 + $0xd24] ss:$16 sps:$4 sm:$0xff]  }
  0xe3   : > { %10371 = vmatprep.subr.bf16.mxu1 %v14890_v11  ;;  %v14956_v10 = vld [vmem:[%s17119_s11 + $0xf24] ss:$16 sps:$4 sm:$0xff]   ;;  %v17471_v11 = vrot.slane %v17464_v6, %v17170_v51 }
  0xe5   : > { %10331 = vmatpush1.bf16.msra.mxu0 %v14885_v12  ;;  %v14951_v12 = vld [vmem:[%s17119_s11 + $0xd20] ss:$16 sps:$4 sm:$0xff]  }
  0xe6   : > { %10372 = vmatpush1.bf16.msra.mxu1 %v14888_v13  ;;  %10332 = vmatprep.subr.bf16.mxu0 %v14893_v14  ;;  %v14954_v13 = vld [vmem:[%s17119_s11 + $0xf20] ss:$16 sps:$4 sm:$0xff]   ;;  %v14959_v14 = vld [vmem:[%s17119_s11 + $0xd04] ss:$16 sps:$4 sm:$0xff]  }
  0xe7   : > { %10373 = vmatprep.subr.bf16.mxu1 %v14896_v16  ;;  %v14962_v16 = vld [vmem:[%s17119_s11 + $0xf04] ss:$16 sps:$4 sm:$0xff]  }
  0xe9   : > { %10333 = vmatpush1.bf16.msra.mxu0 %v14891_v17  ;;  %v1994_v17 = vcombine.high %v17471_v11, %v17471_v11 }
  0xea   : > { %10374 = vmatpush1.bf16.msra.mxu1 %v14894_v18  ;;  %10334 = vmatprep.subr.bf16.mxu0 %v14899_v21  ;;  %v14957_v18 = vld [vmem:[%s17119_s11 + $0xd00] ss:$16 sps:$4 sm:$0xff]   ;;  %v17482_v21 = vrot.slane %v17379_v48, %v17170_v51 }
  0xeb   : > { %10375 = vmatprep.subr.bf16.mxu1 %v14902_v22  ;;  %v14960_v22 = vld [vmem:[%s17119_s11 + $0xf00] ss:$16 sps:$4 sm:$0xff]  }
  0xec   : > { %v14967_v48 = vld [vmem:[%s17119_s11 + $0x12e0] ss:$16 sps:$4 sm:$0xff]  }
  0xed   : > { %10335 = vmatpush1.bf16.msra.mxu0 %v14897_v23  ;;  %v14966_v23 = vld [vmem:[%s17119_s11 + $0x10e4] ss:$16 sps:$4 sm:$0xff]  }
  0xee   : > { %10376 = vmatpush1.bf16.msra.mxu1 %v14900_v24  ;;  %10336 = vmatprep.subr.bf16.mxu0 %v14905_v26  ;;  %v14969_v24 = vld [vmem:[%s17119_s11 + $0x12e4] ss:$16 sps:$4 sm:$0xff]   ;;  %v17488_v26 = vrot.slane %v1994_v17, %v17170_v51 }
  0xef   : > { %10377 = vmatprep.subr.bf16.mxu1 %v14908_v27  ;;  %v17492_v27 = vcombine.high %v17482_v21, %v17482_v21  ;;  %v15008_v17 = vld [vmem:[%s17119_s11 + $0x1004] ss:$16 sps:$4 sm:$0xff]  }
  0xf1   : > { %10337 = vmatpush1.bf16.msra.mxu0 %v14903_v28  ;;  %v14964_v28 = vld [vmem:[%s17119_s11 + $0x10e0] ss:$16 sps:$4 sm:$0xff]  }
  0xf2   : > { %10378 = vmatpush1.bf16.msra.mxu1 %v14906_v30  ;;  %10338 = vmatprep.subr.bf16.mxu0 %v14911_v31  ;;  %v14972_v30 = vld [vmem:[%s17119_s11 + $0x10c4] ss:$16 sps:$4 sm:$0xff]  }
  0xf3   : > { %10379 = vmatprep.subr.bf16.mxu1 %v14914_v32  ;;  %v14975_v31 = vld [vmem:[%s17119_s11 + $0x12c4] ss:$16 sps:$4 sm:$0xff]   ;;  %v17500_v32 = vcombine.high %v17488_v26, %v17488_v26 }
  0xf5   : > { %10339 = vmatpush1.bf16.msra.mxu0 %v14909_v34 }
  0xf6   : > { %10380 = vmatpush1.bf16.msra.mxu1 %v14912_v8  ;;  %10340 = vmatprep.subr.bf16.mxu0 %v14917_v36  ;;  %v14970_v36 = vld [vmem:[%s17119_s11 + $0x10c0] ss:$16 sps:$4 sm:$0xff]  }
  0xf7   : > { %10381 = vmatprep.subr.bf16.mxu1 %v14920_v37  ;;  %v14973_v37 = vld [vmem:[%s17119_s11 + $0x12c0] ss:$16 sps:$4 sm:$0xff]  }
  0xf9   : > { %10341 = vmatpush2.bf16.msra.mxu0 %v14915_v39 }
  0xfa   : > { %10382 = vmatpush2.bf16.msra.mxu1 %v14918_v41  ;;  %10342 = vmatprep.subr.bf16.mxu0 %v14923_v42 }
  0xfb   : > { %10383 = vmatprep.subr.bf16.mxu1 %v14926_v43  ;;  %v14978_v43 = vld [vmem:[%s17119_s11 + $0x10a4] ss:$16 sps:$4 sm:$0xff]  }
  0xfd   : > { %10343 = vmatpush2.bf16.msra.mxu0 %v14921_v44  ;;  %v14981_v44 = vld [vmem:[%s17119_s11 + $0x12a4] ss:$16 sps:$4 sm:$0xff]  }
  0xfe   : > { %10384 = vmatpush2.bf16.msra.mxu1 %v14924_v35  ;;  %10344 = vmatprep.subr.bf16.mxu0 %v14929_v49  ;;  %v14976_v49 = vld [vmem:[%s17119_s11 + $0x10a0] ss:$16 sps:$4 sm:$0xff]  }
  0xff   : > { %10385 = vmatprep.subr.bf16.mxu1 %v14932_v50  ;;  %v14979_v50 = vld [vmem:[%s17119_s11 + $0x12a0] ss:$16 sps:$4 sm:$0xff]  }
 0x101   : > { %10345 = vmatpush2.bf16.msra.mxu0 %v14927_v52 }
 0x102   : > { %10386 = vmatpush2.bf16.msra.mxu1 %v14930_v53  ;;  %10346 = vmatprep.subr.bf16.mxu0 %v14935_v55 }
 0x103   : > { %10387 = vmatprep.subr.bf16.mxu1 %v14938_v56 }
 0x105   : > { %10347 = vmatpush2.bf16.msra.mxu0 %v14933_v57  ;;  %v14984_v57 = vld [vmem:[%s17119_s11 + $0x1084] ss:$16 sps:$4 sm:$0xff]  }
 0x106   : > { %10388 = vmatpush2.bf16.msra.mxu1 %v14936_v58  ;;  %10348 = vmatprep.subr.bf16.mxu0 %v14941_v38  ;;  %v14987_v58 = vld [vmem:[%s17119_s11 + $0x1284] ss:$16 sps:$4 sm:$0xff]   ;;  %v14982_v38 = vld [vmem:[%s17119_s11 + $0x1080] ss:$16 sps:$4 sm:$0xff]  }
 0x107   : > { %10389 = vmatprep.subr.bf16.mxu1 %v14944_v61  ;;  %v14985_v61 = vld [vmem:[%s17119_s11 + $0x1280] ss:$16 sps:$4 sm:$0xff]  }
 0x109   : > { %10349 = vmatpush2.bf16.msra.mxu0 %v14939_v63  ;;  %v14990_v63 = vld [vmem:[%s17119_s11 + $0x1064] ss:$16 sps:$4 sm:$0xff]  }
 0x10a   : > { %10390 = vmatpush2.bf16.msra.mxu1 %v14942_v0  ;;  %10350 = vmatprep.subr.bf16.mxu0 %v14947_v3  ;;  %v14993_v0 = vld [vmem:[%s17119_s11 + $0x1264] ss:$16 sps:$4 sm:$0xff]   ;;  %v14988_v3 = vld [vmem:[%s17119_s11 + $0x1060] ss:$16 sps:$4 sm:$0xff]  }
 0x10b   : > { %10391 = vmatprep.subr.bf16.mxu1 %v14950_v4  ;;  %v14991_v4 = vld [vmem:[%s17119_s11 + $0x1260] ss:$16 sps:$4 sm:$0xff]  }
 0x10d   : > { %10351 = vmatpush2.bf16.msra.mxu0 %v14945_v5  ;;  %v14996_v5 = vld [vmem:[%s17119_s11 + $0x1044] ss:$16 sps:$4 sm:$0xff]  }
 0x10e   : > { %10392 = vmatpush2.bf16.msra.mxu1 %v14948_v7  ;;  %10352 = vmatprep.subr.bf16.mxu0 %v14953_v9  ;;  %v14999_v7 = vld [vmem:[%s17119_s11 + $0x1244] ss:$16 sps:$4 sm:$0xff]   ;;  %v14994_v9 = vld [vmem:[%s17119_s11 + $0x1040] ss:$16 sps:$4 sm:$0xff]  }
 0x10f   : > { %10393 = vmatprep.subr.bf16.mxu1 %v14956_v10  ;;  %v14997_v10 = vld [vmem:[%s17119_s11 + $0x1240] ss:$16 sps:$4 sm:$0xff]  }
 0x111   : > { %10353 = vmatpush2.bf16.msra.mxu0 %v14951_v12  ;;  %v15002_v12 = vld [vmem:[%s17119_s11 + $0x1024] ss:$16 sps:$4 sm:$0xff]  }
 0x112   : > { %10394 = vmatpush2.bf16.msra.mxu1 %v14954_v13  ;;  %10354 = vmatprep.subr.bf16.mxu0 %v14959_v14  ;;  %v15005_v13 = vld [vmem:[%s17119_s11 + $0x1224] ss:$16 sps:$4 sm:$0xff]   ;;  %v15000_v14 = vld [vmem:[%s17119_s11 + $0x1020] ss:$16 sps:$4 sm:$0xff]  }
 0x113   : > { %10395 = vmatprep.subr.bf16.mxu1 %v14962_v16  ;;  %v15003_v16 = vld [vmem:[%s17119_s11 + $0x1220] ss:$16 sps:$4 sm:$0xff]  }
 0x115   : > { %10355 = vmatpush2.bf16.msra.mxu0 %v14957_v18  ;;  %v15011_v18 = vld [vmem:[%s17119_s11 + $0x1204] ss:$16 sps:$4 sm:$0xff]  }
 0x116   : > { %10396 = vmatpush2.bf16.msra.mxu1 %v14960_v22  ;;  %10406 = vmatprep.subr.bf16.mxu0 %v14966_v23  ;;  %v15006_v22 = vld [vmem:[%s17119_s11 + $0x1000] ss:$16 sps:$4 sm:$0xff]  }
 0x117   : > { %10447 = vmatprep.subr.bf16.mxu1 %v14969_v24  ;;  %v15009_v23 = vld [vmem:[%s17119_s11 + $0x1200] ss:$16 sps:$4 sm:$0xff]   ;;  %v15014_v24 = vld [vmem:[%s17119_s11 + $0x11e4] ss:$16 sps:$4 sm:$0xff]  }
 0x118   : > { %v10112_v34 = vpop.f32.mrf.mxu0  ;;  %10357 = vmatmul.mubr.bf16.vlgmr.msra.gmra.mxu0 %v17482_v21 }
 0x119   : > { %v10153_v8 = vpop.f32.mrf.mxu1  ;;  %10398 = vmatmul.mubr.bf16.vlgmr.msra.gmra.mxu1 %v17492_v27  ;;  %10407 = vmatpush1.bf16.msra.mxu0 %v14964_v28  ;;  %v15017_v28 = vld [vmem:[%s17119_s11 + $0x13e4] ss:$16 sps:$4 sm:$0xff]  }
 0x11a   : > { %v17506_v39 = vadd.f32 %v10153_v8, %v10112_v34  ;;  %10448 = vmatpush1.bf16.msra.mxu1 %v14967_v48  ;;  %v10114_v41 = vpop.f32.mrf.mxu0  ;;  %10408 = vmatprep.subr.bf16.mxu0 %v14972_v30  ;;  %v15012_v48 = vld [vmem:[%s17119_s11 + $0x11e0] ss:$16 sps:$4 sm:$0xff]   ;;  %v15023_v34 = vld [vmem:[%s17119_s11 + $0x13c4] ss:$16 sps:$4 sm:$0xff]  }
 0x11b   : > { %v10155_v42 = vpop.f32.mrf.mxu1  ;;  %10449 = vmatprep.subr.bf16.mxu1 %v14975_v31  ;;  %10438 = vmatprep.mubr.bf16.mxu0 %v17488_v26  ;;  %v15015_v30 = vld [vmem:[%s17119_s11 + $0x13e0] ss:$16 sps:$4 sm:$0xff]   ;;  %v15020_v31 = vld [vmem:[%s17119_s11 + $0x11c4] ss:$16 sps:$4 sm:$0xff]  }
 0x11c   : > { %v17510_v35 = vadd.f32 %v10155_v42, %v10114_v41  ;;  %10479 = vmatprep.mubr.bf16.mxu1 %v17500_v32  ;;  %v10116_v52 = vpop.f32.mrf.mxu0  ;;  %v15018_v8 = vld [vmem:[%s17119_s11 + $0x11c0] ss:$16 sps:$4 sm:$0xff]   ;;  %v15029_v41 = vld [vmem:[%s17119_s11 + $0x13a4] ss:$16 sps:$4 sm:$0xff]  }
 0x11d   : > { %v10157_v53 = vpop.f32.mrf.mxu1  ;;  %10409 = vmatpush1.bf16.msra.mxu0 %v14970_v36  ;;  %v15021_v36 = vld [vmem:[%s17119_s11 + $0x13c0] ss:$16 sps:$4 sm:$0xff]  }
 0x11e   : > { %10450 = vmatpush1.bf16.msra.mxu1 %v14973_v37  ;;  %v10117_v55 = vpop.f32.mrf.mxu0  ;;  %10410 = vmatprep.subr.bf16.mxu0 %v14978_v43  ;;  %v15026_v37 = vld [vmem:[%s17119_s11 + $0x11a4] ss:$16 sps:$4 sm:$0xff]   ;;  %v15024_v42 = vld [vmem:[%s17119_s11 + $0x11a0] ss:$16 sps:$4 sm:$0xff]  }
 0x11f   : > { %v10158_v56 = vpop.f32.mrf.mxu1  ;;  %10451 = vmatprep.subr.bf16.mxu1 %v14981_v44  ;;  %v15027_v43 = vld [vmem:[%s17119_s11 + $0x13a0] ss:$16 sps:$4 sm:$0xff]   ;;  %v15032_v44 = vld [vmem:[%s17119_s11 + $0x1184] ss:$16 sps:$4 sm:$0xff]  }
 0x120   : > { %v15033_v52 = vld [vmem:[%s17119_s11 + $0x1380] ss:$16 sps:$4 sm:$0xff]   ;;  %v15038_v53 = vld [vmem:[%s17119_s11 + $0x1164] ss:$16 sps:$4 sm:$0xff]  }
 0x121   : > { %10411 = vmatpush1.bf16.msra.mxu0 %v14976_v49  ;;  %v15035_v49 = vld [vmem:[%s17119_s11 + $0x1384] ss:$16 sps:$4 sm:$0xff]   ;;  %v15036_v56 = vld [vmem:[%s17119_s11 + $0x1160] ss:$16 sps:$4 sm:$0xff]  }
 0x122   : > { %10452 = vmatpush1.bf16.msra.mxu1 %v14979_v50  ;;  %10412 = vmatprep.subr.bf16.mxu0 %v14984_v57  ;;  %v15030_v50 = vld [vmem:[%s17119_s11 + $0x1180] ss:$16 sps:$4 sm:$0xff]   ;;  %v15041_v55 = vld [vmem:[%s17119_s11 + $0x1364] ss:$16 sps:$4 sm:$0xff]  }
 0x123   : > { %10453 = vmatprep.subr.bf16.mxu1 %v14987_v58  ;;  %v15039_v57 = vld [vmem:[%s17119_s11 + $0x1360] ss:$16 sps:$4 sm:$0xff]   ;;  %v15044_v58 = vld [vmem:[%s17119_s11 + $0x1144] ss:$16 sps:$4 sm:$0xff]  }
 0x125   : > { %10413 = vmatpush1.bf16.msra.mxu0 %v14982_v38  ;;  %v15047_v38 = vld [vmem:[%s17119_s11 + $0x1344] ss:$16 sps:$4 sm:$0xff]  }
 0x126   : > { %10454 = vmatpush1.bf16.msra.mxu1 %v14985_v61  ;;  %10414 = vmatprep.subr.bf16.mxu0 %v14990_v63  ;;  %v1979_v61 = vcombine.high %v17464_v6, %v17464_v6  ;;  %v15042_v63 = vld [vmem:[%s17119_s11 + $0x1140] ss:$16 sps:$4 sm:$0xff]  }
 0x127   : > { %10455 = vmatprep.subr.bf16.mxu1 %v14993_v0  ;;  %v15045_v0 = vld [vmem:[%s17119_s11 + $0x1340] ss:$16 sps:$4 sm:$0xff]  }
 0x128   : > { %v15048_v6 = vld [vmem:[%s17119_s11 + $0x1120] ss:$16 sps:$4 sm:$0xff]  }
 0x129   : > { %10415 = vmatpush1.bf16.msra.mxu0 %v14988_v3  ;;  %v15050_v3 = vld [vmem:[%s17119_s11 + $0x1124] ss:$16 sps:$4 sm:$0xff]  }
 0x12a   : > { %10456 = vmatpush1.bf16.msra.mxu1 %v14991_v4  ;;  %10416 = vmatprep.subr.bf16.mxu0 %v14996_v5  ;;  %v15053_v4 = vld [vmem:[%s17119_s11 + $0x1324] ss:$16 sps:$4 sm:$0xff]   ;;  %v17565_v5 = vrot.slane %v1979_v61, %v17170_v51  ;;  %v15078_v61 = vld [vmem:[%s17119_s11 + $0x1480] ss:$16 sps:$4 sm:$0xff]  }
 0x12b   : > { %10457 = vmatprep.subr.bf16.mxu1 %v14999_v7  ;;  %v15051_v7 = vld [vmem:[%s17119_s11 + $0x1320] ss:$16 sps:$4 sm:$0xff]  }
 0x12d   : > { %10417 = vmatpush1.bf16.msra.mxu0 %v14994_v9  ;;  %v15056_v9 = vld [vmem:[%s17119_s11 + $0x1104] ss:$16 sps:$4 sm:$0xff]  }
 0x12e   : > { %10458 = vmatpush1.bf16.msra.mxu1 %v14997_v10  ;;  %10418 = vmatprep.subr.bf16.mxu0 %v15002_v12  ;;  %v15059_v10 = vld [vmem:[%s17119_s11 + $0x1304] ss:$16 sps:$4 sm:$0xff]   ;;  %v1995_v12 = vcombine.high %v17565_v5, %v17565_v5 }
 0x12f   : > { %10459 = vmatprep.subr.bf16.mxu1 %v15005_v13  ;;  %v17575_v13 = vrot.slane %v17471_v11, %v17170_v51 }
 0x131   : > { %10419 = vmatpush1.bf16.msra.mxu0 %v15000_v14  ;;  %v15054_v14 = vld [vmem:[%s17119_s11 + $0x1100] ss:$16 sps:$4 sm:$0xff]   ;;  %v17588_v11 = vcombine.high %v17575_v13, %v17575_v13 }
 0x132   : > { %10460 = vmatpush1.bf16.msra.mxu1 %v15003_v16  ;;  %10420 = vmatprep.subr.bf16.mxu0 %v15008_v17  ;;  %v15057_v16 = vld [vmem:[%s17119_s11 + $0x1300] ss:$16 sps:$4 sm:$0xff]   ;;  %v15062_v17 = vld [vmem:[%s17119_s11 + $0x14e4] ss:$16 sps:$4 sm:$0xff]  }
 0x133   : > { %10461 = vmatprep.subr.bf16.mxu1 %v15011_v18  ;;  %v15065_v18 = vld [vmem:[%s17119_s11 + $0x16e4] ss:$16 sps:$4 sm:$0xff]  }
 0x135   : > { %10421 = vmatpush1.bf16.msra.mxu0 %v15006_v22  ;;  %v15060_v22 = vld [vmem:[%s17119_s11 + $0x14e0] ss:$16 sps:$4 sm:$0xff]  }
 0x136   : > { %10462 = vmatpush1.bf16.msra.mxu1 %v15009_v23  ;;  %10422 = vmatprep.subr.bf16.mxu0 %v15014_v24  ;;  %v15063_v23 = vld [vmem:[%s17119_s11 + $0x16e0] ss:$16 sps:$4 sm:$0xff]   ;;  %v17584_v24 = vrot.slane %v1995_v12, %v17170_v51 }
 0x137   : > { %10463 = vmatprep.subr.bf16.mxu1 %v15017_v28  ;;  %v15068_v28 = vld [vmem:[%s17119_s11 + $0x14c4] ss:$16 sps:$4 sm:$0xff]   ;;  %v15093_v12 = vld [vmem:[%s17119_s11 + $0x1640] ss:$16 sps:$4 sm:$0xff]  }
 0x139   : > { %10423 = vmatpush2.bf16.msra.mxu0 %v15012_v48  ;;  %v15071_v48 = vld [vmem:[%s17119_s11 + $0x16c4] ss:$16 sps:$4 sm:$0xff]  }
 0x13a   : > { %10464 = vmatpush2.bf16.msra.mxu1 %v15015_v30  ;;  %10424 = vmatprep.subr.bf16.mxu0 %v15020_v31  ;;  %v15066_v30 = vld [vmem:[%s17119_s11 + $0x14c0] ss:$16 sps:$4 sm:$0xff]  }
 0x13b   : > { %10465 = vmatprep.subr.bf16.mxu1 %v15023_v34  ;;  %v15069_v31 = vld [vmem:[%s17119_s11 + $0x16c0] ss:$16 sps:$4 sm:$0xff]   ;;  %v17596_v34 = vcombine.high %v17584_v24, %v17584_v24 }
 0x13d   : > { %10425 = vmatpush2.bf16.msra.mxu0 %v15018_v8 }
 0x13e   : > { %10466 = vmatpush2.bf16.msra.mxu1 %v15021_v36  ;;  %10426 = vmatprep.subr.bf16.mxu0 %v15026_v37 }
 0x13f   : > { %10467 = vmatprep.subr.bf16.mxu1 %v15029_v41 }
 0x141   : > { %10427 = vmatpush2.bf16.msra.mxu0 %v15024_v42 }
 0x142   : > { %10468 = vmatpush2.bf16.msra.mxu1 %v15027_v43  ;;  %10428 = vmatprep.subr.bf16.mxu0 %v15032_v44  ;;  %v15074_v43 = vld [vmem:[%s17119_s11 + $0x14a4] ss:$16 sps:$4 sm:$0xff]  }
 0x143   : > { %10469 = vmatprep.subr.bf16.mxu1 %v15035_v49  ;;  %v15077_v44 = vld [vmem:[%s17119_s11 + $0x16a4] ss:$16 sps:$4 sm:$0xff]  }
 0x145   : > { %10429 = vmatpush2.bf16.msra.mxu0 %v15030_v50 }
 0x146   : > { %10470 = vmatpush2.bf16.msra.mxu1 %v15033_v52  ;;  %10430 = vmatprep.subr.bf16.mxu0 %v15038_v53  ;;  %v15072_v52 = vld [vmem:[%s17119_s11 + $0x14a0] ss:$16 sps:$4 sm:$0xff]  }
 0x147   : > { %10471 = vmatprep.subr.bf16.mxu1 %v15041_v55  ;;  %v15075_v53 = vld [vmem:[%s17119_s11 + $0x16a0] ss:$16 sps:$4 sm:$0xff]  }
 0x149   : > { %10431 = vmatpush2.bf16.msra.mxu0 %v15036_v56 }
 0x14a   : > { %10472 = vmatpush2.bf16.msra.mxu1 %v15039_v57  ;;  %10432 = vmatprep.subr.bf16.mxu0 %v15044_v58 }
 0x14b   : > { %10473 = vmatprep.subr.bf16.mxu1 %v15047_v38  ;;  %v15083_v38 = vld [vmem:[%s17119_s11 + $0x1684] ss:$16 sps:$4 sm:$0xff]  }
 0x14d   : > { %10433 = vmatpush2.bf16.msra.mxu0 %v15042_v63  ;;  %v15081_v63 = vld [vmem:[%s17119_s11 + $0x1680] ss:$16 sps:$4 sm:$0xff]  }
 0x14e   : > { %10474 = vmatpush2.bf16.msra.mxu1 %v15045_v0  ;;  %10434 = vmatprep.subr.bf16.mxu0 %v15050_v3  ;;  %v15086_v0 = vld [vmem:[%s17119_s11 + $0x1464] ss:$16 sps:$4 sm:$0xff]  }
 0x14f   : > { %10475 = vmatprep.subr.bf16.mxu1 %v15053_v4  ;;  %v15089_v3 = vld [vmem:[%s17119_s11 + $0x1664] ss:$16 sps:$4 sm:$0xff]   ;;  %v15084_v4 = vld [vmem:[%s17119_s11 + $0x1460] ss:$16 sps:$4 sm:$0xff]  }
 0x151   : > { %10435 = vmatpush2.bf16.msra.mxu0 %v15048_v6  ;;  %v15087_v6 = vld [vmem:[%s17119_s11 + $0x1660] ss:$16 sps:$4 sm:$0xff]  }
 0x152   : > { %10476 = vmatpush2.bf16.msra.mxu1 %v15051_v7  ;;  %10436 = vmatprep.subr.bf16.mxu0 %v15056_v9  ;;  %v15092_v7 = vld [vmem:[%s17119_s11 + $0x1444] ss:$16 sps:$4 sm:$0xff]  }
 0x153   : > { %10477 = vmatprep.subr.bf16.mxu1 %v15059_v10  ;;  %v15095_v9 = vld [vmem:[%s17119_s11 + $0x1644] ss:$16 sps:$4 sm:$0xff]   ;;  %v15090_v10 = vld [vmem:[%s17119_s11 + $0x1440] ss:$16 sps:$4 sm:$0xff]  }
 0x155   : > { %10437 = vmatpush2.bf16.msra.mxu0 %v15054_v14  ;;  %v15098_v14 = vld [vmem:[%s17119_s11 + $0x1424] ss:$16 sps:$4 sm:$0xff]  }
 0x156   : > { %10478 = vmatpush2.bf16.msra.mxu1 %v15057_v16  ;;  %10488 = vmatprep.subr.bf16.mxu0 %v15062_v17  ;;  %v15101_v16 = vld [vmem:[%s17119_s11 + $0x1624] ss:$16 sps:$4 sm:$0xff]   ;;  %v15096_v17 = vld [vmem:[%s17119_s11 + $0x1420] ss:$16 sps:$4 sm:$0xff]  }
 0x157   : > { %10529 = vmatprep.subr.bf16.mxu1 %v15065_v18  ;;  %v15099_v18 = vld [vmem:[%s17119_s11 + $0x1620] ss:$16 sps:$4 sm:$0xff]  }
 0x158   : > { %v10194_v8 = vpop.f32.mrf.mxu0  ;;  %10439 = vmatmul.mubr.bf16.vlgmr.msra.gmra.mxu0 %v17575_v13 }
 0x159   : > { %v10235_v36 = vpop.f32.mrf.mxu1  ;;  %10480 = vmatmul.mubr.bf16.vlgmr.msra.gmra.mxu1 %v17588_v11  ;;  %v10195_v37 = vadd.f32 %v10194_v8, %v17506_v39  ;;  %10489 = vmatpush1.bf16.msra.mxu0 %v15060_v22  ;;  %v15104_v22 = vld [vmem:[%s17119_s11 + $0x1404] ss:$16 sps:$4 sm:$0xff]   ;;  %v15108_v8 = vld [vmem:[%s17119_s11 + $0x15e0] ss:$16 sps:$4 sm:$0xff]  }
 0x15a   : > { %10530 = vmatpush1.bf16.msra.mxu1 %v15063_v23  ;;  %v10196_v41 = vpop.f32.mrf.mxu0  ;;  %10490 = vmatprep.subr.bf16.mxu0 %v15068_v28  ;;  %v15107_v23 = vld [vmem:[%s17119_s11 + $0x1604] ss:$16 sps:$4 sm:$0xff]   ;;  %v15102_v28 = vld [vmem:[%s17119_s11 + $0x1400] ss:$16 sps:$4 sm:$0xff]  }
 0x15b   : > { %v10237_v42 = vpop.f32.mrf.mxu1  ;;  %10531 = vmatprep.subr.bf16.mxu1 %v15071_v48  ;;  %v17603_v49 = vadd.f32 %v10235_v36, %v10195_v37  ;;  %v10197_v50 = vadd.f32 %v10196_v41, %v17510_v35  ;;  %10520 = vmatprep.mubr.bf16.mxu0 %v17584_v24  ;;  %v15080_v35 = vld [vmem:[%s17119_s11 + $0x1484] ss:$16 sps:$4 sm:$0xff]   ;;  %v15105_v48 = vld [vmem:[%s17119_s11 + $0x1600] ss:$16 sps:$4 sm:$0xff]  }
 0x15c   : > { %10561 = vmatprep.mubr.bf16.mxu1 %v17596_v34  ;;  %v10198_v39 = vpop.f32.mrf.mxu0  ;;  %v15111_v36 = vld [vmem:[%s17119_s11 + $0x17e0] ss:$16 sps:$4 sm:$0xff]   ;;  %v15116_v37 = vld [vmem:[%s17119_s11 + $0x15c4] ss:$16 sps:$4 sm:$0xff]  }
 0x15d   : > { %v10239_v55 = vpop.f32.mrf.mxu1  ;;  %v17610_v56 = vadd.f32 %v10237_v42, %v10197_v50  ;;  %10491 = vmatpush1.bf16.msra.mxu0 %v15066_v30  ;;  %v15110_v30 = vld [vmem:[%s17119_s11 + $0x15e4] ss:$16 sps:$4 sm:$0xff]   ;;  %v15114_v42 = vld [vmem:[%s17119_s11 + $0x15c0] ss:$16 sps:$4 sm:$0xff]  }
 0x15e   : > { %10532 = vmatpush1.bf16.msra.mxu1 %v15069_v31  ;;  %v10199_v57 = vpop.f32.mrf.mxu0  ;;  %10492 = vmatprep.subr.bf16.mxu0 %v15074_v43  ;;  %v15113_v31 = vld [vmem:[%s17119_s11 + $0x17e4] ss:$16 sps:$4 sm:$0xff]   ;;  %v15117_v43 = vld [vmem:[%s17119_s11 + $0x17c0] ss:$16 sps:$4 sm:$0xff]  }
 0x15f   : > { %v10240_v58 = vpop.f32.mrf.mxu1  ;;  %10533 = vmatprep.subr.bf16.mxu1 %v15077_v44  ;;  %v15119_v41 = vld [vmem:[%s17119_s11 + $0x17c4] ss:$16 sps:$4 sm:$0xff]   ;;  %v15126_v57 = vld [vmem:[%s17119_s11 + $0x1580] ss:$16 sps:$4 sm:$0xff]  }
 0x160   : > { %v15122_v44 = vld [vmem:[%s17119_s11 + $0x15a4] ss:$16 sps:$4 sm:$0xff]   ;;  %v15129_v58 = vld [vmem:[%s17119_s11 + $0x1780] ss:$16 sps:$4 sm:$0xff]  }
 0x161   : > { %10493 = vmatpush1.bf16.msra.mxu0 %v15072_v52  ;;  %v15125_v50 = vld [vmem:[%s17119_s11 + $0x17a4] ss:$16 sps:$4 sm:$0xff]   ;;  %v15120_v52 = vld [vmem:[%s17119_s11 + $0x15a0] ss:$16 sps:$4 sm:$0xff]  }
 0x162   : > { %10534 = vmatpush1.bf16.msra.mxu1 %v15075_v53  ;;  %10494 = vmatprep.subr.bf16.mxu0 %v15080_v35  ;;  %v15123_v53 = vld [vmem:[%s17119_s11 + $0x17a0] ss:$16 sps:$4 sm:$0xff]   ;;  %v15128_v39 = vld [vmem:[%s17119_s11 + $0x1584] ss:$16 sps:$4 sm:$0xff]  }
 0x163   : > { %10535 = vmatprep.subr.bf16.mxu1 %v15083_v38  ;;  %v15131_v55 = vld [vmem:[%s17119_s11 + $0x1784] ss:$16 sps:$4 sm:$0xff]  }
 0x164   : > { %v15134_v35 = vld [vmem:[%s17119_s11 + $0x1564] ss:$16 sps:$4 sm:$0xff]  }
 0x165   : > { %10495 = vmatpush1.bf16.msra.mxu0 %v15078_v61  ;;  %v15137_v38 = vld [vmem:[%s17119_s11 + $0x1764] ss:$16 sps:$4 sm:$0xff]   ;;  %v15132_v61 = vld [vmem:[%s17119_s11 + $0x1560] ss:$16 sps:$4 sm:$0xff]  }
 0x166   : > { %10536 = vmatpush1.bf16.msra.mxu1 %v15081_v63  ;;  %10496 = vmatprep.subr.bf16.mxu0 %v15086_v0  ;;  %v15135_v63 = vld [vmem:[%s17119_s11 + $0x1760] ss:$16 sps:$4 sm:$0xff]   ;;  %v15140_v0 = vld [vmem:[%s17119_s11 + $0x1544] ss:$16 sps:$4 sm:$0xff]  }
 0x167   : > { %10537 = vmatprep.subr.bf16.mxu1 %v15089_v3  ;;  %v15143_v3 = vld [vmem:[%s17119_s11 + $0x1744] ss:$16 sps:$4 sm:$0xff]  }
 0x169   : > { %10497 = vmatpush1.bf16.msra.mxu0 %v15084_v4  ;;  %v17655_v4 = vld [vmem:[%s17114_s30 + $0x18] sm:$0xff] }
 0x16a   : > { %10538 = vmatpush1.bf16.msra.mxu1 %v15087_v6  ;;  %10498 = vmatprep.subr.bf16.mxu0 %v15092_v7  ;;  %v15138_v6 = vld [vmem:[%s17119_s11 + $0x1540] ss:$16 sps:$4 sm:$0xff]  }
 0x16b   : > { %10539 = vmatprep.subr.bf16.mxu1 %v15095_v9  ;;  %v15141_v7 = vld [vmem:[%s17119_s11 + $0x1740] ss:$16 sps:$4 sm:$0xff]   ;;  %v15146_v9 = vld [vmem:[%s17119_s11 + $0x1524] ss:$16 sps:$4 sm:$0xff]  }
 0x16d   : > { %10499 = vmatpush1.bf16.msra.mxu0 %v15090_v10  ;;  %v15149_v10 = vld [vmem:[%s17119_s11 + $0x1724] ss:$16 sps:$4 sm:$0xff]  }
 0x16e   : > { %10540 = vmatpush1.bf16.msra.mxu1 %v15093_v12  ;;  %10500 = vmatprep.subr.bf16.mxu0 %v15098_v14  ;;  %v17663_v12 = vrot.slane %v17655_v4, %v17170_v51  ;;  %v15144_v14 = vld [vmem:[%s17119_s11 + $0x1520] ss:$16 sps:$4 sm:$0xff]  }
 0x16f   : > { %10541 = vmatprep.subr.bf16.mxu1 %v15101_v16  ;;  %v15147_v16 = vld [vmem:[%s17119_s11 + $0x1720] ss:$16 sps:$4 sm:$0xff]  }
 0x171   : > { %10501 = vmatpush1.bf16.msra.mxu0 %v15096_v17  ;;  %v15152_v17 = vld [vmem:[%s17119_s11 + $0x1504] ss:$16 sps:$4 sm:$0xff]  }
 0x172   : > { %10542 = vmatpush1.bf16.msra.mxu1 %v15099_v18  ;;  %10502 = vmatprep.subr.bf16.mxu0 %v15104_v22  ;;  %v15155_v18 = vld [vmem:[%s17119_s11 + $0x1704] ss:$16 sps:$4 sm:$0xff]   ;;  %v2043_v22 = vcombine.high %v17663_v12, %v17663_v12 }
 0x173   : > { %10543 = vmatprep.subr.bf16.mxu1 %v15107_v23  ;;  %v17673_v23 = vrot.slane %v17565_v5, %v17170_v51 }
 0x175   : > { %10503 = vmatpush1.bf16.msra.mxu0 %v15102_v28  ;;  %v15150_v28 = vld [vmem:[%s17119_s11 + $0x1500] ss:$16 sps:$4 sm:$0xff]   ;;  %v17686_v5 = vcombine.high %v17673_v23, %v17673_v23 }
 0x176   : > { %10544 = vmatpush1.bf16.msra.mxu1 %v15105_v48  ;;  %10504 = vmatprep.subr.bf16.mxu0 %v15110_v30  ;;  %v15153_v48 = vld [vmem:[%s17119_s11 + $0x1700] ss:$16 sps:$4 sm:$0xff]   ;;  %v15159_v30 = vld [vmem:[%s17119_s11 + $0x18e4] ss:$16 sps:$4 sm:$0xff]  }
 0x177   : > { %10545 = vmatprep.subr.bf16.mxu1 %v15113_v31  ;;  %v15162_v31 = vld [vmem:[%s17119_s11 + $0x1ae4] ss:$16 sps:$4 sm:$0xff]  }
 0x179   : > { %10505 = vmatpush2.bf16.msra.mxu0 %v15108_v8  ;;  %v15157_v8 = vld [vmem:[%s17119_s11 + $0x18e0] ss:$16 sps:$4 sm:$0xff]  }
 0x17a   : > { %10546 = vmatpush2.bf16.msra.mxu1 %v15111_v36  ;;  %10506 = vmatprep.subr.bf16.mxu0 %v15116_v37  ;;  %v15160_v36 = vld [vmem:[%s17119_s11 + $0x1ae0] ss:$16 sps:$4 sm:$0xff]   ;;  %v17682_v37 = vrot.slane %v2043_v22, %v17170_v51 }
 0x17b   : > { %10547 = vmatprep.subr.bf16.mxu1 %v15119_v41  ;;  %v15165_v41 = vld [vmem:[%s17119_s11 + $0x18c4] ss:$16 sps:$4 sm:$0xff]   ;;  %v15181_v22 = vld [vmem:[%s17119_s11 + $0x1860] ss:$16 sps:$4 sm:$0xff]  }
 0x17d   : > { %10507 = vmatpush2.bf16.msra.mxu0 %v15114_v42  ;;  %v15168_v42 = vld [vmem:[%s17119_s11 + $0x1ac4] ss:$16 sps:$4 sm:$0xff]  }
 0x17e   : > { %10548 = vmatpush2.bf16.msra.mxu1 %v15117_v43  ;;  %10508 = vmatprep.subr.bf16.mxu0 %v15122_v44  ;;  %v15163_v43 = vld [vmem:[%s17119_s11 + $0x18c0] ss:$16 sps:$4 sm:$0xff]  }
 0x17f   : > { %10549 = vmatprep.subr.bf16.mxu1 %v15125_v50  ;;  %v15166_v44 = vld [vmem:[%s17119_s11 + $0x1ac0] ss:$16 sps:$4 sm:$0xff]   ;;  %v17694_v50 = vcombine.high %v17682_v37, %v17682_v37 }
 0x181   : > { %10509 = vmatpush2.bf16.msra.mxu0 %v15120_v52 }
 0x182   : > { %10550 = vmatpush2.bf16.msra.mxu1 %v15123_v53  ;;  %10510 = vmatprep.subr.bf16.mxu0 %v15128_v39 }
 0x183   : > { %10551 = vmatprep.subr.bf16.mxu1 %v15131_v55 }
 0x185   : > { %10511 = vmatpush2.bf16.msra.mxu0 %v15126_v57 }
 0x186   : > { %10552 = vmatpush2.bf16.msra.mxu1 %v15129_v58  ;;  %10512 = vmatprep.subr.bf16.mxu0 %v15134_v35  ;;  %v15171_v58 = vld [vmem:[%s17119_s11 + $0x18a4] ss:$16 sps:$4 sm:$0xff]  }
 0x187   : > { %10553 = vmatprep.subr.bf16.mxu1 %v15137_v38  ;;  %v15174_v35 = vld [vmem:[%s17119_s11 + $0x1aa4] ss:$16 sps:$4 sm:$0xff]  }
 0x189   : > { %10513 = vmatpush2.bf16.msra.mxu0 %v15132_v61 }
 0x18a   : > { %10554 = vmatpush2.bf16.msra.mxu1 %v15135_v63  ;;  %10514 = vmatprep.subr.bf16.mxu0 %v15140_v0  ;;  %v15169_v63 = vld [vmem:[%s17119_s11 + $0x18a0] ss:$16 sps:$4 sm:$0xff]  }
 0x18b   : > { %10555 = vmatprep.subr.bf16.mxu1 %v15143_v3  ;;  %v15172_v0 = vld [vmem:[%s17119_s11 + $0x1aa0] ss:$16 sps:$4 sm:$0xff]  }
 0x18d   : > { %10515 = vmatpush2.bf16.msra.mxu0 %v15138_v6 }
 0x18e   : > { %10556 = vmatpush2.bf16.msra.mxu1 %v15141_v7  ;;  %10516 = vmatprep.subr.bf16.mxu0 %v15146_v9 }
 0x18f   : > { %10557 = vmatprep.subr.bf16.mxu1 %v15149_v10  ;;  %v15180_v10 = vld [vmem:[%s17119_s11 + $0x1a84] ss:$16 sps:$4 sm:$0xff]  }
 0x191   : > { %10517 = vmatpush2.bf16.msra.mxu0 %v15144_v14  ;;  %v15175_v14 = vld [vmem:[%s17119_s11 + $0x1880] ss:$16 sps:$4 sm:$0xff]  }
 0x192   : > { %10558 = vmatpush2.bf16.msra.mxu1 %v15147_v16  ;;  %10518 = vmatprep.subr.bf16.mxu0 %v15152_v17  ;;  %v15178_v16 = vld [vmem:[%s17119_s11 + $0x1a80] ss:$16 sps:$4 sm:$0xff]   ;;  %v15183_v17 = vld [vmem:[%s17119_s11 + $0x1864] ss:$16 sps:$4 sm:$0xff]  }
 0x193   : > { %10559 = vmatprep.subr.bf16.mxu1 %v15155_v18  ;;  %v15186_v18 = vld [vmem:[%s17119_s11 + $0x1a64] ss:$16 sps:$4 sm:$0xff]  }
 0x195   : > { %10519 = vmatpush2.bf16.msra.mxu0 %v15150_v28  ;;  %v15184_v28 = vld [vmem:[%s17119_s11 + $0x1a60] ss:$16 sps:$4 sm:$0xff]  }
 0x196   : > { %10560 = vmatpush2.bf16.msra.mxu1 %v15153_v48  ;;  %10570 = vmatprep.subr.bf16.mxu0 %v15159_v30  ;;  %v15189_v48 = vld [vmem:[%s17119_s11 + $0x1844] ss:$16 sps:$4 sm:$0xff]  }
 0x197   : > { %10611 = vmatprep.subr.bf16.mxu1 %v15162_v31  ;;  %v15192_v30 = vld [vmem:[%s17119_s11 + $0x1a44] ss:$16 sps:$4 sm:$0xff]   ;;  %v15187_v31 = vld [vmem:[%s17119_s11 + $0x1840] ss:$16 sps:$4 sm:$0xff]  }
 0x198   : > { %v10276_v52 = vpop.f32.mrf.mxu0  ;;  %10521 = vmatmul.mubr.bf16.vlgmr.msra.gmra.mxu0 %v17673_v23 }
 0x199   : > { %v10317_v53 = vpop.f32.mrf.mxu1  ;;  %10562 = vmatmul.mubr.bf16.vlgmr.msra.gmra.mxu1 %v17686_v5  ;;  %v10277_v39 = vadd.f32 %v10276_v52, %v17603_v49  ;;  %10571 = vmatpush1.bf16.msra.mxu0 %v15157_v8  ;;  %v15190_v8 = vld [vmem:[%s17119_s11 + $0x1a40] ss:$16 sps:$4 sm:$0xff]   ;;  %v15204_v52 = vld [vmem:[%s17119_s11 + $0x1a04] ss:$16 sps:$4 sm:$0xff]  }
 0x19a   : > { %10612 = vmatpush1.bf16.msra.mxu1 %v15160_v36  ;;  %v10278_v55 = vpop.f32.mrf.mxu0  ;;  %10572 = vmatprep.subr.bf16.mxu0 %v15165_v41  ;;  %v15195_v36 = vld [vmem:[%s17119_s11 + $0x1824] ss:$16 sps:$4 sm:$0xff]  }
 0x19b   : > { %v10319_v57 = vpop.f32.mrf.mxu1  ;;  %10613 = vmatprep.subr.bf16.mxu1 %v15168_v42  ;;  %v17701_v38 = vadd.f32 %v10317_v53, %v10277_v39  ;;  %v10279_v61 = vadd.f32 %v10278_v55, %v17610_v56  ;;  %10602 = vmatprep.mubr.bf16.mxu0 %v17682_v37  ;;  %v15177_v56 = vld [vmem:[%s17119_s11 + $0x1884] ss:$16 sps:$4 sm:$0xff]   ;;  %v15193_v42 = vld [vmem:[%s17119_s11 + $0x1820] ss:$16 sps:$4 sm:$0xff]  }
 0x19c   : > { %10643 = vmatprep.mubr.bf16.mxu1 %v17694_v50  ;;  %v10280_v49 = vpop.f32.mrf.mxu0  ;;  %v15198_v41 = vld [vmem:[%s17119_s11 + $0x1a24] ss:$16 sps:$4 sm:$0xff]   ;;  %v15199_v53 = vld [vmem:[%s17119_s11 + $0x1800] ss:$16 sps:$4 sm:$0xff]  }
 0x19d   : > { %v10321_v3 = vpop.f32.mrf.mxu1  ;;  %v17708_v6 = vadd.f32 %v10319_v57, %v10279_v61  ;;  %10573 = vmatpush1.bf16.msra.mxu0 %v15163_v43  ;;  %v15196_v43 = vld [vmem:[%s17119_s11 + $0x1a20] ss:$16 sps:$4 sm:$0xff]   ;;  %v15207_v55 = vld [vmem:[%s17119_s11 + $0x19e4] ss:$16 sps:$4 sm:$0xff]  }
 0x19e   : > { %10614 = vmatpush1.bf16.msra.mxu1 %v15166_v44  ;;  %v10281_v7 = vpop.f32.mrf.mxu0  ;;  %10574 = vmatprep.subr.bf16.mxu0 %v15171_v58  ;;  %v15201_v44 = vld [vmem:[%s17119_s11 + $0x1804] ss:$16 sps:$4 sm:$0xff]   ;;  %v15202_v39 = vld [vmem:[%s17119_s11 + $0x1a00] ss:$16 sps:$4 sm:$0xff]  }
 0x19f   : > { %v10322_v9 = vpop.f32.mrf.mxu1  ;;  %10615 = vmatprep.subr.bf16.mxu1 %v15174_v35  ;;  %v15210_v57 = vld [vmem:[%s17119_s11 + $0x1be4] ss:$16 sps:$4 sm:$0xff]   ;;  %v15205_v58 = vld [vmem:[%s17119_s11 + $0x19e0] ss:$16 sps:$4 sm:$0xff]  }
 0x1a0   : > { %v15208_v35 = vld [vmem:[%s17119_s11 + $0x1be0] ss:$16 sps:$4 sm:$0xff]   ;;  %v15213_v61 = vld [vmem:[%s17119_s11 + $0x19c4] ss:$16 sps:$4 sm:$0xff]  }
 0x1a1   : > { %10575 = vmatpush1.bf16.msra.mxu0 %v15169_v63  ;;  %v15216_v63 = vld [vmem:[%s17119_s11 + $0x1bc4] ss:$16 sps:$4 sm:$0xff]   ;;  %v15214_v49 = vld [vmem:[%s17119_s11 + $0x1bc0] ss:$16 sps:$4 sm:$0xff]  }
 0x1a2   : > { %10616 = vmatpush1.bf16.msra.mxu1 %v15172_v0  ;;  %10576 = vmatprep.subr.bf16.mxu0 %v15177_v56  ;;  %v15211_v0 = vld [vmem:[%s17119_s11 + $0x19c0] ss:$16 sps:$4 sm:$0xff]   ;;  %v15219_v3 = vld [vmem:[%s17119_s11 + $0x19a4] ss:$16 sps:$4 sm:$0xff]  }
 0x1a3   : > { %10617 = vmatprep.subr.bf16.mxu1 %v15180_v10  ;;  %v15222_v7 = vld [vmem:[%s17119_s11 + $0x1ba4] ss:$16 sps:$4 sm:$0xff]   ;;  %v15217_v9 = vld [vmem:[%s17119_s11 + $0x19a0] ss:$16 sps:$4 sm:$0xff]  }
 0x1a4   : > { %v15220_v56 = vld [vmem:[%s17119_s11 + $0x1ba0] ss:$16 sps:$4 sm:$0xff]   ;;  %v15225_v10 = vld [vmem:[%s17119_s11 + $0x1984] ss:$16 sps:$4 sm:$0xff]  }
 0x1a5   : > { %10577 = vmatpush1.bf16.msra.mxu0 %v15175_v14  ;;  %v15228_v14 = vld [vmem:[%s17119_s11 + $0x1b84] ss:$16 sps:$4 sm:$0xff]  }
 0x1a6   : > { %10618 = vmatpush1.bf16.msra.mxu1 %v15178_v16  ;;  %10578 = vmatprep.subr.bf16.mxu0 %v15183_v17  ;;  %v15223_v16 = vld [vmem:[%s17119_s11 + $0x1980] ss:$16 sps:$4 sm:$0xff]  }
 0x1a7   : > { %10619 = vmatprep.subr.bf16.mxu1 %v15186_v18  ;;  %v15226_v17 = vld [vmem:[%s17119_s11 + $0x1b80] ss:$16 sps:$4 sm:$0xff]   ;;  %v15231_v18 = vld [vmem:[%s17119_s11 + $0x1964] ss:$16 sps:$4 sm:$0xff]  }
 0x1a9   : > { %10579 = vmatpush1.bf16.msra.mxu0 %v15181_v22  ;;  %v15234_v22 = vld [vmem:[%s17119_s11 + $0x1b64] ss:$16 sps:$4 sm:$0xff]  }
 0x1aa   : > { %10620 = vmatpush1.bf16.msra.mxu1 %v15184_v28  ;;  %10580 = vmatprep.subr.bf16.mxu0 %v15189_v48  ;;  %v15229_v28 = vld [vmem:[%s17119_s11 + $0x1960] ss:$16 sps:$4 sm:$0xff]  }
 0x1ab   : > { %10621 = vmatprep.subr.bf16.mxu1 %v15192_v30  ;;  %v15232_v48 = vld [vmem:[%s17119_s11 + $0x1b60] ss:$16 sps:$4 sm:$0xff]   ;;  %v15237_v30 = vld [vmem:[%s17119_s11 + $0x1944] ss:$16 sps:$4 sm:$0xff]  }
 0x1ad   : > { %10581 = vmatpush1.bf16.msra.mxu0 %v15187_v31  ;;  %v15240_v31 = vld [vmem:[%s17119_s11 + $0x1b44] ss:$16 sps:$4 sm:$0xff]  }
 0x1ae   : > { %10622 = vmatpush1.bf16.msra.mxu1 %v15190_v8  ;;  %10582 = vmatprep.subr.bf16.mxu0 %v15195_v36  ;;  %v2028_v8 = vcombine.high %v17655_v4, %v17655_v4  ;;  %v15235_v36 = vld [vmem:[%s17119_s11 + $0x1940] ss:$16 sps:$4 sm:$0xff]  }
 0x1af   : > { %10623 = vmatprep.subr.bf16.mxu1 %v15198_v41  ;;  %v15238_v41 = vld [vmem:[%s17119_s11 + $0x1b40] ss:$16 sps:$4 sm:$0xff]  }
 0x1b0   : > { %v15241_v4 = vld [vmem:[%s17119_s11 + $0x1920] ss:$16 sps:$4 sm:$0xff]  }
 0x1b1   : > { %10583 = vmatpush1.bf16.msra.mxu0 %v15193_v42  ;;  %v15243_v42 = vld [vmem:[%s17119_s11 + $0x1924] ss:$16 sps:$4 sm:$0xff]  }
 0x1b2   : > { %10624 = vmatpush1.bf16.msra.mxu1 %v15196_v43  ;;  %10584 = vmatprep.subr.bf16.mxu0 %v15201_v44  ;;  %v15246_v43 = vld [vmem:[%s17119_s11 + $0x1b24] ss:$16 sps:$4 sm:$0xff]   ;;  %v17759_v44 = vrot.slane %v2028_v8, %v17170_v51 }
 0x1b3   : > { %10625 = vmatprep.subr.bf16.mxu1 %v15204_v52  ;;  %v15244_v52 = vld [vmem:[%s17119_s11 + $0x1b20] ss:$16 sps:$4 sm:$0xff]  }
 0x1b5   : > { %10585 = vmatpush1.bf16.msra.mxu0 %v15199_v53  ;;  %v15249_v53 = vld [vmem:[%s17119_s11 + $0x1904] ss:$16 sps:$4 sm:$0xff]  }
 0x1b6   : > { %10626 = vmatpush1.bf16.msra.mxu1 %v15202_v39  ;;  %10586 = vmatprep.subr.bf16.mxu0 %v15207_v55  ;;  %v15252_v39 = vld [vmem:[%s17119_s11 + $0x1b04] ss:$16 sps:$4 sm:$0xff]   ;;  %v2044_v55 = vcombine.high %v17759_v44, %v17759_v44 }
 0x1b7   : > { %10627 = vmatprep.subr.bf16.mxu1 %v15210_v57  ;;  %v17769_v57 = vrot.slane %v17663_v12, %v17170_v51 }
 0x1b9   : > { %10587 = vmatpush2.bf16.msra.mxu0 %v15205_v58  ;;  %v15247_v58 = vld [vmem:[%s17119_s11 + $0x1900] ss:$16 sps:$4 sm:$0xff]   ;;  %v17782_v12 = vcombine.high %v17769_v57, %v17769_v57 }
 0x1ba   : > { %10628 = vmatpush2.bf16.msra.mxu1 %v15208_v35  ;;  %10588 = vmatprep.subr.bf16.mxu0 %v15213_v61  ;;  %v15250_v35 = vld [vmem:[%s17119_s11 + $0x1b00] ss:$16 sps:$4 sm:$0xff]   ;;  %v15255_v61 = vld [vmem:[%s17119_s11 + $0x1ce4] ss:$16 sps:$4 sm:$0xff]  }
 0x1bb   : > { %10629 = vmatprep.subr.bf16.mxu1 %v15216_v63  ;;  %v15258_v63 = vld [vmem:[%s17119_s11 + $0x1ee4] ss:$16 sps:$4 sm:$0xff]  }
 0x1bd   : > { %10589 = vmatpush2.bf16.msra.mxu0 %v15211_v0  ;;  %v15253_v0 = vld [vmem:[%s17119_s11 + $0x1ce0] ss:$16 sps:$4 sm:$0xff]  }
 0x1be   : > { %10630 = vmatpush2.bf16.msra.mxu1 %v15214_v49  ;;  %10590 = vmatprep.subr.bf16.mxu0 %v15219_v3  ;;  %v15256_v49 = vld [vmem:[%s17119_s11 + $0x1ee0] ss:$16 sps:$4 sm:$0xff]   ;;  %v17778_v3 = vrot.slane %v2044_v55, %v17170_v51 }
 0x1bf   : > { %10631 = vmatprep.subr.bf16.mxu1 %v15222_v7  ;;  %v15261_v7 = vld [vmem:[%s17119_s11 + $0x1cc4] ss:$16 sps:$4 sm:$0xff]   ;;  %v15274_v55 = vld [vmem:[%s17119_s11 + $0x1e80] ss:$16 sps:$4 sm:$0xff]  }
 0x1c1   : > { %10591 = vmatpush2.bf16.msra.mxu0 %v15217_v9  ;;  %v15264_v9 = vld [vmem:[%s17119_s11 + $0x1ec4] ss:$16 sps:$4 sm:$0xff]  }
 0x1c2   : > { %10632 = vmatpush2.bf16.msra.mxu1 %v15220_v56  ;;  %10592 = vmatprep.subr.bf16.mxu0 %v15225_v10  ;;  %v15259_v56 = vld [vmem:[%s17119_s11 + $0x1cc0] ss:$16 sps:$4 sm:$0xff]  }
 0x1c3   : > { %10633 = vmatprep.subr.bf16.mxu1 %v15228_v14  ;;  %v15262_v10 = vld [vmem:[%s17119_s11 + $0x1ec0] ss:$16 sps:$4 sm:$0xff]   ;;  %v17790_v14 = vcombine.high %v17778_v3, %v17778_v3 }
 0x1c5   : > { %10593 = vmatpush2.bf16.msra.mxu0 %v15223_v16 }
 0x1c6   : > { %10634 = vmatpush2.bf16.msra.mxu1 %v15226_v17  ;;  %10594 = vmatprep.subr.bf16.mxu0 %v15231_v18 }
 0x1c7   : > { %10635 = vmatprep.subr.bf16.mxu1 %v15234_v22 }
 0x1c9   : > { %10595 = vmatpush2.bf16.msra.mxu0 %v15229_v28 }
 0x1ca   : > { %10636 = vmatpush2.bf16.msra.mxu1 %v15232_v48  ;;  %10596 = vmatprep.subr.bf16.mxu0 %v15237_v30  ;;  %v15267_v48 = vld [vmem:[%s17119_s11 + $0x1ca4] ss:$16 sps:$4 sm:$0xff]  }
 0x1cb   : > { %10637 = vmatprep.subr.bf16.mxu1 %v15240_v31  ;;  %v15270_v30 = vld [vmem:[%s17119_s11 + $0x1ea4] ss:$16 sps:$4 sm:$0xff]  }
 0x1cd   : > { %10597 = vmatpush2.bf16.msra.mxu0 %v15235_v36  ;;  %v15265_v36 = vld [vmem:[%s17119_s11 + $0x1ca0] ss:$16 sps:$4 sm:$0xff]  }
 0x1ce   : > { %10638 = vmatpush2.bf16.msra.mxu1 %v15238_v41  ;;  %10598 = vmatprep.subr.bf16.mxu0 %v15243_v42  ;;  %v15268_v41 = vld [vmem:[%s17119_s11 + $0x1ea0] ss:$16 sps:$4 sm:$0xff]  }
 0x1cf   : > { %10639 = vmatprep.subr.bf16.mxu1 %v15246_v43 }
 0x1d1   : > { %10599 = vmatpush2.bf16.msra.mxu0 %v15241_v4 }
 0x1d2   : > { %10640 = vmatpush2.bf16.msra.mxu1 %v15244_v52  ;;  %10600 = vmatprep.subr.bf16.mxu0 %v15249_v53  ;;  %v15276_v53 = vld [vmem:[%s17119_s11 + $0x1e84] ss:$16 sps:$4 sm:$0xff]  }
 0x1d3   : > { %10641 = vmatprep.subr.bf16.mxu1 %v15252_v39  ;;  %v15271_v39 = vld [vmem:[%s17119_s11 + $0x1c80] ss:$16 sps:$4 sm:$0xff]  }
 0x1d5   : > { %10601 = vmatpush2.bf16.msra.mxu0 %v15247_v58  ;;  %v15279_v58 = vld [vmem:[%s17119_s11 + $0x1c64] ss:$16 sps:$4 sm:$0xff]  }
 0x1d6   : > { %10642 = vmatpush2.bf16.msra.mxu1 %v15250_v35  ;;  %10652 = vmatprep.subr.bf16.mxu0 %v15255_v61  ;;  %v15282_v35 = vld [vmem:[%s17119_s11 + $0x1e64] ss:$16 sps:$4 sm:$0xff]   ;;  %v15277_v61 = vld [vmem:[%s17119_s11 + $0x1c60] ss:$16 sps:$4 sm:$0xff]  }
 0x1d7   : > { %10693 = vmatprep.subr.bf16.mxu1 %v15258_v63  ;;  %v15280_v63 = vld [vmem:[%s17119_s11 + $0x1e60] ss:$16 sps:$4 sm:$0xff]  }
 0x1d8   : > { %v10358_v16 = vpop.f32.mrf.mxu0  ;;  %10603 = vmatmul.mubr.bf16.vlgmr.msra.gmra.mxu0 %v17769_v57 }
 0x1d9   : > { %v10399_v17 = vpop.f32.mrf.mxu1  ;;  %10644 = vmatmul.mubr.bf16.vlgmr.msra.gmra.mxu1 %v17782_v12  ;;  %v10359_v18 = vadd.f32 %v10358_v16, %v17701_v38  ;;  %10653 = vmatpush1.bf16.msra.mxu0 %v15253_v0  ;;  %v15285_v0 = vld [vmem:[%s17119_s11 + $0x1c44] ss:$16 sps:$4 sm:$0xff]   ;;  %v15289_v16 = vld [vmem:[%s17119_s11 + $0x1c20] ss:$16 sps:$4 sm:$0xff]  }
 0x1da   : > { %10694 = vmatpush1.bf16.msra.mxu1 %v15256_v49  ;;  %v10360_v22 = vpop.f32.mrf.mxu0  ;;  %10654 = vmatprep.subr.bf16.mxu0 %v15261_v7  ;;  %v15288_v49 = vld [vmem:[%s17119_s11 + $0x1e44] ss:$16 sps:$4 sm:$0xff]   ;;  %v15283_v7 = vld [vmem:[%s17119_s11 + $0x1c40] ss:$16 sps:$4 sm:$0xff]  }
 0x1db   : > { %v10401_v28 = vpop.f32.mrf.mxu1  ;;  %10695 = vmatprep.subr.bf16.mxu1 %v15264_v9  ;;  %v17797_v31 = vadd.f32 %v10399_v17, %v10359_v18  ;;  %v10361_v8 = vadd.f32 %v10360_v22, %v17708_v6  ;;  %10684 = vmatprep.mubr.bf16.mxu0 %v17778_v3  ;;  %v15273_v6 = vld [vmem:[%s17119_s11 + $0x1c84] ss:$16 sps:$4 sm:$0xff]   ;;  %v15286_v9 = vld [vmem:[%s17119_s11 + $0x1e40] ss:$16 sps:$4 sm:$0xff]  }
 0x1dc   : > { %10725 = vmatprep.mubr.bf16.mxu1 %v17790_v14  ;;  %v10362_v38 = vpop.f32.mrf.mxu0  ;;  %v15292_v17 = vld [vmem:[%s17119_s11 + $0x1e20] ss:$16 sps:$4 sm:$0xff]   ;;  %v15297_v18 = vld [vmem:[%s17119_s11 + $0x1c04] ss:$16 sps:$4 sm:$0xff]  }
 0x1dd   : > { %v10403_v42 = vpop.f32.mrf.mxu1  ;;  %v17804_v43 = vadd.f32 %v10401_v28, %v10361_v8  ;;  %10655 = vmatpush1.bf16.msra.mxu0 %v15259_v56  ;;  %v15291_v56 = vld [vmem:[%s17119_s11 + $0x1c24] ss:$16 sps:$4 sm:$0xff]   ;;  %v15295_v28 = vld [vmem:[%s17119_s11 + $0x1c00] ss:$16 sps:$4 sm:$0xff]  }
 0x1de   : > { %10696 = vmatpush1.bf16.msra.mxu1 %v15262_v10  ;;  %v10363_v4 = vpop.f32.mrf.mxu0  ;;  %10656 = vmatprep.subr.bf16.mxu0 %v15267_v48  ;;  %v15294_v10 = vld [vmem:[%s17119_s11 + $0x1e24] ss:$16 sps:$4 sm:$0xff]   ;;  %v15298_v48 = vld [vmem:[%s17119_s11 + $0x1e00] ss:$16 sps:$4 sm:$0xff]  }
 0x1df   : > { %v10404_v52 = vpop.f32.mrf.mxu1  ;;  %10697 = vmatprep.subr.bf16.mxu1 %v15270_v30  ;;  %v15300_v22 = vld [vmem:[%s17119_s11 + $0x1e04] ss:$16 sps:$4 sm:$0xff]   ;;  %v15307_v4 = vld [vmem:[%s17119_s11 + $0x1dc0] ss:$16 sps:$4 sm:$0xff]  }
 0x1e0   : > { %v15303_v30 = vld [vmem:[%s17119_s11 + $0x1de4] ss:$16 sps:$4 sm:$0xff]   ;;  %v15310_v52 = vld [vmem:[%s17119_s11 + $0x1fc0] ss:$16 sps:$4 sm:$0xff]  }
 0x1e1   : > { %10657 = vmatpush1.bf16.msra.mxu0 %v15265_v36  ;;  %v15306_v8 = vld [vmem:[%s17119_s11 + $0x1fe4] ss:$16 sps:$4 sm:$0xff]   ;;  %v15301_v36 = vld [vmem:[%s17119_s11 + $0x1de0] ss:$16 sps:$4 sm:$0xff]  }
 0x1e2   : > { %10698 = vmatpush1.bf16.msra.mxu1 %v15268_v41  ;;  %10658 = vmatprep.subr.bf16.mxu0 %v15273_v6  ;;  %v15304_v41 = vld [vmem:[%s17119_s11 + $0x1fe0] ss:$16 sps:$4 sm:$0xff]   ;;  %v15309_v38 = vld [vmem:[%s17119_s11 + $0x1dc4] ss:$16 sps:$4 sm:$0xff]  }
 0x1e3   : > { %10699 = vmatprep.subr.bf16.mxu1 %v15276_v53  ;;  %v15312_v42 = vld [vmem:[%s17119_s11 + $0x1fc4] ss:$16 sps:$4 sm:$0xff]  }
 0x1e4   : > { %v15315_v6 = vld [vmem:[%s17119_s11 + $0x1da4] ss:$16 sps:$4 sm:$0xff]  }
 0x1e5   : > { %10659 = vmatpush1.bf16.msra.mxu0 %v15271_v39  ;;  %v15318_v53 = vld [vmem:[%s17119_s11 + $0x1fa4] ss:$16 sps:$4 sm:$0xff]   ;;  %v15313_v39 = vld [vmem:[%s17119_s11 + $0x1da0] ss:$16 sps:$4 sm:$0xff]  }
 0x1e6   : > { %10700 = vmatpush1.bf16.msra.mxu1 %v15274_v55  ;;  %10660 = vmatprep.subr.bf16.mxu0 %v15279_v58  ;;  %v15316_v55 = vld [vmem:[%s17119_s11 + $0x1fa0] ss:$16 sps:$4 sm:$0xff]   ;;  %v15321_v58 = vld [vmem:[%s17119_s11 + $0x1d84] ss:$16 sps:$4 sm:$0xff]  }
 0x1e7   : > { %10701 = vmatprep.subr.bf16.mxu1 %v15282_v35  ;;  %v15324_v35 = vld [vmem:[%s17119_s11 + $0x1f84] ss:$16 sps:$4 sm:$0xff]  }
 0x1e9   : > { %10661 = vmatpush1.bf16.msra.mxu0 %v15277_v61  ;;  %v15319_v61 = vld [vmem:[%s17119_s11 + $0x1d80] ss:$16 sps:$4 sm:$0xff]  }
 0x1ea   : > { %10702 = vmatpush1.bf16.msra.mxu1 %v15280_v63  ;;  %10662 = vmatprep.subr.bf16.mxu0 %v15285_v0  ;;  %v15322_v63 = vld [vmem:[%s17119_s11 + $0x1f80] ss:$16 sps:$4 sm:$0xff]   ;;  %v15327_v0 = vld [vmem:[%s17119_s11 + $0x1d64] ss:$16 sps:$4 sm:$0xff]  }
 0x1eb   : > { %10703 = vmatprep.subr.bf16.mxu1 %v15288_v49  ;;  %v15330_v49 = vld [vmem:[%s17119_s11 + $0x1f64] ss:$16 sps:$4 sm:$0xff]  }
 0x1ed   : > { %10663 = vmatpush1.bf16.msra.mxu0 %v15283_v7  ;;  %v15325_v7 = vld [vmem:[%s17119_s11 + $0x1d60] ss:$16 sps:$4 sm:$0xff]  }
 0x1ee   : > { %10704 = vmatpush1.bf16.msra.mxu1 %v15286_v9  ;;  %10664 = vmatprep.subr.bf16.mxu0 %v15291_v56  ;;  %v15328_v9 = vld [vmem:[%s17119_s11 + $0x1f60] ss:$16 sps:$4 sm:$0xff]   ;;  %v15333_v56 = vld [vmem:[%s17119_s11 + $0x1d44] ss:$16 sps:$4 sm:$0xff]  }
 0x1ef   : > { %10705 = vmatprep.subr.bf16.mxu1 %v15294_v10  ;;  %v15336_v10 = vld [vmem:[%s17119_s11 + $0x1f44] ss:$16 sps:$4 sm:$0xff]  }
 0x1f1   : > { %10665 = vmatpush1.bf16.msra.mxu0 %v15289_v16  ;;  %v17849_v16 = vld [vmem:[%s17114_s30 + $0x20] sm:$0xff] }
 0x1f2   : > { %10706 = vmatpush1.bf16.msra.mxu1 %v15292_v17  ;;  %10666 = vmatprep.subr.bf16.mxu0 %v15297_v18  ;;  %v15331_v17 = vld [vmem:[%s17119_s11 + $0x1d40] ss:$16 sps:$4 sm:$0xff]  }
 0x1f3   : > { %10707 = vmatprep.subr.bf16.mxu1 %v15300_v22  ;;  %v15334_v18 = vld [vmem:[%s17119_s11 + $0x1f40] ss:$16 sps:$4 sm:$0xff]   ;;  %v15339_v22 = vld [vmem:[%s17119_s11 + $0x1d24] ss:$16 sps:$4 sm:$0xff]  }
 0x1f5   : > { %10667 = vmatpush1.bf16.msra.mxu0 %v15295_v28  ;;  %v15342_v28 = vld [vmem:[%s17119_s11 + $0x1f24] ss:$16 sps:$4 sm:$0xff]  }
 0x1f6   : > { %10708 = vmatpush1.bf16.msra.mxu1 %v15298_v48  ;;  %10668 = vmatprep.subr.bf16.mxu0 %v15303_v30  ;;  %v17857_v48 = vrot.slane %v17849_v16, %v17170_v51  ;;  %v15337_v30 = vld [vmem:[%s17119_s11 + $0x1d20] ss:$16 sps:$4 sm:$0xff]  }
 0x1f7   : > { %10709 = vmatprep.subr.bf16.mxu1 %v15306_v8  ;;  %v15340_v8 = vld [vmem:[%s17119_s11 + $0x1f20] ss:$16 sps:$4 sm:$0xff]  }
 0x1f9   : > { %10669 = vmatpush2.bf16.msra.mxu0 %v15301_v36  ;;  %v15345_v36 = vld [vmem:[%s17119_s11 + $0x1d04] ss:$16 sps:$4 sm:$0xff]  }
 0x1fa   : > { %10710 = vmatpush2.bf16.msra.mxu1 %v15304_v41  ;;  %10670 = vmatprep.subr.bf16.mxu0 %v15309_v38  ;;  %v15348_v41 = vld [vmem:[%s17119_s11 + $0x1f04] ss:$16 sps:$4 sm:$0xff]   ;;  %v2092_v38 = vcombine.high %v17857_v48, %v17857_v48 }
 0x1fb   : > { %10711 = vmatprep.subr.bf16.mxu1 %v15312_v42  ;;  %v17867_v42 = vrot.slane %v17759_v44, %v17170_v51 }
 0x1fd   : > { %10671 = vmatpush2.bf16.msra.mxu0 %v15307_v4  ;;  %v15343_v4 = vld [vmem:[%s17119_s11 + $0x1d00] ss:$16 sps:$4 sm:$0xff]   ;;  %v17880_v44 = vcombine.high %v17867_v42, %v17867_v42 }
 0x1fe   : > { %10712 = vmatpush2.bf16.msra.mxu1 %v15310_v52  ;;  %10672 = vmatprep.subr.bf16.mxu0 %v15315_v6  ;;  %v15346_v52 = vld [vmem:[%s17119_s11 + $0x1f00] ss:$16 sps:$4 sm:$0xff]   ;;  %v15352_v6 = vld [vmem:[%s17119_s11 + $0x20e4] ss:$16 sps:$4 sm:$0xff]  }
 0x1ff   : > { %10713 = vmatprep.subr.bf16.mxu1 %v15318_v53  ;;  %v15355_v53 = vld [vmem:[%s17119_s11 + $0x22e4] ss:$16 sps:$4 sm:$0xff]  }
 0x201   : > { %10673 = vmatpush2.bf16.msra.mxu0 %v15313_v39  ;;  %v15350_v39 = vld [vmem:[%s17119_s11 + $0x20e0] ss:$16 sps:$4 sm:$0xff]  }
 0x202   : > { %10714 = vmatpush2.bf16.msra.mxu1 %v15316_v55  ;;  %10674 = vmatprep.subr.bf16.mxu0 %v15321_v58  ;;  %v15353_v55 = vld [vmem:[%s17119_s11 + $0x22e0] ss:$16 sps:$4 sm:$0xff]   ;;  %v17876_v58 = vrot.slane %v2092_v38, %v17170_v51 }
 0x203   : > { %10715 = vmatprep.subr.bf16.mxu1 %v15324_v35  ;;  %v15358_v35 = vld [vmem:[%s17119_s11 + $0x20c4] ss:$16 sps:$4 sm:$0xff]  }
 0x205   : > { %10675 = vmatpush2.bf16.msra.mxu0 %v15319_v61  ;;  %v15361_v61 = vld [vmem:[%s17119_s11 + $0x22c4] ss:$16 sps:$4 sm:$0xff]  }
 0x206   : > { %10716 = vmatpush2.bf16.msra.mxu1 %v15322_v63  ;;  %10676 = vmatprep.subr.bf16.mxu0 %v15327_v0  ;;  %v15356_v63 = vld [vmem:[%s17119_s11 + $0x20c0] ss:$16 sps:$4 sm:$0xff]  }
 0x207   : > { %10717 = vmatprep.subr.bf16.mxu1 %v15330_v49  ;;  %v15359_v0 = vld [vmem:[%s17119_s11 + $0x22c0] ss:$16 sps:$4 sm:$0xff]   ;;  %v17888_v49 = vcombine.high %v17876_v58, %v17876_v58 }
 0x209   : > { %10677 = vmatpush2.bf16.msra.mxu0 %v15325_v7 }
 0x20a   : > { %10718 = vmatpush2.bf16.msra.mxu1 %v15328_v9  ;;  %10678 = vmatprep.subr.bf16.mxu0 %v15333_v56 }
 0x20b   : > { %10719 = vmatprep.subr.bf16.mxu1 %v15336_v10 }
 0x20d   : > { %10679 = vmatpush2.bf16.msra.mxu0 %v15331_v17 }
 0x20e   : > { %10720 = vmatpush2.bf16.msra.mxu1 %v15334_v18  ;;  %10680 = vmatprep.subr.bf16.mxu0 %v15339_v22  ;;  %v15364_v18 = vld [vmem:[%s17119_s11 + $0x20a4] ss:$16 sps:$4 sm:$0xff]  }
 0x20f   : > { %10721 = vmatprep.subr.bf16.mxu1 %v15342_v28  ;;  %v15367_v22 = vld [vmem:[%s17119_s11 + $0x22a4] ss:$16 sps:$4 sm:$0xff]  }
 0x211   : > { %10681 = vmatpush2.bf16.msra.mxu0 %v15337_v30 }
 0x212   : > { %10722 = vmatpush2.bf16.msra.mxu1 %v15340_v8  ;;  %10682 = vmatprep.subr.bf16.mxu0 %v15345_v36  ;;  %v15362_v8 = vld [vmem:[%s17119_s11 + $0x20a0] ss:$16 sps:$4 sm:$0xff]  }
 0x213   : > { %10723 = vmatprep.subr.bf16.mxu1 %v15348_v41  ;;  %v15365_v36 = vld [vmem:[%s17119_s11 + $0x22a0] ss:$16 sps:$4 sm:$0xff]  }
 0x215   : > { %10683 = vmatpush2.bf16.msra.mxu0 %v15343_v4 }
 0x216   : > { %10724 = vmatpush2.bf16.msra.mxu1 %v15346_v52  ;;  %10734 = vmatprep.subr.bf16.mxu0 %v15352_v6  ;;  %v15373_v6 = vld [vmem:[%s17119_s11 + $0x2284] ss:$16 sps:$4 sm:$0xff]  }
 0x217   : > { %10775 = vmatprep.subr.bf16.mxu1 %v15355_v53  ;;  %v15368_v53 = vld [vmem:[%s17119_s11 + $0x2080] ss:$16 sps:$4 sm:$0xff]  }
 0x218   : > { %v10440_v7 = vpop.f32.mrf.mxu0  ;;  %10685 = vmatmul.mubr.bf16.vlgmr.msra.gmra.mxu0 %v17867_v42 }
 0x219   : > { %v10481_v9 = vpop.f32.mrf.mxu1  ;;  %10726 = vmatmul.mubr.bf16.vlgmr.msra.gmra.mxu1 %v17880_v44  ;;  %v10441_v56 = vadd.f32 %v10440_v7, %v17797_v31  ;;  %10735 = vmatpush1.bf16.msra.mxu0 %v15350_v39  ;;  %v15371_v39 = vld [vmem:[%s17119_s11 + $0x2280] ss:$16 sps:$4 sm:$0xff]   ;;  %v15385_v7 = vld [vmem:[%s17119_s11 + $0x2244] ss:$16 sps:$4 sm:$0xff]  }
 0x21a   : > { %10776 = vmatpush1.bf16.msra.mxu1 %v15353_v55  ;;  %v10442_v10 = vpop.f32.mrf.mxu0  ;;  %10736 = vmatprep.subr.bf16.mxu0 %v15358_v35  ;;  %v15376_v55 = vld [vmem:[%s17119_s11 + $0x2064] ss:$16 sps:$4 sm:$0xff]  }
 0x21b   : > { %v10483_v17 = vpop.f32.mrf.mxu1  ;;  %10777 = vmatprep.subr.bf16.mxu1 %v15361_v61  ;;  %v17895_v28 = vadd.f32 %v10481_v9, %v10441_v56  ;;  %v10443_v30 = vadd.f32 %v10442_v10, %v17804_v43  ;;  %10766 = vmatprep.mubr.bf16.mxu0 %v17876_v58  ;;  %v15370_v43 = vld [vmem:[%s17119_s11 + $0x2084] ss:$16 sps:$4 sm:$0xff]   ;;  %v15374_v61 = vld [vmem:[%s17119_s11 + $0x2060] ss:$16 sps:$4 sm:$0xff]  }
 0x21c   : > { %10807 = vmatprep.mubr.bf16.mxu1 %v17888_v49  ;;  %v10444_v31 = vpop.f32.mrf.mxu0  ;;  %v15379_v35 = vld [vmem:[%s17119_s11 + $0x2264] ss:$16 sps:$4 sm:$0xff]   ;;  %v15380_v9 = vld [vmem:[%s17119_s11 + $0x2040] ss:$16 sps:$4 sm:$0xff]  }
 0x21d   : > { %v10485_v41 = vpop.f32.mrf.mxu1  ;;  %v17902_v38 = vadd.f32 %v10483_v17, %v10443_v30  ;;  %10737 = vmatpush1.bf16.msra.mxu0 %v15356_v63  ;;  %v15377_v63 = vld [vmem:[%s17119_s11 + $0x2260] ss:$16 sps:$4 sm:$0xff]   ;;  %v15388_v10 = vld [vmem:[%s17119_s11 + $0x2024] ss:$16 sps:$4 sm:$0xff]  }
 0x21e   : > { %10778 = vmatpush1.bf16.msra.mxu1 %v15359_v0  ;;  %v10445_v4 = vpop.f32.mrf.mxu0  ;;  %10738 = vmatprep.subr.bf16.mxu0 %v15364_v18  ;;  %v15382_v0 = vld [vmem:[%s17119_s11 + $0x2044] ss:$16 sps:$4 sm:$0xff]   ;;  %v15383_v56 = vld [vmem:[%s17119_s11 + $0x2240] ss:$16 sps:$4 sm:$0xff]  }
 0x21f   : > { %v10486_v52 = vpop.f32.mrf.mxu1  ;;  %10779 = vmatprep.subr.bf16.mxu1 %v15367_v22  ;;  %v15391_v17 = vld [vmem:[%s17119_s11 + $0x2224] ss:$16 sps:$4 sm:$0xff]   ;;  %v15386_v18 = vld [vmem:[%s17119_s11 + $0x2020] ss:$16 sps:$4 sm:$0xff]  }
 0x220   : > { %v15389_v22 = vld [vmem:[%s17119_s11 + $0x2220] ss:$16 sps:$4 sm:$0xff]   ;;  %v15394_v30 = vld [vmem:[%s17119_s11 + $0x2004] ss:$16 sps:$4 sm:$0xff]  }
 0x221   : > { %10739 = vmatpush1.bf16.msra.mxu0 %v15362_v8  ;;  %v15397_v8 = vld [vmem:[%s17119_s11 + $0x2204] ss:$16 sps:$4 sm:$0xff]   ;;  %v15395_v31 = vld [vmem:[%s17119_s11 + $0x2200] ss:$16 sps:$4 sm:$0xff]  }
 0x222   : > { %10780 = vmatpush1.bf16.msra.mxu1 %v15365_v36  ;;  %10740 = vmatprep.subr.bf16.mxu0 %v15370_v43  ;;  %v15392_v36 = vld [vmem:[%s17119_s11 + $0x2000] ss:$16 sps:$4 sm:$0xff]   ;;  %v15400_v41 = vld [vmem:[%s17119_s11 + $0x21e4] ss:$16 sps:$4 sm:$0xff]  }
 0x223   : > { %10781 = vmatprep.subr.bf16.mxu1 %v15373_v6  ;;  %v15403_v4 = vld [vmem:[%s17119_s11 + $0x23e4] ss:$16 sps:$4 sm:$0xff]   ;;  %v15398_v52 = vld [vmem:[%s17119_s11 + $0x21e0] ss:$16 sps:$4 sm:$0xff]  }
 0x224   : > { %v15401_v43 = vld [vmem:[%s17119_s11 + $0x23e0] ss:$16 sps:$4 sm:$0xff]   ;;  %v15406_v6 = vld [vmem:[%s17119_s11 + $0x21c4] ss:$16 sps:$4 sm:$0xff]  }
 0x225   : > { %10741 = vmatpush1.bf16.msra.mxu0 %v15368_v53  ;;  %v15409_v53 = vld [vmem:[%s17119_s11 + $0x23c4] ss:$16 sps:$4 sm:$0xff]  }
 0x226   : > { %10782 = vmatpush1.bf16.msra.mxu1 %v15371_v39  ;;  %10742 = vmatprep.subr.bf16.mxu0 %v15376_v55  ;;  %v15404_v39 = vld [vmem:[%s17119_s11 + $0x21c0] ss:$16 sps:$4 sm:$0xff]  }
 0x227   : > { %10783 = vmatprep.subr.bf16.mxu1 %v15379_v35  ;;  %v15407_v55 = vld [vmem:[%s17119_s11 + $0x23c0] ss:$16 sps:$4 sm:$0xff]   ;;  %v15412_v35 = vld [vmem:[%s17119_s11 + $0x21a4] ss:$16 sps:$4 sm:$0xff]  }
 0x229   : > { %10743 = vmatpush1.bf16.msra.mxu0 %v15374_v61  ;;  %v15415_v61 = vld [vmem:[%s17119_s11 + $0x23a4] ss:$16 sps:$4 sm:$0xff]  }
 0x22a   : > { %10784 = vmatpush1.bf16.msra.mxu1 %v15377_v63  ;;  %10744 = vmatprep.subr.bf16.mxu0 %v15382_v0  ;;  %v15410_v63 = vld [vmem:[%s17119_s11 + $0x21a0] ss:$16 sps:$4 sm:$0xff]  }
 0x22b   : > { %10785 = vmatprep.subr.bf16.mxu1 %v15385_v7  ;;  %v15413_v0 = vld [vmem:[%s17119_s11 + $0x23a0] ss:$16 sps:$4 sm:$0xff]   ;;  %v15418_v7 = vld [vmem:[%s17119_s11 + $0x2184] ss:$16 sps:$4 sm:$0xff]  }
 0x22d   : > { %10745 = vmatpush1.bf16.msra.mxu0 %v15380_v9  ;;  %v15421_v9 = vld [vmem:[%s17119_s11 + $0x2384] ss:$16 sps:$4 sm:$0xff]  }
 0x22e   : > { %10786 = vmatpush1.bf16.msra.mxu1 %v15383_v56  ;;  %10746 = vmatprep.subr.bf16.mxu0 %v15388_v10  ;;  %v15416_v56 = vld [vmem:[%s17119_s11 + $0x2180] ss:$16 sps:$4 sm:$0xff]  }
 0x22f   : > { %10787 = vmatprep.subr.bf16.mxu1 %v15391_v17  ;;  %v15419_v10 = vld [vmem:[%s17119_s11 + $0x2380] ss:$16 sps:$4 sm:$0xff]   ;;  %v15424_v17 = vld [vmem:[%s17119_s11 + $0x2164] ss:$16 sps:$4 sm:$0xff]  }
 0x231   : > { %10747 = vmatpush1.bf16.msra.mxu0 %v15386_v18  ;;  %v15427_v18 = vld [vmem:[%s17119_s11 + $0x2364] ss:$16 sps:$4 sm:$0xff]  }
 0x232   : > { %10788 = vmatpush1.bf16.msra.mxu1 %v15389_v22  ;;  %10748 = vmatprep.subr.bf16.mxu0 %v15394_v30  ;;  %v15422_v22 = vld [vmem:[%s17119_s11 + $0x2160] ss:$16 sps:$4 sm:$0xff]  }
 0x233   : > { %10789 = vmatprep.subr.bf16.mxu1 %v15397_v8  ;;  %v15425_v30 = vld [vmem:[%s17119_s11 + $0x2360] ss:$16 sps:$4 sm:$0xff]   ;;  %v15430_v8 = vld [vmem:[%s17119_s11 + $0x2144] ss:$16 sps:$4 sm:$0xff]  }
 0x235   : > { %10749 = vmatpush1.bf16.msra.mxu0 %v15392_v36  ;;  %v15433_v36 = vld [vmem:[%s17119_s11 + $0x2344] ss:$16 sps:$4 sm:$0xff]  }
 0x236   : > { %10790 = vmatpush1.bf16.msra.mxu1 %v15395_v31  ;;  %10750 = vmatprep.subr.bf16.mxu0 %v15400_v41  ;;  %v2077_v31 = vcombine.high %v17849_v16, %v17849_v16  ;;  %v15428_v41 = vld [vmem:[%s17119_s11 + $0x2140] ss:$16 sps:$4 sm:$0xff]  }
 0x237   : > { %10791 = vmatprep.subr.bf16.mxu1 %v15403_v4  ;;  %v15431_v4 = vld [vmem:[%s17119_s11 + $0x2340] ss:$16 sps:$4 sm:$0xff]  }
 0x238   : > { %v15434_v16 = vld [vmem:[%s17119_s11 + $0x2120] ss:$16 sps:$4 sm:$0xff]  }
 0x239   : > { %10751 = vmatpush2.bf16.msra.mxu0 %v15398_v52  ;;  %v15436_v52 = vld [vmem:[%s17119_s11 + $0x2124] ss:$16 sps:$4 sm:$0xff]  }
 0x23a   : > { %10792 = vmatpush2.bf16.msra.mxu1 %v15401_v43  ;;  %10752 = vmatprep.subr.bf16.mxu0 %v15406_v6  ;;  %v15439_v43 = vld [vmem:[%s17119_s11 + $0x2324] ss:$16 sps:$4 sm:$0xff]   ;;  %v17953_v6 = vrot.slane %v2077_v31, %v17170_v51 }
 0x23b   : > { %10793 = vmatprep.subr.bf16.mxu1 %v15409_v53  ;;  %v15437_v53 = vld [vmem:[%s17119_s11 + $0x2320] ss:$16 sps:$4 sm:$0xff]  }
 0x23d   : > { %10753 = vmatpush2.bf16.msra.mxu0 %v15404_v39  ;;  %v15442_v39 = vld [vmem:[%s17119_s11 + $0x2104] ss:$16 sps:$4 sm:$0xff]  }
 0x23e   : > { %10794 = vmatpush2.bf16.msra.mxu1 %v15407_v55  ;;  %10754 = vmatprep.subr.bf16.mxu0 %v15412_v35  ;;  %v15445_v55 = vld [vmem:[%s17119_s11 + $0x2304] ss:$16 sps:$4 sm:$0xff]   ;;  %v2093_v35 = vcombine.high %v17953_v6, %v17953_v6 }
 0x23f   : > { %10795 = vmatprep.subr.bf16.mxu1 %v15415_v61  ;;  %v17963_v61 = vrot.slane %v17857_v48, %v17170_v51 }
 0x241   : > { %10755 = vmatpush2.bf16.msra.mxu0 %v15410_v63  ;;  %v15440_v63 = vld [vmem:[%s17119_s11 + $0x2100] ss:$16 sps:$4 sm:$0xff]   ;;  %v17976_v48 = vcombine.high %v17963_v61, %v17963_v61 }
 0x242   : > { %10796 = vmatpush2.bf16.msra.mxu1 %v15413_v0  ;;  %10756 = vmatprep.subr.bf16.mxu0 %v15418_v7  ;;  %v15443_v0 = vld [vmem:[%s17119_s11 + $0x2300] ss:$16 sps:$4 sm:$0xff]   ;;  %v15448_v7 = vld [vmem:[%s17119_s11 + $0x24e4] ss:$16 sps:$4 sm:$0xff]  }
 0x243   : > { %10797 = vmatprep.subr.bf16.mxu1 %v15421_v9  ;;  %v15451_v9 = vld [vmem:[%s17119_s11 + $0x26e4] ss:$16 sps:$4 sm:$0xff]  }
 0x245   : > { %10757 = vmatpush2.bf16.msra.mxu0 %v15416_v56  ;;  %v15446_v56 = vld [vmem:[%s17119_s11 + $0x24e0] ss:$16 sps:$4 sm:$0xff]  }
 0x246   : > { %10798 = vmatpush2.bf16.msra.mxu1 %v15419_v10  ;;  %10758 = vmatprep.subr.bf16.mxu0 %v15424_v17  ;;  %v15449_v10 = vld [vmem:[%s17119_s11 + $0x26e0] ss:$16 sps:$4 sm:$0xff]   ;;  %v17972_v17 = vrot.slane %v2093_v35, %v17170_v51 }
 0x247   : > { %10799 = vmatprep.subr.bf16.mxu1 %v15427_v18  ;;  %v15454_v18 = vld [vmem:[%s17119_s11 + $0x24c4] ss:$16 sps:$4 sm:$0xff]   ;;  %v15458_v35 = vld [vmem:[%s17119_s11 + $0x24a0] ss:$16 sps:$4 sm:$0xff]  }
 0x249   : > { %10759 = vmatpush2.bf16.msra.mxu0 %v15422_v22  ;;  %v15457_v22 = vld [vmem:[%s17119_s11 + $0x26c4] ss:$16 sps:$4 sm:$0xff]  }
 0x24a   : > { %10800 = vmatpush2.bf16.msra.mxu1 %v15425_v30  ;;  %10760 = vmatprep.subr.bf16.mxu0 %v15430_v8  ;;  %v15452_v30 = vld [vmem:[%s17119_s11 + $0x24c0] ss:$16 sps:$4 sm:$0xff]  }
 0x24b   : > { %10801 = vmatprep.subr.bf16.mxu1 %v15433_v36  ;;  %v15455_v8 = vld [vmem:[%s17119_s11 + $0x26c0] ss:$16 sps:$4 sm:$0xff]   ;;  %v17984_v36 = vcombine.high %v17972_v17, %v17972_v17 }
 0x24d   : > { %10761 = vmatpush2.bf16.msra.mxu0 %v15428_v41 }
 0x24e   : > { %10802 = vmatpush2.bf16.msra.mxu1 %v15431_v4  ;;  %10762 = vmatprep.subr.bf16.mxu0 %v15436_v52 }
 0x24f   : > { %10803 = vmatprep.subr.bf16.mxu1 %v15439_v43 }
 0x251   : > { %10763 = vmatpush2.bf16.msra.mxu0 %v15434_v16  ;;  %v15460_v16 = vld [vmem:[%s17119_s11 + $0x24a4] ss:$16 sps:$4 sm:$0xff]  }
 0x252   : > { %10804 = vmatpush2.bf16.msra.mxu1 %v15437_v53  ;;  %10764 = vmatprep.subr.bf16.mxu0 %v15442_v39  ;;  %v15463_v53 = vld [vmem:[%s17119_s11 + $0x26a4] ss:$16 sps:$4 sm:$0xff]  }
 0x253   : > { %10805 = vmatprep.subr.bf16.mxu1 %v15445_v55 }
 0x255   : > { %10765 = vmatpush2.bf16.msra.mxu0 %v15440_v63  ;;  %v15461_v63 = vld [vmem:[%s17119_s11 + $0x26a0] ss:$16 sps:$4 sm:$0xff]  }
 0x256   : > { %10806 = vmatpush2.bf16.msra.mxu1 %v15443_v0  ;;  %10816 = vmatprep.subr.bf16.mxu0 %v15448_v7 }
 0x257   : > { %10857 = vmatprep.subr.bf16.mxu1 %v15451_v9 }
 0x258   : > { %v10522_v31 = vpop.f32.mrf.mxu0  ;;  %10767 = vmatmul.mubr.bf16.vlgmr.msra.gmra.mxu0 %v17963_v61 }
 0x259   : > { %v10563_v41 = vpop.f32.mrf.mxu1  ;;  %10808 = vmatmul.mubr.bf16.vlgmr.msra.gmra.mxu1 %v17976_v48  ;;  %v10523_v4 = vadd.f32 %v10522_v31, %v17895_v28  ;;  %10817 = vmatpush1.bf16.msra.mxu0 %v15446_v56  ;;  %v15470_v31 = vld [vmem:[%s17119_s11 + $0x2460] ss:$16 sps:$4 sm:$0xff]  }
 0x25a   : > { %10858 = vmatpush1.bf16.msra.mxu1 %v15449_v10  ;;  %v10524_v52 = vpop.f32.mrf.mxu0  ;;  %10818 = vmatprep.subr.bf16.mxu0 %v15454_v18  ;;  %v15469_v10 = vld [vmem:[%s17119_s11 + $0x2684] ss:$16 sps:$4 sm:$0xff]   ;;  %v15464_v18 = vld [vmem:[%s17119_s11 + $0x2480] ss:$16 sps:$4 sm:$0xff]  }
 0x25b   : > { %v10565_v43 = vpop.f32.mrf.mxu1  ;;  %10859 = vmatprep.subr.bf16.mxu1 %v15457_v22  ;;  %v17991_v39 = vadd.f32 %v10563_v41, %v10523_v4  ;;  %v10525_v55 = vadd.f32 %v10524_v52, %v17902_v38  ;;  %10848 = vmatprep.mubr.bf16.mxu0 %v17972_v17  ;;  %v15466_v38 = vld [vmem:[%s17119_s11 + $0x2484] ss:$16 sps:$4 sm:$0xff]   ;;  %v15467_v22 = vld [vmem:[%s17119_s11 + $0x2680] ss:$16 sps:$4 sm:$0xff]  }
 0x25c   : > { %10889 = vmatprep.mubr.bf16.mxu1 %v17984_v36  ;;  %v10526_v28 = vpop.f32.mrf.mxu0  ;;  %v15473_v41 = vld [vmem:[%s17119_s11 + $0x2660] ss:$16 sps:$4 sm:$0xff]   ;;  %v15478_v4 = vld [vmem:[%s17119_s11 + $0x2444] ss:$16 sps:$4 sm:$0xff]  }
 0x25d   : > { %v10567_v0 = vpop.f32.mrf.mxu1  ;;  %v17998_v7 = vadd.f32 %v10565_v43, %v10525_v55  ;;  %10819 = vmatpush1.bf16.msra.mxu0 %v15452_v30  ;;  %v15472_v30 = vld [vmem:[%s17119_s11 + $0x2464] ss:$16 sps:$4 sm:$0xff]   ;;  %v15476_v43 = vld [vmem:[%s17119_s11 + $0x2440] ss:$16 sps:$4 sm:$0xff]  }
 0x25e   : > { %10860 = vmatpush1.bf16.msra.mxu1 %v15455_v8  ;;  %v10527_v9 = vpop.f32.mrf.mxu0  ;;  %10820 = vmatprep.subr.bf16.mxu0 %v15460_v16  ;;  %v15475_v8 = vld [vmem:[%s17119_s11 + $0x2664] ss:$16 sps:$4 sm:$0xff]   ;;  %v15479_v16 = vld [vmem:[%s17119_s11 + $0x2640] ss:$16 sps:$4 sm:$0xff]  }
 0x25f   : > { %v10568_v56 = vpop.f32.mrf.mxu1  ;;  %10861 = vmatprep.subr.bf16.mxu1 %v15463_v53  ;;  %v15481_v52 = vld [vmem:[%s17119_s11 + $0x2644] ss:$16 sps:$4 sm:$0xff]   ;;  %v15488_v9 = vld [vmem:[%s17119_s11 + $0x2400] ss:$16 sps:$4 sm:$0xff]  }
 0x260   : > { %v15484_v53 = vld [vmem:[%s17119_s11 + $0x2424] ss:$16 sps:$4 sm:$0xff]   ;;  %v15491_v56 = vld [vmem:[%s17119_s11 + $0x2600] ss:$16 sps:$4 sm:$0xff]  }
 0x261   : > { %10821 = vmatpush1.bf16.msra.mxu0 %v15458_v35  ;;  %v15487_v55 = vld [vmem:[%s17119_s11 + $0x2624] ss:$16 sps:$4 sm:$0xff]   ;;  %v15482_v35 = vld [vmem:[%s17119_s11 + $0x2420] ss:$16 sps:$4 sm:$0xff]  }
 0x262   : > { %10862 = vmatpush1.bf16.msra.mxu1 %v15461_v63  ;;  %10822 = vmatprep.subr.bf16.mxu0 %v15466_v38  ;;  %v15485_v63 = vld [vmem:[%s17119_s11 + $0x2620] ss:$16 sps:$4 sm:$0xff]   ;;  %v15490_v28 = vld [vmem:[%s17119_s11 + $0x2404] ss:$16 sps:$4 sm:$0xff]  }
 0x263   : > { %10863 = vmatprep.subr.bf16.mxu1 %v15469_v10  ;;  %v15493_v0 = vld [vmem:[%s17119_s11 + $0x2604] ss:$16 sps:$4 sm:$0xff]  }
 0x264   : > { %v15496_v38 = vld [vmem:[%s17119_s11 + $0x25e4] ss:$16 sps:$4 sm:$0xff]  }
 0x265   : > { %10823 = vmatpush1.bf16.msra.mxu0 %v15464_v18  ;;  %v15499_v10 = vld [vmem:[%s17119_s11 + $0x27e4] ss:$16 sps:$4 sm:$0xff]   ;;  %v15494_v18 = vld [vmem:[%s17119_s11 + $0x25e0] ss:$16 sps:$4 sm:$0xff]  }
 0x266   : > { %10864 = vmatpush1.bf16.msra.mxu1 %v15467_v22  ;;  %10824 = vmatprep.subr.bf16.mxu0 %v15472_v30  ;;  %v15497_v22 = vld [vmem:[%s17119_s11 + $0x27e0] ss:$16 sps:$4 sm:$0xff]   ;;  %v15502_v30 = vld [vmem:[%s17119_s11 + $0x25c4] ss:$16 sps:$4 sm:$0xff]  }
 0x267   : > { %10865 = vmatprep.subr.bf16.mxu1 %v15475_v8  ;;  %v15505_v8 = vld [vmem:[%s17119_s11 + $0x27c4] ss:$16 sps:$4 sm:$0xff]  }
 0x269   : > { %10825 = vmatpush1.bf16.msra.mxu0 %v15470_v31  ;;  %v15500_v31 = vld [vmem:[%s17119_s11 + $0x25c0] ss:$16 sps:$4 sm:$0xff]  }
 0x26a   : > { %10866 = vmatpush1.bf16.msra.mxu1 %v15473_v41  ;;  %10826 = vmatprep.subr.bf16.mxu0 %v15478_v4  ;;  %v15503_v41 = vld [vmem:[%s17119_s11 + $0x27c0] ss:$16 sps:$4 sm:$0xff]   ;;  %v15508_v4 = vld [vmem:[%s17119_s11 + $0x25a4] ss:$16 sps:$4 sm:$0xff]  }
 0x26b   : > { %10867 = vmatprep.subr.bf16.mxu1 %v15481_v52  ;;  %v15511_v52 = vld [vmem:[%s17119_s11 + $0x27a4] ss:$16 sps:$4 sm:$0xff]  }
 0x26d   : > { %10827 = vmatpush1.bf16.msra.mxu0 %v15476_v43  ;;  %v15506_v43 = vld [vmem:[%s17119_s11 + $0x25a0] ss:$16 sps:$4 sm:$0xff]  }
 0x26e   : > { %10868 = vmatpush1.bf16.msra.mxu1 %v15479_v16  ;;  %10828 = vmatprep.subr.bf16.mxu0 %v15484_v53  ;;  %v15509_v16 = vld [vmem:[%s17119_s11 + $0x27a0] ss:$16 sps:$4 sm:$0xff]   ;;  %v15514_v53 = vld [vmem:[%s17119_s11 + $0x2584] ss:$16 sps:$4 sm:$0xff]  }
 0x26f   : > { %10869 = vmatprep.subr.bf16.mxu1 %v15487_v55  ;;  %v15517_v55 = vld [vmem:[%s17119_s11 + $0x2784] ss:$16 sps:$4 sm:$0xff]  }
 0x271   : > { %10829 = vmatpush1.bf16.msra.mxu0 %v15482_v35  ;;  %v15512_v35 = vld [vmem:[%s17119_s11 + $0x2580] ss:$16 sps:$4 sm:$0xff]  }
 0x272   : > { %10870 = vmatpush1.bf16.msra.mxu1 %v15485_v63  ;;  %10830 = vmatprep.subr.bf16.mxu0 %v15490_v28  ;;  %v15515_v63 = vld [vmem:[%s17119_s11 + $0x2780] ss:$16 sps:$4 sm:$0xff]   ;;  %v15520_v28 = vld [vmem:[%s17119_s11 + $0x2564] ss:$16 sps:$4 sm:$0xff]  }
 0x273   : > { %10871 = vmatprep.subr.bf16.mxu1 %v15493_v0  ;;  %v15523_v0 = vld [vmem:[%s17119_s11 + $0x2764] ss:$16 sps:$4 sm:$0xff]  }
 0x275   : > { %10831 = vmatpush1.bf16.msra.mxu0 %v15488_v9  ;;  %v15518_v9 = vld [vmem:[%s17119_s11 + $0x2560] ss:$16 sps:$4 sm:$0xff]  }
 0x276   : > { %10872 = vmatpush1.bf16.msra.mxu1 %v15491_v56  ;;  %10832 = vmatprep.subr.bf16.mxu0 %v15496_v38  ;;  %v15521_v56 = vld [vmem:[%s17119_s11 + $0x2760] ss:$16 sps:$4 sm:$0xff]   ;;  %v15526_v38 = vld [vmem:[%s17119_s11 + $0x2544] ss:$16 sps:$4 sm:$0xff]  }
 0x277   : > { %10873 = vmatprep.subr.bf16.mxu1 %v15499_v10  ;;  %v15529_v10 = vld [vmem:[%s17119_s11 + $0x2744] ss:$16 sps:$4 sm:$0xff]  }
 0x279   : > { %10833 = vmatpush2.bf16.msra.mxu0 %v15494_v18  ;;  %v18043_v18 = vld [vmem:[%s17114_s30 + $0x28] sm:$0xff] }
 0x27a   : > { %10874 = vmatpush2.bf16.msra.mxu1 %v15497_v22  ;;  %10834 = vmatprep.subr.bf16.mxu0 %v15502_v30  ;;  %v15524_v22 = vld [vmem:[%s17119_s11 + $0x2540] ss:$16 sps:$4 sm:$0xff]  }
 0x27b   : > { %10875 = vmatprep.subr.bf16.mxu1 %v15505_v8  ;;  %v15527_v30 = vld [vmem:[%s17119_s11 + $0x2740] ss:$16 sps:$4 sm:$0xff]   ;;  %v15532_v8 = vld [vmem:[%s17119_s11 + $0x2524] ss:$16 sps:$4 sm:$0xff]  }
 0x27d   : > { %10835 = vmatpush2.bf16.msra.mxu0 %v15500_v31  ;;  %v15535_v31 = vld [vmem:[%s17119_s11 + $0x2724] ss:$16 sps:$4 sm:$0xff]  }
 0x27e   : > { %10876 = vmatpush2.bf16.msra.mxu1 %v15503_v41  ;;  %10836 = vmatprep.subr.bf16.mxu0 %v15508_v4  ;;  %v18051_v41 = vrot.slane %v18043_v18, %v17170_v51  ;;  %v15530_v4 = vld [vmem:[%s17119_s11 + $0x2520] ss:$16 sps:$4 sm:$0xff]  }
 0x27f   : > { %10877 = vmatprep.subr.bf16.mxu1 %v15511_v52  ;;  %v15533_v52 = vld [vmem:[%s17119_s11 + $0x2720] ss:$16 sps:$4 sm:$0xff]  }
 0x281   : > { %10837 = vmatpush2.bf16.msra.mxu0 %v15506_v43  ;;  %v15538_v43 = vld [vmem:[%s17119_s11 + $0x2504] ss:$16 sps:$4 sm:$0xff]  }
 0x282   : > { %10878 = vmatpush2.bf16.msra.mxu1 %v15509_v16  ;;  %10838 = vmatprep.subr.bf16.mxu0 %v15514_v53  ;;  %v15541_v16 = vld [vmem:[%s17119_s11 + $0x2704] ss:$16 sps:$4 sm:$0xff]   ;;  %v2141_v53 = vcombine.high %v18051_v41, %v18051_v41 }
 0x283   : > { %10879 = vmatprep.subr.bf16.mxu1 %v15517_v55  ;;  %v18061_v55 = vrot.slane %v17953_v6, %v17170_v51 }
 0x285   : > { %10839 = vmatpush2.bf16.msra.mxu0 %v15512_v35  ;;  %v15536_v35 = vld [vmem:[%s17119_s11 + $0x2500] ss:$16 sps:$4 sm:$0xff]   ;;  %v18074_v6 = vcombine.high %v18061_v55, %v18061_v55 }
 0x286   : > { %10880 = vmatpush2.bf16.msra.mxu1 %v15515_v63  ;;  %10840 = vmatprep.subr.bf16.mxu0 %v15520_v28  ;;  %v15539_v63 = vld [vmem:[%s17119_s11 + $0x2700] ss:$16 sps:$4 sm:$0xff]   ;;  %v15545_v28 = vld [vmem:[%s17119_s11 + $0x28e4] ss:$16 sps:$4 sm:$0xff]  }
 0x287   : > { %10881 = vmatprep.subr.bf16.mxu1 %v15523_v0  ;;  %v15548_v0 = vld [vmem:[%s17119_s11 + $0x2ae4] ss:$16 sps:$4 sm:$0xff]   ;;  %19535 = vst [vmem:[#allocation4_spill] sm:$0xff] %v18074_v6 }
 0x289   : > { %10841 = vmatpush2.bf16.msra.mxu0 %v15518_v9  ;;  %v15543_v9 = vld [vmem:[%s17119_s11 + $0x28e0] ss:$16 sps:$4 sm:$0xff]  }
 0x28a   : > { %10882 = vmatpush2.bf16.msra.mxu1 %v15521_v56  ;;  %10842 = vmatprep.subr.bf16.mxu0 %v15526_v38  ;;  %v15546_v56 = vld [vmem:[%s17119_s11 + $0x2ae0] ss:$16 sps:$4 sm:$0xff]   ;;  %v18070_v38 = vrot.slane %v2141_v53, %v17170_v51 }
 0x28b   : > { %10883 = vmatprep.subr.bf16.mxu1 %v15529_v10  ;;  %v15551_v10 = vld [vmem:[%s17119_s11 + $0x28c4] ss:$16 sps:$4 sm:$0xff]  }
 0x28d   : > { %10843 = vmatpush2.bf16.msra.mxu0 %v15524_v22  ;;  %v15554_v22 = vld [vmem:[%s17119_s11 + $0x2ac4] ss:$16 sps:$4 sm:$0xff]  }
 0x28e   : > { %10884 = vmatpush2.bf16.msra.mxu1 %v15527_v30  ;;  %10844 = vmatprep.subr.bf16.mxu0 %v15532_v8  ;;  %v15549_v30 = vld [vmem:[%s17119_s11 + $0x28c0] ss:$16 sps:$4 sm:$0xff]  }
 0x28f   : > { %10885 = vmatprep.subr.bf16.mxu1 %v15535_v31  ;;  %v15552_v8 = vld [vmem:[%s17119_s11 + $0x2ac0] ss:$16 sps:$4 sm:$0xff]   ;;  %v18082_v31 = vcombine.high %v18070_v38, %v18070_v38 }
 0x291   : > { %10845 = vmatpush2.bf16.msra.mxu0 %v15530_v4  ;;  %19536 = vst [vmem:[#allocation5_spill] sm:$0xff] %v18082_v31 }
 0x292   : > { %10886 = vmatpush2.bf16.msra.mxu1 %v15533_v52  ;;  %10846 = vmatprep.subr.bf16.mxu0 %v15538_v43 }
 0x293   : > { %10887 = vmatprep.subr.bf16.mxu1 %v15541_v16 }
 0x295   : > { %10847 = vmatpush2.bf16.msra.mxu0 %v15536_v35  ;;  %v15557_v35 = vld [vmem:[%s17119_s11 + $0x28a4] ss:$16 sps:$4 sm:$0xff]  }
 0x296   : > { %10888 = vmatpush2.bf16.msra.mxu1 %v15539_v63  ;;  %10898 = vmatprep.subr.bf16.mxu0 %v15545_v28  ;;  %v15560_v63 = vld [vmem:[%s17119_s11 + $0x2aa4] ss:$16 sps:$4 sm:$0xff]  }
 0x297   : > { %10939 = vmatprep.subr.bf16.mxu1 %v15548_v0 }
 0x298   : > { %v10604_v4 = vpop.f32.mrf.mxu0  ;;  %10849 = vmatmul.mubr.bf16.vlgmr.msra.gmra.mxu0 %v18061_v55 }
 0x299   : > { %v10645_v52 = vpop.f32.mrf.mxu1  ;;  %10890 = vmatmul.mubr.bf16.vlgmr.msra.gmra.mxu1 %v18074_v6  ;;  %v10605_v43 = vadd.f32 %v10604_v4, %v17991_v39  ;;  %10899 = vmatpush1.bf16.msra.mxu0 %v15543_v9  ;;  %v15566_v4 = vld [vmem:[%s17119_s11 + $0x2a84] ss:$16 sps:$4 sm:$0xff]   ;;  %v15651_v6 = vld [vmem:[%s17119_s11 + $0x2ca0] ss:$16 sps:$4 sm:$0xff]  }
 0x29a   : > { %10940 = vmatpush1.bf16.msra.mxu1 %v15546_v56  ;;  %v10606_v16 = vpop.f32.mrf.mxu0  ;;  %10900 = vmatprep.subr.bf16.mxu0 %v15551_v10 }
 0x29b   : > { %v10647_v53 = vpop.f32.mrf.mxu1  ;;  %10941 = vmatprep.subr.bf16.mxu1 %v15554_v22  ;;  %v18089_v28 = vadd.f32 %v10645_v52, %v10605_v43  ;;  %v10607_v0 = vadd.f32 %v10606_v16, %v17998_v7  ;;  %10930 = vmatprep.mubr.bf16.mxu0 %v18070_v38  ;;  %v15563_v7 = vld [vmem:[%s17119_s11 + $0x2884] ss:$16 sps:$4 sm:$0xff]   ;;  %v15561_v52 = vld [vmem:[%s17119_s11 + $0x2880] ss:$16 sps:$4 sm:$0xff]  }
 0x29c   : > { %10971 = vmatprep.mubr.bf16.mxu1 %v18082_v31  ;;  %v10608_v39 = vpop.f32.mrf.mxu0  ;;  %v15564_v43 = vld [vmem:[%s17119_s11 + $0x2a80] ss:$16 sps:$4 sm:$0xff]  }
 0x29d   : > { %v10649_v9 = vpop.f32.mrf.mxu1  ;;  %v18096_v56 = vadd.f32 %v10647_v53, %v10607_v0  ;;  %10901 = vmatpush1.bf16.msra.mxu0 %v15549_v30  ;;  %v15569_v30 = vld [vmem:[%s17119_s11 + $0x2864] ss:$16 sps:$4 sm:$0xff]   ;;  %v15567_v16 = vld [vmem:[%s17119_s11 + $0x2860] ss:$16 sps:$4 sm:$0xff]  }
 0x29e   : > { %10942 = vmatpush1.bf16.msra.mxu1 %v15552_v8  ;;  %v10609_v10 = vpop.f32.mrf.mxu0  ;;  %10902 = vmatprep.subr.bf16.mxu0 %v15557_v35  ;;  %v15572_v8 = vld [vmem:[%s17119_s11 + $0x2a64] ss:$16 sps:$4 sm:$0xff]   ;;  %v15570_v53 = vld [vmem:[%s17119_s11 + $0x2a60] ss:$16 sps:$4 sm:$0xff]  }
 0x29f   : > { %v10650_v22 = vpop.f32.mrf.mxu1  ;;  %10943 = vmatprep.subr.bf16.mxu1 %v15560_v63  ;;  %v15573_v35 = vld [vmem:[%s17119_s11 + $0x2840] ss:$16 sps:$4 sm:$0xff]   ;;  %v15581_v0 = vld [vmem:[%s17119_s11 + $0x2824] ss:$16 sps:$4 sm:$0xff]  }
 0x2a0   : > { %v15576_v63 = vld [vmem:[%s17119_s11 + $0x2a40] ss:$16 sps:$4 sm:$0xff]   ;;  %v15584_v39 = vld [vmem:[%s17119_s11 + $0x2a24] ss:$16 sps:$4 sm:$0xff]  }
 0x2a1   : > { %10903 = vmatpush1.bf16.msra.mxu0 %v15555_v40  ;;  %v15575_v40 = vld [vmem:[%s17119_s11 + $0x2844] ss:$16 sps:$4 sm:$0xff]   ;;  %v15579_v9 = vld [vmem:[%s17119_s11 + $0x2820] ss:$16 sps:$4 sm:$0xff]  }
 0x2a2   : > { %10944 = vmatpush1.bf16.msra.mxu1 %v15558_v45  ;;  %10904 = vmatprep.subr.bf16.mxu0 %v15563_v7  ;;  %v15578_v45 = vld [vmem:[%s17119_s11 + $0x2a44] ss:$16 sps:$4 sm:$0xff]   ;;  %v15582_v10 = vld [vmem:[%s17119_s11 + $0x2a20] ss:$16 sps:$4 sm:$0xff]  }
 0x2a3   : > { %10945 = vmatprep.subr.bf16.mxu1 %v15566_v4  ;;  %v15587_v22 = vld [vmem:[%s17119_s11 + $0x2804] ss:$16 sps:$4 sm:$0xff]   ;;  %v15585_v4 = vld [vmem:[%s17119_s11 + $0x2800] ss:$16 sps:$4 sm:$0xff]  }
 0x2a4   : > { %v15590_v7 = vld [vmem:[%s17119_s11 + $0x2a04] ss:$16 sps:$4 sm:$0xff]  }
 0x2a5   : > { %10905 = vmatpush1.bf16.msra.mxu0 %v15561_v52  ;;  %v15588_v52 = vld [vmem:[%s17119_s11 + $0x2a00] ss:$16 sps:$4 sm:$0xff]  }
 0x2a6   : > { %10946 = vmatpush1.bf16.msra.mxu1 %v15564_v43  ;;  %10906 = vmatprep.subr.bf16.mxu0 %v15569_v30  ;;  %v15593_v43 = vld [vmem:[%s17119_s11 + $0x29e4] ss:$16 sps:$4 sm:$0xff]  }
 0x2a7   : > { %10947 = vmatprep.subr.bf16.mxu1 %v15572_v8  ;;  %v15596_v30 = vld [vmem:[%s17119_s11 + $0x2be4] ss:$16 sps:$4 sm:$0xff]   ;;  %v15591_v8 = vld [vmem:[%s17119_s11 + $0x29e0] ss:$16 sps:$4 sm:$0xff]  }
 0x2a9   : > { %10907 = vmatpush1.bf16.msra.mxu0 %v15567_v16  ;;  %v15594_v16 = vld [vmem:[%s17119_s11 + $0x2be0] ss:$16 sps:$4 sm:$0xff]  }
 0x2aa   : > { %10948 = vmatpush1.bf16.msra.mxu1 %v15570_v53  ;;  %10908 = vmatprep.subr.bf16.mxu0 %v15575_v40  ;;  %v15599_v53 = vld [vmem:[%s17119_s11 + $0x29c4] ss:$16 sps:$4 sm:$0xff]  }
 0x2ab   : > { %10949 = vmatprep.subr.bf16.mxu1 %v15578_v45  ;;  %v15602_v40 = vld [vmem:[%s17119_s11 + $0x2bc4] ss:$16 sps:$4 sm:$0xff]   ;;  %v15597_v45 = vld [vmem:[%s17119_s11 + $0x29c0] ss:$16 sps:$4 sm:$0xff]  }
 0x2ad   : > { %10909 = vmatpush1.bf16.msra.mxu0 %v15573_v35  ;;  %v15600_v35 = vld [vmem:[%s17119_s11 + $0x2bc0] ss:$16 sps:$4 sm:$0xff]  }
 0x2ae   : > { %10950 = vmatpush1.bf16.msra.mxu1 %v15576_v63  ;;  %10910 = vmatprep.subr.bf16.mxu0 %v15581_v0  ;;  %v15605_v63 = vld [vmem:[%s17119_s11 + $0x29a4] ss:$16 sps:$4 sm:$0xff]  }
 0x2af   : > { %10951 = vmatprep.subr.bf16.mxu1 %v15584_v39  ;;  %v15608_v0 = vld [vmem:[%s17119_s11 + $0x2ba4] ss:$16 sps:$4 sm:$0xff]   ;;  %v15603_v39 = vld [vmem:[%s17119_s11 + $0x29a0] ss:$16 sps:$4 sm:$0xff]  }
 0x2b1   : > { %10911 = vmatpush1.bf16.msra.mxu0 %v15579_v9  ;;  %v15606_v9 = vld [vmem:[%s17119_s11 + $0x2ba0] ss:$16 sps:$4 sm:$0xff]  }
 0x2b2   : > { %10952 = vmatpush1.bf16.msra.mxu1 %v15582_v10  ;;  %10912 = vmatprep.subr.bf16.mxu0 %v15587_v22  ;;  %v15611_v10 = vld [vmem:[%s17119_s11 + $0x2984] ss:$16 sps:$4 sm:$0xff]  }
 0x2b3   : > { %10953 = vmatprep.subr.bf16.mxu1 %v15590_v7  ;;  %v15614_v22 = vld [vmem:[%s17119_s11 + $0x2b84] ss:$16 sps:$4 sm:$0xff]   ;;  %v15609_v7 = vld [vmem:[%s17119_s11 + $0x2980] ss:$16 sps:$4 sm:$0xff]  }
 0x2b5   : > { %10913 = vmatpush1.bf16.msra.mxu0 %v15585_v4  ;;  %v15612_v4 = vld [vmem:[%s17119_s11 + $0x2b80] ss:$16 sps:$4 sm:$0xff]  }
 0x2b6   : > { %10954 = vmatpush1.bf16.msra.mxu1 %v15588_v52  ;;  %10914 = vmatprep.subr.bf16.mxu0 %v15593_v43  ;;  %v15617_v52 = vld [vmem:[%s17119_s11 + $0x2964] ss:$16 sps:$4 sm:$0xff]  }
 0x2b7   : > { %10955 = vmatprep.subr.bf16.mxu1 %v15596_v30  ;;  %v15620_v43 = vld [vmem:[%s17119_s11 + $0x2b64] ss:$16 sps:$4 sm:$0xff]   ;;  %v15615_v30 = vld [vmem:[%s17119_s11 + $0x2960] ss:$16 sps:$4 sm:$0xff]  }
 0x2b9   : > { %10915 = vmatpush2.bf16.msra.mxu0 %v15591_v8  ;;  %v15618_v8 = vld [vmem:[%s17119_s11 + $0x2b60] ss:$16 sps:$4 sm:$0xff]  }
 0x2ba   : > { %10956 = vmatpush2.bf16.msra.mxu1 %v15594_v16  ;;  %10916 = vmatprep.subr.bf16.mxu0 %v15599_v53  ;;  %v15623_v16 = vld [vmem:[%s17119_s11 + $0x2944] ss:$16 sps:$4 sm:$0xff]  }
 0x2bb   : > { %10957 = vmatprep.subr.bf16.mxu1 %v15602_v40  ;;  %v15626_v53 = vld [vmem:[%s17119_s11 + $0x2b44] ss:$16 sps:$4 sm:$0xff]   ;;  %v2126_v40 = vcombine.high %v18043_v18, %v18043_v18  ;;  %v15627_v18 = vld [vmem:[%s17119_s11 + $0x2920] ss:$16 sps:$4 sm:$0xff]  }
 0x2bd   : > { %10917 = vmatpush2.bf16.msra.mxu0 %v15597_v45  ;;  %v15621_v45 = vld [vmem:[%s17119_s11 + $0x2940] ss:$16 sps:$4 sm:$0xff]  }
 0x2be   : > { %10958 = vmatpush2.bf16.msra.mxu1 %v15600_v35  ;;  %10918 = vmatprep.subr.bf16.mxu0 %v15605_v63  ;;  %v15624_v35 = vld [vmem:[%s17119_s11 + $0x2b40] ss:$16 sps:$4 sm:$0xff]   ;;  %v15629_v63 = vld [vmem:[%s17119_s11 + $0x2924] ss:$16 sps:$4 sm:$0xff]  }
 0x2bf   : > { %10959 = vmatprep.subr.bf16.mxu1 %v15608_v0  ;;  %v15632_v0 = vld [vmem:[%s17119_s11 + $0x2b24] ss:$16 sps:$4 sm:$0xff]  }
 0x2c1   : > { %10919 = vmatpush2.bf16.msra.mxu0 %v15603_v39  ;;  %v18147_v39 = vrot.slane %v2126_v40, %v17170_v51 }
 0x2c2   : > { %10960 = vmatpush2.bf16.msra.mxu1 %v15606_v9  ;;  %10920 = vmatprep.subr.bf16.mxu0 %v15611_v10  ;;  %v15630_v9 = vld [vmem:[%s17119_s11 + $0x2b20] ss:$16 sps:$4 sm:$0xff]   ;;  %v15635_v10 = vld [vmem:[%s17119_s11 + $0x2904] ss:$16 sps:$4 sm:$0xff]  }
 0x2c3   : > { %10961 = vmatprep.subr.bf16.mxu1 %v15614_v22  ;;  %v15638_v22 = vld [vmem:[%s17119_s11 + $0x2b04] ss:$16 sps:$4 sm:$0xff]  }
 0x2c5   : > { %10921 = vmatpush2.bf16.msra.mxu0 %v15609_v7  ;;  %v2142_v7 = vcombine.high %v18147_v39, %v18147_v39 }
 0x2c6   : > { %10962 = vmatpush2.bf16.msra.mxu1 %v15612_v4  ;;  %10922 = vmatprep.subr.bf16.mxu0 %v15617_v52  ;;  %v18157_v4 = vrot.slane %v18051_v41, %v17170_v51  ;;  %v15633_v52 = vld [vmem:[%s17119_s11 + $0x2900] ss:$16 sps:$4 sm:$0xff]  }
 0x2c7   : > { %10963 = vmatprep.subr.bf16.mxu1 %v15620_v43  ;;  %v15636_v43 = vld [vmem:[%s17119_s11 + $0x2b00] ss:$16 sps:$4 sm:$0xff]   ;;  %v18166_v40 = vrot.slane %v2142_v7, %v17170_v51 }
 0x2c8   : > { %19537 = vst [vmem:[#allocation6_spill] sm:$0xff] %v18157_v4  ;;  %v18170_v41 = vcombine.high %v18157_v4, %v18157_v4 }
 0x2c9   : > { %10923 = vmatpush2.bf16.msra.mxu0 %v15615_v30  ;;  %v15641_v30 = vld [vmem:[%s17119_s11 + $0x2ce4] ss:$16 sps:$4 sm:$0xff]  }
 0x2ca   : > { %10964 = vmatpush2.bf16.msra.mxu1 %v15618_v8  ;;  %10924 = vmatprep.subr.bf16.mxu0 %v15623_v16  ;;  %v15644_v8 = vld [vmem:[%s17119_s11 + $0x2ee4] ss:$16 sps:$4 sm:$0xff]   ;;  %v15639_v16 = vld [vmem:[%s17119_s11 + $0x2ce0] ss:$16 sps:$4 sm:$0xff]  }
 0x2cb   : > { %10965 = vmatprep.subr.bf16.mxu1 %v15626_v53  ;;  %v15642_v53 = vld [vmem:[%s17119_s11 + $0x2ee0] ss:$16 sps:$4 sm:$0xff]  }
 0x2cd   : > { %10925 = vmatpush2.bf16.msra.mxu0 %v15621_v45  ;;  %v15647_v45 = vld [vmem:[%s17119_s11 + $0x2cc4] ss:$16 sps:$4 sm:$0xff]  }
 0x2ce   : > { %10966 = vmatpush2.bf16.msra.mxu1 %v15624_v35  ;;  %10926 = vmatprep.subr.bf16.mxu0 %v15629_v63  ;;  %v15650_v35 = vld [vmem:[%s17119_s11 + $0x2ec4] ss:$16 sps:$4 sm:$0xff]   ;;  %v15645_v63 = vld [vmem:[%s17119_s11 + $0x2cc0] ss:$16 sps:$4 sm:$0xff]  }
 0x2cf   : > { %10967 = vmatprep.subr.bf16.mxu1 %v15632_v0  ;;  %v15648_v0 = vld [vmem:[%s17119_s11 + $0x2ec0] ss:$16 sps:$4 sm:$0xff]  }
 0x2d1   : > { %10927 = vmatpush2.bf16.msra.mxu0 %v15627_v18  ;;  %v18178_v18 = vcombine.high %v18166_v40, %v18166_v40 }
 0x2d2   : > { %10968 = vmatpush2.bf16.msra.mxu1 %v15630_v9  ;;  %10928 = vmatprep.subr.bf16.mxu0 %v15635_v10 }
 0x2d3   : > { %10969 = vmatprep.subr.bf16.mxu1 %v15638_v22  ;;  %19538 = vst [vmem:[#allocation7_spill] sm:$0xff] %v18178_v18 }
 0x2d5   : > { %10929 = vmatpush2.bf16.msra.mxu0 %v15633_v52 }
 0x2d6   : > { %10970 = vmatpush2.bf16.msra.mxu1 %v15636_v43  ;;  %10980 = vmatprep.subr.bf16.mxu0 %v15641_v30  ;;  %v15653_v43 = vld [vmem:[%s17119_s11 + $0x2ca4] ss:$16 sps:$4 sm:$0xff]  }
 0x2d7   : > { %11021 = vmatprep.subr.bf16.mxu1 %v15644_v8  ;;  %v15656_v30 = vld [vmem:[%s17119_s11 + $0x2ea4] ss:$16 sps:$4 sm:$0xff]  }
 0x2d8   : > { %v10686_v9 = vpop.f32.mrf.mxu0  ;;  %10931 = vmatmul.mubr.bf16.vlgmr.msra.gmra.mxu0 %v18157_v4  ;;  %v15654_v4 = vld [vmem:[%s17119_s11 + $0x2ea0] ss:$16 sps:$4 sm:$0xff]  }
 0x2d9   : > { %v10727_v10 = vpop.f32.mrf.mxu1  ;;  %10972 = vmatmul.mubr.bf16.vlgmr.msra.gmra.mxu1 %v18170_v41  ;;  %v10687_v22 = vadd.f32 %v10686_v9, %v18089_v28  ;;  %10981 = vmatpush1.bf16.msra.mxu0 %v15639_v16  ;;  %v15662_v9 = vld [vmem:[%s17119_s11 + $0x2e84] ss:$16 sps:$4 sm:$0xff]  }
 0x2da   : > { %11022 = vmatpush1.bf16.msra.mxu1 %v15642_v53  ;;  %v10688_v7 = vpop.f32.mrf.mxu0  ;;  %10982 = vmatprep.subr.bf16.mxu0 %v15647_v45 }
 0x2db   : > { %v10729_v52 = vpop.f32.mrf.mxu1  ;;  %11023 = vmatprep.subr.bf16.mxu1 %v15650_v35  ;;  %v18185_v8 = vadd.f32 %v10727_v10, %v10687_v22  ;;  %v10689_v31 = vadd.f32 %v10688_v7, %v18096_v56  ;;  %11012 = vmatprep.mubr.bf16.mxu0 %v18166_v40  ;;  %v15659_v56 = vld [vmem:[%s17119_s11 + $0x2c84] ss:$16 sps:$4 sm:$0xff]   ;;  %v15657_v10 = vld [vmem:[%s17119_s11 + $0x2c80] ss:$16 sps:$4 sm:$0xff]  }
 0x2dc   : > { %11053 = vmatprep.mubr.bf16.mxu1 %v18178_v18  ;;  %v10690_v28 = vpop.f32.mrf.mxu0  ;;  %v15660_v22 = vld [vmem:[%s17119_s11 + $0x2e80] ss:$16 sps:$4 sm:$0xff]   ;;  %v17058_v18 = vmov 0  }
 0x2dd   : > { %v10731_v16 = vpop.f32.mrf.mxu1  ;;  %v18192_v53 = vadd.f32 %v10729_v52, %v10689_v31  ;;  %10983 = vmatpush1.bf16.msra.mxu0 %v15645_v63  ;;  %v15665_v31 = vld [vmem:[%s17119_s11 + $0x2c64] ss:$16 sps:$4 sm:$0xff]   ;;  %v15666_v7 = vld [vmem:[%s17119_s11 + $0x2e60] ss:$16 sps:$4 sm:$0xff]  }
 0x2de   : > { %11024 = vmatpush1.bf16.msra.mxu1 %v15648_v0  ;;  %v10691_v45 = vpop.f32.mrf.mxu0  ;;  %10984 = vmatprep.subr.bf16.mxu0 %v15653_v43  ;;  %v15668_v63 = vld [vmem:[%s17119_s11 + $0x2e64] ss:$16 sps:$4 sm:$0xff]   ;;  %v15663_v0 = vld [vmem:[%s17119_s11 + $0x2c60] ss:$16 sps:$4 sm:$0xff]  }
 0x2df   : > { %v10732_v35 = vpop.f32.mrf.mxu1  ;;  %11025 = vmatprep.subr.bf16.mxu1 %v15656_v30  ;;  %v15669_v52 = vld [vmem:[%s17119_s11 + $0x2c40] ss:$16 sps:$4 sm:$0xff]   ;;  %v15677_v30 = vld [vmem:[%s17119_s11 + $0x2c24] ss:$16 sps:$4 sm:$0xff]  }
 0x2e0   : > { %v15672_v43 = vld [vmem:[%s17119_s11 + $0x2e40] ss:$16 sps:$4 sm:$0xff]   ;;  %v15680_v28 = vld [vmem:[%s17119_s11 + $0x2e24] ss:$16 sps:$4 sm:$0xff]  }
 0x2e1   : > { %10985 = vmatpush1.bf16.msra.mxu0 %v15651_v6  ;;  %v15671_v6 = vld [vmem:[%s17119_s11 + $0x2c44] ss:$16 sps:$4 sm:$0xff]   ;;  %v15675_v16 = vld [vmem:[%s17119_s11 + $0x2c20] ss:$16 sps:$4 sm:$0xff]  }
 0x2e2   : > { %11026 = vmatpush1.bf16.msra.mxu1 %v15654_v4  ;;  %10986 = vmatprep.subr.bf16.mxu0 %v15659_v56  ;;  %v15674_v4 = vld [vmem:[%s17119_s11 + $0x2e44] ss:$16 sps:$4 sm:$0xff]   ;;  %v15678_v45 = vld [vmem:[%s17119_s11 + $0x2e20] ss:$16 sps:$4 sm:$0xff]  }
 0x2e3   : > { %11027 = vmatprep.subr.bf16.mxu1 %v15662_v9  ;;  %v15683_v35 = vld [vmem:[%s17119_s11 + $0x2c04] ss:$16 sps:$4 sm:$0xff]   ;;  %v15681_v9 = vld [vmem:[%s17119_s11 + $0x2c00] ss:$16 sps:$4 sm:$0xff]  }
 0x2e4   : > { %v15686_v56 = vld [vmem:[%s17119_s11 + $0x2e04] ss:$16 sps:$4 sm:$0xff]  }
 0x2e5   : > { %10987 = vmatpush1.bf16.msra.mxu0 %v15657_v10  ;;  %v15684_v10 = vld [vmem:[%s17119_s11 + $0x2e00] ss:$16 sps:$4 sm:$0xff]  }
 0x2e6   : > { %11028 = vmatpush1.bf16.msra.mxu1 %v15660_v22  ;;  %10988 = vmatprep.subr.bf16.mxu0 %v15665_v31  ;;  %v15689_v22 = vld [vmem:[%s17119_s11 + $0x2de4] ss:$16 sps:$4 sm:$0xff]  }
 0x2e7   : > { %11029 = vmatprep.subr.bf16.mxu1 %v15668_v63  ;;  %v15692_v31 = vld [vmem:[%s17119_s11 + $0x2fe4] ss:$16 sps:$4 sm:$0xff]   ;;  %v15687_v63 = vld [vmem:[%s17119_s11 + $0x2de0] ss:$16 sps:$4 sm:$0xff]  }
 0x2e9   : > { %10989 = vmatpush1.bf16.msra.mxu0 %v15663_v0  ;;  %v15690_v0 = vld [vmem:[%s17119_s11 + $0x2fe0] ss:$16 sps:$4 sm:$0xff]  }
 0x2ea   : > { %11030 = vmatpush1.bf16.msra.mxu1 %v15666_v7  ;;  %10990 = vmatprep.subr.bf16.mxu0 %v15671_v6  ;;  %v15695_v7 = vld [vmem:[%s17119_s11 + $0x2dc4] ss:$16 sps:$4 sm:$0xff]  }
 0x2eb   : > { %11031 = vmatprep.subr.bf16.mxu1 %v15674_v4  ;;  %v15698_v6 = vld [vmem:[%s17119_s11 + $0x2fc4] ss:$16 sps:$4 sm:$0xff]   ;;  %v15693_v4 = vld [vmem:[%s17119_s11 + $0x2dc0] ss:$16 sps:$4 sm:$0xff]  }
 0x2ed   : > { %10991 = vmatpush1.bf16.msra.mxu0 %v15669_v52  ;;  %v15696_v52 = vld [vmem:[%s17119_s11 + $0x2fc0] ss:$16 sps:$4 sm:$0xff]  }
 0x2ee   : > { %11032 = vmatpush1.bf16.msra.mxu1 %v15672_v43  ;;  %10992 = vmatprep.subr.bf16.mxu0 %v15677_v30  ;;  %v15701_v43 = vld [vmem:[%s17119_s11 + $0x2da4] ss:$16 sps:$4 sm:$0xff]  }
 0x2ef   : > { %11033 = vmatprep.subr.bf16.mxu1 %v15680_v28  ;;  %v15704_v30 = vld [vmem:[%s17119_s11 + $0x2fa4] ss:$16 sps:$4 sm:$0xff]   ;;  %v15699_v28 = vld [vmem:[%s17119_s11 + $0x2da0] ss:$16 sps:$4 sm:$0xff]  }
 0x2f1   : > { %10993 = vmatpush1.bf16.msra.mxu0 %v15675_v16  ;;  %v15702_v16 = vld [vmem:[%s17119_s11 + $0x2fa0] ss:$16 sps:$4 sm:$0xff]  }
 0x2f2   : > { %11034 = vmatpush1.bf16.msra.mxu1 %v15678_v45  ;;  %10994 = vmatprep.subr.bf16.mxu0 %v15683_v35  ;;  %v15707_v45 = vld [vmem:[%s17119_s11 + $0x2d84] ss:$16 sps:$4 sm:$0xff]  }
 0x2f3   : > { %11035 = vmatprep.subr.bf16.mxu1 %v15686_v56  ;;  %v15710_v35 = vld [vmem:[%s17119_s11 + $0x2f84] ss:$16 sps:$4 sm:$0xff]   ;;  %v15705_v56 = vld [vmem:[%s17119_s11 + $0x2d80] ss:$16 sps:$4 sm:$0xff]  }
 0x2f5   : > { %10995 = vmatpush1.bf16.msra.mxu0 %v15681_v9  ;;  %v15708_v9 = vld [vmem:[%s17119_s11 + $0x2f80] ss:$16 sps:$4 sm:$0xff]  }
 0x2f6   : > { %11036 = vmatpush1.bf16.msra.mxu1 %v15684_v10  ;;  %10996 = vmatprep.subr.bf16.mxu0 %v15689_v22  ;;  %v15713_v10 = vld [vmem:[%s17119_s11 + $0x2d64] ss:$16 sps:$4 sm:$0xff]  }
 0x2f7   : > { %11037 = vmatprep.subr.bf16.mxu1 %v15692_v31  ;;  %v15716_v22 = vld [vmem:[%s17119_s11 + $0x2f64] ss:$16 sps:$4 sm:$0xff]   ;;  %v15711_v31 = vld [vmem:[%s17119_s11 + $0x2d60] ss:$16 sps:$4 sm:$0xff]  }
 0x2f9   : > { %10997 = vmatpush2.bf16.msra.mxu0 %v15687_v63  ;;  %v15714_v63 = vld [vmem:[%s17119_s11 + $0x2f60] ss:$16 sps:$4 sm:$0xff]  }
 0x2fa   : > { %11038 = vmatpush2.bf16.msra.mxu1 %v15690_v0  ;;  %10998 = vmatprep.subr.bf16.mxu0 %v15695_v7  ;;  %v15719_v0 = vld [vmem:[%s17119_s11 + $0x2d44] ss:$16 sps:$4 sm:$0xff]  }
 0x2fb   : > { %11039 = vmatprep.subr.bf16.mxu1 %v15698_v6  ;;  %v15722_v7 = vld [vmem:[%s17119_s11 + $0x2f44] ss:$16 sps:$4 sm:$0xff]   ;;  %v15717_v6 = vld [vmem:[%s17119_s11 + $0x2d40] ss:$16 sps:$4 sm:$0xff]  }
 0x2fd   : > { %10999 = vmatpush2.bf16.msra.mxu0 %v15693_v4  ;;  %v15720_v4 = vld [vmem:[%s17119_s11 + $0x2f40] ss:$16 sps:$4 sm:$0xff]  }
 0x2fe   : > { %11040 = vmatpush2.bf16.msra.mxu1 %v15696_v52  ;;  %11000 = vmatprep.subr.bf16.mxu0 %v15701_v43  ;;  %v15725_v52 = vld [vmem:[%s17119_s11 + $0x2d24] ss:$16 sps:$4 sm:$0xff]  }
 0x2ff   : > { %11041 = vmatprep.subr.bf16.mxu1 %v15704_v30  ;;  %v15728_v43 = vld [vmem:[%s17119_s11 + $0x2f24] ss:$16 sps:$4 sm:$0xff]   ;;  %v15723_v30 = vld [vmem:[%s17119_s11 + $0x2d20] ss:$16 sps:$4 sm:$0xff]  }
 0x301   : > { %11001 = vmatpush2.bf16.msra.mxu0 %v15699_v28  ;;  %v15726_v28 = vld [vmem:[%s17119_s11 + $0x2f20] ss:$16 sps:$4 sm:$0xff]  }
 0x302   : > { %11042 = vmatpush2.bf16.msra.mxu1 %v15702_v16  ;;  %11002 = vmatprep.subr.bf16.mxu0 %v15707_v45  ;;  %v15731_v16 = vld [vmem:[%s17119_s11 + $0x2d04] ss:$16 sps:$4 sm:$0xff]  }
 0x303   : > { %11043 = vmatprep.subr.bf16.mxu1 %v15710_v35  ;;  %v15734_v45 = vld [vmem:[%s17119_s11 + $0x2f04] ss:$16 sps:$4 sm:$0xff]   ;;  %v18246_v35 = vrot.slane %v18147_v39, %v17170_v51 }
 0x304   : > { %v15744_v39 = vld [vmem:[%s17119_s11 + $0x30c4] ss:$16 sps:$4 sm:$0xff]  }
 0x305   : > { %11003 = vmatpush2.bf16.msra.mxu0 %v15705_v56  ;;  %19539 = vst [vmem:[#allocation8_spill] sm:$0xff] %v18246_v35  ;;  %v15729_v56 = vld [vmem:[%s17119_s11 + $0x2d00] ss:$16 sps:$4 sm:$0xff]  }
 0x306   : > { %11044 = vmatpush2.bf16.msra.mxu1 %v15708_v9  ;;  %11004 = vmatprep.subr.bf16.mxu0 %v15713_v10  ;;  %v15732_v9 = vld [vmem:[%s17119_s11 + $0x2f00] ss:$16 sps:$4 sm:$0xff]   ;;  %v15738_v10 = vld [vmem:[%s17119_s11 + $0x30e4] ss:$16 sps:$4 sm:$0xff]  }
 0x307   : > { %11045 = vmatprep.subr.bf16.mxu1 %v15716_v22  ;;  %v15741_v22 = vld [vmem:[%s17119_s11 + $0xec] ss:$16 sps:$4 sm:$0xff]  }
 0x309   : > { %11005 = vmatpush2.bf16.msra.mxu0 %v15711_v31  ;;  %v15736_v31 = vld [vmem:[%s17119_s11 + $0x30e0] ss:$16 sps:$4 sm:$0xff]  }
 0x30a   : > { %11046 = vmatpush2.bf16.msra.mxu1 %v15714_v63  ;;  %11006 = vmatprep.subr.bf16.mxu0 %v15719_v0  ;;  %v15739_v63 = vld [vmem:[%s17119_s11 + $0xe8] ss:$16 sps:$4 sm:$0xff]   ;;  %v18256_v0 = vcombine.high %v18246_v35, %v18246_v35 }
 0x30b   : > { %11047 = vmatprep.subr.bf16.mxu1 %v15722_v7  ;;  %v15747_v7 = vld [vmem:[%s17119_s11 + $0xcc] ss:$16 sps:$4 sm:$0xff]  }
 0x30d   : > { %11007 = vmatpush2.bf16.msra.mxu0 %v15717_v6  ;;  %v15742_v6 = vld [vmem:[%s17119_s11 + $0x30c0] ss:$16 sps:$4 sm:$0xff]  }
 0x30e   : > { %11048 = vmatpush2.bf16.msra.mxu1 %v15720_v4  ;;  %11008 = vmatprep.subr.bf16.mxu0 %v15725_v52  ;;  %v15745_v4 = vld [vmem:[%s17119_s11 + $0xc8] ss:$16 sps:$4 sm:$0xff]  }
 0x30f   : > { %11049 = vmatprep.subr.bf16.mxu1 %v15728_v43 }
 0x311   : > { %11009 = vmatpush2.bf16.msra.mxu0 %v15723_v30 }
 0x312   : > { %11050 = vmatpush2.bf16.msra.mxu1 %v15726_v28  ;;  %11010 = vmatprep.subr.bf16.mxu0 %v15731_v16 }
 0x313   : > { %11051 = vmatprep.subr.bf16.mxu1 %v15734_v45  ;;  %v15750_v45 = vld [vmem:[%s17119_s11 + $0x30a4] ss:$16 sps:$4 sm:$0xff]  }
 0x315   : > { %11011 = vmatpush2.bf16.msra.mxu0 %v15729_v56  ;;  %v15753_v56 = vld [vmem:[%s17119_s11 + $0xac] ss:$16 sps:$4 sm:$0xff]  }
 0x316   : > { %11052 = vmatpush2.bf16.msra.mxu1 %v15732_v9  ;;  %11062 = vmatprep.subr.bf16.mxu0 %v15738_v10 }
 0x317   : > { %11103 = vmatprep.subr.bf16.mxu1 %v15741_v22  ;;  %v15748_v22 = vld [vmem:[%s17119_s11 + $0x30a0] ss:$16 sps:$4 sm:$0xff]  }
 0x318   : > { %v10768_v52 = vpop.f32.mrf.mxu0  ;;  %11013 = vmatmul.mubr.bf16.vlgmr.msra.gmra.mxu0 %v18246_v35  ;;  %v15751_v35 = vld [vmem:[%s17119_s11 + $0xa8] ss:$16 sps:$4 sm:$0xff]  }
 0x319   : > { %v10809_v43 = vpop.f32.mrf.mxu1  ;;  %11054 = vmatmul.mubr.bf16.vlgmr.msra.gmra.mxu1 %v18256_v0  ;;  %v10769_v30 = vadd.f32 %v10768_v52, %v18185_v8  ;;  %11063 = vmatpush1.bf16.msra.mxu0 %v15736_v31  ;;  %v15759_v52 = vld [vmem:[%s17119_s11 + $0x8c] ss:$16 sps:$4 sm:$0xff]  }
 0x31a   : > { %11104 = vmatpush1.bf16.msra.mxu1 %v15739_v63  ;;  %v10770_v28 = vpop.f32.mrf.mxu0  ;;  %11064 = vmatprep.subr.bf16.mxu0 %v15744_v39 }
 0x31b   : > { %v10811_v16 = vpop.f32.mrf.mxu1  ;;  %11105 = vmatprep.subr.bf16.mxu1 %v15747_v7  ;;  %v18267_v9 = vadd.f32 %v10809_v43, %v10769_v30  ;;  %v10771_v10 = vadd.f32 %v10770_v28, %v18192_v53  ;;  %11094 = vmatprep.mubr.bf16.mxu0 %v17058_v18  ;;  %v15756_v7 = vld [vmem:[%s17119_s11 + $0x3084] ss:$16 sps:$4 sm:$0xff]   ;;  %v15757_v43 = vld [vmem:[%s17119_s11 + $0x88] ss:$16 sps:$4 sm:$0xff]   ;;  %v15760_v30 = vld [vmem:[%s17119_s11 + $0x3060] ss:$16 sps:$4 sm:$0xff]  }
 0x31c   : > { %11135 = vmatprep.mubr.bf16.mxu1 %v17182_v62  ;;  %v10772_v8 = vpop.f32.mrf.mxu0  ;;  %v15754_v62 = vld [vmem:[%s17119_s11 + $0x3080] ss:$16 sps:$4 sm:$0xff]   ;;  %v15763_v28 = vld [vmem:[%s17119_s11 + $0x68] ss:$16 sps:$4 sm:$0xff]  }
 0x31d   : > { %v10813_v31 = vpop.f32.mrf.mxu1  ;;  %v18274_v63 = vadd.f32 %v10811_v16, %v10771_v10  ;;  %11065 = vmatpush1.bf16.msra.mxu0 %v15742_v6  ;;  %v15762_v6 = vld [vmem:[%s17119_s11 + $0x3064] ss:$16 sps:$4 sm:$0xff]   ;;  %v15772_v8 = vld [vmem:[%s17119_s11 + $0x3020] ss:$16 sps:$4 sm:$0xff]  }
 0x31e   : > { %11106 = vmatpush1.bf16.msra.mxu1 %v15745_v4  ;;  %v10773_v39 = vpop.f32.mrf.mxu0  ;;  %11066 = vmatprep.subr.bf16.mxu0 %v15750_v45  ;;  %v15765_v4 = vld [vmem:[%s17119_s11 + $0x6c] ss:$16 sps:$4 sm:$0xff]   ;;  %v15768_v16 = vld [vmem:[%s17119_s11 + $0x3044] ss:$16 sps:$4 sm:$0xff]   ;;  %v15766_v45 = vld [vmem:[%s17119_s11 + $0x3040] ss:$16 sps:$4 sm:$0xff]  }
 0x31f   : > { %v10814_v53 = vpop.f32.mrf.mxu1  ;;  %11107 = vmatprep.subr.bf16.mxu1 %v15753_v56  ;;  %v15769_v56 = vld [vmem:[%s17119_s11 + $0x48] ss:$16 sps:$4 sm:$0xff]   ;;  %v15774_v10 = vld [vmem:[%s17119_s11 + $0x3024] ss:$16 sps:$4 sm:$0xff]  }
 0x320   : > { %v15775_v31 = vld [vmem:[%s17119_s11 + $0x28] ss:$16 sps:$4 sm:$0xff]   ;;  %v15780_v39 = vld [vmem:[%s17119_s11 + $0x3004] ss:$16 sps:$4 sm:$0xff]   ;;  %v15783_v53 = vld [vmem:[%s17119_s11 + $0xc] ss:$16 sps:$4 sm:$0xff]  }
 0x321   : > { %11067 = vmatpush1.bf16.msra.mxu0 %v15748_v22  ;;  %v15777_v22 = vld [vmem:[%s17119_s11 + $0x2c] ss:$16 sps:$4 sm:$0xff]  }
 0x322   : > { %11108 = vmatpush1.bf16.msra.mxu1 %v15751_v35  ;;  %11068 = vmatprep.subr.bf16.mxu0 %v15756_v7  ;;  %v15771_v35 = vld [vmem:[%s17119_s11 + $0x4c] ss:$16 sps:$4 sm:$0xff]   ;;  %v15778_v7 = vld [vmem:[%s17119_s11 + $0x3000] ss:$16 sps:$4 sm:$0xff]  }
 0x323   : > { %11109 = vmatprep.subr.bf16.mxu1 %v15759_v52  ;;  %v15781_v52 = vld [vmem:[%s17119_s11 + $0x8] ss:$16 sps:$4 sm:$0xff]  }
 0x325   : > { %11069 = vmatpush1.bf16.msra.mxu0 %v15754_v62  ;;  %v12892_v62 = vld.sshfl [vmem:[%s17114_s30 + $0x30] sm:$0x1 pattern:$0x75316420] }
 0x326   : > { %11110 = vmatpush1.bf16.msra.mxu1 %v15757_v43  ;;  %11070 = vmatprep.subr.bf16.mxu0 %v15762_v6  ;;  %v15786_v43 = vld [vmem:[%s17119_s11 + $0x1ec] ss:$16 sps:$4 sm:$0xff]  }
 0x327   : > { %11111 = vmatprep.subr.bf16.mxu1 %v15765_v4  ;;  %v15789_v6 = vld [vmem:[%s17119_s11 + $0x2ec] ss:$16 sps:$4 sm:$0xff]   ;;  %v15784_v4 = vld [vmem:[%s17119_s11 + $0x1e8] ss:$16 sps:$4 sm:$0xff]  }
 0x329   : > { %11071 = vmatpush1.bf16.msra.mxu0 %v15760_v30  ;;  %v15787_v30 = vld [vmem:[%s17119_s11 + $0x2e8] ss:$16 sps:$4 sm:$0xff]  }
 0x32a   : > { %11112 = vmatpush1.bf16.msra.mxu1 %v15763_v28  ;;  %11072 = vmatprep.subr.bf16.mxu0 %v15768_v16  ;;  %v18302_v28 = vrot.slane %v12892_v62, %v17170_v51  ;;  %v15792_v16 = vld [vmem:[%s17119_s11 + $0x1cc] ss:$16 sps:$4 sm:$0xff]  }
 0x32b   : > { %11113 = vmatprep.subr.bf16.mxu1 %v15771_v35  ;;  %v15795_v35 = vld [vmem:[%s17119_s11 + $0x2cc] ss:$16 sps:$4 sm:$0xff]  }
 0x32c   : > { %v15813_v62 = vld [vmem:[%s17119_s11 + $0x26c] ss:$16 sps:$4 sm:$0xff]  }
 0x32d   : > { %11073 = vmatpush1.bf16.msra.mxu0 %v15766_v45  ;;  %v15790_v45 = vld [vmem:[%s17119_s11 + $0x1c8] ss:$16 sps:$4 sm:$0xff]  }
 0x32e   : > { %11114 = vmatpush1.bf16.msra.mxu1 %v15769_v56  ;;  %11074 = vmatprep.subr.bf16.mxu0 %v15774_v10  ;;  %v15793_v56 = vld [vmem:[%s17119_s11 + $0x2c8] ss:$16 sps:$4 sm:$0xff]   ;;  %v15798_v10 = vld [vmem:[%s17119_s11 + $0x1ac] ss:$16 sps:$4 sm:$0xff]  }
 0x32f   : > { %11115 = vmatprep.subr.bf16.mxu1 %v15777_v22  ;;  %v15801_v22 = vld [vmem:[%s17119_s11 + $0x2ac] ss:$16 sps:$4 sm:$0xff]  }
 0x331   : > { %11075 = vmatpush1.bf16.msra.mxu0 %v15772_v8  ;;  %v15796_v8 = vld [vmem:[%s17119_s11 + $0x1a8] ss:$16 sps:$4 sm:$0xff]  }
 0x332   : > { %11116 = vmatpush1.bf16.msra.mxu1 %v15775_v31  ;;  %11076 = vmatprep.subr.bf16.mxu0 %v15780_v39  ;;  %v15799_v31 = vld [vmem:[%s17119_s11 + $0x2a8] ss:$16 sps:$4 sm:$0xff]   ;;  %v15804_v39 = vld [vmem:[%s17119_s11 + $0x18c] ss:$16 sps:$4 sm:$0xff]  }
 0x333   : > { %11117 = vmatprep.subr.bf16.mxu1 %v15783_v53  ;;  %v15807_v53 = vld [vmem:[%s17119_s11 + $0x28c] ss:$16 sps:$4 sm:$0xff]  }
 0x335   : > { %11077 = vmatpush1.bf16.msra.mxu0 %v15778_v7  ;;  %v15802_v7 = vld [vmem:[%s17119_s11 + $0x188] ss:$16 sps:$4 sm:$0xff]  }
 0x336   : > { %11118 = vmatpush1.bf16.msra.mxu1 %v15781_v52  ;;  %11144 = vmatprep.subr.bf16.mxu0 %v15789_v6  ;;  %v15805_v52 = vld [vmem:[%s17119_s11 + $0x288] ss:$16 sps:$4 sm:$0xff]  }
 0x337   : > { %11119 = vmatprep.subr.bf16.mxu1 %v15786_v43  ;;  %v15808_v43 = vld [vmem:[%s17119_s11 + $0x168] ss:$16 sps:$4 sm:$0xff]  }
 0x338   : > { %11095 = vmatmul.mubr.bf16.vlgmr.msra.gmra.mxu0 %v18302_v28  ;;  %v15811_v6 = vld [vmem:[%s17119_s11 + $0x268] ss:$16 sps:$4 sm:$0xff]  }
 0x339   : > { %11145 = vmatpush1.bf16.msra.mxu0 %v15787_v30  ;;  %11176 = vmatprep.mubr.bf16.mxu0 %v17189_v2  ;;  %v15810_v2 = vld [vmem:[%s17119_s11 + $0x16c] ss:$16 sps:$4 sm:$0xff]  }
 0x33a   : > { %11120 = vmatpush2.bf16.msra.mxu1 %v15784_v4  ;;  %11146 = vmatprep.subr.bf16.mxu0 %v15795_v35  ;;  %v15816_v4 = vld [vmem:[%s17119_s11 + $0x14c] ss:$16 sps:$4 sm:$0xff]   ;;  %v15817_v35 = vld [vmem:[%s17119_s11 + $0x248] ss:$16 sps:$4 sm:$0xff]  }
 0x33b   : > { %11121 = vmatprep.subr.bf16.mxu1 %v15792_v16  ;;  %v15819_v30 = vld [vmem:[%s17119_s11 + $0x24c] ss:$16 sps:$4 sm:$0xff]   ;;  %v15814_v16 = vld [vmem:[%s17119_s11 + $0x148] ss:$16 sps:$4 sm:$0xff]  }
 0x33d   : > { %11147 = vmatpush1.bf16.msra.mxu0 %v15793_v56  ;;  %v15825_v56 = vld [vmem:[%s17119_s11 + $0x22c] ss:$16 sps:$4 sm:$0xff]  }
 0x33e   : > { %11122 = vmatpush2.bf16.msra.mxu1 %v15790_v45  ;;  %11148 = vmatprep.subr.bf16.mxu0 %v15801_v22  ;;  %v15822_v45 = vld [vmem:[%s17119_s11 + $0x12c] ss:$16 sps:$4 sm:$0xff]   ;;  %v15823_v22 = vld [vmem:[%s17119_s11 + $0x228] ss:$16 sps:$4 sm:$0xff]  }
 0x33f   : > { %11123 = vmatprep.subr.bf16.mxu1 %v15798_v10  ;;  %v15820_v10 = vld [vmem:[%s17119_s11 + $0x128] ss:$16 sps:$4 sm:$0xff]  }
 0x341   : > { %11149 = vmatpush1.bf16.msra.mxu0 %v15799_v31  ;;  %v15831_v31 = vld [vmem:[%s17119_s11 + $0x20c] ss:$16 sps:$4 sm:$0xff]  }
 0x342   : > { %11124 = vmatpush2.bf16.msra.mxu1 %v15796_v8  ;;  %11150 = vmatprep.subr.bf16.mxu0 %v15807_v53  ;;  %v15828_v8 = vld [vmem:[%s17119_s11 + $0x10c] ss:$16 sps:$4 sm:$0xff]   ;;  %v15829_v53 = vld [vmem:[%s17119_s11 + $0x208] ss:$16 sps:$4 sm:$0xff]  }
 0x343   : > { %11125 = vmatprep.subr.bf16.mxu1 %v15804_v39  ;;  %v15826_v39 = vld [vmem:[%s17119_s11 + $0x108] ss:$16 sps:$4 sm:$0xff]  }
 0x345   : > { %11151 = vmatpush1.bf16.msra.mxu0 %v15805_v52  ;;  %v15837_v52 = vld [vmem:[%s17119_s11 + $0x4ec] ss:$16 sps:$4 sm:$0xff]  }
 0x346   : > { %11126 = vmatpush2.bf16.msra.mxu1 %v15802_v7  ;;  %11152 = vmatprep.subr.bf16.mxu0 %v15813_v62  ;;  %v15834_v7 = vld [vmem:[%s17119_s11 + $0x3ec] ss:$16 sps:$4 sm:$0xff]   ;;  %v15835_v62 = vld [vmem:[%s17119_s11 + $0x4e8] ss:$16 sps:$4 sm:$0xff]  }
 0x347   : > { %11127 = vmatprep.subr.bf16.mxu1 %v15810_v2  ;;  %v15832_v2 = vld [vmem:[%s17119_s11 + $0x3e8] ss:$16 sps:$4 sm:$0xff]  }
 0x349   : > { %11153 = vmatpush1.bf16.msra.mxu0 %v15811_v6  ;;  %v15843_v6 = vld [vmem:[%s17119_s11 + $0x4cc] ss:$16 sps:$4 sm:$0xff]  }
 0x34a   : > { %11128 = vmatpush2.bf16.msra.mxu1 %v15808_v43  ;;  %11154 = vmatprep.subr.bf16.mxu0 %v15819_v30  ;;  %v15840_v43 = vld [vmem:[%s17119_s11 + $0x3cc] ss:$16 sps:$4 sm:$0xff]   ;;  %v15841_v30 = vld [vmem:[%s17119_s11 + $0x4c8] ss:$16 sps:$4 sm:$0xff]  }
 0x34b   : > { %11129 = vmatprep.subr.bf16.mxu1 %v15816_v4  ;;  %v15838_v4 = vld [vmem:[%s17119_s11 + $0x3c8] ss:$16 sps:$4 sm:$0xff]  }
 0x34d   : > { %11155 = vmatpush1.bf16.msra.mxu0 %v15817_v35 }
 0x34e   : > { %11130 = vmatpush2.bf16.msra.mxu1 %v15814_v16  ;;  %11156 = vmatprep.subr.bf16.mxu0 %v15825_v56 }
 0x34f   : > { %11131 = vmatprep.subr.bf16.mxu1 %v15822_v45 }
 0x351   : > { %11157 = vmatpush1.bf16.msra.mxu0 %v15823_v22  ;;  %v15846_v22 = vld [vmem:[%s17119_s11 + $0x3ac] ss:$16 sps:$4 sm:$0xff]  }
 0x352   : > { %11132 = vmatpush2.bf16.msra.mxu1 %v15820_v10  ;;  %11158 = vmatprep.subr.bf16.mxu0 %v15831_v31 }
 0x353   : > { %11133 = vmatprep.subr.bf16.mxu1 %v15828_v8  ;;  %v15849_v8 = vld [vmem:[%s17119_s11 + $0x4ac] ss:$16 sps:$4 sm:$0xff]  }
 0x355   : > { %11159 = vmatpush1.bf16.msra.mxu0 %v15829_v53  ;;  %v15844_v53 = vld [vmem:[%s17119_s11 + $0x3a8] ss:$16 sps:$4 sm:$0xff]  }
 0x356   : > { %11134 = vmatpush2.bf16.msra.mxu1 %v15826_v39  ;;  %11160 = vmatprep.subr.bf16.mxu0 %v15834_v7  ;;  %v15847_v7 = vld [vmem:[%s17119_s11 + $0x4a8] ss:$16 sps:$4 sm:$0xff]  }
 0x357   : > { %11185 = vmatprep.subr.bf16.mxu1 %v15837_v52 }
 0x358   : > { %v10850_v16 = vpop.f32.mrf.mxu0 }
 0x359   : > { %v10891_v35 = vpop.f32.mrf.mxu1  ;;  %11136 = vmatmul.mubr.bf16.vlgmr.msra.gmra.mxu1 %v17208_v15  ;;  %v10851_v45 = vadd.f32 %v10850_v16, %v18267_v9  ;;  %11161 = vmatpush2.bf16.msra.mxu0 %v15832_v2  ;;  %v15856_v16 = vld [vmem:[%s17119_s11 + $0x368] ss:$16 sps:$4 sm:$0xff]  }
 0x35a   : > { %11186 = vmatpush1.bf16.msra.mxu1 %v15835_v62  ;;  %v10852_v56 = vpop.f32.mrf.mxu0  ;;  %11162 = vmatprep.subr.bf16.mxu0 %v15840_v43  ;;  %v15855_v43 = vld [vmem:[%s17119_s11 + $0x48c] ss:$16 sps:$4 sm:$0xff]  }
 0x35b   : > { %v10893_v10 = vpop.f32.mrf.mxu1  ;;  %11187 = vmatprep.subr.bf16.mxu1 %v15843_v6  ;;  %v18346_v31 = vadd.f32 %v10891_v35, %v10851_v45  ;;  %v10853_v39 = vadd.f32 %v10852_v56, %v18274_v63  ;;  %11217 = vmatprep.mubr.bf16.mxu1 %v17214_v19  ;;  %v15852_v63 = vld [vmem:[%s17119_s11 + $0x38c] ss:$16 sps:$4 sm:$0xff]   ;;  %v15850_v19 = vld [vmem:[%s17119_s11 + $0x388] ss:$16 sps:$4 sm:$0xff]  }
 0x35c   : > { %v10854_v15 = vpop.f32.mrf.mxu0  ;;  %v15853_v6 = vld [vmem:[%s17119_s11 + $0x488] ss:$16 sps:$4 sm:$0xff]   ;;  %v15864_v45 = vld [vmem:[%s17119_s11 + $0x34c] ss:$16 sps:$4 sm:$0xff]  }
 0x35d   : > { %v10895_v9 = vpop.f32.mrf.mxu1  ;;  %v18352_v52 = vadd.f32 %v10893_v10, %v10853_v39  ;;  %11163 = vmatpush2.bf16.msra.mxu0 %v15838_v4  ;;  %v15858_v4 = vld [vmem:[%s17119_s11 + $0x36c] ss:$16 sps:$4 sm:$0xff]   ;;  %v15859_v35 = vld [vmem:[%s17119_s11 + $0x468] ss:$16 sps:$4 sm:$0xff]  }
 0x35e   : > { %11188 = vmatpush1.bf16.msra.mxu1 %v15841_v30  ;;  %v10855_v2 = vpop.f32.mrf.mxu0  ;;  %11164 = vmatprep.subr.bf16.mxu0 %v15846_v22  ;;  %v15861_v30 = vld [vmem:[%s17119_s11 + $0x46c] ss:$16 sps:$4 sm:$0xff]   ;;  %v15862_v10 = vld [vmem:[%s17119_s11 + $0x348] ss:$16 sps:$4 sm:$0xff]  }
 0x35f   : > { %v10896_v62 = vpop.f32.mrf.mxu1  ;;  %11189 = vmatprep.subr.bf16.mxu1 %v15849_v8  ;;  %v15867_v56 = vld [vmem:[%s17119_s11 + $0x44c] ss:$16 sps:$4 sm:$0xff]   ;;  %v15865_v22 = vld [vmem:[%s17119_s11 + $0x448] ss:$16 sps:$4 sm:$0xff]  }
 0x360   : > { %v15870_v8 = vld [vmem:[%s17119_s11 + $0x32c] ss:$16 sps:$4 sm:$0xff]   ;;  %v15874_v2 = vld [vmem:[%s17119_s11 + $0x308] ss:$16 sps:$4 sm:$0xff]  }
 0x361   : > { %11165 = vmatpush2.bf16.msra.mxu0 %v15844_v53  ;;  %v15873_v39 = vld [vmem:[%s17119_s11 + $0x42c] ss:$16 sps:$4 sm:$0xff]   ;;  %v15868_v53 = vld [vmem:[%s17119_s11 + $0x328] ss:$16 sps:$4 sm:$0xff]  }
 0x362   : > { %11190 = vmatpush1.bf16.msra.mxu1 %v15847_v7  ;;  %11166 = vmatprep.subr.bf16.mxu0 %v15852_v63  ;;  %v15871_v7 = vld [vmem:[%s17119_s11 + $0x428] ss:$16 sps:$4 sm:$0xff]   ;;  %v15876_v15 = vld [vmem:[%s17119_s11 + $0x30c] ss:$16 sps:$4 sm:$0xff]  }
 0x363   : > { %11191 = vmatprep.subr.bf16.mxu1 %v15855_v43  ;;  %v15879_v9 = vld [vmem:[%s17119_s11 + $0x40c] ss:$16 sps:$4 sm:$0xff]   ;;  %v15877_v62 = vld [vmem:[%s17119_s11 + $0x408] ss:$16 sps:$4 sm:$0xff]  }
 0x364   : > { %v15882_v63 = vld [vmem:[%s17119_s11 + $0x5ec] ss:$16 sps:$4 sm:$0xff]  }
 0x365   : > { %11167 = vmatpush2.bf16.msra.mxu0 %v15850_v19  ;;  %v15885_v43 = vld [vmem:[%s17119_s11 + $0x6ec] ss:$16 sps:$4 sm:$0xff]   ;;  %v15880_v19 = vld [vmem:[%s17119_s11 + $0x5e8] ss:$16 sps:$4 sm:$0xff]  }
 0x366   : > { %11192 = vmatpush1.bf16.msra.mxu1 %v15853_v6  ;;  %11168 = vmatprep.subr.bf16.mxu0 %v15858_v4  ;;  %v15883_v6 = vld [vmem:[%s17119_s11 + $0x6e8] ss:$16 sps:$4 sm:$0xff]   ;;  %v15888_v4 = vld [vmem:[%s17119_s11 + $0x5cc] ss:$16 sps:$4 sm:$0xff]  }
 0x367   : > { %11193 = vmatprep.subr.bf16.mxu1 %v15861_v30  ;;  %v15891_v30 = vld [vmem:[%s17119_s11 + $0x6cc] ss:$16 sps:$4 sm:$0xff]  }
 0x369   : > { %11169 = vmatpush2.bf16.msra.mxu0 %v15856_v16  ;;  %v15886_v16 = vld [vmem:[%s17119_s11 + $0x5c8] ss:$16 sps:$4 sm:$0xff]  }
 0x36a   : > { %11194 = vmatpush1.bf16.msra.mxu1 %v15859_v35  ;;  %11170 = vmatprep.subr.bf16.mxu0 %v15864_v45  ;;  %v15889_v35 = vld [vmem:[%s17119_s11 + $0x6c8] ss:$16 sps:$4 sm:$0xff]   ;;  %v15894_v45 = vld [vmem:[%s17119_s11 + $0x5ac] ss:$16 sps:$4 sm:$0xff]  }
 0x36b   : > { %11195 = vmatprep.subr.bf16.mxu1 %v15867_v56  ;;  %v15897_v56 = vld [vmem:[%s17119_s11 + $0x6ac] ss:$16 sps:$4 sm:$0xff]  }
 0x36d   : > { %11171 = vmatpush2.bf16.msra.mxu0 %v15862_v10  ;;  %v15892_v10 = vld [vmem:[%s17119_s11 + $0x5a8] ss:$16 sps:$4 sm:$0xff]  }
 0x36e   : > { %11196 = vmatpush1.bf16.msra.mxu1 %v15865_v22  ;;  %11172 = vmatprep.subr.bf16.mxu0 %v15870_v8  ;;  %v15900_v22 = vld [vmem:[%s17119_s11 + $0x58c] ss:$16 sps:$4 sm:$0xff]  }
 0x36f   : > { %11197 = vmatprep.subr.bf16.mxu1 %v15873_v39  ;;  %v15903_v8 = vld [vmem:[%s17119_s11 + $0x68c] ss:$16 sps:$4 sm:$0xff]   ;;  %v15898_v39 = vld [vmem:[%s17119_s11 + $0x588] ss:$16 sps:$4 sm:$0xff]  }
 0x371   : > { %11173 = vmatpush2.bf16.msra.mxu0 %v15868_v53  ;;  %v15901_v53 = vld [vmem:[%s17119_s11 + $0x688] ss:$16 sps:$4 sm:$0xff]  }
 0x372   : > { %11198 = vmatpush1.bf16.msra.mxu1 %v15871_v7  ;;  %11174 = vmatprep.subr.bf16.mxu0 %v15876_v15  ;;  %v15909_v7 = vld [vmem:[%s17119_s11 + $0x66c] ss:$16 sps:$4 sm:$0xff]   ;;  %v15904_v15 = vld [vmem:[%s17119_s11 + $0x568] ss:$16 sps:$4 sm:$0xff]  }
 0x373   : > { %11199 = vmatprep.subr.bf16.mxu1 %v15879_v9  ;;  %v15907_v9 = vld [vmem:[%s17119_s11 + $0x668] ss:$16 sps:$4 sm:$0xff]  }
 0x375   : > { %11175 = vmatpush2.bf16.msra.mxu0 %v15874_v2  ;;  %v15912_v2 = vld [vmem:[%s17119_s11 + $0x54c] ss:$16 sps:$4 sm:$0xff]  }
 0x376   : > { %11200 = vmatpush1.bf16.msra.mxu1 %v15877_v62  ;;  %11226 = vmatprep.subr.bf16.mxu0 %v15885_v43  ;;  %v15915_v62 = vld [vmem:[%s17119_s11 + $0x64c] ss:$16 sps:$4 sm:$0xff]   ;;  %v15913_v43 = vld [vmem:[%s17119_s11 + $0x648] ss:$16 sps:$4 sm:$0xff]  }
 0x377   : > { %11201 = vmatprep.subr.bf16.mxu1 %v15882_v63  ;;  %v15910_v63 = vld [vmem:[%s17119_s11 + $0x548] ss:$16 sps:$4 sm:$0xff]  }
 0x378   : > { %11177 = vmatmul.mubr.bf16.vlgmr.msra.gmra.mxu0 %v17218_v20  ;;  %v15895_v20 = vld [vmem:[%s17119_s11 + $0x6a8] ss:$16 sps:$4 sm:$0xff]  }
 0x379   : > { %11227 = vmatpush1.bf16.msra.mxu0 %v15883_v6  ;;  %11258 = vmatprep.mubr.bf16.mxu0 %v17226_v25  ;;  %v15906_v25 = vld [vmem:[%s17119_s11 + $0x56c] ss:$16 sps:$4 sm:$0xff]  }
 0x37a   : > { %11202 = vmatpush2.bf16.msra.mxu1 %v15880_v19  ;;  %11228 = vmatprep.subr.bf16.mxu0 %v15891_v30  ;;  %v15918_v19 = vld [vmem:[%s17119_s11 + $0x52c] ss:$16 sps:$4 sm:$0xff]   ;;  %v15919_v30 = vld [vmem:[%s17119_s11 + $0x628] ss:$16 sps:$4 sm:$0xff]  }
 0x37b   : > { %11203 = vmatprep.subr.bf16.mxu1 %v15888_v4  ;;  %v15921_v6 = vld [vmem:[%s17119_s11 + $0x62c] ss:$16 sps:$4 sm:$0xff]   ;;  %v15916_v4 = vld [vmem:[%s17119_s11 + $0x528] ss:$16 sps:$4 sm:$0xff]  }
 0x37d   : > { %11229 = vmatpush1.bf16.msra.mxu0 %v15889_v35  ;;  %v15927_v35 = vld [vmem:[%s17119_s11 + $0x60c] ss:$16 sps:$4 sm:$0xff]  }
 0x37e   : > { %11204 = vmatpush2.bf16.msra.mxu1 %v15886_v16  ;;  %11230 = vmatprep.subr.bf16.mxu0 %v15897_v56  ;;  %v15924_v16 = vld [vmem:[%s17119_s11 + $0x50c] ss:$16 sps:$4 sm:$0xff]   ;;  %v15925_v56 = vld [vmem:[%s17119_s11 + $0x608] ss:$16 sps:$4 sm:$0xff]  }
 0x37f   : > { %11205 = vmatprep.subr.bf16.mxu1 %v15894_v45  ;;  %v15922_v45 = vld [vmem:[%s17119_s11 + $0x508] ss:$16 sps:$4 sm:$0xff]  }
 0x381   : > { %11231 = vmatpush1.bf16.msra.mxu0 %v15895_v20  ;;  %v15933_v20 = vld [vmem:[%s17119_s11 + $0x8ec] ss:$16 sps:$4 sm:$0xff]  }
 0x382   : > { %11206 = vmatpush2.bf16.msra.mxu1 %v15892_v10  ;;  %11232 = vmatprep.subr.bf16.mxu0 %v15903_v8  ;;  %v15930_v10 = vld [vmem:[%s17119_s11 + $0x7ec] ss:$16 sps:$4 sm:$0xff]   ;;  %v15931_v8 = vld [vmem:[%s17119_s11 + $0x8e8] ss:$16 sps:$4 sm:$0xff]  }
 0x383   : > { %11207 = vmatprep.subr.bf16.mxu1 %v15900_v22  ;;  %v15928_v22 = vld [vmem:[%s17119_s11 + $0x7e8] ss:$16 sps:$4 sm:$0xff]  }
 0x385   : > { %11233 = vmatpush1.bf16.msra.mxu0 %v15901_v53  ;;  %v15939_v53 = vld [vmem:[%s17119_s11 + $0x8cc] ss:$16 sps:$4 sm:$0xff]  }
 0x386   : > { %11208 = vmatpush2.bf16.msra.mxu1 %v15898_v39  ;;  %11234 = vmatprep.subr.bf16.mxu0 %v15909_v7  ;;  %v15936_v39 = vld [vmem:[%s17119_s11 + $0x7cc] ss:$16 sps:$4 sm:$0xff]  }
 0x387   : > { %11209 = vmatprep.subr.bf16.mxu1 %v15906_v25 }
 0x389   : > { %11235 = vmatpush1.bf16.msra.mxu0 %v15907_v9  ;;  %v15934_v9 = vld [vmem:[%s17119_s11 + $0x7c8] ss:$16 sps:$4 sm:$0xff]  }
 0x38a   : > { %11210 = vmatpush2.bf16.msra.mxu1 %v15904_v15  ;;  %11236 = vmatprep.subr.bf16.mxu0 %v15915_v62 }
 0x38b   : > { %11211 = vmatprep.subr.bf16.mxu1 %v15912_v2  ;;  %v15937_v2 = vld [vmem:[%s17119_s11 + $0x8c8] ss:$16 sps:$4 sm:$0xff]  }
 0x38d   : > { %11237 = vmatpush1.bf16.msra.mxu0 %v15913_v43  ;;  %v15942_v43 = vld [vmem:[%s17119_s11 + $0x7ac] ss:$16 sps:$4 sm:$0xff]  }
 0x38e   : > { %11212 = vmatpush2.bf16.msra.mxu1 %v15910_v63  ;;  %11238 = vmatprep.subr.bf16.mxu0 %v15921_v6 }
 0x38f   : > { %11213 = vmatprep.subr.bf16.mxu1 %v15918_v19  ;;  %v15945_v19 = vld [vmem:[%s17119_s11 + $0x8ac] ss:$16 sps:$4 sm:$0xff]  }
 0x391   : > { %11239 = vmatpush1.bf16.msra.mxu0 %v15919_v30 }
 0x392   : > { %11214 = vmatpush2.bf16.msra.mxu1 %v15916_v4  ;;  %11240 = vmatprep.subr.bf16.mxu0 %v15927_v35  ;;  %v15943_v35 = vld [vmem:[%s17119_s11 + $0x8a8] ss:$16 sps:$4 sm:$0xff]  }
 0x393   : > { %11215 = vmatprep.subr.bf16.mxu1 %v15924_v16  ;;  %v15940_v16 = vld [vmem:[%s17119_s11 + $0x7a8] ss:$16 sps:$4 sm:$0xff]  }
 0x395   : > { %11241 = vmatpush1.bf16.msra.mxu0 %v15925_v56 }
 0x396   : > { %11216 = vmatpush2.bf16.msra.mxu1 %v15922_v45  ;;  %11242 = vmatprep.subr.bf16.mxu0 %v15930_v10  ;;  %v15946_v10 = vld [vmem:[%s17119_s11 + $0x788] ss:$16 sps:$4 sm:$0xff]  }
 0x397   : > { %11267 = vmatprep.subr.bf16.mxu1 %v15933_v20  ;;  %v15949_v20 = vld [vmem:[%s17119_s11 + $0x888] ss:$16 sps:$4 sm:$0xff]  }
 0x398   : > { %v10932_v25 = vpop.f32.mrf.mxu0 }
 0x399   : > { %v10973_v7 = vpop.f32.mrf.mxu1  ;;  %11218 = vmatmul.mubr.bf16.vlgmr.msra.gmra.mxu1 %v17291_v29  ;;  %v10933_v15 = vadd.f32 %v10932_v25, %v18346_v31  ;;  %11243 = vmatpush2.bf16.msra.mxu0 %v15928_v22  ;;  %v15954_v22 = vld [vmem:[%s17119_s11 + $0x76c] ss:$16 sps:$4 sm:$0xff]  }
 0x39a   : > { %11268 = vmatpush1.bf16.msra.mxu1 %v15931_v8  ;;  %v10934_v62 = vpop.f32.mrf.mxu0  ;;  %11244 = vmatprep.subr.bf16.mxu0 %v15936_v39  ;;  %v15957_v8 = vld [vmem:[%s17119_s11 + $0x86c] ss:$16 sps:$4 sm:$0xff]   ;;  %v15952_v39 = vld [vmem:[%s17119_s11 + $0x768] ss:$16 sps:$4 sm:$0xff]  }
 0x39b   : > { %v10975_v63 = vpop.f32.mrf.mxu1  ;;  %11269 = vmatprep.subr.bf16.mxu1 %v15939_v53  ;;  %v18420_v6 = vadd.f32 %v10973_v7, %v10933_v15  ;;  %v10935_v29 = vadd.f32 %v10934_v62, %v18352_v52  ;;  %11299 = vmatprep.mubr.bf16.mxu1 %v17320_v46  ;;  %v15948_v52 = vld [vmem:[%s17119_s11 + $0x78c] ss:$16 sps:$4 sm:$0xff]   ;;  %v15955_v53 = vld [vmem:[%s17119_s11 + $0x868] ss:$16 sps:$4 sm:$0xff]  }
 0x39c   : > { %v10936_v31 = vpop.f32.mrf.mxu0  ;;  %v15951_v46 = vld [vmem:[%s17119_s11 + $0x88c] ss:$16 sps:$4 sm:$0xff]   ;;  %v15958_v15 = vld [vmem:[%s17119_s11 + $0x748] ss:$16 sps:$4 sm:$0xff]  }
 0x39d   : > { %v10977_v4 = vpop.f32.mrf.mxu1  ;;  %v18424_v30 = vadd.f32 %v10975_v63, %v10935_v29  ;;  %11245 = vmatpush2.bf16.msra.mxu0 %v15934_v9  ;;  %v15960_v25 = vld [vmem:[%s17119_s11 + $0x74c] ss:$16 sps:$4 sm:$0xff]   ;;  %v15961_v9 = vld [vmem:[%s17119_s11 + $0x848] ss:$16 sps:$4 sm:$0xff]  }
 0x39e   : > { %11270 = vmatpush1.bf16.msra.mxu1 %v15937_v2  ;;  %v10937_v45 = vpop.f32.mrf.mxu0  ;;  %11246 = vmatprep.subr.bf16.mxu0 %v15942_v43  ;;  %v15963_v7 = vld [vmem:[%s17119_s11 + $0x84c] ss:$16 sps:$4 sm:$0xff]   ;;  %v15964_v63 = vld [vmem:[%s17119_s11 + $0x728] ss:$16 sps:$4 sm:$0xff]  }
 0x39f   : > { %v10978_v56 = vpop.f32.mrf.mxu1  ;;  %11271 = vmatprep.subr.bf16.mxu1 %v15945_v19  ;;  %v15966_v2 = vld [vmem:[%s17119_s11 + $0x72c] ss:$16 sps:$4 sm:$0xff]   ;;  %v15967_v43 = vld [vmem:[%s17119_s11 + $0x828] ss:$16 sps:$4 sm:$0xff]  }
 0x3a0   : > { %v15969_v62 = vld [vmem:[%s17119_s11 + $0x82c] ss:$16 sps:$4 sm:$0xff]   ;;  %v15970_v31 = vld [vmem:[%s17119_s11 + $0x708] ss:$16 sps:$4 sm:$0xff]  }
 0x3a1   : > { %11247 = vmatpush2.bf16.msra.mxu0 %v15940_v16  ;;  %v15972_v19 = vld [vmem:[%s17119_s11 + $0x70c] ss:$16 sps:$4 sm:$0xff]   ;;  %v15973_v4 = vld [vmem:[%s17119_s11 + $0x808] ss:$16 sps:$4 sm:$0xff]  }
 0x3a2   : > { %11272 = vmatpush1.bf16.msra.mxu1 %v15943_v35  ;;  %11248 = vmatprep.subr.bf16.mxu0 %v15948_v52  ;;  %v15975_v29 = vld [vmem:[%s17119_s11 + $0x80c] ss:$16 sps:$4 sm:$0xff]   ;;  %v15976_v45 = vld [vmem:[%s17119_s11 + $0x9e8] ss:$16 sps:$4 sm:$0xff]  }
 0x3a3   : > { %11273 = vmatprep.subr.bf16.mxu1 %v15951_v46  ;;  %v15978_v16 = vld [vmem:[%s17119_s11 + $0x9ec] ss:$16 sps:$4 sm:$0xff]   ;;  %v15979_v56 = vld [vmem:[%s17119_s11 + $0xae8] ss:$16 sps:$4 sm:$0xff]  }
 0x3a4   : > { %v15981_v35 = vld [vmem:[%s17119_s11 + $0xaec] ss:$16 sps:$4 sm:$0xff]  }
 0x3a5   : > { %11249 = vmatpush2.bf16.msra.mxu0 %v15946_v10  ;;  %v15984_v52 = vld [vmem:[%s17119_s11 + $0x9cc] ss:$16 sps:$4 sm:$0xff]   ;;  %v15982_v10 = vld [vmem:[%s17119_s11 + $0x9c8] ss:$16 sps:$4 sm:$0xff]  }
 0x3a6   : > { %11274 = vmatpush1.bf16.msra.mxu1 %v15949_v20  ;;  %11250 = vmatprep.subr.bf16.mxu0 %v15954_v22  ;;  %v15987_v46 = vld [vmem:[%s17119_s11 + $0xacc] ss:$16 sps:$4 sm:$0xff]   ;;  %v15985_v20 = vld [vmem:[%s17119_s11 + $0xac8] ss:$16 sps:$4 sm:$0xff]  }
 0x3a7   : > { %11275 = vmatprep.subr.bf16.mxu1 %v15957_v8  ;;  %v15990_v22 = vld [vmem:[%s17119_s11 + $0x9ac] ss:$16 sps:$4 sm:$0xff]  }
 0x3a8   : > { %v15993_v8 = vld [vmem:[%s17119_s11 + $0xaac] ss:$16 sps:$4 sm:$0xff]  }
 0x3a9   : > { %11251 = vmatpush2.bf16.msra.mxu0 %v15952_v39  ;;  %v15988_v39 = vld [vmem:[%s17119_s11 + $0x9a8] ss:$16 sps:$4 sm:$0xff]  }
 0x3aa   : > { %11276 = vmatpush1.bf16.msra.mxu1 %v15955_v53  ;;  %11252 = vmatprep.subr.bf16.mxu0 %v15960_v25  ;;  %v15996_v53 = vld [vmem:[%s17119_s11 + $0x98c] ss:$16 sps:$4 sm:$0xff]  }
 0x3ab   : > { %11277 = vmatprep.subr.bf16.mxu1 %v15963_v7  ;;  %v15999_v25 = vld [vmem:[%s17119_s11 + $0xa8c] ss:$16 sps:$4 sm:$0xff]   ;;  %v15994_v7 = vld [vmem:[%s17119_s11 + $0x988] ss:$16 sps:$4 sm:$0xff]  }
 0x3ad   : > { %11253 = vmatpush2.bf16.msra.mxu0 %v15958_v15  ;;  %v15997_v15 = vld [vmem:[%s17119_s11 + $0xa88] ss:$16 sps:$4 sm:$0xff]  }
 0x3ae   : > { %11278 = vmatpush1.bf16.msra.mxu1 %v15961_v9  ;;  %11254 = vmatprep.subr.bf16.mxu0 %v15966_v2  ;;  %v16005_v9 = vld [vmem:[%s17119_s11 + $0xa6c] ss:$16 sps:$4 sm:$0xff]   ;;  %v16000_v2 = vld [vmem:[%s17119_s11 + $0x968] ss:$16 sps:$4 sm:$0xff]  }
 0x3af   : > { %11279 = vmatprep.subr.bf16.mxu1 %v15969_v62  ;;  %v16003_v62 = vld [vmem:[%s17119_s11 + $0xa68] ss:$16 sps:$4 sm:$0xff]  }
 0x3b1   : > { %11255 = vmatpush2.bf16.msra.mxu0 %v15964_v63  ;;  %v16008_v63 = vld [vmem:[%s17119_s11 + $0x94c] ss:$16 sps:$4 sm:$0xff]  }
 0x3b2   : > { %11280 = vmatpush1.bf16.msra.mxu1 %v15967_v43  ;;  %11256 = vmatprep.subr.bf16.mxu0 %v15972_v19  ;;  %v16011_v43 = vld [vmem:[%s17119_s11 + $0xa4c] ss:$16 sps:$4 sm:$0xff]   ;;  %v16006_v19 = vld [vmem:[%s17119_s11 + $0x948] ss:$16 sps:$4 sm:$0xff]  }
 0x3b3   : > { %11281 = vmatprep.subr.bf16.mxu1 %v15975_v29  ;;  %v16009_v29 = vld [vmem:[%s17119_s11 + $0xa48] ss:$16 sps:$4 sm:$0xff]  }
 0x3b5   : > { %11257 = vmatpush2.bf16.msra.mxu0 %v15970_v31  ;;  %v16014_v31 = vld [vmem:[%s17119_s11 + $0x92c] ss:$16 sps:$4 sm:$0xff]  }
 0x3b6   : > { %11282 = vmatpush1.bf16.msra.mxu1 %v15973_v4  ;;  %11308 = vmatprep.subr.bf16.mxu0 %v15981_v35  ;;  %v16017_v4 = vld [vmem:[%s17119_s11 + $0xa2c] ss:$16 sps:$4 sm:$0xff]   ;;  %v16015_v35 = vld [vmem:[%s17119_s11 + $0xa28] ss:$16 sps:$4 sm:$0xff]  }
 0x3b7   : > { %11283 = vmatprep.subr.bf16.mxu1 %v15978_v16  ;;  %v16012_v16 = vld [vmem:[%s17119_s11 + $0x928] ss:$16 sps:$4 sm:$0xff]  }
 0x3b8   : > { %11259 = vmatmul.mubr.bf16.vlgmr.msra.gmra.mxu0 %v17298_v33  ;;  %v15991_v33 = vld [vmem:[%s17119_s11 + $0xaa8] ss:$16 sps:$4 sm:$0xff]  }
 0x3b9   : > { %11309 = vmatpush1.bf16.msra.mxu0 %v15979_v56  ;;  %11340 = vmatprep.mubr.bf16.mxu0 %v17325_v47  ;;  %v16002_v47 = vld [vmem:[%s17119_s11 + $0x96c] ss:$16 sps:$4 sm:$0xff]  }
 0x3ba   : > { %11284 = vmatpush2.bf16.msra.mxu1 %v15976_v45  ;;  %11310 = vmatprep.subr.bf16.mxu0 %v15987_v46  ;;  %v16020_v45 = vld [vmem:[%s17119_s11 + $0x90c] ss:$16 sps:$4 sm:$0xff]   ;;  %v16021_v46 = vld [vmem:[%s17119_s11 + $0xa08] ss:$16 sps:$4 sm:$0xff]  }
 0x3bb   : > { %11285 = vmatprep.subr.bf16.mxu1 %v15984_v52  ;;  %v16023_v56 = vld [vmem:[%s17119_s11 + $0xa0c] ss:$16 sps:$4 sm:$0xff]   ;;  %v16018_v52 = vld [vmem:[%s17119_s11 + $0x908] ss:$16 sps:$4 sm:$0xff]  }
 0x3bd   : > { %11311 = vmatpush1.bf16.msra.mxu0 %v15985_v20  ;;  %v16029_v20 = vld [vmem:[%s17119_s11 + $0xcec] ss:$16 sps:$4 sm:$0xff]  }
 0x3be   : > { %11286 = vmatpush2.bf16.msra.mxu1 %v15982_v10  ;;  %11312 = vmatprep.subr.bf16.mxu0 %v15993_v8  ;;  %v16026_v10 = vld [vmem:[%s17119_s11 + $0xbec] ss:$16 sps:$4 sm:$0xff]   ;;  %v16027_v8 = vld [vmem:[%s17119_s11 + $0xce8] ss:$16 sps:$4 sm:$0xff]  }
 0x3bf   : > { %11287 = vmatprep.subr.bf16.mxu1 %v15990_v22  ;;  %v16024_v22 = vld [vmem:[%s17119_s11 + $0xbe8] ss:$16 sps:$4 sm:$0xff]  }
 0x3c1   : > { %11313 = vmatpush1.bf16.msra.mxu0 %v15991_v33  ;;  %v16035_v33 = vld [vmem:[%s17119_s11 + $0xccc] ss:$16 sps:$4 sm:$0xff]  }
 0x3c2   : > { %11288 = vmatpush2.bf16.msra.mxu1 %v15988_v39  ;;  %11314 = vmatprep.subr.bf16.mxu0 %v15999_v25  ;;  %v16032_v39 = vld [vmem:[%s17119_s11 + $0xbcc] ss:$16 sps:$4 sm:$0xff]  }
 0x3c3   : > { %11289 = vmatprep.subr.bf16.mxu1 %v15996_v53 }
 0x3c5   : > { %11315 = vmatpush1.bf16.msra.mxu0 %v15997_v15  ;;  %v16030_v15 = vld [vmem:[%s17119_s11 + $0xbc8] ss:$16 sps:$4 sm:$0xff]  }
 0x3c6   : > { %11290 = vmatpush2.bf16.msra.mxu1 %v15994_v7  ;;  %11316 = vmatprep.subr.bf16.mxu0 %v16005_v9 }
 0x3c7   : > { %11291 = vmatprep.subr.bf16.mxu1 %v16002_v47  ;;  %v16033_v47 = vld [vmem:[%s17119_s11 + $0xcc8] ss:$16 sps:$4 sm:$0xff]  }
 0x3c9   : > { %11317 = vmatpush1.bf16.msra.mxu0 %v16003_v62  ;;  %v16038_v62 = vld [vmem:[%s17119_s11 + $0xbac] ss:$16 sps:$4 sm:$0xff]  }
 0x3ca   : > { %11292 = vmatpush2.bf16.msra.mxu1 %v16000_v2  ;;  %11318 = vmatprep.subr.bf16.mxu0 %v16011_v43 }
 0x3cb   : > { %11293 = vmatprep.subr.bf16.mxu1 %v16008_v63  ;;  %v16041_v63 = vld [vmem:[%s17119_s11 + $0xcac] ss:$16 sps:$4 sm:$0xff]  }
 0x3cd   : > { %11319 = vmatpush1.bf16.msra.mxu0 %v16009_v29 }
 0x3ce   : > { %11294 = vmatpush2.bf16.msra.mxu1 %v16006_v19  ;;  %11320 = vmatprep.subr.bf16.mxu0 %v16017_v4  ;;  %v16039_v4 = vld [vmem:[%s17119_s11 + $0xca8] ss:$16 sps:$4 sm:$0xff]  }
 0x3cf   : > { %11295 = vmatprep.subr.bf16.mxu1 %v16014_v31  ;;  %v16036_v31 = vld [vmem:[%s17119_s11 + $0xba8] ss:$16 sps:$4 sm:$0xff]  }
 0x3d1   : > { %11321 = vmatpush1.bf16.msra.mxu0 %v16015_v35 }
 0x3d2   : > { %11296 = vmatpush2.bf16.msra.mxu1 %v16012_v16  ;;  %11322 = vmatprep.subr.bf16.mxu0 %v16023_v56  ;;  %v16045_v56 = vld [vmem:[%s17119_s11 + $0xc88] ss:$16 sps:$4 sm:$0xff]  }
 0x3d3   : > { %11297 = vmatprep.subr.bf16.mxu1 %v16020_v45  ;;  %v16042_v45 = vld [vmem:[%s17119_s11 + $0xb88] ss:$16 sps:$4 sm:$0xff]  }
 0x3d5   : > { %11323 = vmatpush1.bf16.msra.mxu0 %v16021_v46  ;;  %v16053_v46 = vld [vmem:[%s17119_s11 + $0xc6c] ss:$16 sps:$4 sm:$0xff]  }
 0x3d6   : > { %11298 = vmatpush2.bf16.msra.mxu1 %v16018_v52  ;;  %11324 = vmatprep.subr.bf16.mxu0 %v16026_v10  ;;  %v16050_v52 = vld [vmem:[%s17119_s11 + $0xb6c] ss:$16 sps:$4 sm:$0xff]   ;;  %v16048_v10 = vld [vmem:[%s17119_s11 + $0xb68] ss:$16 sps:$4 sm:$0xff]  }
 0x3d7   : > { %11349 = vmatprep.subr.bf16.mxu1 %v16029_v20  ;;  %v16051_v20 = vld [vmem:[%s17119_s11 + $0xc68] ss:$16 sps:$4 sm:$0xff]  }
 0x3d8   : > { %v11014_v53 = vpop.f32.mrf.mxu0 }
 0x3d9   : > { %v11055_v25 = vpop.f32.mrf.mxu1  ;;  %11300 = vmatmul.mubr.bf16.vlgmr.msra.gmra.mxu1 %v17389_v54  ;;  %v11015_v7 = vadd.f32 %v11014_v53, %v18420_v6  ;;  %11325 = vmatpush2.bf16.msra.mxu0 %v16024_v22  ;;  %v16056_v22 = vld [vmem:[%s17119_s11 + $0xb4c] ss:$16 sps:$4 sm:$0xff]  }
 0x3da   : > { %11350 = vmatpush1.bf16.msra.mxu1 %v16027_v8  ;;  %v11016_v9 = vpop.f32.mrf.mxu0  ;;  %11326 = vmatprep.subr.bf16.mxu0 %v16032_v39  ;;  %v16059_v8 = vld [vmem:[%s17119_s11 + $0xc4c] ss:$16 sps:$4 sm:$0xff]   ;;  %v16054_v39 = vld [vmem:[%s17119_s11 + $0xb48] ss:$16 sps:$4 sm:$0xff]  }
 0x3db   : > { %v11057_v2 = vpop.f32.mrf.mxu1  ;;  %11351 = vmatprep.subr.bf16.mxu1 %v16035_v33  ;;  %v18494_v43 = vadd.f32 %v11055_v25, %v11015_v7  ;;  %v11017_v54 = vadd.f32 %v11016_v9, %v18424_v30  ;;  %11381 = vmatprep.mubr.bf16.mxu1 %v17396_v59  ;;  %v16044_v30 = vld [vmem:[%s17119_s11 + $0xb8c] ss:$16 sps:$4 sm:$0xff]   ;;  %v16057_v33 = vld [vmem:[%s17119_s11 + $0xc48] ss:$16 sps:$4 sm:$0xff]  }
 0x3dc   : > { %v11018_v6 = vpop.f32.mrf.mxu0  ;;  %v16047_v59 = vld [vmem:[%s17119_s11 + $0xc8c] ss:$16 sps:$4 sm:$0xff]   ;;  %v16060_v7 = vld [vmem:[%s17119_s11 + $0xb28] ss:$16 sps:$4 sm:$0xff]  }
 0x3dd   : > { %v11059_v19 = vpop.f32.mrf.mxu1  ;;  %v18498_v29 = vadd.f32 %v11057_v2, %v11017_v54  ;;  %11327 = vmatpush2.bf16.msra.mxu0 %v16030_v15  ;;  %v16062_v53 = vld [vmem:[%s17119_s11 + $0xb2c] ss:$16 sps:$4 sm:$0xff]   ;;  %v16063_v15 = vld [vmem:[%s17119_s11 + $0xc28] ss:$16 sps:$4 sm:$0xff]  }
 0x3de   : > { %11352 = vmatpush1.bf16.msra.mxu1 %v16033_v47  ;;  %v11019_v16 = vpop.f32.mrf.mxu0  ;;  %11328 = vmatprep.subr.bf16.mxu0 %v16038_v62  ;;  %v16065_v25 = vld [vmem:[%s17119_s11 + $0xc2c] ss:$16 sps:$4 sm:$0xff]   ;;  %v16066_v2 = vld [vmem:[%s17119_s11 + $0xb08] ss:$16 sps:$4 sm:$0xff]  }
 0x3df   : > { %v11060_v35 = vpop.f32.mrf.mxu1  ;;  %11353 = vmatprep.subr.bf16.mxu1 %v16041_v63  ;;  %v16068_v47 = vld [vmem:[%s17119_s11 + $0xb0c] ss:$16 sps:$4 sm:$0xff]   ;;  %v16069_v62 = vld [vmem:[%s17119_s11 + $0xc08] ss:$16 sps:$4 sm:$0xff]  }
 0x3e0   : > { %v16071_v9 = vld [vmem:[%s17119_s11 + $0xc0c] ss:$16 sps:$4 sm:$0xff]   ;;  %v16072_v6 = vld [vmem:[%s17119_s11 + $0xde8] ss:$16 sps:$4 sm:$0xff]  }
 0x3e1   : > { %11329 = vmatpush2.bf16.msra.mxu0 %v16036_v31  ;;  %v16074_v63 = vld [vmem:[%s17119_s11 + $0xdec] ss:$16 sps:$4 sm:$0xff]   ;;  %v16075_v19 = vld [vmem:[%s17119_s11 + $0xee8] ss:$16 sps:$4 sm:$0xff]  }
 0x3e2   : > { %11354 = vmatpush1.bf16.msra.mxu1 %v16039_v4  ;;  %11330 = vmatprep.subr.bf16.mxu0 %v16044_v30  ;;  %v16077_v54 = vld [vmem:[%s17119_s11 + $0xeec] ss:$16 sps:$4 sm:$0xff]   ;;  %v16078_v30 = vld [vmem:[%s17119_s11 + $0xdc8] ss:$16 sps:$4 sm:$0xff]  }
 0x3e3   : > { %11355 = vmatprep.subr.bf16.mxu1 %v16047_v59  ;;  %v16080_v31 = vld [vmem:[%s17119_s11 + $0xdcc] ss:$16 sps:$4 sm:$0xff]   ;;  %v16081_v59 = vld [vmem:[%s17119_s11 + $0xec8] ss:$16 sps:$4 sm:$0xff]  }
 0x3e4   : > { %v16083_v4 = vld [vmem:[%s17119_s11 + $0xecc] ss:$16 sps:$4 sm:$0xff]  }
 0x3e5   : > { %11331 = vmatpush2.bf16.msra.mxu0 %v16042_v45 }
 0x3e6   : > { %11356 = vmatpush1.bf16.msra.mxu1 %v16045_v56  ;;  %11332 = vmatprep.subr.bf16.mxu0 %v16050_v52  ;;  %v16086_v56 = vld [vmem:[%s17119_s11 + $0xdac] ss:$16 sps:$4 sm:$0xff]  }
 0x3e7   : > { %11357 = vmatprep.subr.bf16.mxu1 %v16053_v46  ;;  %v16089_v52 = vld [vmem:[%s17119_s11 + $0xeac] ss:$16 sps:$4 sm:$0xff]  }
 0x3e9   : > { %11333 = vmatpush2.bf16.msra.mxu0 %v16048_v10  ;;  %v16084_v10 = vld [vmem:[%s17119_s11 + $0xda8] ss:$16 sps:$4 sm:$0xff]  }
 0x3ea   : > { %11358 = vmatpush1.bf16.msra.mxu1 %v16051_v20  ;;  %11334 = vmatprep.subr.bf16.mxu0 %v16056_v22  ;;  %v16087_v20 = vld [vmem:[%s17119_s11 + $0xea8] ss:$16 sps:$4 sm:$0xff]  }
 0x3eb   : > { %11359 = vmatprep.subr.bf16.mxu1 %v16059_v8  ;;  %v16095_v8 = vld [vmem:[%s17119_s11 + $0xe8c] ss:$16 sps:$4 sm:$0xff]  }
 0x3ed   : > { %11335 = vmatpush2.bf16.msra.mxu0 %v16054_v39  ;;  %v16093_v39 = vld [vmem:[%s17119_s11 + $0xe88] ss:$16 sps:$4 sm:$0xff]  }
 0x3ee   : > { %11360 = vmatpush1.bf16.msra.mxu1 %v16057_v33  ;;  %11336 = vmatprep.subr.bf16.mxu0 %v16062_v53  ;;  %v16098_v33 = vld [vmem:[%s17119_s11 + $0xd6c] ss:$16 sps:$4 sm:$0xff]  }
 0x3ef   : > { %11361 = vmatprep.subr.bf16.mxu1 %v16065_v25  ;;  %v16101_v53 = vld [vmem:[%s17119_s11 + $0xe6c] ss:$16 sps:$4 sm:$0xff]   ;;  %v16096_v25 = vld [vmem:[%s17119_s11 + $0xd68] ss:$16 sps:$4 sm:$0xff]  }
 0x3f1   : > { %11337 = vmatpush2.bf16.msra.mxu0 %v16060_v7  ;;  %v16099_v7 = vld [vmem:[%s17119_s11 + $0xe68] ss:$16 sps:$4 sm:$0xff]  }
 0x3f2   : > { %11362 = vmatpush1.bf16.msra.mxu1 %v16063_v15  ;;  %11338 = vmatprep.subr.bf16.mxu0 %v16068_v47  ;;  %v16104_v15 = vld [vmem:[%s17119_s11 + $0xd4c] ss:$16 sps:$4 sm:$0xff]  }
 0x3f3   : > { %11363 = vmatprep.subr.bf16.mxu1 %v16071_v9  ;;  %v16107_v47 = vld [vmem:[%s17119_s11 + $0xe4c] ss:$16 sps:$4 sm:$0xff]   ;;  %v16102_v9 = vld [vmem:[%s17119_s11 + $0xd48] ss:$16 sps:$4 sm:$0xff]  }
 0x3f5   : > { %11339 = vmatpush2.bf16.msra.mxu0 %v16066_v2  ;;  %v16105_v2 = vld [vmem:[%s17119_s11 + $0xe48] ss:$16 sps:$4 sm:$0xff]  }
 0x3f6   : > { %11364 = vmatpush1.bf16.msra.mxu1 %v16069_v62  ;;  %11390 = vmatprep.subr.bf16.mxu0 %v16077_v54  ;;  %v16110_v62 = vld [vmem:[%s17119_s11 + $0xd2c] ss:$16 sps:$4 sm:$0xff]   ;;  %v16108_v54 = vld [vmem:[%s17119_s11 + $0xd28] ss:$16 sps:$4 sm:$0xff]  }
 0x3f7   : > { %11365 = vmatprep.subr.bf16.mxu1 %v16074_v63  ;;  %v16113_v63 = vld [vmem:[%s17119_s11 + $0xe2c] ss:$16 sps:$4 sm:$0xff]  }
 0x3f8   : > { %v11096_v16 = vpop.f32.mrf.mxu0  ;;  %11341 = vmatmul.mubr.bf16.vlgmr.msra.gmra.mxu0 %v17400_v60 }
 0x3f9   : > { %v18530_v35 = vadd.f32 %v11096_v16, %v18494_v43  ;;  %11391 = vmatpush1.bf16.msra.mxu0 %v16075_v19  ;;  %11422 = vmatprep.mubr.bf16.mxu0 %v17408_v1  ;;  %v16090_v1 = vld [vmem:[%s17119_s11 + $0xd88] ss:$16 sps:$4 sm:$0xff]   ;;  %v16116_v19 = vld [vmem:[%s17119_s11 + $0xd0c] ss:$16 sps:$4 sm:$0xff]  }
 0x3fa   : > { %11366 = vmatpush2.bf16.msra.mxu1 %v16072_v6  ;;  %v11098_v45 = vpop.f32.mrf.mxu0  ;;  %11392 = vmatprep.subr.bf16.mxu0 %v16083_v4  ;;  %v16111_v6 = vld [vmem:[%s17119_s11 + $0xe28] ss:$16 sps:$4 sm:$0xff]  }
 0x3fb   : > { %11367 = vmatprep.subr.bf16.mxu1 %v16080_v31  ;;  %v18537_v46 = vadd.f32 %v11098_v45, %v18498_v29  ;;  %v16092_v29 = vld [vmem:[%s17119_s11 + $0xd8c] ss:$16 sps:$4 sm:$0xff]   ;;  %v16114_v4 = vld [vmem:[%s17119_s11 + $0xd08] ss:$16 sps:$4 sm:$0xff]  }
 0x3fc   : > { %v11100_v60 = vpop.f32.mrf.mxu0  ;;  %v16119_v31 = vld [vmem:[%s17119_s11 + $0xe0c] ss:$16 sps:$4 sm:$0xff]   ;;  %v16117_v16 = vld [vmem:[%s17119_s11 + $0xe08] ss:$16 sps:$4 sm:$0xff]  }
 0x3fd   : > { %v12132_v43 = vcombine.low %v18530_v35, %v18537_v46  ;;  %11393 = vmatpush1.bf16.msra.mxu0 %v16081_v59  ;;  %v16125_v59 = vld [vmem:[%s17119_s11 + $0x10ec] ss:$16 sps:$4 sm:$0xff]   ;;  %v16120_v45 = vld [vmem:[%s17119_s11 + $0xfe8] ss:$16 sps:$4 sm:$0xff]  }
 0x3fe   : > { %11368 = vmatpush2.bf16.msra.mxu1 %v16078_v30  ;;  %v11101_v22 = vpop.f32.mrf.mxu0  ;;  %11394 = vmatprep.subr.bf16.mxu0 %v16089_v52  ;;  %v16122_v30 = vld [vmem:[%s17119_s11 + $0xfec] ss:$16 sps:$4 sm:$0xff]  }
 0x3ff   : > { %11369 = vmatprep.subr.bf16.mxu1 %v16086_v56  ;;  %v16123_v56 = vld [vmem:[%s17119_s11 + $0x10e8] ss:$16 sps:$4 sm:$0xff]   ;;  %v16128_v52 = vld [vmem:[%s17119_s11 + $0xfcc] ss:$16 sps:$4 sm:$0xff]  }
 0x400   : > { %v16131_v60 = vld [vmem:[%s17119_s11 + $0x10cc] ss:$16 sps:$4 sm:$0xff]   ;;  %v16129_v22 = vld [vmem:[%s17119_s11 + $0x10c8] ss:$16 sps:$4 sm:$0xff]  }
 0x401   : > { %11395 = vmatpush1.bf16.msra.mxu0 %v16087_v20  ;;  %v16126_v20 = vld [vmem:[%s17119_s11 + $0xfc8] ss:$16 sps:$4 sm:$0xff]  }
 0x402   : > { %11370 = vmatpush2.bf16.msra.mxu1 %v16084_v10  ;;  %11396 = vmatprep.subr.bf16.mxu0 %v16095_v8  ;;  %v16134_v8 = vld [vmem:[%s17119_s11 + $0xfac] ss:$16 sps:$4 sm:$0xff]  }
 0x403   : > { %11371 = vmatprep.subr.bf16.mxu1 %v16092_v29 }
 0x405   : > { %11397 = vmatpush1.bf16.msra.mxu0 %v16093_v39 }
 0x406   : > { %11372 = vmatpush2.bf16.msra.mxu1 %v16090_v1  ;;  %11398 = vmatprep.subr.bf16.mxu0 %v16101_v53  ;;  %v16137_v1 = vld [vmem:[%s17119_s11 + $0x10ac] ss:$16 sps:$4 sm:$0xff]  }
 0x407   : > { %11373 = vmatprep.subr.bf16.mxu1 %v16098_v33  ;;  %v16135_v33 = vld [vmem:[%s17119_s11 + $0x10a8] ss:$16 sps:$4 sm:$0xff]  }
 0x409   : > { %11399 = vmatpush1.bf16.msra.mxu0 %v16099_v7  ;;  %v16143_v7 = vld [vmem:[%s17119_s11 + $0x108c] ss:$16 sps:$4 sm:$0xff]  }
 0x40a   : > { %11374 = vmatpush2.bf16.msra.mxu1 %v16096_v25  ;;  %11400 = vmatprep.subr.bf16.mxu0 %v16107_v47  ;;  %v16140_v25 = vld [vmem:[%s17119_s11 + $0xf8c] ss:$16 sps:$4 sm:$0xff]  }
 0x40b   : > { %11375 = vmatprep.subr.bf16.mxu1 %v16104_v15  ;;  %v16138_v15 = vld [vmem:[%s17119_s11 + $0xf88] ss:$16 sps:$4 sm:$0xff]   ;;  %v16146_v47 = vld [vmem:[%s17119_s11 + $0xf6c] ss:$16 sps:$4 sm:$0xff]  }
 0x40d   : > { %11401 = vmatpush1.bf16.msra.mxu0 %v16105_v2  ;;  %v16144_v2 = vld [vmem:[%s17119_s11 + $0xf68] ss:$16 sps:$4 sm:$0xff]  }
 0x40e   : > { %11376 = vmatpush2.bf16.msra.mxu1 %v16102_v9  ;;  %11402 = vmatprep.subr.bf16.mxu0 %v16113_v63  ;;  %v16149_v9 = vld [vmem:[%s17119_s11 + $0x106c] ss:$16 sps:$4 sm:$0xff]  }
 0x40f   : > { %11377 = vmatprep.subr.bf16.mxu1 %v16110_v62  ;;  %v16147_v62 = vld [vmem:[%s17119_s11 + $0x1068] ss:$16 sps:$4 sm:$0xff]   ;;  %v16152_v63 = vld [vmem:[%s17119_s11 + $0xf4c] ss:$16 sps:$4 sm:$0xff]  }
 0x411   : > { %11403 = vmatpush1.bf16.msra.mxu0 %v16111_v6  ;;  %v16150_v6 = vld [vmem:[%s17119_s11 + $0xf48] ss:$16 sps:$4 sm:$0xff]  }
 0x412   : > { %11378 = vmatpush2.bf16.msra.mxu1 %v16108_v54  ;;  %11404 = vmatprep.subr.bf16.mxu0 %v16119_v31  ;;  %v16155_v54 = vld [vmem:[%s17119_s11 + $0x104c] ss:$16 sps:$4 sm:$0xff]  }
 0x413   : > { %11379 = vmatprep.subr.bf16.mxu1 %v16116_v19  ;;  %v16153_v19 = vld [vmem:[%s17119_s11 + $0x1048] ss:$16 sps:$4 sm:$0xff]   ;;  %v16158_v31 = vld [vmem:[%s17119_s11 + $0xf2c] ss:$16 sps:$4 sm:$0xff]  }
 0x415   : > { %11405 = vmatpush1.bf16.msra.mxu0 %v16117_v16  ;;  %v16156_v16 = vld [vmem:[%s17119_s11 + $0xf28] ss:$16 sps:$4 sm:$0xff]  }
 0x416   : > { %11380 = vmatpush2.bf16.msra.mxu1 %v16114_v4  ;;  %11406 = vmatprep.subr.bf16.mxu0 %v16122_v30  ;;  %v16161_v4 = vld [vmem:[%s17119_s11 + $0x102c] ss:$16 sps:$4 sm:$0xff]   ;;  %v16159_v30 = vld [vmem:[%s17119_s11 + $0x1028] ss:$16 sps:$4 sm:$0xff]  }
 0x417   : > { %11431 = vmatprep.subr.bf16.mxu1 %v16125_v59  ;;  %v16164_v59 = vld [vmem:[%s17119_s11 + $0xf0c] ss:$16 sps:$4 sm:$0xff]  }
 0x419   : > { %v18570_v10 = vpop.f32.mrf.mxu1  ;;  %11382 = vmatmul.mubr.bf16.vlgmr.msra.gmra.mxu1 %v17482_v21  ;;  %11407 = vmatpush2.bf16.msra.mxu0 %v16120_v45  ;;  %v16132_v21 = vld [vmem:[%s17119_s11 + $0xfa8] ss:$16 sps:$4 sm:$0xff]   ;;  %v16167_v45 = vld [vmem:[%s17119_s11 + $0x100c] ss:$16 sps:$4 sm:$0xff]  }
 0x41a   : > { %11432 = vmatpush1.bf16.msra.mxu1 %v16123_v56  ;;  %11408 = vmatprep.subr.bf16.mxu0 %v16128_v52  ;;  %v16162_v56 = vld [vmem:[%s17119_s11 + $0xf08] ss:$16 sps:$4 sm:$0xff]  }
 0x41b   : > { %v18575_v29 = vpop.f32.mrf.mxu1  ;;  %11433 = vmatprep.subr.bf16.mxu1 %v16131_v60  ;;  %11463 = vmatprep.mubr.bf16.mxu1 %v17488_v26  ;;  %v16141_v26 = vld [vmem:[%s17119_s11 + $0x1088] ss:$16 sps:$4 sm:$0xff]   ;;  %v16170_v60 = vld [vmem:[%s17119_s11 + $0x11ec] ss:$16 sps:$4 sm:$0xff]  }
 0x41c   : > { %v16165_v52 = vld [vmem:[%s17119_s11 + $0x1008] ss:$16 sps:$4 sm:$0xff]  }
 0x41d   : > { %v11141_v39 = vpop.f32.mrf.mxu1  ;;  %11409 = vmatpush2.bf16.msra.mxu0 %v16126_v20  ;;  %v16173_v20 = vld [vmem:[%s17119_s11 + $0x12ec] ss:$16 sps:$4 sm:$0xff]  }
 0x41e   : > { %11434 = vmatpush1.bf16.msra.mxu1 %v16129_v22  ;;  %11410 = vmatprep.subr.bf16.mxu0 %v16134_v8  ;;  %v16168_v22 = vld [vmem:[%s17119_s11 + $0x11e8] ss:$16 sps:$4 sm:$0xff]   ;;  %v16179_v39 = vld [vmem:[%s17119_s11 + $0x12cc] ss:$16 sps:$4 sm:$0xff]  }
 0x41f   : > { %v11142_v53 = vpop.f32.mrf.mxu1  ;;  %11435 = vmatprep.subr.bf16.mxu1 %v16137_v1  ;;  %v16171_v8 = vld [vmem:[%s17119_s11 + $0x12e8] ss:$16 sps:$4 sm:$0xff]   ;;  %v16176_v1 = vld [vmem:[%s17119_s11 + $0x11cc] ss:$16 sps:$4 sm:$0xff]  }
 0x420   : > { %v16174_v53 = vld [vmem:[%s17119_s11 + $0x11c8] ss:$16 sps:$4 sm:$0xff]  }
 0x421   : > { %11411 = vmatpush2.bf16.msra.mxu0 %v16132_v21 }
 0x422   : > { %11436 = vmatpush1.bf16.msra.mxu1 %v16135_v33  ;;  %11412 = vmatprep.subr.bf16.mxu0 %v16140_v25  ;;  %v16177_v25 = vld [vmem:[%s17119_s11 + $0x12c8] ss:$16 sps:$4 sm:$0xff]  }
 0x423   : > { %11437 = vmatprep.subr.bf16.mxu1 %v16143_v7 }
 0x425   : > { %11413 = vmatpush2.bf16.msra.mxu0 %v16138_v15  ;;  %v16182_v15 = vld [vmem:[%s17119_s11 + $0x11ac] ss:$16 sps:$4 sm:$0xff]  }
 0x426   : > { %11438 = vmatpush1.bf16.msra.mxu1 %v16141_v26  ;;  %11414 = vmatprep.subr.bf16.mxu0 %v16146_v47  ;;  %v16185_v26 = vld [vmem:[%s17119_s11 + $0x12ac] ss:$16 sps:$4 sm:$0xff]   ;;  %v16180_v47 = vld [vmem:[%s17119_s11 + $0x11a8] ss:$16 sps:$4 sm:$0xff]  }
 0x427   : > { %11439 = vmatprep.subr.bf16.mxu1 %v16149_v9  ;;  %v16183_v9 = vld [vmem:[%s17119_s11 + $0x12a8] ss:$16 sps:$4 sm:$0xff]  }
 0x429   : > { %11415 = vmatpush2.bf16.msra.mxu0 %v16144_v2 }
 0x42a   : > { %11440 = vmatpush1.bf16.msra.mxu1 %v16147_v62  ;;  %11416 = vmatprep.subr.bf16.mxu0 %v16152_v63  ;;  %v16188_v62 = vld [vmem:[%s17119_s11 + $0x118c] ss:$16 sps:$4 sm:$0xff]  }
 0x42b   : > { %11441 = vmatprep.subr.bf16.mxu1 %v16155_v54  ;;  %v16191_v63 = vld [vmem:[%s17119_s11 + $0x128c] ss:$16 sps:$4 sm:$0xff]  }
 0x42c   : > { %v16194_v54 = vld [vmem:[%s17119_s11 + $0x116c] ss:$16 sps:$4 sm:$0xff]  }
 0x42d   : > { %11417 = vmatpush2.bf16.msra.mxu0 %v16150_v6  ;;  %v16197_v6 = vld [vmem:[%s17119_s11 + $0x126c] ss:$16 sps:$4 sm:$0xff]  }
 0x42e   : > { %11442 = vmatpush1.bf16.msra.mxu1 %v16153_v19  ;;  %11418 = vmatprep.subr.bf16.mxu0 %v16158_v31  ;;  %v16192_v19 = vld [vmem:[%s17119_s11 + $0x1168] ss:$16 sps:$4 sm:$0xff]  }
 0x42f   : > { %11443 = vmatprep.subr.bf16.mxu1 %v16161_v4  ;;  %v16195_v31 = vld [vmem:[%s17119_s11 + $0x1268] ss:$16 sps:$4 sm:$0xff]   ;;  %v16200_v4 = vld [vmem:[%s17119_s11 + $0x114c] ss:$16 sps:$4 sm:$0xff]  }
 0x431   : > { %11419 = vmatpush2.bf16.msra.mxu0 %v16156_v16  ;;  %v16203_v16 = vld [vmem:[%s17119_s11 + $0x124c] ss:$16 sps:$4 sm:$0xff]  }
 0x432   : > { %11444 = vmatpush1.bf16.msra.mxu1 %v16159_v30  ;;  %11420 = vmatprep.subr.bf16.mxu0 %v16164_v59  ;;  %v16198_v30 = vld [vmem:[%s17119_s11 + $0x1148] ss:$16 sps:$4 sm:$0xff]  }
 0x433   : > { %11445 = vmatprep.subr.bf16.mxu1 %v16167_v45  ;;  %v16201_v59 = vld [vmem:[%s17119_s11 + $0x1248] ss:$16 sps:$4 sm:$0xff]   ;;  %v16206_v45 = vld [vmem:[%s17119_s11 + $0x112c] ss:$16 sps:$4 sm:$0xff]  }
 0x435   : > { %11421 = vmatpush2.bf16.msra.mxu0 %v16162_v56  ;;  %v16209_v56 = vld [vmem:[%s17119_s11 + $0x122c] ss:$16 sps:$4 sm:$0xff]  }
 0x436   : > { %11446 = vmatpush1.bf16.msra.mxu1 %v16165_v52  ;;  %11472 = vmatprep.subr.bf16.mxu0 %v16173_v20  ;;  %v16204_v52 = vld [vmem:[%s17119_s11 + $0x1128] ss:$16 sps:$4 sm:$0xff]   ;;  %v16212_v20 = vld [vmem:[%s17119_s11 + $0x110c] ss:$16 sps:$4 sm:$0xff]  }
 0x437   : > { %11447 = vmatprep.subr.bf16.mxu1 %v16170_v60  ;;  %v16207_v60 = vld [vmem:[%s17119_s11 + $0x1228] ss:$16 sps:$4 sm:$0xff]  }
 0x438   : > { %v11178_v21 = vpop.f32.mrf.mxu0  ;;  %11423 = vmatmul.mubr.bf16.vlgmr.msra.gmra.mxu0 %v17492_v27 }
 0x439   : > { %v18610_v33 = vadd.f32 %v11178_v21, %v18570_v10  ;;  %11473 = vmatpush1.bf16.msra.mxu0 %v16171_v8  ;;  %11504 = vmatprep.mubr.bf16.mxu0 %v17500_v32  ;;  %v16189_v32 = vld [vmem:[%s17119_s11 + $0x1288] ss:$16 sps:$4 sm:$0xff]   ;;  %v16221_v21 = vld [vmem:[%s17119_s11 + $0x14ec] ss:$16 sps:$4 sm:$0xff]  }
 0x43a   : > { %11448 = vmatpush2.bf16.msra.mxu1 %v16168_v22  ;;  %v11180_v7 = vpop.f32.mrf.mxu0  ;;  %11474 = vmatprep.subr.bf16.mxu0 %v16179_v39  ;;  %v16215_v22 = vld [vmem:[%s17119_s11 + $0x120c] ss:$16 sps:$4 sm:$0xff]   ;;  %v16210_v8 = vld [vmem:[%s17119_s11 + $0x1108] ss:$16 sps:$4 sm:$0xff]  }
 0x43b   : > { %11449 = vmatprep.subr.bf16.mxu1 %v16176_v1  ;;  %v18617_v27 = vadd.f32 %v11180_v7, %v18575_v29  ;;  %v16186_v29 = vld [vmem:[%s17119_s11 + $0x1188] ss:$16 sps:$4 sm:$0xff]   ;;  %v16218_v39 = vld [vmem:[%s17119_s11 + $0x13ec] ss:$16 sps:$4 sm:$0xff]  }
 0x43c   : > { %v11182_v10 = vpop.f32.mrf.mxu0  ;;  %v16213_v1 = vld [vmem:[%s17119_s11 + $0x1208] ss:$16 sps:$4 sm:$0xff]   ;;  %v16224_v7 = vld [vmem:[%s17119_s11 + $0x13cc] ss:$16 sps:$4 sm:$0xff]  }
 0x43d   : > { %11475 = vmatpush1.bf16.msra.mxu0 %v16177_v25  ;;  %v16219_v25 = vld [vmem:[%s17119_s11 + $0x14e8] ss:$16 sps:$4 sm:$0xff]  }
 0x43e   : > { %11450 = vmatpush2.bf16.msra.mxu1 %v16174_v53  ;;  %v11183_v2 = vpop.f32.mrf.mxu0  ;;  %11476 = vmatprep.subr.bf16.mxu0 %v16185_v26  ;;  %v16216_v53 = vld [vmem:[%s17119_s11 + $0x13e8] ss:$16 sps:$4 sm:$0xff]  }
 0x43f   : > { %11451 = vmatprep.subr.bf16.mxu1 %v16182_v15  ;;  %v16227_v15 = vld [vmem:[%s17119_s11 + $0x14cc] ss:$16 sps:$4 sm:$0xff]  }
 0x441   : > { %11477 = vmatpush1.bf16.msra.mxu0 %v16183_v9  ;;  %v16225_v9 = vld [vmem:[%s17119_s11 + $0x14c8] ss:$16 sps:$4 sm:$0xff]  }
 0x442   : > { %11452 = vmatpush2.bf16.msra.mxu1 %v16180_v47  ;;  %11478 = vmatprep.subr.bf16.mxu0 %v16191_v63  ;;  %v16222_v47 = vld [vmem:[%s17119_s11 + $0x13c8] ss:$16 sps:$4 sm:$0xff]   ;;  %v16233_v63 = vld [vmem:[%s17119_s11 + $0x14ac] ss:$16 sps:$4 sm:$0xff]  }
 0x443   : > { %11453 = vmatprep.subr.bf16.mxu1 %v16188_v62  ;;  %v16230_v62 = vld [vmem:[%s17119_s11 + $0x13ac] ss:$16 sps:$4 sm:$0xff]  }
 0x445   : > { %11479 = vmatpush1.bf16.msra.mxu0 %v16189_v32  ;;  %v16231_v32 = vld [vmem:[%s17119_s11 + $0x14a8] ss:$16 sps:$4 sm:$0xff]  }
 0x446   : > { %11454 = vmatpush2.bf16.msra.mxu1 %v16186_v29  ;;  %11480 = vmatprep.subr.bf16.mxu0 %v16197_v6  ;;  %v16228_v29 = vld [vmem:[%s17119_s11 + $0x13a8] ss:$16 sps:$4 sm:$0xff]   ;;  %v16236_v6 = vld [vmem:[%s17119_s11 + $0x138c] ss:$16 sps:$4 sm:$0xff]  }
 0x447   : > { %11455 = vmatprep.subr.bf16.mxu1 %v16194_v54 }
 0x449   : > { %11481 = vmatpush1.bf16.msra.mxu0 %v16195_v31  ;;  %v16242_v31 = vld [vmem:[%s17119_s11 + $0x136c] ss:$16 sps:$4 sm:$0xff]  }
 0x44a   : > { %11456 = vmatpush2.bf16.msra.mxu1 %v16192_v19  ;;  %11482 = vmatprep.subr.bf16.mxu0 %v16203_v16  ;;  %v16239_v19 = vld [vmem:[%s17119_s11 + $0x148c] ss:$16 sps:$4 sm:$0xff]   ;;  %v16240_v16 = vld [vmem:[%s17119_s11 + $0x1368] ss:$16 sps:$4 sm:$0xff]  }
 0x44b   : > { %11457 = vmatprep.subr.bf16.mxu1 %v16200_v4  ;;  %v16245_v4 = vld [vmem:[%s17119_s11 + $0x146c] ss:$16 sps:$4 sm:$0xff]  }
 0x44d   : > { %11483 = vmatpush1.bf16.msra.mxu0 %v16201_v59  ;;  %v16248_v59 = vld [vmem:[%s17119_s11 + $0x134c] ss:$16 sps:$4 sm:$0xff]  }
 0x44e   : > { %11458 = vmatpush2.bf16.msra.mxu1 %v16198_v30  ;;  %11484 = vmatprep.subr.bf16.mxu0 %v16209_v56  ;;  %v16243_v30 = vld [vmem:[%s17119_s11 + $0x1468] ss:$16 sps:$4 sm:$0xff]  }
 0x44f   : > { %11459 = vmatprep.subr.bf16.mxu1 %v16206_v45  ;;  %v16251_v45 = vld [vmem:[%s17119_s11 + $0x144c] ss:$16 sps:$4 sm:$0xff]   ;;  %v16246_v56 = vld [vmem:[%s17119_s11 + $0x1348] ss:$16 sps:$4 sm:$0xff]  }
 0x451   : > { %11485 = vmatpush1.bf16.msra.mxu0 %v16207_v60  ;;  %v16254_v60 = vld [vmem:[%s17119_s11 + $0x132c] ss:$16 sps:$4 sm:$0xff]  }
 0x452   : > { %11460 = vmatpush2.bf16.msra.mxu1 %v16204_v52  ;;  %11486 = vmatprep.subr.bf16.mxu0 %v16215_v22  ;;  %v16249_v52 = vld [vmem:[%s17119_s11 + $0x1448] ss:$16 sps:$4 sm:$0xff]  }
 0x453   : > { %11461 = vmatprep.subr.bf16.mxu1 %v16212_v20  ;;  %v16257_v20 = vld [vmem:[%s17119_s11 + $0x142c] ss:$16 sps:$4 sm:$0xff]   ;;  %v16252_v22 = vld [vmem:[%s17119_s11 + $0x1328] ss:$16 sps:$4 sm:$0xff]  }
 0x455   : > { %11487 = vmatpush1.bf16.msra.mxu0 %v16213_v1  ;;  %v16260_v1 = vld [vmem:[%s17119_s11 + $0x130c] ss:$16 sps:$4 sm:$0xff]  }
 0x456   : > { %11462 = vmatpush2.bf16.msra.mxu1 %v16210_v8  ;;  %11488 = vmatprep.subr.bf16.mxu0 %v16218_v39  ;;  %v16255_v8 = vld [vmem:[%s17119_s11 + $0x1428] ss:$16 sps:$4 sm:$0xff]   ;;  %v16263_v39 = vld [vmem:[%s17119_s11 + $0x140c] ss:$16 sps:$4 sm:$0xff]  }
 0x457   : > { %11513 = vmatprep.subr.bf16.mxu1 %v16221_v21  ;;  %v16258_v21 = vld [vmem:[%s17119_s11 + $0x1308] ss:$16 sps:$4 sm:$0xff]  }
 0x459   : > { %v11219_v26 = vpop.f32.mrf.mxu1  ;;  %11464 = vmatmul.mubr.bf16.vlgmr.msra.gmra.mxu1 %v17575_v13  ;;  %11489 = vmatpush2.bf16.msra.mxu0 %v16216_v53  ;;  %v16261_v53 = vld [vmem:[%s17119_s11 + $0x1408] ss:$16 sps:$4 sm:$0xff]  }
 0x45a   : > { %v18650_v10 = vadd.f32 %v11219_v26, %v18610_v33  ;;  %11514 = vmatpush1.bf16.msra.mxu1 %v16219_v25  ;;  %11490 = vmatprep.subr.bf16.mxu0 %v16224_v7  ;;  %v16266_v25 = vld [vmem:[%s17119_s11 + $0x15ec] ss:$16 sps:$4 sm:$0xff]   ;;  %v16267_v26 = vld [vmem:[%s17119_s11 + $0x16e8] ss:$16 sps:$4 sm:$0xff]  }
 0x45b   : > { %v11221_v2 = vpop.f32.mrf.mxu1  ;;  %11515 = vmatprep.subr.bf16.mxu1 %v16227_v15  ;;  %11545 = vmatprep.mubr.bf16.mxu1 %v17584_v24  ;;  %v16237_v24 = vld [vmem:[%s17119_s11 + $0x1488] ss:$16 sps:$4 sm:$0xff]   ;;  %v16269_v7 = vld [vmem:[%s17119_s11 + $0x16ec] ss:$16 sps:$4 sm:$0xff]  }
 0x45c   : > { %v18657_v13 = vadd.f32 %v11221_v2, %v18617_v27  ;;  %v16234_v27 = vld [vmem:[%s17119_s11 + $0x1388] ss:$16 sps:$4 sm:$0xff]  }
 0x45d   : > { %v11223_v33 = vpop.f32.mrf.mxu1  ;;  %11491 = vmatpush2.bf16.msra.mxu0 %v16222_v47  ;;  %v16264_v15 = vld [vmem:[%s17119_s11 + $0x15e8] ss:$16 sps:$4 sm:$0xff]   ;;  %v16272_v47 = vld [vmem:[%s17119_s11 + $0x15cc] ss:$16 sps:$4 sm:$0xff]  }
 0x45e   : > { %11516 = vmatpush1.bf16.msra.mxu1 %v16225_v9  ;;  %11492 = vmatprep.subr.bf16.mxu0 %v16230_v62  ;;  %v16275_v9 = vld [vmem:[%s17119_s11 + $0x16cc] ss:$16 sps:$4 sm:$0xff]   ;;  %v16273_v33 = vld [vmem:[%s17119_s11 + $0x16c8] ss:$16 sps:$4 sm:$0xff]  }
 0x45f   : > { %v11224_v54 = vpop.f32.mrf.mxu1  ;;  %11517 = vmatprep.subr.bf16.mxu1 %v16233_v63  ;;  %v16270_v63 = vld [vmem:[%s17119_s11 + $0x15c8] ss:$16 sps:$4 sm:$0xff]  }
 0x460   : > { %v16281_v54 = vld [vmem:[%s17119_s11 + $0x16ac] ss:$16 sps:$4 sm:$0xff]  }
 0x461   : > { %11493 = vmatpush2.bf16.msra.mxu0 %v16228_v29 }
 0x462   : > { %11518 = vmatpush1.bf16.msra.mxu1 %v16231_v32  ;;  %11494 = vmatprep.subr.bf16.mxu0 %v16236_v6  ;;  %v16278_v32 = vld [vmem:[%s17119_s11 + $0x15ac] ss:$16 sps:$4 sm:$0xff]   ;;  %v16276_v6 = vld [vmem:[%s17119_s11 + $0x15a8] ss:$16 sps:$4 sm:$0xff]  }
 0x463   : > { %11519 = vmatprep.subr.bf16.mxu1 %v16239_v19  ;;  %v16279_v19 = vld [vmem:[%s17119_s11 + $0x16a8] ss:$16 sps:$4 sm:$0xff]  }
 0x465   : > { %11495 = vmatpush2.bf16.msra.mxu0 %v16234_v27 }
 0x466   : > { %11520 = vmatpush1.bf16.msra.mxu1 %v16237_v24  ;;  %11496 = vmatprep.subr.bf16.mxu0 %v16242_v31  ;;  %v16284_v24 = vld [vmem:[%s17119_s11 + $0x158c] ss:$16 sps:$4 sm:$0xff]  }
 0x467   : > { %11521 = vmatprep.subr.bf16.mxu1 %v16245_v4  ;;  %v16287_v31 = vld [vmem:[%s17119_s11 + $0x168c] ss:$16 sps:$4 sm:$0xff]  }
 0x468   : > { %v16290_v4 = vld [vmem:[%s17119_s11 + $0x156c] ss:$16 sps:$4 sm:$0xff]  }
 0x469   : > { %11497 = vmatpush2.bf16.msra.mxu0 %v16240_v16  ;;  %v16293_v16 = vld [vmem:[%s17119_s11 + $0x166c] ss:$16 sps:$4 sm:$0xff]  }
 0x46a   : > { %11522 = vmatpush1.bf16.msra.mxu1 %v16243_v30  ;;  %11498 = vmatprep.subr.bf16.mxu0 %v16248_v59  ;;  %v16288_v30 = vld [vmem:[%s17119_s11 + $0x1568] ss:$16 sps:$4 sm:$0xff]  }
 0x46b   : > { %11523 = vmatprep.subr.bf16.mxu1 %v16251_v45  ;;  %v16291_v59 = vld [vmem:[%s17119_s11 + $0x1668] ss:$16 sps:$4 sm:$0xff]   ;;  %v16296_v45 = vld [vmem:[%s17119_s11 + $0x154c] ss:$16 sps:$4 sm:$0xff]  }
 0x46d   : > { %11499 = vmatpush2.bf16.msra.mxu0 %v16246_v56  ;;  %v16299_v56 = vld [vmem:[%s17119_s11 + $0x164c] ss:$16 sps:$4 sm:$0xff]  }
 0x46e   : > { %11524 = vmatpush1.bf16.msra.mxu1 %v16249_v52  ;;  %11500 = vmatprep.subr.bf16.mxu0 %v16254_v60  ;;  %v16294_v52 = vld [vmem:[%s17119_s11 + $0x1548] ss:$16 sps:$4 sm:$0xff]  }
 0x46f   : > { %11525 = vmatprep.subr.bf16.mxu1 %v16257_v20  ;;  %v16297_v60 = vld [vmem:[%s17119_s11 + $0x1648] ss:$16 sps:$4 sm:$0xff]   ;;  %v16302_v20 = vld [vmem:[%s17119_s11 + $0x152c] ss:$16 sps:$4 sm:$0xff]  }
 0x471   : > { %11501 = vmatpush2.bf16.msra.mxu0 %v16252_v22  ;;  %v16305_v22 = vld [vmem:[%s17119_s11 + $0x162c] ss:$16 sps:$4 sm:$0xff]  }
 0x472   : > { %11526 = vmatpush1.bf16.msra.mxu1 %v16255_v8  ;;  %11502 = vmatprep.subr.bf16.mxu0 %v16260_v1  ;;  %v16300_v8 = vld [vmem:[%s17119_s11 + $0x1528] ss:$16 sps:$4 sm:$0xff]  }
 0x473   : > { %11527 = vmatprep.subr.bf16.mxu1 %v16263_v39  ;;  %v16303_v1 = vld [vmem:[%s17119_s11 + $0x1628] ss:$16 sps:$4 sm:$0xff]   ;;  %v16308_v39 = vld [vmem:[%s17119_s11 + $0x150c] ss:$16 sps:$4 sm:$0xff]  }
 0x475   : > { %11503 = vmatpush2.bf16.msra.mxu0 %v16258_v21  ;;  %v16311_v21 = vld [vmem:[%s17119_s11 + $0x160c] ss:$16 sps:$4 sm:$0xff]  }
 0x476   : > { %11528 = vmatpush1.bf16.msra.mxu1 %v16261_v53  ;;  %11554 = vmatprep.subr.bf16.mxu0 %v16269_v7  ;;  %v16306_v53 = vld [vmem:[%s17119_s11 + $0x1508] ss:$16 sps:$4 sm:$0xff]   ;;  %v16314_v7 = vld [vmem:[%s17119_s11 + $0x17ec] ss:$16 sps:$4 sm:$0xff]  }
 0x477   : > { %11529 = vmatprep.subr.bf16.mxu1 %v16266_v25  ;;  %v16309_v25 = vld [vmem:[%s17119_s11 + $0x1608] ss:$16 sps:$4 sm:$0xff]  }
 0x478   : > { %v11260_v2 = vpop.f32.mrf.mxu0  ;;  %11505 = vmatmul.mubr.bf16.vlgmr.msra.gmra.mxu0 %v17588_v11 }
 0x479   : > { %v18690_v62 = vadd.f32 %v11260_v2, %v18650_v10  ;;  %11555 = vmatpush1.bf16.msra.mxu0 %v16267_v26  ;;  %11586 = vmatprep.mubr.bf16.mxu0 %v17596_v34  ;;  %v16285_v34 = vld [vmem:[%s17119_s11 + $0x1688] ss:$16 sps:$4 sm:$0xff]   ;;  %v16323_v2 = vld [vmem:[%s17119_s11 + $0x18cc] ss:$16 sps:$4 sm:$0xff]  }
 0x47a   : > { %11530 = vmatpush2.bf16.msra.mxu1 %v16264_v15  ;;  %v11262_v29 = vpop.f32.mrf.mxu0  ;;  %11556 = vmatprep.subr.bf16.mxu0 %v16275_v9  ;;  %v16317_v15 = vld [vmem:[%s17119_s11 + $0x18ec] ss:$16 sps:$4 sm:$0xff]   ;;  %v16312_v26 = vld [vmem:[%s17119_s11 + $0x17e8] ss:$16 sps:$4 sm:$0xff]  }
 0x47b   : > { %11531 = vmatprep.subr.bf16.mxu1 %v16272_v47  ;;  %v18697_v11 = vadd.f32 %v11262_v29, %v18657_v13  ;;  %v16282_v13 = vld [vmem:[%s17119_s11 + $0x1588] ss:$16 sps:$4 sm:$0xff]   ;;  %v16320_v9 = vld [vmem:[%s17119_s11 + $0x17cc] ss:$16 sps:$4 sm:$0xff]  }
 0x47c   : > { %v11264_v10 = vpop.f32.mrf.mxu0  ;;  %v16315_v47 = vld [vmem:[%s17119_s11 + $0x18e8] ss:$16 sps:$4 sm:$0xff]  }
 0x47d   : > { %11557 = vmatpush1.bf16.msra.mxu0 %v16273_v33  ;;  %v16318_v29 = vld [vmem:[%s17119_s11 + $0x17c8] ss:$16 sps:$4 sm:$0xff]   ;;  %v16326_v10 = vld [vmem:[%s17119_s11 + $0x17ac] ss:$16 sps:$4 sm:$0xff]  }
 0x47e   : > { %11532 = vmatpush2.bf16.msra.mxu1 %v16270_v63  ;;  %v11265_v27 = vpop.f32.mrf.mxu0  ;;  %11558 = vmatprep.subr.bf16.mxu0 %v16281_v54 }
 0x47f   : > { %11533 = vmatprep.subr.bf16.mxu1 %v16278_v32  ;;  %v16321_v32 = vld [vmem:[%s17119_s11 + $0x18c8] ss:$16 sps:$4 sm:$0xff]  }
 0x480   : > { %v16327_v27 = vld [vmem:[%s17119_s11 + $0x18a8] ss:$16 sps:$4 sm:$0xff]  }
 0x481   : > { %11559 = vmatpush1.bf16.msra.mxu0 %v16279_v19  ;;  %v16324_v19 = vld [vmem:[%s17119_s11 + $0x17a8] ss:$16 sps:$4 sm:$0xff]  }
 0x482   : > { %11534 = vmatpush2.bf16.msra.mxu1 %v16276_v6  ;;  %11560 = vmatprep.subr.bf16.mxu0 %v16287_v31  ;;  %v16329_v6 = vld [vmem:[%s17119_s11 + $0x18ac] ss:$16 sps:$4 sm:$0xff]  }
 0x483   : > { %11535 = vmatprep.subr.bf16.mxu1 %v16284_v24  ;;  %v16332_v31 = vld [vmem:[%s17119_s11 + $0x178c] ss:$16 sps:$4 sm:$0xff]  }
 0x485   : > { %11561 = vmatpush1.bf16.msra.mxu0 %v16285_v34  ;;  %v16338_v34 = vld [vmem:[%s17119_s11 + $0x176c] ss:$16 sps:$4 sm:$0xff]  }
 0x486   : > { %11536 = vmatpush2.bf16.msra.mxu1 %v16282_v13  ;;  %11562 = vmatprep.subr.bf16.mxu0 %v16293_v16  ;;  %v16335_v13 = vld [vmem:[%s17119_s11 + $0x188c] ss:$16 sps:$4 sm:$0xff]   ;;  %v16336_v16 = vld [vmem:[%s17119_s11 + $0x1768] ss:$16 sps:$4 sm:$0xff]  }
 0x487   : > { %11537 = vmatprep.subr.bf16.mxu1 %v16290_v4  ;;  %v16341_v4 = vld [vmem:[%s17119_s11 + $0x186c] ss:$16 sps:$4 sm:$0xff]  }
 0x489   : > { %11563 = vmatpush1.bf16.msra.mxu0 %v16291_v59  ;;  %v16344_v59 = vld [vmem:[%s17119_s11 + $0x174c] ss:$16 sps:$4 sm:$0xff]  }
 0x48a   : > { %11538 = vmatpush2.bf16.msra.mxu1 %v16288_v30  ;;  %11564 = vmatprep.subr.bf16.mxu0 %v16299_v56  ;;  %v16339_v30 = vld [vmem:[%s17119_s11 + $0x1868] ss:$16 sps:$4 sm:$0xff]  }
 0x48b   : > { %11539 = vmatprep.subr.bf16.mxu1 %v16296_v45  ;;  %v16347_v45 = vld [vmem:[%s17119_s11 + $0x184c] ss:$16 sps:$4 sm:$0xff]   ;;  %v16342_v56 = vld [vmem:[%s17119_s11 + $0x1748] ss:$16 sps:$4 sm:$0xff]  }
 0x48d   : > { %11565 = vmatpush1.bf16.msra.mxu0 %v16297_v60  ;;  %v16350_v60 = vld [vmem:[%s17119_s11 + $0x172c] ss:$16 sps:$4 sm:$0xff]  }
 0x48e   : > { %11540 = vmatpush2.bf16.msra.mxu1 %v16294_v52  ;;  %11566 = vmatprep.subr.bf16.mxu0 %v16305_v22  ;;  %v16345_v52 = vld [vmem:[%s17119_s11 + $0x1848] ss:$16 sps:$4 sm:$0xff]  }
 0x48f   : > { %11541 = vmatprep.subr.bf16.mxu1 %v16302_v20  ;;  %v16353_v20 = vld [vmem:[%s17119_s11 + $0x182c] ss:$16 sps:$4 sm:$0xff]   ;;  %v16348_v22 = vld [vmem:[%s17119_s11 + $0x1728] ss:$16 sps:$4 sm:$0xff]  }
 0x491   : > { %11567 = vmatpush1.bf16.msra.mxu0 %v16303_v1  ;;  %v16356_v1 = vld [vmem:[%s17119_s11 + $0x170c] ss:$16 sps:$4 sm:$0xff]  }
 0x492   : > { %11542 = vmatpush2.bf16.msra.mxu1 %v16300_v8  ;;  %11568 = vmatprep.subr.bf16.mxu0 %v16311_v21  ;;  %v16351_v8 = vld [vmem:[%s17119_s11 + $0x1828] ss:$16 sps:$4 sm:$0xff]  }
 0x493   : > { %11543 = vmatprep.subr.bf16.mxu1 %v16308_v39  ;;  %v16359_v39 = vld [vmem:[%s17119_s11 + $0x180c] ss:$16 sps:$4 sm:$0xff]   ;;  %v16354_v21 = vld [vmem:[%s17119_s11 + $0x1708] ss:$16 sps:$4 sm:$0xff]  }
 0x495   : > { %11569 = vmatpush1.bf16.msra.mxu0 %v16309_v25  ;;  %v16362_v25 = vld [vmem:[%s17119_s11 + $0x19ec] ss:$16 sps:$4 sm:$0xff]  }
 0x496   : > { %11544 = vmatpush2.bf16.msra.mxu1 %v16306_v53  ;;  %11570 = vmatprep.subr.bf16.mxu0 %v16314_v7  ;;  %v16357_v53 = vld [vmem:[%s17119_s11 + $0x1808] ss:$16 sps:$4 sm:$0xff]   ;;  %v16365_v7 = vld [vmem:[%s17119_s11 + $0x1aec] ss:$16 sps:$4 sm:$0xff]  }
 0x497   : > { %11595 = vmatprep.subr.bf16.mxu1 %v16317_v15  ;;  %v16360_v15 = vld [vmem:[%s17119_s11 + $0x19e8] ss:$16 sps:$4 sm:$0xff]  }
 0x499   : > { %v11301_v63 = vpop.f32.mrf.mxu1  ;;  %11546 = vmatmul.mubr.bf16.vlgmr.msra.gmra.mxu1 %v17673_v23  ;;  %11571 = vmatpush2.bf16.msra.mxu0 %v16312_v26  ;;  %v16363_v26 = vld [vmem:[%s17119_s11 + $0x1ae8] ss:$16 sps:$4 sm:$0xff]  }
 0x49a   : > { %v18730_v33 = vadd.f32 %v11301_v63, %v18690_v62  ;;  %11596 = vmatpush1.bf16.msra.mxu1 %v16315_v47  ;;  %11572 = vmatprep.subr.bf16.mxu0 %v16320_v9  ;;  %v16368_v47 = vld [vmem:[%s17119_s11 + $0x19cc] ss:$16 sps:$4 sm:$0xff]  }
 0x49b   : > { %v11303_v54 = vpop.f32.mrf.mxu1  ;;  %11597 = vmatprep.subr.bf16.mxu1 %v16323_v2  ;;  %11627 = vmatprep.mubr.bf16.mxu1 %v17682_v37  ;;  %v16333_v37 = vld [vmem:[%s17119_s11 + $0x1888] ss:$16 sps:$4 sm:$0xff]   ;;  %v16371_v9 = vld [vmem:[%s17119_s11 + $0x1acc] ss:$16 sps:$4 sm:$0xff]  }
 0x49c   : > { %v18737_v23 = vadd.f32 %v11303_v54, %v18697_v11  ;;  %v16330_v11 = vld [vmem:[%s17119_s11 + $0x1788] ss:$16 sps:$4 sm:$0xff]  }
 0x49d   : > { %v11305_v62 = vpop.f32.mrf.mxu1  ;;  %11573 = vmatpush2.bf16.msra.mxu0 %v16318_v29  ;;  %v16366_v29 = vld [vmem:[%s17119_s11 + $0x19c8] ss:$16 sps:$4 sm:$0xff]  }
 0x49e   : > { %11598 = vmatpush1.bf16.msra.mxu1 %v16321_v32  ;;  %11574 = vmatprep.subr.bf16.mxu0 %v16326_v10  ;;  %v16369_v32 = vld [vmem:[%s17119_s11 + $0x1ac8] ss:$16 sps:$4 sm:$0xff]   ;;  %v16374_v10 = vld [vmem:[%s17119_s11 + $0x19ac] ss:$16 sps:$4 sm:$0xff]  }
 0x49f   : > { %v11306_v24 = vpop.f32.mrf.mxu1  ;;  %11599 = vmatprep.subr.bf16.mxu1 %v16329_v6  ;;  %v16377_v6 = vld [vmem:[%s17119_s11 + $0x1aac] ss:$16 sps:$4 sm:$0xff]   ;;  %v16372_v62 = vld [vmem:[%s17119_s11 + $0x19a8] ss:$16 sps:$4 sm:$0xff]  }
 0x4a0   : > { %v16380_v24 = vld [vmem:[%s17119_s11 + $0x198c] ss:$16 sps:$4 sm:$0xff]  }
 0x4a1   : > { %11575 = vmatpush2.bf16.msra.mxu0 %v16324_v19  ;;  %v16375_v19 = vld [vmem:[%s17119_s11 + $0x1aa8] ss:$16 sps:$4 sm:$0xff]  }
 0x4a2   : > { %11600 = vmatpush1.bf16.msra.mxu1 %v16327_v27  ;;  %11576 = vmatprep.subr.bf16.mxu0 %v16332_v31  ;;  %v16383_v31 = vld [vmem:[%s17119_s11 + $0x1a8c] ss:$16 sps:$4 sm:$0xff]  }
 0x4a3   : > { %11601 = vmatprep.subr.bf16.mxu1 %v16335_v13  ;;  %v16386_v13 = vld [vmem:[%s17119_s11 + $0x196c] ss:$16 sps:$4 sm:$0xff]  }
 0x4a5   : > { %11577 = vmatpush2.bf16.msra.mxu0 %v16330_v11  ;;  %v16389_v11 = vld [vmem:[%s17119_s11 + $0x1a6c] ss:$16 sps:$4 sm:$0xff]  }
 0x4a6   : > { %11602 = vmatpush1.bf16.msra.mxu1 %v16333_v37  ;;  %11578 = vmatprep.subr.bf16.mxu0 %v16338_v34  ;;  %v16384_v37 = vld [vmem:[%s17119_s11 + $0x1968] ss:$16 sps:$4 sm:$0xff]  }
 0x4a7   : > { %11603 = vmatprep.subr.bf16.mxu1 %v16341_v4  ;;  %v16387_v34 = vld [vmem:[%s17119_s11 + $0x1a68] ss:$16 sps:$4 sm:$0xff]   ;;  %v16392_v4 = vld [vmem:[%s17119_s11 + $0x194c] ss:$16 sps:$4 sm:$0xff]  }
 0x4a9   : > { %11579 = vmatpush2.bf16.msra.mxu0 %v16336_v16  ;;  %v16395_v16 = vld [vmem:[%s17119_s11 + $0x1a4c] ss:$16 sps:$4 sm:$0xff]  }
 0x4aa   : > { %11604 = vmatpush1.bf16.msra.mxu1 %v16339_v30  ;;  %11580 = vmatprep.subr.bf16.mxu0 %v16344_v59  ;;  %v16390_v30 = vld [vmem:[%s17119_s11 + $0x1948] ss:$16 sps:$4 sm:$0xff]  }
 0x4ab   : > { %11605 = vmatprep.subr.bf16.mxu1 %v16347_v45  ;;  %v16393_v59 = vld [vmem:[%s17119_s11 + $0x1a48] ss:$16 sps:$4 sm:$0xff]   ;;  %v16398_v45 = vld [vmem:[%s17119_s11 + $0x192c] ss:$16 sps:$4 sm:$0xff]  }
 0x4ad   : > { %11581 = vmatpush2.bf16.msra.mxu0 %v16342_v56  ;;  %v16401_v56 = vld [vmem:[%s17119_s11 + $0x1a2c] ss:$16 sps:$4 sm:$0xff]  }
 0x4ae   : > { %11606 = vmatpush1.bf16.msra.mxu1 %v16345_v52  ;;  %11582 = vmatprep.subr.bf16.mxu0 %v16350_v60  ;;  %v16396_v52 = vld [vmem:[%s17119_s11 + $0x1928] ss:$16 sps:$4 sm:$0xff]  }
 0x4af   : > { %11607 = vmatprep.subr.bf16.mxu1 %v16353_v20  ;;  %v16399_v60 = vld [vmem:[%s17119_s11 + $0x1a28] ss:$16 sps:$4 sm:$0xff]   ;;  %v16404_v20 = vld [vmem:[%s17119_s11 + $0x190c] ss:$16 sps:$4 sm:$0xff]  }
 0x4b1   : > { %11583 = vmatpush2.bf16.msra.mxu0 %v16348_v22  ;;  %v16407_v22 = vld [vmem:[%s17119_s11 + $0x1a0c] ss:$16 sps:$4 sm:$0xff]  }
 0x4b2   : > { %11608 = vmatpush1.bf16.msra.mxu1 %v16351_v8  ;;  %11584 = vmatprep.subr.bf16.mxu0 %v16356_v1  ;;  %v16402_v8 = vld [vmem:[%s17119_s11 + $0x1908] ss:$16 sps:$4 sm:$0xff]  }
 0x4b3   : > { %11609 = vmatprep.subr.bf16.mxu1 %v16359_v39  ;;  %v16405_v1 = vld [vmem:[%s17119_s11 + $0x1a08] ss:$16 sps:$4 sm:$0xff]   ;;  %v16410_v39 = vld [vmem:[%s17119_s11 + $0x1bec] ss:$16 sps:$4 sm:$0xff]  }
 0x4b5   : > { %11585 = vmatpush2.bf16.msra.mxu0 %v16354_v21  ;;  %v16413_v21 = vld [vmem:[%s17119_s11 + $0x1cec] ss:$16 sps:$4 sm:$0xff]  }
 0x4b6   : > { %11610 = vmatpush1.bf16.msra.mxu1 %v16357_v53  ;;  %11636 = vmatprep.subr.bf16.mxu0 %v16365_v7  ;;  %v16408_v53 = vld [vmem:[%s17119_s11 + $0x1be8] ss:$16 sps:$4 sm:$0xff]   ;;  %v16416_v7 = vld [vmem:[%s17119_s11 + $0x1bcc] ss:$16 sps:$4 sm:$0xff]  }
 0x4b7   : > { %11611 = vmatprep.subr.bf16.mxu1 %v16362_v25  ;;  %v16411_v25 = vld [vmem:[%s17119_s11 + $0x1ce8] ss:$16 sps:$4 sm:$0xff]  }
 0x4b8   : > { %v11342_v2 = vpop.f32.mrf.mxu0  ;;  %11587 = vmatmul.mubr.bf16.vlgmr.msra.gmra.mxu0 %v17686_v5 }
 0x4b9   : > { %v18770_v63 = vadd.f32 %v11342_v2, %v18730_v33  ;;  %11637 = vmatpush1.bf16.msra.mxu0 %v16363_v26  ;;  %11668 = vmatprep.mubr.bf16.mxu0 %v17694_v50  ;;  %v16381_v50 = vld [vmem:[%s17119_s11 + $0x1a88] ss:$16 sps:$4 sm:$0xff]  }
 0x4ba   : > { %11612 = vmatpush2.bf16.msra.mxu1 %v16360_v15  ;;  %v11344_v54 = vpop.f32.mrf.mxu0  ;;  %11638 = vmatprep.subr.bf16.mxu0 %v16371_v9  ;;  %v16419_v15 = vld [vmem:[%s17119_s11 + $0x1ccc] ss:$16 sps:$4 sm:$0xff]   ;;  %v16414_v9 = vld [vmem:[%s17119_s11 + $0x1bc8] ss:$16 sps:$4 sm:$0xff]  }
 0x4bb   : > { %11613 = vmatprep.subr.bf16.mxu1 %v16368_v47  ;;  %v18777_v5 = vadd.f32 %v11344_v54, %v18737_v23  ;;  %v16378_v23 = vld [vmem:[%s17119_s11 + $0x1988] ss:$16 sps:$4 sm:$0xff]   ;;  %v16425_v54 = vld [vmem:[%s17119_s11 + $0x1cac] ss:$16 sps:$4 sm:$0xff]  }
 0x4bc   : > { %v11346_v33 = vpop.f32.mrf.mxu0  ;;  %v16417_v2 = vld [vmem:[%s17119_s11 + $0x1cc8] ss:$16 sps:$4 sm:$0xff]  }
 0x4bd   : > { %11639 = vmatpush1.bf16.msra.mxu0 %v16369_v32  ;;  %v16422_v32 = vld [vmem:[%s17119_s11 + $0x1bac] ss:$16 sps:$4 sm:$0xff]  }
 0x4be   : > { %11614 = vmatpush2.bf16.msra.mxu1 %v16366_v29  ;;  %v11347_v27 = vpop.f32.mrf.mxu0  ;;  %11640 = vmatprep.subr.bf16.mxu0 %v16377_v6  ;;  %v16423_v6 = vld [vmem:[%s17119_s11 + $0x1ca8] ss:$16 sps:$4 sm:$0xff]  }
 0x4bf   : > { %11615 = vmatprep.subr.bf16.mxu1 %v16374_v10  ;;  %v16420_v10 = vld [vmem:[%s17119_s11 + $0x1ba8] ss:$16 sps:$4 sm:$0xff]   ;;  %v16434_v27 = vld [vmem:[%s17119_s11 + $0x1b6c] ss:$16 sps:$4 sm:$0xff]  }
 0x4c1   : > { %11641 = vmatpush1.bf16.msra.mxu0 %v16375_v19  ;;  %v16431_v19 = vld [vmem:[%s17119_s11 + $0x1c8c] ss:$16 sps:$4 sm:$0xff]  }
 0x4c2   : > { %11616 = vmatpush2.bf16.msra.mxu1 %v16372_v62  ;;  %11642 = vmatprep.subr.bf16.mxu0 %v16383_v31  ;;  %v16428_v62 = vld [vmem:[%s17119_s11 + $0x1b8c] ss:$16 sps:$4 sm:$0xff]   ;;  %v16432_v31 = vld [vmem:[%s17119_s11 + $0x1b68] ss:$16 sps:$4 sm:$0xff]  }
 0x4c3   : > { %11617 = vmatprep.subr.bf16.mxu1 %v16380_v24  ;;  %v16437_v24 = vld [vmem:[%s17119_s11 + $0x1c6c] ss:$16 sps:$4 sm:$0xff]  }
 0x4c5   : > { %11643 = vmatpush1.bf16.msra.mxu0 %v16381_v50  ;;  %v16440_v50 = vld [vmem:[%s17119_s11 + $0x1b4c] ss:$16 sps:$4 sm:$0xff]  }
 0x4c6   : > { %11618 = vmatpush2.bf16.msra.mxu1 %v16378_v23  ;;  %11644 = vmatprep.subr.bf16.mxu0 %v16389_v11  ;;  %v16435_v23 = vld [vmem:[%s17119_s11 + $0x1c68] ss:$16 sps:$4 sm:$0xff]  }
 0x4c7   : > { %11619 = vmatprep.subr.bf16.mxu1 %v16386_v13  ;;  %v16443_v13 = vld [vmem:[%s17119_s11 + $0x1c4c] ss:$16 sps:$4 sm:$0xff]   ;;  %v16438_v11 = vld [vmem:[%s17119_s11 + $0x1b48] ss:$16 sps:$4 sm:$0xff]  }
 0x4c9   : > { %11645 = vmatpush1.bf16.msra.mxu0 %v16387_v34  ;;  %v16446_v34 = vld [vmem:[%s17119_s11 + $0x1b2c] ss:$16 sps:$4 sm:$0xff]  }
 0x4ca   : > { %11620 = vmatpush2.bf16.msra.mxu1 %v16384_v37  ;;  %11646 = vmatprep.subr.bf16.mxu0 %v16395_v16  ;;  %v16441_v37 = vld [vmem:[%s17119_s11 + $0x1c48] ss:$16 sps:$4 sm:$0xff]  }
 0x4cb   : > { %11621 = vmatprep.subr.bf16.mxu1 %v16392_v4  ;;  %v16449_v4 = vld [vmem:[%s17119_s11 + $0x1c2c] ss:$16 sps:$4 sm:$0xff]   ;;  %v16444_v16 = vld [vmem:[%s17119_s11 + $0x1b28] ss:$16 sps:$4 sm:$0xff]  }
 0x4cd   : > { %11647 = vmatpush1.bf16.msra.mxu0 %v16393_v59  ;;  %v16452_v59 = vld [vmem:[%s17119_s11 + $0x1b0c] ss:$16 sps:$4 sm:$0xff]  }
 0x4ce   : > { %11622 = vmatpush2.bf16.msra.mxu1 %v16390_v30  ;;  %11648 = vmatprep.subr.bf16.mxu0 %v16401_v56  ;;  %v16447_v30 = vld [vmem:[%s17119_s11 + $0x1c28] ss:$16 sps:$4 sm:$0xff]  }
 0x4cf   : > { %11623 = vmatprep.subr.bf16.mxu1 %v16398_v45  ;;  %v16455_v45 = vld [vmem:[%s17119_s11 + $0x1c0c] ss:$16 sps:$4 sm:$0xff]   ;;  %v16450_v56 = vld [vmem:[%s17119_s11 + $0x1b08] ss:$16 sps:$4 sm:$0xff]  }
 0x4d1   : > { %11649 = vmatpush1.bf16.msra.mxu0 %v16399_v60  ;;  %v16458_v60 = vld [vmem:[%s17119_s11 + $0x1dec] ss:$16 sps:$4 sm:$0xff]  }
 0x4d2   : > { %11624 = vmatpush2.bf16.msra.mxu1 %v16396_v52  ;;  %11650 = vmatprep.subr.bf16.mxu0 %v16407_v22  ;;  %v16453_v52 = vld [vmem:[%s17119_s11 + $0x1c08] ss:$16 sps:$4 sm:$0xff]  }
 0x4d3   : > { %11625 = vmatprep.subr.bf16.mxu1 %v16404_v20  ;;  %v16461_v20 = vld [vmem:[%s17119_s11 + $0x1eec] ss:$16 sps:$4 sm:$0xff]   ;;  %v16456_v22 = vld [vmem:[%s17119_s11 + $0x1de8] ss:$16 sps:$4 sm:$0xff]  }
 0x4d5   : > { %11651 = vmatpush1.bf16.msra.mxu0 %v16405_v1  ;;  %v16464_v1 = vld [vmem:[%s17119_s11 + $0x1dcc] ss:$16 sps:$4 sm:$0xff]  }
 0x4d6   : > { %11626 = vmatpush2.bf16.msra.mxu1 %v16402_v8  ;;  %11652 = vmatprep.subr.bf16.mxu0 %v16410_v39  ;;  %v16459_v8 = vld [vmem:[%s17119_s11 + $0x1ee8] ss:$16 sps:$4 sm:$0xff]   ;;  %v16467_v39 = vld [vmem:[%s17119_s11 + $0x1ecc] ss:$16 sps:$4 sm:$0xff]  }
 0x4d7   : > { %11677 = vmatprep.subr.bf16.mxu1 %v16413_v21 }
 0x4d9   : > { %v11383_v26 = vpop.f32.mrf.mxu1  ;;  %11628 = vmatmul.mubr.bf16.vlgmr.msra.gmra.mxu1 %v17769_v57  ;;  %11653 = vmatpush2.bf16.msra.mxu0 %v16408_v53 }
 0x4da   : > { %v18810_v47 = vadd.f32 %v11383_v26, %v18770_v63  ;;  %11678 = vmatpush1.bf16.msra.mxu1 %v16411_v25  ;;  %11654 = vmatprep.subr.bf16.mxu0 %v16416_v7  ;;  %v16462_v25 = vld [vmem:[%s17119_s11 + $0x1dc8] ss:$16 sps:$4 sm:$0xff]   ;;  %v16470_v26 = vld [vmem:[%s17119_s11 + $0x1dac] ss:$16 sps:$4 sm:$0xff]  }
 0x4db   : > { %v11385_v29 = vpop.f32.mrf.mxu1  ;;  %11679 = vmatprep.subr.bf16.mxu1 %v16419_v15  ;;  %11709 = vmatprep.mubr.bf16.mxu1 %v17778_v3  ;;  %v16429_v3 = vld [vmem:[%s17119_s11 + $0x1c88] ss:$16 sps:$4 sm:$0xff]  }
 0x4dc   : > { %v18817_v57 = vadd.f32 %v11385_v29, %v18777_v5  ;;  %v16426_v5 = vld [vmem:[%s17119_s11 + $0x1b88] ss:$16 sps:$4 sm:$0xff]  }
 0x4dd   : > { %v11387_v63 = vpop.f32.mrf.mxu1  ;;  %11655 = vmatpush2.bf16.msra.mxu0 %v16414_v9  ;;  %v16465_v7 = vld [vmem:[%s17119_s11 + $0x1ec8] ss:$16 sps:$4 sm:$0xff]   ;;  %v16473_v9 = vld [vmem:[%s17119_s11 + $0x1eac] ss:$16 sps:$4 sm:$0xff]  }
 0x4de   : > { %11680 = vmatpush1.bf16.msra.mxu1 %v16417_v2  ;;  %11656 = vmatprep.subr.bf16.mxu0 %v16422_v32  ;;  %v16468_v2 = vld [vmem:[%s17119_s11 + $0x1da8] ss:$16 sps:$4 sm:$0xff]   ;;  %v16479_v63 = vld [vmem:[%s17119_s11 + $0x1e8c] ss:$16 sps:$4 sm:$0xff]  }
 0x4df   : > { %v11388_v33 = vpop.f32.mrf.mxu1  ;;  %11681 = vmatprep.subr.bf16.mxu1 %v16425_v54  ;;  %v16471_v29 = vld [vmem:[%s17119_s11 + $0x1ea8] ss:$16 sps:$4 sm:$0xff]   ;;  %v16476_v54 = vld [vmem:[%s17119_s11 + $0x1d8c] ss:$16 sps:$4 sm:$0xff]  }
 0x4e0   : > { %v16480_v33 = vld [vmem:[%s17119_s11 + $0x1d68] ss:$16 sps:$4 sm:$0xff]  }
 0x4e1   : > { %11657 = vmatpush2.bf16.msra.mxu0 %v16420_v10  ;;  %v16482_v10 = vld [vmem:[%s17119_s11 + $0x1d6c] ss:$16 sps:$4 sm:$0xff]  }
 0x4e2   : > { %11682 = vmatpush1.bf16.msra.mxu1 %v16423_v6  ;;  %11658 = vmatprep.subr.bf16.mxu0 %v16428_v62  ;;  %v16485_v6 = vld [vmem:[%s17119_s11 + $0x1e6c] ss:$16 sps:$4 sm:$0xff]   ;;  %v16483_v62 = vld [vmem:[%s17119_s11 + $0x1e68] ss:$16 sps:$4 sm:$0xff]  }
 0x4e3   : > { %11683 = vmatprep.subr.bf16.mxu1 %v16431_v19  ;;  %v16488_v19 = vld [vmem:[%s17119_s11 + $0x1d4c] ss:$16 sps:$4 sm:$0xff]  }
 0x4e5   : > { %11659 = vmatpush2.bf16.msra.mxu0 %v16426_v5  ;;  %v16491_v5 = vld [vmem:[%s17119_s11 + $0x1e4c] ss:$16 sps:$4 sm:$0xff]  }
 0x4e6   : > { %11684 = vmatpush1.bf16.msra.mxu1 %v16429_v3  ;;  %11660 = vmatprep.subr.bf16.mxu0 %v16434_v27  ;;  %v16486_v3 = vld [vmem:[%s17119_s11 + $0x1d48] ss:$16 sps:$4 sm:$0xff]  }
 0x4e7   : > { %11685 = vmatprep.subr.bf16.mxu1 %v16437_v24  ;;  %v16489_v27 = vld [vmem:[%s17119_s11 + $0x1e48] ss:$16 sps:$4 sm:$0xff]   ;;  %v16494_v24 = vld [vmem:[%s17119_s11 + $0x1d2c] ss:$16 sps:$4 sm:$0xff]  }
 0x4e9   : > { %11661 = vmatpush2.bf16.msra.mxu0 %v16432_v31  ;;  %v16497_v31 = vld [vmem:[%s17119_s11 + $0x1e2c] ss:$16 sps:$4 sm:$0xff]  }
 0x4ea   : > { %11686 = vmatpush1.bf16.msra.mxu1 %v16435_v23  ;;  %11662 = vmatprep.subr.bf16.mxu0 %v16440_v50  ;;  %v16492_v23 = vld [vmem:[%s17119_s11 + $0x1d28] ss:$16 sps:$4 sm:$0xff]  }
 0x4eb   : > { %11687 = vmatprep.subr.bf16.mxu1 %v16443_v13  ;;  %v16495_v50 = vld [vmem:[%s17119_s11 + $0x1e28] ss:$16 sps:$4 sm:$0xff]   ;;  %v16500_v13 = vld [vmem:[%s17119_s11 + $0x1d0c] ss:$16 sps:$4 sm:$0xff]  }
 0x4ed   : > { %11663 = vmatpush2.bf16.msra.mxu0 %v16438_v11  ;;  %v16503_v11 = vld [vmem:[%s17119_s11 + $0x1e0c] ss:$16 sps:$4 sm:$0xff]  }
 0x4ee   : > { %11688 = vmatpush1.bf16.msra.mxu1 %v16441_v37  ;;  %11664 = vmatprep.subr.bf16.mxu0 %v16446_v34  ;;  %v16498_v37 = vld [vmem:[%s17119_s11 + $0x1d08] ss:$16 sps:$4 sm:$0xff]  }
 0x4ef   : > { %11689 = vmatprep.subr.bf16.mxu1 %v16449_v4  ;;  %v16501_v34 = vld [vmem:[%s17119_s11 + $0x1e08] ss:$16 sps:$4 sm:$0xff]   ;;  %v16506_v4 = vld [vmem:[%s17119_s11 + $0x1fec] ss:$16 sps:$4 sm:$0xff]  }
 0x4f1   : > { %11665 = vmatpush2.bf16.msra.mxu0 %v16444_v16  ;;  %v16509_v16 = vld [vmem:[%s17119_s11 + $0x20ec] ss:$16 sps:$4 sm:$0xff]  }
 0x4f2   : > { %11690 = vmatpush1.bf16.msra.mxu1 %v16447_v30  ;;  %11666 = vmatprep.subr.bf16.mxu0 %v16452_v59  ;;  %v16504_v30 = vld [vmem:[%s17119_s11 + $0x1fe8] ss:$16 sps:$4 sm:$0xff]  }
 0x4f3   : > { %11691 = vmatprep.subr.bf16.mxu1 %v16455_v45  ;;  %v16507_v59 = vld [vmem:[%s17119_s11 + $0x20e8] ss:$16 sps:$4 sm:$0xff]   ;;  %v16512_v45 = vld [vmem:[%s17119_s11 + $0x1fcc] ss:$16 sps:$4 sm:$0xff]  }
 0x4f5   : > { %11667 = vmatpush2.bf16.msra.mxu0 %v16450_v56  ;;  %v16515_v56 = vld [vmem:[%s17119_s11 + $0x20cc] ss:$16 sps:$4 sm:$0xff]  }
 0x4f6   : > { %11692 = vmatpush1.bf16.msra.mxu1 %v16453_v52  ;;  %11718 = vmatprep.subr.bf16.mxu0 %v16461_v20  ;;  %v16510_v20 = vld [vmem:[%s17119_s11 + $0x1fc8] ss:$16 sps:$4 sm:$0xff]  }
 0x4f7   : > { %11693 = vmatprep.subr.bf16.mxu1 %v16458_v60 }
 0x4f8   : > { %v11424_v21 = vpop.f32.mrf.mxu0  ;;  %11669 = vmatmul.mubr.bf16.vlgmr.msra.gmra.mxu0 %v17782_v12 }
 0x4f9   : > { %v18850_v53 = vadd.f32 %v11424_v21, %v18810_v47  ;;  %11719 = vmatpush1.bf16.msra.mxu0 %v16459_v8  ;;  %11750 = vmatprep.mubr.bf16.mxu0 %v17790_v14  ;;  %v16477_v14 = vld [vmem:[%s17119_s11 + $0x1e88] ss:$16 sps:$4 sm:$0xff]  }
 0x4fa   : > { %11694 = vmatpush2.bf16.msra.mxu1 %v16456_v22  ;;  %v11426_v15 = vpop.f32.mrf.mxu0  ;;  %11720 = vmatprep.subr.bf16.mxu0 %v16467_v39  ;;  %v16513_v22 = vld [vmem:[%s17119_s11 + $0x20c8] ss:$16 sps:$4 sm:$0xff]   ;;  %v16521_v39 = vld [vmem:[%s17119_s11 + $0x20ac] ss:$16 sps:$4 sm:$0xff]  }
 0x4fb   : > { %11695 = vmatprep.subr.bf16.mxu1 %v16464_v1  ;;  %v18857_v12 = vadd.f32 %v11426_v15, %v18817_v57  ;;  %v16474_v57 = vld [vmem:[%s17119_s11 + $0x1d88] ss:$16 sps:$4 sm:$0xff]   ;;  %v16518_v1 = vld [vmem:[%s17119_s11 + $0x1fac] ss:$16 sps:$4 sm:$0xff]  }
 0x4fc   : > { %v11428_v47 = vpop.f32.mrf.mxu0  ;;  %v16524_v15 = vld [vmem:[%s17119_s11 + $0x1f8c] ss:$16 sps:$4 sm:$0xff]  }
 0x4fd   : > { %11721 = vmatpush1.bf16.msra.mxu0 %v16465_v7  ;;  %v16533_v47 = vld [vmem:[%s17119_s11 + $0x206c] ss:$16 sps:$4 sm:$0xff]  }
 0x4fe   : > { %11696 = vmatpush2.bf16.msra.mxu1 %v16462_v25  ;;  %v11429_v32 = vpop.f32.mrf.mxu0  ;;  %11722 = vmatprep.subr.bf16.mxu0 %v16473_v9  ;;  %v16519_v25 = vld [vmem:[%s17119_s11 + $0x20a8] ss:$16 sps:$4 sm:$0xff]  }
 0x4ff   : > { %11697 = vmatprep.subr.bf16.mxu1 %v16470_v26  ;;  %v16527_v26 = vld [vmem:[%s17119_s11 + $0x208c] ss:$16 sps:$4 sm:$0xff]   ;;  %v16522_v9 = vld [vmem:[%s17119_s11 + $0x1f88] ss:$16 sps:$4 sm:$0xff]  }
 0x500   : > { %v16536_v32 = vld [vmem:[%s17119_s11 + $0x1f4c] ss:$16 sps:$4 sm:$0xff]  }
 0x501   : > { %11723 = vmatpush1.bf16.msra.mxu0 %v16471_v29  ;;  %v16531_v29 = vld [vmem:[%s17119_s11 + $0x2068] ss:$16 sps:$4 sm:$0xff]  }
 0x502   : > { %11698 = vmatpush2.bf16.msra.mxu1 %v16468_v2  ;;  %11724 = vmatprep.subr.bf16.mxu0 %v16479_v63  ;;  %v16528_v2 = vld [vmem:[%s17119_s11 + $0x1f68] ss:$16 sps:$4 sm:$0xff]  }
 0x503   : > { %11699 = vmatprep.subr.bf16.mxu1 %v16476_v54  ;;  %v16539_v54 = vld [vmem:[%s17119_s11 + $0x204c] ss:$16 sps:$4 sm:$0xff]   ;;  %v16534_v63 = vld [vmem:[%s17119_s11 + $0x1f48] ss:$16 sps:$4 sm:$0xff]  }
 0x505   : > { %11725 = vmatpush1.bf16.msra.mxu0 %v16477_v14  ;;  %v16542_v14 = vld [vmem:[%s17119_s11 + $0x1f2c] ss:$16 sps:$4 sm:$0xff]  }
 0x506   : > { %11700 = vmatpush2.bf16.msra.mxu1 %v16474_v57  ;;  %11726 = vmatprep.subr.bf16.mxu0 %v16485_v6  ;;  %v16537_v57 = vld [vmem:[%s17119_s11 + $0x2048] ss:$16 sps:$4 sm:$0xff]  }
 0x507   : > { %11701 = vmatprep.subr.bf16.mxu1 %v16482_v10  ;;  %v16545_v10 = vld [vmem:[%s17119_s11 + $0x202c] ss:$16 sps:$4 sm:$0xff]   ;;  %v16540_v6 = vld [vmem:[%s17119_s11 + $0x1f28] ss:$16 sps:$4 sm:$0xff]  }
 0x509   : > { %11727 = vmatpush1.bf16.msra.mxu0 %v16483_v62  ;;  %v16548_v62 = vld [vmem:[%s17119_s11 + $0x1f0c] ss:$16 sps:$4 sm:$0xff]  }
 0x50a   : > { %11702 = vmatpush2.bf16.msra.mxu1 %v16480_v33  ;;  %11728 = vmatprep.subr.bf16.mxu0 %v16491_v5  ;;  %v16543_v33 = vld [vmem:[%s17119_s11 + $0x2028] ss:$16 sps:$4 sm:$0xff]  }
 0x50b   : > { %11703 = vmatprep.subr.bf16.mxu1 %v16488_v19  ;;  %v16551_v19 = vld [vmem:[%s17119_s11 + $0x200c] ss:$16 sps:$4 sm:$0xff]   ;;  %v16546_v5 = vld [vmem:[%s17119_s11 + $0x1f08] ss:$16 sps:$4 sm:$0xff]  }
 0x50d   : > { %11729 = vmatpush1.bf16.msra.mxu0 %v16489_v27  ;;  %v16554_v27 = vld [vmem:[%s17119_s11 + $0x21ec] ss:$16 sps:$4 sm:$0xff]  }
 0x50e   : > { %11704 = vmatpush2.bf16.msra.mxu1 %v16486_v3  ;;  %11730 = vmatprep.subr.bf16.mxu0 %v16497_v31  ;;  %v16549_v3 = vld [vmem:[%s17119_s11 + $0x2008] ss:$16 sps:$4 sm:$0xff]  }
 0x50f   : > { %11705 = vmatprep.subr.bf16.mxu1 %v16494_v24  ;;  %v16557_v24 = vld [vmem:[%s17119_s11 + $0x22ec] ss:$16 sps:$4 sm:$0xff]   ;;  %v16552_v31 = vld [vmem:[%s17119_s11 + $0x21e8] ss:$16 sps:$4 sm:$0xff]  }
 0x511   : > { %11731 = vmatpush1.bf16.msra.mxu0 %v16495_v50  ;;  %v16560_v50 = vld [vmem:[%s17119_s11 + $0x21cc] ss:$16 sps:$4 sm:$0xff]  }
 0x512   : > { %11706 = vmatpush2.bf16.msra.mxu1 %v16492_v23  ;;  %11732 = vmatprep.subr.bf16.mxu0 %v16503_v11  ;;  %v16555_v23 = vld [vmem:[%s17119_s11 + $0x22e8] ss:$16 sps:$4 sm:$0xff]  }
 0x513   : > { %11707 = vmatprep.subr.bf16.mxu1 %v16500_v13  ;;  %v16563_v13 = vld [vmem:[%s17119_s11 + $0x22cc] ss:$16 sps:$4 sm:$0xff]  }
 0x515   : > { %11733 = vmatpush1.bf16.msra.mxu0 %v16501_v34  ;;  %v16558_v34 = vld [vmem:[%s17119_s11 + $0x21c8] ss:$16 sps:$4 sm:$0xff]  }
 0x516   : > { %11708 = vmatpush2.bf16.msra.mxu1 %v16498_v37  ;;  %11734 = vmatprep.subr.bf16.mxu0 %v16506_v4  ;;  %v16561_v4 = vld [vmem:[%s17119_s11 + $0x22c8] ss:$16 sps:$4 sm:$0xff]  }
 0x517   : > { %11759 = vmatprep.subr.bf16.mxu1 %v16509_v16 }
 0x519   : > { %v11465_v52 = vpop.f32.mrf.mxu1  ;;  %11710 = vmatmul.mubr.bf16.vlgmr.msra.gmra.mxu1 %v17867_v42  ;;  %11735 = vmatpush2.bf16.msra.mxu0 %v16504_v30  ;;  %v16566_v30 = vld [vmem:[%s17119_s11 + $0x21ac] ss:$16 sps:$4 sm:$0xff]  }
 0x51a   : > { %v18890_v60 = vadd.f32 %v11465_v52, %v18850_v53  ;;  %11760 = vmatpush1.bf16.msra.mxu1 %v16507_v59  ;;  %11736 = vmatprep.subr.bf16.mxu0 %v16512_v45  ;;  %v16516_v53 = vld [vmem:[%s17119_s11 + $0x1fa8] ss:$16 sps:$4 sm:$0xff]   ;;  %v16569_v59 = vld [vmem:[%s17119_s11 + $0x22ac] ss:$16 sps:$4 sm:$0xff]  }
 0x51b   : > { %v11467_v8 = vpop.f32.mrf.mxu1  ;;  %11761 = vmatprep.subr.bf16.mxu1 %v16515_v56  ;;  %11791 = vmatprep.mubr.bf16.mxu1 %v17876_v58  ;;  %v16525_v58 = vld [vmem:[%s17119_s11 + $0x2088] ss:$16 sps:$4 sm:$0xff]  }
 0x51c   : > { %v18897_v42 = vadd.f32 %v11467_v8, %v18857_v12  ;;  %v16530_v12 = vld [vmem:[%s17119_s11 + $0x1f6c] ss:$16 sps:$4 sm:$0xff]   ;;  %v16564_v56 = vld [vmem:[%s17119_s11 + $0x21a8] ss:$16 sps:$4 sm:$0xff]  }
 0x51d   : > { %v11469_v21 = vpop.f32.mrf.mxu1  ;;  %11737 = vmatpush2.bf16.msra.mxu0 %v16510_v20  ;;  %v16567_v52 = vld [vmem:[%s17119_s11 + $0x22a8] ss:$16 sps:$4 sm:$0xff]   ;;  %v16572_v20 = vld [vmem:[%s17119_s11 + $0x218c] ss:$16 sps:$4 sm:$0xff]  }
 0x51e   : > { %11762 = vmatpush1.bf16.msra.mxu1 %v16513_v22  ;;  %11738 = vmatprep.subr.bf16.mxu0 %v16518_v1  ;;  %v16575_v22 = vld [vmem:[%s17119_s11 + $0x228c] ss:$16 sps:$4 sm:$0xff]   ;;  %v16570_v8 = vld [vmem:[%s17119_s11 + $0x2188] ss:$16 sps:$4 sm:$0xff]  }
 0x51f   : > { %v11470_v7 = vpop.f32.mrf.mxu1  ;;  %11763 = vmatprep.subr.bf16.mxu1 %v16521_v39  ;;  %v16578_v1 = vld [vmem:[%s17119_s11 + $0x216c] ss:$16 sps:$4 sm:$0xff]   ;;  %v16579_v21 = vld [vmem:[%s17119_s11 + $0x2268] ss:$16 sps:$4 sm:$0xff]  }
 0x520   : > { %v16581_v39 = vld [vmem:[%s17119_s11 + $0x226c] ss:$16 sps:$4 sm:$0xff]   ;;  %v16582_v7 = vld [vmem:[%s17119_s11 + $0x2148] ss:$16 sps:$4 sm:$0xff]  }
 0x521   : > { %11739 = vmatpush2.bf16.msra.mxu0 %v16516_v53  ;;  %v16584_v53 = vld [vmem:[%s17119_s11 + $0x214c] ss:$16 sps:$4 sm:$0xff]  }
 0x522   : > { %11764 = vmatpush1.bf16.msra.mxu1 %v16519_v25  ;;  %11740 = vmatprep.subr.bf16.mxu0 %v16524_v15  ;;  %v16587_v25 = vld [vmem:[%s17119_s11 + $0x224c] ss:$16 sps:$4 sm:$0xff]   ;;  %v16585_v15 = vld [vmem:[%s17119_s11 + $0x2248] ss:$16 sps:$4 sm:$0xff]  }
 0x523   : > { %11765 = vmatprep.subr.bf16.mxu1 %v16527_v26  ;;  %v16590_v26 = vld [vmem:[%s17119_s11 + $0x212c] ss:$16 sps:$4 sm:$0xff]  }
 0x525   : > { %11741 = vmatpush2.bf16.msra.mxu0 %v16522_v9  ;;  %v16593_v9 = vld [vmem:[%s17119_s11 + $0x222c] ss:$16 sps:$4 sm:$0xff]  }
 0x526   : > { %11766 = vmatpush1.bf16.msra.mxu1 %v16525_v58  ;;  %11742 = vmatprep.subr.bf16.mxu0 %v16530_v12  ;;  %v16588_v58 = vld [vmem:[%s17119_s11 + $0x2128] ss:$16 sps:$4 sm:$0xff]  }
 0x527   : > { %11767 = vmatprep.subr.bf16.mxu1 %v16533_v47  ;;  %v16591_v12 = vld [vmem:[%s17119_s11 + $0x2228] ss:$16 sps:$4 sm:$0xff]   ;;  %v16596_v47 = vld [vmem:[%s17119_s11 + $0x210c] ss:$16 sps:$4 sm:$0xff]  }
 0x529   : > { %11743 = vmatpush2.bf16.msra.mxu0 %v16528_v2  ;;  %v16599_v2 = vld [vmem:[%s17119_s11 + $0x220c] ss:$16 sps:$4 sm:$0xff]  }
 0x52a   : > { %11768 = vmatpush1.bf16.msra.mxu1 %v16531_v29  ;;  %11744 = vmatprep.subr.bf16.mxu0 %v16536_v32  ;;  %v16594_v29 = vld [vmem:[%s17119_s11 + $0x2108] ss:$16 sps:$4 sm:$0xff]  }
 0x52b   : > { %11769 = vmatprep.subr.bf16.mxu1 %v16539_v54  ;;  %v16597_v32 = vld [vmem:[%s17119_s11 + $0x2208] ss:$16 sps:$4 sm:$0xff]   ;;  %v16602_v54 = vld [vmem:[%s17119_s11 + $0x23ec] ss:$16 sps:$4 sm:$0xff]  }
 0x52d   : > { %11745 = vmatpush2.bf16.msra.mxu0 %v16534_v63  ;;  %v16605_v63 = vld [vmem:[%s17119_s11 + $0x24ec] ss:$16 sps:$4 sm:$0xff]  }
 0x52e   : > { %11770 = vmatpush1.bf16.msra.mxu1 %v16537_v57  ;;  %11746 = vmatprep.subr.bf16.mxu0 %v16542_v14  ;;  %v16600_v57 = vld [vmem:[%s17119_s11 + $0x23e8] ss:$16 sps:$4 sm:$0xff]  }
 0x52f   : > { %11771 = vmatprep.subr.bf16.mxu1 %v16545_v10  ;;  %v16603_v14 = vld [vmem:[%s17119_s11 + $0x24e8] ss:$16 sps:$4 sm:$0xff]   ;;  %v16608_v10 = vld [vmem:[%s17119_s11 + $0x23cc] ss:$16 sps:$4 sm:$0xff]  }
 0x531   : > { %11747 = vmatpush2.bf16.msra.mxu0 %v16540_v6  ;;  %v16611_v6 = vld [vmem:[%s17119_s11 + $0x24cc] ss:$16 sps:$4 sm:$0xff]  }
 0x532   : > { %11772 = vmatpush1.bf16.msra.mxu1 %v16543_v33  ;;  %11748 = vmatprep.subr.bf16.mxu0 %v16548_v62 }
 0x533   : > { %11773 = vmatprep.subr.bf16.mxu1 %v16551_v19  ;;  %v16606_v19 = vld [vmem:[%s17119_s11 + $0x23c8] ss:$16 sps:$4 sm:$0xff]  }
 0x535   : > { %11749 = vmatpush2.bf16.msra.mxu0 %v16546_v5  ;;  %v16609_v5 = vld [vmem:[%s17119_s11 + $0x24c8] ss:$16 sps:$4 sm:$0xff]  }
 0x536   : > { %11774 = vmatpush1.bf16.msra.mxu1 %v16549_v3  ;;  %11800 = vmatprep.subr.bf16.mxu0 %v16557_v24  ;;  %v16617_v24 = vld [vmem:[%s17119_s11 + $0x24ac] ss:$16 sps:$4 sm:$0xff]  }
 0x537   : > { %11775 = vmatprep.subr.bf16.mxu1 %v16554_v27  ;;  %v16614_v27 = vld [vmem:[%s17119_s11 + $0x23ac] ss:$16 sps:$4 sm:$0xff]  }
 0x538   : > { %v11506_v11 = vpop.f32.mrf.mxu0  ;;  %11751 = vmatmul.mubr.bf16.vlgmr.msra.gmra.mxu0 %v17880_v44 }
 0x539   : > { %v18930_v37 = vadd.f32 %v11506_v11, %v18890_v60  ;;  %11801 = vmatpush1.bf16.msra.mxu0 %v16555_v23  ;;  %11832 = vmatprep.mubr.bf16.mxu0 %v17888_v49  ;;  %v16573_v49 = vld [vmem:[%s17119_s11 + $0x2288] ss:$16 sps:$4 sm:$0xff]   ;;  %v16620_v11 = vld [vmem:[%s17119_s11 + $0x238c] ss:$16 sps:$4 sm:$0xff]  }
 0x53a   : > { %11776 = vmatpush2.bf16.msra.mxu1 %v16552_v31  ;;  %v11508_v16 = vpop.f32.mrf.mxu0  ;;  %11802 = vmatprep.subr.bf16.mxu0 %v16563_v13  ;;  %v16612_v23 = vld [vmem:[%s17119_s11 + $0x23a8] ss:$16 sps:$4 sm:$0xff]  }
 0x53b   : > { %11777 = vmatprep.subr.bf16.mxu1 %v16560_v50  ;;  %v18937_v44 = vadd.f32 %v11508_v16, %v18897_v42  ;;  %v16576_v42 = vld [vmem:[%s17119_s11 + $0x2168] ss:$16 sps:$4 sm:$0xff]   ;;  %v16629_v16 = vld [vmem:[%s17119_s11 + $0x246c] ss:$16 sps:$4 sm:$0xff]  }
 0x53c   : > { %v11510_v45 = vpop.f32.mrf.mxu0  ;;  %v16615_v50 = vld [vmem:[%s17119_s11 + $0x24a8] ss:$16 sps:$4 sm:$0xff]  }
 0x53d   : > { %11803 = vmatpush1.bf16.msra.mxu0 %v16561_v4  ;;  %v16626_v4 = vld [vmem:[%s17119_s11 + $0x236c] ss:$16 sps:$4 sm:$0xff]  }
 0x53e   : > { %11778 = vmatpush2.bf16.msra.mxu1 %v16558_v34  ;;  %v11511_v60 = vpop.f32.mrf.mxu0  ;;  %11804 = vmatprep.subr.bf16.mxu0 %v16569_v59  ;;  %v16618_v34 = vld [vmem:[%s17119_s11 + $0x2388] ss:$16 sps:$4 sm:$0xff]   ;;  %v16635_v45 = vld [vmem:[%s17119_s11 + $0x244c] ss:$16 sps:$4 sm:$0xff]  }
 0x53f   : > { %11779 = vmatprep.subr.bf16.mxu1 %v16566_v30  ;;  %v16624_v30 = vld [vmem:[%s17119_s11 + $0x2368] ss:$16 sps:$4 sm:$0xff]   ;;  %v16638_v60 = vld [vmem:[%s17119_s11 + $0x232c] ss:$16 sps:$4 sm:$0xff]  }
 0x540   : > { %v16627_v59 = vld [vmem:[%s17119_s11 + $0x2468] ss:$16 sps:$4 sm:$0xff]  }
 0x541   : > { %11805 = vmatpush1.bf16.msra.mxu0 %v16567_v52  ;;  %v16633_v52 = vld [vmem:[%s17119_s11 + $0x2448] ss:$16 sps:$4 sm:$0xff]  }
 0x542   : > { %11780 = vmatpush2.bf16.msra.mxu1 %v16564_v56  ;;  %11806 = vmatprep.subr.bf16.mxu0 %v16575_v22  ;;  %v16630_v56 = vld [vmem:[%s17119_s11 + $0x2348] ss:$16 sps:$4 sm:$0xff]  }
 0x543   : > { %11781 = vmatprep.subr.bf16.mxu1 %v16572_v20  ;;  %v16641_v20 = vld [vmem:[%s17119_s11 + $0x242c] ss:$16 sps:$4 sm:$0xff]   ;;  %v16636_v22 = vld [vmem:[%s17119_s11 + $0x2328] ss:$16 sps:$4 sm:$0xff]  }
 0x545   : > { %11807 = vmatpush1.bf16.msra.mxu0 %v16573_v49  ;;  %v16644_v49 = vld [vmem:[%s17119_s11 + $0x230c] ss:$16 sps:$4 sm:$0xff]  }
 0x546   : > { %11782 = vmatpush2.bf16.msra.mxu1 %v16570_v8  ;;  %11808 = vmatprep.subr.bf16.mxu0 %v16581_v39  ;;  %v16639_v8 = vld [vmem:[%s17119_s11 + $0x2428] ss:$16 sps:$4 sm:$0xff]  }
 0x547   : > { %11783 = vmatprep.subr.bf16.mxu1 %v16578_v1  ;;  %v16647_v1 = vld [vmem:[%s17119_s11 + $0x240c] ss:$16 sps:$4 sm:$0xff]   ;;  %v16642_v39 = vld [vmem:[%s17119_s11 + $0x2308] ss:$16 sps:$4 sm:$0xff]  }
 0x549   : > { %11809 = vmatpush1.bf16.msra.mxu0 %v16579_v21  ;;  %v16650_v21 = vld [vmem:[%s17119_s11 + $0x25ec] ss:$16 sps:$4 sm:$0xff]  }
 0x54a   : > { %11784 = vmatpush2.bf16.msra.mxu1 %v16576_v42  ;;  %11810 = vmatprep.subr.bf16.mxu0 %v16587_v25  ;;  %v16645_v42 = vld [vmem:[%s17119_s11 + $0x2408] ss:$16 sps:$4 sm:$0xff]  }
 0x54b   : > { %11785 = vmatprep.subr.bf16.mxu1 %v16584_v53  ;;  %v16653_v53 = vld [vmem:[%s17119_s11 + $0x26ec] ss:$16 sps:$4 sm:$0xff]   ;;  %v16648_v25 = vld [vmem:[%s17119_s11 + $0x25e8] ss:$16 sps:$4 sm:$0xff]  }
 0x54d   : > { %11811 = vmatpush1.bf16.msra.mxu0 %v16585_v15  ;;  %v16656_v15 = vld [vmem:[%s17119_s11 + $0x25cc] ss:$16 sps:$4 sm:$0xff]  }
 0x54e   : > { %11786 = vmatpush2.bf16.msra.mxu1 %v16582_v7  ;;  %11812 = vmatprep.subr.bf16.mxu0 %v16593_v9  ;;  %v16651_v7 = vld [vmem:[%s17119_s11 + $0x26e8] ss:$16 sps:$4 sm:$0xff]  }
 0x54f   : > { %11787 = vmatprep.subr.bf16.mxu1 %v16590_v26  ;;  %v16659_v26 = vld [vmem:[%s17119_s11 + $0x26cc] ss:$16 sps:$4 sm:$0xff]  }
 0x551   : > { %11813 = vmatpush1.bf16.msra.mxu0 %v16591_v12  ;;  %v16654_v12 = vld [vmem:[%s17119_s11 + $0x25c8] ss:$16 sps:$4 sm:$0xff]  }
 0x552   : > { %11788 = vmatpush2.bf16.msra.mxu1 %v16588_v58  ;;  %11814 = vmatprep.subr.bf16.mxu0 %v16599_v2 }
 0x553   : > { %11789 = vmatprep.subr.bf16.mxu1 %v16596_v47  ;;  %v16657_v47 = vld [vmem:[%s17119_s11 + $0x26c8] ss:$16 sps:$4 sm:$0xff]  }
 0x555   : > { %11815 = vmatpush1.bf16.msra.mxu0 %v16597_v32  ;;  %v16665_v32 = vld [vmem:[%s17119_s11 + $0x26ac] ss:$16 sps:$4 sm:$0xff]  }
 0x556   : > { %11790 = vmatpush2.bf16.msra.mxu1 %v16594_v29  ;;  %11816 = vmatprep.subr.bf16.mxu0 %v16602_v54  ;;  %v16662_v29 = vld [vmem:[%s17119_s11 + $0x25ac] ss:$16 sps:$4 sm:$0xff]  }
 0x557   : > { %11841 = vmatprep.subr.bf16.mxu1 %v16605_v63  ;;  %v16660_v63 = vld [vmem:[%s17119_s11 + $0x25a8] ss:$16 sps:$4 sm:$0xff]  }
 0x559   : > { %v11547_v33 = vpop.f32.mrf.mxu1  ;;  %11792 = vmatmul.mubr.bf16.vlgmr.msra.gmra.mxu1 %v17963_v61  ;;  %11817 = vmatpush2.bf16.msra.mxu0 %v16600_v57  ;;  %v16663_v57 = vld [vmem:[%s17119_s11 + $0x26a8] ss:$16 sps:$4 sm:$0xff]  }
 0x55a   : > { %v18970_v62 = vadd.f32 %v11547_v33, %v18930_v37  ;;  %11842 = vmatpush1.bf16.msra.mxu1 %v16603_v14  ;;  %11818 = vmatprep.subr.bf16.mxu0 %v16608_v10  ;;  %v16623_v37 = vld [vmem:[%s17119_s11 + $0x248c] ss:$16 sps:$4 sm:$0xff]   ;;  %v16666_v33 = vld [vmem:[%s17119_s11 + $0x2588] ss:$16 sps:$4 sm:$0xff]  }
 0x55b   : > { %v11549_v3 = vpop.f32.mrf.mxu1  ;;  %11843 = vmatprep.subr.bf16.mxu1 %v16611_v6  ;;  %11873 = vmatprep.mubr.bf16.mxu1 %v17972_v17  ;;  %v16621_v17 = vld [vmem:[%s17119_s11 + $0x2488] ss:$16 sps:$4 sm:$0xff]   ;;  %v16668_v10 = vld [vmem:[%s17119_s11 + $0x258c] ss:$16 sps:$4 sm:$0xff]  }
 0x55c   : > { %v18977_v61 = vadd.f32 %v11549_v3, %v18937_v44  ;;  %v16632_v44 = vld [vmem:[%s17119_s11 + $0x234c] ss:$16 sps:$4 sm:$0xff]   ;;  %v16675_v3 = vld [vmem:[%s17119_s11 + $0x2668] ss:$16 sps:$4 sm:$0xff]  }
 0x55d   : > { %v11551_v31 = vpop.f32.mrf.mxu1  ;;  %11819 = vmatpush2.bf16.msra.mxu0 %v16606_v19  ;;  %v16671_v6 = vld [vmem:[%s17119_s11 + $0x268c] ss:$16 sps:$4 sm:$0xff]  }
 0x55e   : > { %11844 = vmatpush1.bf16.msra.mxu1 %v16609_v5  ;;  %11820 = vmatprep.subr.bf16.mxu0 %v16614_v27  ;;  %v16677_v19 = vld [vmem:[%s17119_s11 + $0x266c] ss:$16 sps:$4 sm:$0xff]   ;;  %v16672_v5 = vld [vmem:[%s17119_s11 + $0x2568] ss:$16 sps:$4 sm:$0xff]  }
 0x55f   : > { %v11552_v13 = vpop.f32.mrf.mxu1  ;;  %11845 = vmatprep.subr.bf16.mxu1 %v16617_v24  ;;  %v16680_v27 = vld [vmem:[%s17119_s11 + $0x254c] ss:$16 sps:$4 sm:$0xff]   ;;  %v16681_v31 = vld [vmem:[%s17119_s11 + $0x2648] ss:$16 sps:$4 sm:$0xff]  }
 0x560   : > { %v16683_v24 = vld [vmem:[%s17119_s11 + $0x264c] ss:$16 sps:$4 sm:$0xff]   ;;  %v16684_v13 = vld [vmem:[%s17119_s11 + $0x2528] ss:$16 sps:$4 sm:$0xff]  }
 0x561   : > { %11821 = vmatpush2.bf16.msra.mxu0 %v16612_v23  ;;  %v16686_v23 = vld [vmem:[%s17119_s11 + $0x252c] ss:$16 sps:$4 sm:$0xff]  }
 0x562   : > { %11846 = vmatpush1.bf16.msra.mxu1 %v16615_v50  ;;  %11822 = vmatprep.subr.bf16.mxu0 %v16620_v11  ;;  %v16689_v50 = vld [vmem:[%s17119_s11 + $0x262c] ss:$16 sps:$4 sm:$0xff]   ;;  %v16687_v11 = vld [vmem:[%s17119_s11 + $0x2628] ss:$16 sps:$4 sm:$0xff]  }
 0x563   : > { %11847 = vmatprep.subr.bf16.mxu1 %v16623_v37  ;;  %v16692_v37 = vld [vmem:[%s17119_s11 + $0x250c] ss:$16 sps:$4 sm:$0xff]  }
 0x565   : > { %11823 = vmatpush2.bf16.msra.mxu0 %v16618_v34  ;;  %v16695_v34 = vld [vmem:[%s17119_s11 + $0x260c] ss:$16 sps:$4 sm:$0xff]  }
 0x566   : > { %11848 = vmatpush1.bf16.msra.mxu1 %v16621_v17  ;;  %11824 = vmatprep.subr.bf16.mxu0 %v16626_v4  ;;  %v16690_v17 = vld [vmem:[%s17119_s11 + $0x2508] ss:$16 sps:$4 sm:$0xff]  }
 0x567   : > { %11849 = vmatprep.subr.bf16.mxu1 %v16629_v16  ;;  %v16693_v4 = vld [vmem:[%s17119_s11 + $0x2608] ss:$16 sps:$4 sm:$0xff]   ;;  %v16698_v16 = vld [vmem:[%s17119_s11 + $0x27ec] ss:$16 sps:$4 sm:$0xff]  }
 0x569   : > { %11825 = vmatpush2.bf16.msra.mxu0 %v16624_v30  ;;  %v16701_v30 = vld [vmem:[%s17119_s11 + $0x28ec] ss:$16 sps:$4 sm:$0xff]  }
 0x56a   : > { %11850 = vmatpush1.bf16.msra.mxu1 %v16627_v59  ;;  %11826 = vmatprep.subr.bf16.mxu0 %v16632_v44  ;;  %v16696_v59 = vld [vmem:[%s17119_s11 + $0x27e8] ss:$16 sps:$4 sm:$0xff]  }
 0x56b   : > { %11851 = vmatprep.subr.bf16.mxu1 %v16635_v45  ;;  %v16699_v44 = vld [vmem:[%s17119_s11 + $0x28e8] ss:$16 sps:$4 sm:$0xff]   ;;  %v16704_v45 = vld [vmem:[%s17119_s11 + $0x27cc] ss:$16 sps:$4 sm:$0xff]  }
 0x56d   : > { %11827 = vmatpush2.bf16.msra.mxu0 %v16630_v56  ;;  %v16707_v56 = vld [vmem:[%s17119_s11 + $0x28cc] ss:$16 sps:$4 sm:$0xff]  }
 0x56e   : > { %11852 = vmatpush1.bf16.msra.mxu1 %v16633_v52  ;;  %11828 = vmatprep.subr.bf16.mxu0 %v16638_v60 }
 0x56f   : > { %11853 = vmatprep.subr.bf16.mxu1 %v16641_v20  ;;  %v16702_v20 = vld [vmem:[%s17119_s11 + $0x27c8] ss:$16 sps:$4 sm:$0xff]  }
 0x571   : > { %11829 = vmatpush2.bf16.msra.mxu0 %v16636_v22  ;;  %v16705_v22 = vld [vmem:[%s17119_s11 + $0x28c8] ss:$16 sps:$4 sm:$0xff]  }
 0x572   : > { %11854 = vmatpush1.bf16.msra.mxu1 %v16639_v8  ;;  %11830 = vmatprep.subr.bf16.mxu0 %v16644_v49  ;;  %v16710_v49 = vld [vmem:[%s17119_s11 + $0x27ac] ss:$16 sps:$4 sm:$0xff]  }
 0x573   : > { %11855 = vmatprep.subr.bf16.mxu1 %v16647_v1  ;;  %v16713_v1 = vld [vmem:[%s17119_s11 + $0x28ac] ss:$16 sps:$4 sm:$0xff]  }
 0x575   : > { %11831 = vmatpush2.bf16.msra.mxu0 %v16642_v39 }
 0x576   : > { %11856 = vmatpush1.bf16.msra.mxu1 %v16645_v42  ;;  %11882 = vmatprep.subr.bf16.mxu0 %v16653_v53  ;;  %v16708_v42 = vld [vmem:[%s17119_s11 + $0x27a8] ss:$16 sps:$4 sm:$0xff]  }
 0x577   : > { %11857 = vmatprep.subr.bf16.mxu1 %v16650_v21  ;;  %v16711_v21 = vld [vmem:[%s17119_s11 + $0x28a8] ss:$16 sps:$4 sm:$0xff]  }
 0x578   : > { %v11588_v9 = vpop.f32.mrf.mxu0  ;;  %11833 = vmatmul.mubr.bf16.vlgmr.msra.gmra.mxu0 %v17976_v48 }
 0x579   : > { %v19010_v58 = vadd.f32 %v11588_v9, %v18970_v62  ;;  %11883 = vmatpush1.bf16.msra.mxu0 %v16651_v7  ;;  %11914 = vmatprep.mubr.bf16.mxu0 %v17984_v36  ;;  %v16669_v36 = vld [vmem:[%s17119_s11 + $0x2688] ss:$16 sps:$4 sm:$0xff]   ;;  %v16674_v62 = vld [vmem:[%s17119_s11 + $0x256c] ss:$16 sps:$4 sm:$0xff]  }
 0x57a   : > { %11858 = vmatpush2.bf16.msra.mxu1 %v16648_v25  ;;  %v11590_v2 = vpop.f32.mrf.mxu0  ;;  %11884 = vmatprep.subr.bf16.mxu0 %v16659_v26  ;;  %v16716_v25 = vld [vmem:[%s17119_s11 + $0x278c] ss:$16 sps:$4 sm:$0xff]  }
 0x57b   : > { %11859 = vmatprep.subr.bf16.mxu1 %v16656_v15  ;;  %v19017_v48 = vadd.f32 %v11590_v2, %v18977_v61  ;;  %v16678_v61 = vld [vmem:[%s17119_s11 + $0x2548] ss:$16 sps:$4 sm:$0xff]   ;;  %v16719_v7 = vld [vmem:[%s17119_s11 + $0x288c] ss:$16 sps:$4 sm:$0xff]  }
 0x57c   : > { %v11592_v54 = vpop.f32.mrf.mxu0  ;;  %v16714_v15 = vld [vmem:[%s17119_s11 + $0x2788] ss:$16 sps:$4 sm:$0xff]   ;;  %v16722_v26 = vld [vmem:[%s17119_s11 + $0x276c] ss:$16 sps:$4 sm:$0xff]  }
 0x57d   : > { %11885 = vmatpush1.bf16.msra.mxu0 %v16657_v47  ;;  %v16725_v9 = vld [vmem:[%s17119_s11 + $0x286c] ss:$16 sps:$4 sm:$0xff]  }
 0x57e   : > { %11860 = vmatpush2.bf16.msra.mxu1 %v16654_v12  ;;  %v11593_v14 = vpop.f32.mrf.mxu0  ;;  %11886 = vmatprep.subr.bf16.mxu0 %v16665_v32  ;;  %v16723_v12 = vld [vmem:[%s17119_s11 + $0x2868] ss:$16 sps:$4 sm:$0xff]   ;;  %v16728_v47 = vld [vmem:[%s17119_s11 + $0x274c] ss:$16 sps:$4 sm:$0xff]  }
 0x57f   : > { %11861 = vmatprep.subr.bf16.mxu1 %v16662_v29  ;;  %v16731_v2 = vld [vmem:[%s17119_s11 + $0x284c] ss:$16 sps:$4 sm:$0xff]   ;;  %v16726_v29 = vld [vmem:[%s17119_s11 + $0x2748] ss:$16 sps:$4 sm:$0xff]  }
 0x580   : > { %v16729_v32 = vld [vmem:[%s17119_s11 + $0x2848] ss:$16 sps:$4 sm:$0xff]   ;;  %v16737_v54 = vld [vmem:[%s17119_s11 + $0x282c] ss:$16 sps:$4 sm:$0xff]  }
 0x581   : > { %11887 = vmatpush1.bf16.msra.mxu0 %v16663_v57  ;;  %v16735_v57 = vld [vmem:[%s17119_s11 + $0x2828] ss:$16 sps:$4 sm:$0xff]   ;;  %v16740_v14 = vld [vmem:[%s17119_s11 + $0x270c] ss:$16 sps:$4 sm:$0xff]  }
 0x582   : > { %11862 = vmatpush2.bf16.msra.mxu1 %v16660_v63  ;;  %11888 = vmatprep.subr.bf16.mxu0 %v16671_v6  ;;  %v16732_v63 = vld [vmem:[%s17119_s11 + $0x2728] ss:$16 sps:$4 sm:$0xff]  }
 0x583   : > { %11863 = vmatprep.subr.bf16.mxu1 %v16668_v10  ;;  %v16743_v10 = vld [vmem:[%s17119_s11 + $0x280c] ss:$16 sps:$4 sm:$0xff]   ;;  %v16738_v6 = vld [vmem:[%s17119_s11 + $0x2708] ss:$16 sps:$4 sm:$0xff]  }
 0x585   : > { %11889 = vmatpush1.bf16.msra.mxu0 %v16669_v36  ;;  %v16746_v36 = vld [vmem:[%s17119_s11 + $0x29ec] ss:$16 sps:$4 sm:$0xff]  }
 0x586   : > { %11864 = vmatpush2.bf16.msra.mxu1 %v16666_v33  ;;  %11890 = vmatprep.subr.bf16.mxu0 %v16677_v19  ;;  %v16741_v33 = vld [vmem:[%s17119_s11 + $0x2808] ss:$16 sps:$4 sm:$0xff]  }
 0x587   : > { %11865 = vmatprep.subr.bf16.mxu1 %v16674_v62  ;;  %v16749_v62 = vld [vmem:[%s17119_s11 + $0x2aec] ss:$16 sps:$4 sm:$0xff]   ;;  %v16744_v19 = vld [vmem:[%s17119_s11 + $0x29e8] ss:$16 sps:$4 sm:$0xff]  }
 0x589   : > { %11891 = vmatpush1.bf16.msra.mxu0 %v16675_v3  ;;  %v16752_v3 = vld [vmem:[%s17119_s11 + $0x29cc] ss:$16 sps:$4 sm:$0xff]  }
 0x58a   : > { %11866 = vmatpush2.bf16.msra.mxu1 %v16672_v5  ;;  %11892 = vmatprep.subr.bf16.mxu0 %v16683_v24  ;;  %v16747_v5 = vld [vmem:[%s17119_s11 + $0x2ae8] ss:$16 sps:$4 sm:$0xff]  }
 0x58b   : > { %11867 = vmatprep.subr.bf16.mxu1 %v16680_v27  ;;  %v16755_v27 = vld [vmem:[%s17119_s11 + $0x2acc] ss:$16 sps:$4 sm:$0xff]  }
 0x58d   : > { %11893 = vmatpush1.bf16.msra.mxu0 %v16681_v31 }
 0x58e   : > { %11868 = vmatpush2.bf16.msra.mxu1 %v16678_v61  ;;  %11894 = vmatprep.subr.bf16.mxu0 %v16689_v50  ;;  %v19540_v61 = vld [vmem:[#allocation4_spill] sm:$0xff]  ;;  %v16753_v50 = vld [vmem:[%s17119_s11 + $0x2ac8] ss:$16 sps:$4 sm:$0xff]  }
 0x58f   : > { %11869 = vmatprep.subr.bf16.mxu1 %v16686_v23  ;;  %v16750_v23 = vld [vmem:[%s17119_s11 + $0x29c8] ss:$16 sps:$4 sm:$0xff]  }
 0x591   : > { %11895 = vmatpush1.bf16.msra.mxu0 %v16687_v11  ;;  %v16758_v11 = vld [vmem:[%s17119_s11 + $0x29ac] ss:$16 sps:$4 sm:$0xff]  }
 0x592   : > { %11870 = vmatpush2.bf16.msra.mxu1 %v16684_v13  ;;  %11896 = vmatprep.subr.bf16.mxu0 %v16695_v34 }
 0x593   : > { %11871 = vmatprep.subr.bf16.mxu1 %v16692_v37  ;;  %v16761_v37 = vld [vmem:[%s17119_s11 + $0x2aac] ss:$16 sps:$4 sm:$0xff]  }
 0x595   : > { %11897 = vmatpush1.bf16.msra.mxu0 %v16693_v4 }
 0x596   : > { %11872 = vmatpush2.bf16.msra.mxu1 %v16690_v17  ;;  %11898 = vmatprep.subr.bf16.mxu0 %v16698_v16  ;;  %v19541_v17 = vld [vmem:[#allocation5_spill] sm:$0xff] }
 0x597   : > { %11923 = vmatprep.subr.bf16.mxu1 %v16701_v30  ;;  %v16756_v16 = vld [vmem:[%s17119_s11 + $0x29a8] ss:$16 sps:$4 sm:$0xff]  }
 0x598   : > { %v16759_v30 = vld [vmem:[%s17119_s11 + $0x2aa8] ss:$16 sps:$4 sm:$0xff]  }
 0x599   : > { %v11629_v52 = vpop.f32.mrf.mxu1  ;;  %11874 = vmatmul.mubr.bf16.vlgmr.msra.gmra.mxu1 %v18061_v55  ;;  %11899 = vmatpush2.bf16.msra.mxu0 %v16696_v59 }
 0x59a   : > { %v19050_v60 = vadd.f32 %v11629_v52, %v19010_v58  ;;  %11924 = vmatpush1.bf16.msra.mxu1 %v16699_v44  ;;  %11900 = vmatprep.subr.bf16.mxu0 %v16704_v45  ;;  %v16720_v58 = vld [vmem:[%s17119_s11 + $0x2768] ss:$16 sps:$4 sm:$0xff]   ;;  %v16764_v44 = vld [vmem:[%s17119_s11 + $0x298c] ss:$16 sps:$4 sm:$0xff]  }
 0x59b   : > { %v11631_v8 = vpop.f32.mrf.mxu1  ;;  %11925 = vmatprep.subr.bf16.mxu1 %v16707_v56  ;;  %11955 = vmatprep.mubr.bf16.mxu1 %v18070_v38  ;;  %v16717_v38 = vld [vmem:[%s17119_s11 + $0x2888] ss:$16 sps:$4 sm:$0xff]   ;;  %v16767_v45 = vld [vmem:[%s17119_s11 + $0x2a8c] ss:$16 sps:$4 sm:$0xff]  }
 0x59c   : > { %v19057_v55 = vadd.f32 %v11631_v8, %v19017_v48  ;;  %v16734_v48 = vld [vmem:[%s17119_s11 + $0x272c] ss:$16 sps:$4 sm:$0xff]   ;;  %v16762_v56 = vld [vmem:[%s17119_s11 + $0x2988] ss:$16 sps:$4 sm:$0xff]  }
 0x59d   : > { %v11633_v39 = vpop.f32.mrf.mxu1  ;;  %11901 = vmatpush2.bf16.msra.mxu0 %v16702_v20  ;;  %v16765_v52 = vld [vmem:[%s17119_s11 + $0x2a88] ss:$16 sps:$4 sm:$0xff]   ;;  %v16773_v20 = vld [vmem:[%s17119_s11 + $0x2a6c] ss:$16 sps:$4 sm:$0xff]  }
 0x59e   : > { %11926 = vmatpush1.bf16.msra.mxu1 %v16705_v22  ;;  %11902 = vmatprep.subr.bf16.mxu0 %v16710_v49  ;;  %v16768_v22 = vld [vmem:[%s17119_s11 + $0x2968] ss:$16 sps:$4 sm:$0xff]   ;;  %v16776_v49 = vld [vmem:[%s17119_s11 + $0x294c] ss:$16 sps:$4 sm:$0xff]  }
 0x59f   : > { %v11634_v53 = vpop.f32.mrf.mxu1  ;;  %11927 = vmatprep.subr.bf16.mxu1 %v16713_v1  ;;  %v16771_v8 = vld [vmem:[%s17119_s11 + $0x2a68] ss:$16 sps:$4 sm:$0xff]   ;;  %v16779_v1 = vld [vmem:[%s17119_s11 + $0x2a4c] ss:$16 sps:$4 sm:$0xff]  }
 0x5a0   : > { %v16777_v39 = vld [vmem:[%s17119_s11 + $0x2a48] ss:$16 sps:$4 sm:$0xff]  }
 0x5a1   : > { %11903 = vmatpush2.bf16.msra.mxu0 %v16708_v42  ;;  %v16782_v42 = vld [vmem:[%s17119_s11 + $0x292c] ss:$16 sps:$4 sm:$0xff]   ;;  %v16780_v53 = vld [vmem:[%s17119_s11 + $0x2928] ss:$16 sps:$4 sm:$0xff]  }
 0x5a2   : > { %11928 = vmatpush1.bf16.msra.mxu1 %v16711_v21  ;;  %11904 = vmatprep.subr.bf16.mxu0 %v16716_v25  ;;  %v16785_v21 = vld [vmem:[%s17119_s11 + $0x2a2c] ss:$16 sps:$4 sm:$0xff]   ;;  %v16783_v25 = vld [vmem:[%s17119_s11 + $0x2a28] ss:$16 sps:$4 sm:$0xff]  }
 0x5a3   : > { %11929 = vmatprep.subr.bf16.mxu1 %v16719_v7  ;;  %v16788_v7 = vld [vmem:[%s17119_s11 + $0x290c] ss:$16 sps:$4 sm:$0xff]  }
 0x5a5   : > { %11905 = vmatpush2.bf16.msra.mxu0 %v16714_v15  ;;  %v16791_v15 = vld [vmem:[%s17119_s11 + $0x2a0c] ss:$16 sps:$4 sm:$0xff]  }
 0x5a6   : > { %11930 = vmatpush1.bf16.msra.mxu1 %v16717_v38  ;;  %11906 = vmatprep.subr.bf16.mxu0 %v16722_v26  ;;  %v16786_v38 = vld [vmem:[%s17119_s11 + $0x2908] ss:$16 sps:$4 sm:$0xff]  }
 0x5a7   : > { %11931 = vmatprep.subr.bf16.mxu1 %v16725_v9  ;;  %v16789_v26 = vld [vmem:[%s17119_s11 + $0x2a08] ss:$16 sps:$4 sm:$0xff]   ;;  %v16794_v9 = vld [vmem:[%s17119_s11 + $0x2bec] ss:$16 sps:$4 sm:$0xff]  }
 0x5a9   : > { %11907 = vmatpush2.bf16.msra.mxu0 %v16720_v58  ;;  %v16797_v58 = vld [vmem:[%s17119_s11 + $0x2cec] ss:$16 sps:$4 sm:$0xff]  }
 0x5aa   : > { %11932 = vmatpush1.bf16.msra.mxu1 %v16723_v12  ;;  %11908 = vmatprep.subr.bf16.mxu0 %v16728_v47  ;;  %v16792_v12 = vld [vmem:[%s17119_s11 + $0x2be8] ss:$16 sps:$4 sm:$0xff]  }
 0x5ab   : > { %11933 = vmatprep.subr.bf16.mxu1 %v16731_v2  ;;  %v16795_v47 = vld [vmem:[%s17119_s11 + $0x2ce8] ss:$16 sps:$4 sm:$0xff]   ;;  %v16800_v2 = vld [vmem:[%s17119_s11 + $0x2bcc] ss:$16 sps:$4 sm:$0xff]  }
 0x5ad   : > { %11909 = vmatpush2.bf16.msra.mxu0 %v16726_v29  ;;  %v16803_v29 = vld [vmem:[%s17119_s11 + $0x2ccc] ss:$16 sps:$4 sm:$0xff]  }
 0x5ae   : > { %11934 = vmatpush1.bf16.msra.mxu1 %v16729_v32  ;;  %11910 = vmatprep.subr.bf16.mxu0 %v16734_v48  ;;  %v19542_v48 = vld [vmem:[#allocation6_spill] sm:$0xff] }
 0x5af   : > { %11935 = vmatprep.subr.bf16.mxu1 %v16737_v54 }
 0x5b1   : > { %11911 = vmatpush2.bf16.msra.mxu0 %v16732_v63  ;;  %v16798_v63 = vld [vmem:[%s17119_s11 + $0x2bc8] ss:$16 sps:$4 sm:$0xff]  }
 0x5b2   : > { %11936 = vmatpush1.bf16.msra.mxu1 %v16735_v57  ;;  %11912 = vmatprep.subr.bf16.mxu0 %v16740_v14  ;;  %v16801_v57 = vld [vmem:[%s17119_s11 + $0x2cc8] ss:$16 sps:$4 sm:$0xff]  }
 0x5b3   : > { %11937 = vmatprep.subr.bf16.mxu1 %v16743_v10  ;;  %v16806_v10 = vld [vmem:[%s17119_s11 + $0x2bac] ss:$16 sps:$4 sm:$0xff]  }
 0x5b5   : > { %11913 = vmatpush2.bf16.msra.mxu0 %v16738_v6  ;;  %v16809_v6 = vld [vmem:[%s17119_s11 + $0x2cac] ss:$16 sps:$4 sm:$0xff]  }
 0x5b6   : > { %11938 = vmatpush1.bf16.msra.mxu1 %v16741_v33  ;;  %11964 = vmatprep.subr.bf16.mxu0 %v16749_v62  ;;  %v16804_v62 = vld [vmem:[%s17119_s11 + $0x2ba8] ss:$16 sps:$4 sm:$0xff]  }
 0x5b7   : > { %11939 = vmatprep.subr.bf16.mxu1 %v16746_v36 }
 0x5b8   : > { %v11670_v24 = vpop.f32.mrf.mxu0  ;;  %11915 = vmatmul.mubr.bf16.vlgmr.msra.gmra.mxu0 %v19540_v61  ;;  %v16818_v61 = vld [vmem:[%s17119_s11 + $0x2b6c] ss:$16 sps:$4 sm:$0xff]  }
 0x5b9   : > { %v19090_v31 = vadd.f32 %v11670_v24, %v19050_v60  ;;  %11965 = vmatpush1.bf16.msra.mxu0 %v16747_v5  ;;  %11996 = vmatprep.mubr.bf16.mxu0 %v19541_v17  ;;  %v16770_v60 = vld [vmem:[%s17119_s11 + $0x296c] ss:$16 sps:$4 sm:$0xff]   ;;  %v16810_v24 = vld [vmem:[%s17119_s11 + $0x2b88] ss:$16 sps:$4 sm:$0xff]  }
 0x5ba   : > { %11940 = vmatpush2.bf16.msra.mxu1 %v16744_v19  ;;  %v11672_v13 = vpop.f32.mrf.mxu0  ;;  %11966 = vmatprep.subr.bf16.mxu0 %v16755_v27  ;;  %v16807_v19 = vld [vmem:[%s17119_s11 + $0x2ca8] ss:$16 sps:$4 sm:$0xff]   ;;  %v16815_v27 = vld [vmem:[%s17119_s11 + $0x2c8c] ss:$16 sps:$4 sm:$0xff]  }
 0x5bb   : > { %11941 = vmatprep.subr.bf16.mxu1 %v16752_v3  ;;  %v19097_v34 = vadd.f32 %v11672_v13, %v19057_v55  ;;  %v16774_v55 = vld [vmem:[%s17119_s11 + $0x2948] ss:$16 sps:$4 sm:$0xff]   ;;  %v16812_v3 = vld [vmem:[%s17119_s11 + $0x2b8c] ss:$16 sps:$4 sm:$0xff]  }
 0x5bc   : > { %v11674_v4 = vpop.f32.mrf.mxu0  ;;  %v16824_v13 = vld [vmem:[%s17119_s11 + $0x2b4c] ss:$16 sps:$4 sm:$0xff]  }
 0x5bd   : > { %11967 = vmatpush1.bf16.msra.mxu0 %v16753_v50  ;;  %v16819_v50 = vld [vmem:[%s17119_s11 + $0x2c68] ss:$16 sps:$4 sm:$0xff]   ;;  %v16830_v17 = vld [vmem:[%s17119_s11 + $0x2b2c] ss:$16 sps:$4 sm:$0xff]  }
 0x5be   : > { %11942 = vmatpush2.bf16.msra.mxu1 %v16750_v23  ;;  %v11675_v59 = vpop.f32.mrf.mxu0  ;;  %11968 = vmatprep.subr.bf16.mxu0 %v16761_v37  ;;  %v16816_v23 = vld [vmem:[%s17119_s11 + $0x2b68] ss:$16 sps:$4 sm:$0xff]   ;;  %v16833_v4 = vld [vmem:[%s17119_s11 + $0x2c2c] ss:$16 sps:$4 sm:$0xff]  }
 0x5bf   : > { %11943 = vmatprep.subr.bf16.mxu1 %v16758_v11  ;;  %v16827_v11 = vld [vmem:[%s17119_s11 + $0x2c4c] ss:$16 sps:$4 sm:$0xff]   ;;  %v16822_v37 = vld [vmem:[%s17119_s11 + $0x2b48] ss:$16 sps:$4 sm:$0xff]  }
 0x5c0   : > { %v16836_v59 = vld [vmem:[%s17119_s11 + $0x2b0c] ss:$16 sps:$4 sm:$0xff]  }
 0x5c1   : > { %11969 = vmatpush1.bf16.msra.mxu0 %v16759_v30  ;;  %v16831_v30 = vld [vmem:[%s17119_s11 + $0x2c28] ss:$16 sps:$4 sm:$0xff]  }
 0x5c2   : > { %11944 = vmatpush2.bf16.msra.mxu1 %v16756_v16  ;;  %11970 = vmatprep.subr.bf16.mxu0 %v16767_v45  ;;  %v16828_v16 = vld [vmem:[%s17119_s11 + $0x2b28] ss:$16 sps:$4 sm:$0xff]  }
 0x5c3   : > { %11945 = vmatprep.subr.bf16.mxu1 %v16764_v44  ;;  %v16839_v44 = vld [vmem:[%s17119_s11 + $0x2c0c] ss:$16 sps:$4 sm:$0xff]   ;;  %v16834_v45 = vld [vmem:[%s17119_s11 + $0x2b08] ss:$16 sps:$4 sm:$0xff]  }
 0x5c5   : > { %11971 = vmatpush1.bf16.msra.mxu0 %v16765_v52  ;;  %v16842_v52 = vld [vmem:[%s17119_s11 + $0x2dec] ss:$16 sps:$4 sm:$0xff]  }
 0x5c6   : > { %11946 = vmatpush2.bf16.msra.mxu1 %v16762_v56  ;;  %11972 = vmatprep.subr.bf16.mxu0 %v16773_v20  ;;  %v16837_v56 = vld [vmem:[%s17119_s11 + $0x2c08] ss:$16 sps:$4 sm:$0xff]  }
 0x5c7   : > { %11947 = vmatprep.subr.bf16.mxu1 %v16770_v60  ;;  %v16845_v60 = vld [vmem:[%s17119_s11 + $0x2eec] ss:$16 sps:$4 sm:$0xff]   ;;  %v16840_v20 = vld [vmem:[%s17119_s11 + $0x2de8] ss:$16 sps:$4 sm:$0xff]  }
 0x5c9   : > { %11973 = vmatpush1.bf16.msra.mxu0 %v16771_v8  ;;  %v16848_v8 = vld [vmem:[%s17119_s11 + $0x2dcc] ss:$16 sps:$4 sm:$0xff]  }
 0x5ca   : > { %11948 = vmatpush2.bf16.msra.mxu1 %v16768_v22  ;;  %11974 = vmatprep.subr.bf16.mxu0 %v16779_v1  ;;  %v16843_v22 = vld [vmem:[%s17119_s11 + $0x2ee8] ss:$16 sps:$4 sm:$0xff]  }
 0x5cb   : > { %11949 = vmatprep.subr.bf16.mxu1 %v16776_v49  ;;  %v16851_v49 = vld [vmem:[%s17119_s11 + $0x2ecc] ss:$16 sps:$4 sm:$0xff]  }
 0x5cd   : > { %11975 = vmatpush1.bf16.msra.mxu0 %v16777_v39  ;;  %v16846_v39 = vld [vmem:[%s17119_s11 + $0x2dc8] ss:$16 sps:$4 sm:$0xff]  }
 0x5ce   : > { %11950 = vmatpush2.bf16.msra.mxu1 %v16774_v55  ;;  %11976 = vmatprep.subr.bf16.mxu0 %v16785_v21 }
 0x5cf   : > { %11951 = vmatprep.subr.bf16.mxu1 %v16782_v42  ;;  %v16849_v42 = vld [vmem:[%s17119_s11 + $0x2ec8] ss:$16 sps:$4 sm:$0xff]  }
 0x5d1   : > { %11977 = vmatpush1.bf16.msra.mxu0 %v16783_v25  ;;  %v16857_v25 = vld [vmem:[%s17119_s11 + $0x2eac] ss:$16 sps:$4 sm:$0xff]  }
 0x5d2   : > { %11952 = vmatpush2.bf16.msra.mxu1 %v16780_v53  ;;  %11978 = vmatprep.subr.bf16.mxu0 %v16791_v15  ;;  %v16854_v53 = vld [vmem:[%s17119_s11 + $0x2dac] ss:$16 sps:$4 sm:$0xff]  }
 0x5d3   : > { %11953 = vmatprep.subr.bf16.mxu1 %v16788_v7  ;;  %v19543_v7 = vld [vmem:[#allocation7_spill] sm:$0xff] }
 0x5d5   : > { %11979 = vmatpush1.bf16.msra.mxu0 %v16789_v26  ;;  %v16855_v26 = vld [vmem:[%s17119_s11 + $0x2ea8] ss:$16 sps:$4 sm:$0xff]  }
 0x5d6   : > { %11954 = vmatpush2.bf16.msra.mxu1 %v16786_v38  ;;  %11980 = vmatprep.subr.bf16.mxu0 %v16794_v9  ;;  %v16852_v38 = vld [vmem:[%s17119_s11 + $0x2da8] ss:$16 sps:$4 sm:$0xff]  }
 0x5d7   : > { %12005 = vmatprep.subr.bf16.mxu1 %v16797_v58  ;;  %v16860_v58 = vld [vmem:[%s17119_s11 + $0x2d8c] ss:$16 sps:$4 sm:$0xff]  }
 0x5d9   : > { %v11711_v32 = vpop.f32.mrf.mxu1  ;;  %11956 = vmatmul.mubr.bf16.vlgmr.msra.gmra.mxu1 %v19542_v48  ;;  %11981 = vmatpush2.bf16.msra.mxu0 %v16792_v12  ;;  %v16863_v12 = vld [vmem:[%s17119_s11 + $0x2e8c] ss:$16 sps:$4 sm:$0xff]   ;;  %v16864_v48 = vld [vmem:[%s17119_s11 + $0x2d68] ss:$16 sps:$4 sm:$0xff]  }
 0x5da   : > { %v19130_v54 = vadd.f32 %v11711_v32, %v19090_v31  ;;  %12006 = vmatpush1.bf16.msra.mxu1 %v16795_v47  ;;  %11982 = vmatprep.subr.bf16.mxu0 %v16800_v2  ;;  %v16821_v31 = vld [vmem:[%s17119_s11 + $0x2c6c] ss:$16 sps:$4 sm:$0xff]   ;;  %v16858_v47 = vld [vmem:[%s17119_s11 + $0x2d88] ss:$16 sps:$4 sm:$0xff]  }
 0x5db   : > { %v11713_v14 = vpop.f32.mrf.mxu1  ;;  %12007 = vmatprep.subr.bf16.mxu1 %v16803_v29  ;;  %12037 = vmatprep.mubr.bf16.mxu1 %v18166_v40  ;;  %v16813_v40 = vld [vmem:[%s17119_s11 + $0x2c88] ss:$16 sps:$4 sm:$0xff]   ;;  %v16866_v29 = vld [vmem:[%s17119_s11 + $0x2d6c] ss:$16 sps:$4 sm:$0xff]  }
 0x5dc   : > { %v19137_v33 = vadd.f32 %v11713_v14, %v19097_v34  ;;  %v16825_v34 = vld [vmem:[%s17119_s11 + $0x2c48] ss:$16 sps:$4 sm:$0xff]   ;;  %v16869_v32 = vld [vmem:[%s17119_s11 + $0x2e6c] ss:$16 sps:$4 sm:$0xff]  }
 0x5dd   : > { %v11715_v36 = vpop.f32.mrf.mxu1  ;;  %11983 = vmatpush2.bf16.msra.mxu0 %v16798_v63  ;;  %v16861_v2 = vld [vmem:[%s17119_s11 + $0x2e88] ss:$16 sps:$4 sm:$0xff]   ;;  %v16872_v63 = vld [vmem:[%s17119_s11 + $0x2d4c] ss:$16 sps:$4 sm:$0xff]  }
 0x5de   : > { %12008 = vmatpush1.bf16.msra.mxu1 %v16801_v57  ;;  %11984 = vmatprep.subr.bf16.mxu0 %v16806_v10  ;;  %v16875_v57 = vld [vmem:[%s17119_s11 + $0x2e4c] ss:$16 sps:$4 sm:$0xff]   ;;  %v16870_v14 = vld [vmem:[%s17119_s11 + $0x2d48] ss:$16 sps:$4 sm:$0xff]  }
 0x5df   : > { %v11716_v5 = vpop.f32.mrf.mxu1  ;;  %12009 = vmatprep.subr.bf16.mxu1 %v16809_v6  ;;  %v16873_v10 = vld [vmem:[%s17119_s11 + $0x2e48] ss:$16 sps:$4 sm:$0xff]   ;;  %v16878_v6 = vld [vmem:[%s17119_s11 + $0x2d2c] ss:$16 sps:$4 sm:$0xff]  }
 0x5e0   : > { %v16876_v36 = vld [vmem:[%s17119_s11 + $0x2d28] ss:$16 sps:$4 sm:$0xff]   ;;  %v16887_v5 = vld [vmem:[%s17119_s11 + $0x2e0c] ss:$16 sps:$4 sm:$0xff]  }
 0x5e1   : > { %11985 = vmatpush2.bf16.msra.mxu0 %v16804_v62  ;;  %v16879_v62 = vld [vmem:[%s17119_s11 + $0x2e28] ss:$16 sps:$4 sm:$0xff]  }
 0x5e2   : > { %12010 = vmatpush1.bf16.msra.mxu1 %v16807_v19  ;;  %11986 = vmatprep.subr.bf16.mxu0 %v16812_v3  ;;  %v16884_v19 = vld [vmem:[%s17119_s11 + $0x2d0c] ss:$16 sps:$4 sm:$0xff]   ;;  %v16882_v3 = vld [vmem:[%s17119_s11 + $0x2d08] ss:$16 sps:$4 sm:$0xff]  }
 0x5e3   : > { %12011 = vmatprep.subr.bf16.mxu1 %v16815_v27  ;;  %v16885_v27 = vld [vmem:[%s17119_s11 + $0x2e08] ss:$16 sps:$4 sm:$0xff]  }
 0x5e5   : > { %11987 = vmatpush2.bf16.msra.mxu0 %v16810_v24  ;;  %v16890_v24 = vld [vmem:[%s17119_s11 + $0x2fec] ss:$16 sps:$4 sm:$0xff]  }
 0x5e6   : > { %12012 = vmatpush1.bf16.msra.mxu1 %v16813_v40  ;;  %11988 = vmatprep.subr.bf16.mxu0 %v16818_v61  ;;  %v16893_v40 = vld [vmem:[%s17119_s11 + $0x30ec] ss:$16 sps:$4 sm:$0xff]   ;;  %v16888_v61 = vld [vmem:[%s17119_s11 + $0x2fe8] ss:$16 sps:$4 sm:$0xff]  }
 0x5e7   : > { %12013 = vmatprep.subr.bf16.mxu1 %v16821_v31  ;;  %v16891_v31 = vld [vmem:[%s17119_s11 + $0x30e8] ss:$16 sps:$4 sm:$0xff]  }
 0x5e9   : > { %11989 = vmatpush2.bf16.msra.mxu0 %v16816_v23  ;;  %v16896_v23 = vld [vmem:[%s17119_s11 + $0x2fcc] ss:$16 sps:$4 sm:$0xff]  }
 0x5ea   : > { %12014 = vmatpush1.bf16.msra.mxu1 %v16819_v50  ;;  %11990 = vmatprep.subr.bf16.mxu0 %v16824_v13  ;;  %v16899_v50 = vld [vmem:[%s17119_s11 + $0x30cc] ss:$16 sps:$4 sm:$0xff]  }
 0x5eb   : > { %12015 = vmatprep.subr.bf16.mxu1 %v16827_v11  ;;  %v19544_v11 = vld [vmem:[#allocation8_spill] sm:$0xff] }
 0x5ed   : > { %11991 = vmatpush2.bf16.msra.mxu0 %v16822_v37 }
 0x5ee   : > { %12016 = vmatpush1.bf16.msra.mxu1 %v16825_v34  ;;  %11992 = vmatprep.subr.bf16.mxu0 %v16830_v17  ;;  %v16894_v34 = vld [vmem:[%s17119_s11 + $0x2fc8] ss:$16 sps:$4 sm:$0xff]  }
 0x5ef   : > { %12017 = vmatprep.subr.bf16.mxu1 %v16833_v4  ;;  %v16897_v17 = vld [vmem:[%s17119_s11 + $0x30c8] ss:$16 sps:$4 sm:$0xff]  }
 0x5f1   : > { %11993 = vmatpush2.bf16.msra.mxu0 %v16828_v16  ;;  %v16902_v16 = vld [vmem:[%s17119_s11 + $0x2fac] ss:$16 sps:$4 sm:$0xff]  }
 0x5f2   : > { %12018 = vmatpush1.bf16.msra.mxu1 %v16831_v30  ;;  %11994 = vmatprep.subr.bf16.mxu0 %v16836_v59  ;;  %v16905_v30 = vld [vmem:[%s17119_s11 + $0x30ac] ss:$16 sps:$4 sm:$0xff]  }
 0x5f3   : > { %12019 = vmatprep.subr.bf16.mxu1 %v16839_v44 }
 0x5f5   : > { %11995 = vmatpush2.bf16.msra.mxu0 %v16834_v45  ;;  %v16900_v45 = vld [vmem:[%s17119_s11 + $0x2fa8] ss:$16 sps:$4 sm:$0xff]  }
 0x5f6   : > { %12020 = vmatpush1.bf16.msra.mxu1 %v16837_v56  ;;  %12046 = vmatprep.subr.bf16.mxu0 %v16845_v60  ;;  %v16903_v56 = vld [vmem:[%s17119_s11 + $0x30a8] ss:$16 sps:$4 sm:$0xff]   ;;  %v16908_v60 = vld [vmem:[%s17119_s11 + $0x2f8c] ss:$16 sps:$4 sm:$0xff]  }
 0x5f7   : > { %12021 = vmatprep.subr.bf16.mxu1 %v16842_v52 }
 0x5f8   : > { %v11752_v1 = vpop.f32.mrf.mxu0  ;;  %11997 = vmatmul.mubr.bf16.vlgmr.msra.gmra.mxu0 %v18170_v41 }
 0x5f9   : > { %v19170_v55 = vadd.f32 %v11752_v1, %v19130_v54  ;;  %12047 = vmatpush1.bf16.msra.mxu0 %v16843_v22  ;;  %12078 = vmatprep.mubr.bf16.mxu0 %v19543_v7  ;;  %v16867_v54 = vld [vmem:[%s17119_s11 + $0x2e68] ss:$16 sps:$4 sm:$0xff]  }
 0x5fa   : > { %12022 = vmatpush2.bf16.msra.mxu1 %v16840_v20  ;;  %v11754_v21 = vpop.f32.mrf.mxu0  ;;  %12048 = vmatprep.subr.bf16.mxu0 %v16851_v49  ;;  %v16911_v20 = vld [vmem:[%s17119_s11 + $0x308c] ss:$16 sps:$4 sm:$0xff]   ;;  %v16906_v22 = vld [vmem:[%s17119_s11 + $0x2f88] ss:$16 sps:$4 sm:$0xff]  }
 0x5fb   : > { %12023 = vmatprep.subr.bf16.mxu1 %v16848_v8  ;;  %v19177_v41 = vadd.f32 %v11754_v21, %v19137_v33  ;;  %v16881_v33 = vld [vmem:[%s17119_s11 + $0x2e2c] ss:$16 sps:$4 sm:$0xff]   ;;  %v16912_v1 = vld [vmem:[%s17119_s11 + $0x2f68] ss:$16 sps:$4 sm:$0xff]  }
 0x5fc   : > { %v11756_v15 = vpop.f32.mrf.mxu0  ;;  %v16914_v8 = vld [vmem:[%s17119_s11 + $0x2f6c] ss:$16 sps:$4 sm:$0xff]   ;;  %v16918_v21 = vld [vmem:[%s17119_s11 + $0x2f48] ss:$16 sps:$4 sm:$0xff]  }
 0x5fd   : > { %12049 = vmatpush1.bf16.msra.mxu0 %v16849_v42  ;;  %v16917_v49 = vld [vmem:[%s17119_s11 + $0x306c] ss:$16 sps:$4 sm:$0xff]   ;;  %v16924_v7 = vld [vmem:[%s17119_s11 + $0x2f28] ss:$16 sps:$4 sm:$0xff]  }
 0x5fe   : > { %12024 = vmatpush2.bf16.msra.mxu1 %v16846_v39  ;;  %v11757_v9 = vpop.f32.mrf.mxu0  ;;  %12050 = vmatprep.subr.bf16.mxu0 %v16857_v25  ;;  %v16920_v39 = vld [vmem:[%s17119_s11 + $0x2f4c] ss:$16 sps:$4 sm:$0xff]   ;;  %v16927_v15 = vld [vmem:[%s17119_s11 + $0x3028] ss:$16 sps:$4 sm:$0xff]  }
 0x5ff   : > { %12025 = vmatprep.subr.bf16.mxu1 %v16854_v53  ;;  %v16923_v42 = vld [vmem:[%s17119_s11 + $0x304c] ss:$16 sps:$4 sm:$0xff]   ;;  %v16921_v53 = vld [vmem:[%s17119_s11 + $0x3048] ss:$16 sps:$4 sm:$0xff]  }
 0x600   : > { %v16926_v25 = vld [vmem:[%s17119_s11 + $0x2f2c] ss:$16 sps:$4 sm:$0xff]   ;;  %v16930_v9 = vld [vmem:[%s17119_s11 + $0x2f08] ss:$16 sps:$4 sm:$0xff]  }
 0x601   : > { %12051 = vmatpush1.bf16.msra.mxu0 %v16855_v26  ;;  %v16935_v26 = vld [vmem:[%s17119_s11 + $0x300c] ss:$16 sps:$4 sm:$0xff]  }
 0x602   : > { %12026 = vmatpush2.bf16.msra.mxu1 %v16852_v38  ;;  %12052 = vmatprep.subr.bf16.mxu0 %v16863_v12  ;;  %v16932_v38 = vld [vmem:[%s17119_s11 + $0x2f0c] ss:$16 sps:$4 sm:$0xff]  }
 0x603   : > { %12027 = vmatprep.subr.bf16.mxu1 %v16860_v58  ;;  %v16933_v58 = vld [vmem:[%s17119_s11 + $0x3008] ss:$16 sps:$4 sm:$0xff]  }
 0x605   : > { %12053 = vmatpush1.bf16.msra.mxu0 %v16861_v2 }
 0x606   : > { %12028 = vmatpush2.bf16.msra.mxu1 %v16858_v47  ;;  %12054 = vmatprep.subr.bf16.mxu0 %v16869_v32 }
 0x607   : > { %12029 = vmatprep.subr.bf16.mxu1 %v16866_v29 }
 0x609   : > { %12055 = vmatpush1.bf16.msra.mxu0 %v16867_v54 }
 0x60a   : > { %12030 = vmatpush2.bf16.msra.mxu1 %v16864_v48  ;;  %12056 = vmatprep.subr.bf16.mxu0 %v16875_v57 }
 0x60b   : > { %12031 = vmatprep.subr.bf16.mxu1 %v16872_v63 }
 0x60d   : > { %12057 = vmatpush1.bf16.msra.mxu0 %v16873_v10 }
 0x60e   : > { %12032 = vmatpush2.bf16.msra.mxu1 %v16870_v14  ;;  %12058 = vmatprep.subr.bf16.mxu0 %v16881_v33 }
 0x60f   : > { %12033 = vmatprep.subr.bf16.mxu1 %v16878_v6 }
 0x611   : > { %12059 = vmatpush1.bf16.msra.mxu0 %v16879_v62 }
 0x612   : > { %12034 = vmatpush2.bf16.msra.mxu1 %v16876_v36  ;;  %12060 = vmatprep.subr.bf16.mxu0 %v16887_v5 }
 0x613   : > { %12035 = vmatprep.subr.bf16.mxu1 %v16884_v19 }
 0x615   : > { %12061 = vmatpush1.bf16.msra.mxu0 %v16885_v27 }
 0x616   : > { %12036 = vmatpush2.bf16.msra.mxu1 %v16882_v3  ;;  %12062 = vmatprep.subr.bf16.mxu0 %v16890_v24 }
 0x617   : > { %12087 = vmatprep.subr.bf16.mxu1 %v16893_v40 }
 0x619   : > { %v11793_v13 = vpop.f32.mrf.mxu1  ;;  %12038 = vmatmul.mubr.bf16.vlgmr.msra.gmra.mxu1 %v19544_v11  ;;  %12063 = vmatpush2.bf16.msra.mxu0 %v16888_v61 }
 0x61a   : > { %v19210_v37 = vadd.f32 %v11793_v13, %v19170_v55  ;;  %12088 = vmatpush1.bf16.msra.mxu1 %v16891_v31  ;;  %12064 = vmatprep.subr.bf16.mxu0 %v16896_v23  ;;  %v16915_v55 = vld [vmem:[%s17119_s11 + $0x3068] ss:$16 sps:$4 sm:$0xff]  }
 0x61b   : > { %v11795_v4 = vpop.f32.mrf.mxu1  ;;  %12089 = vmatprep.subr.bf16.mxu1 %v16899_v50  ;;  %12119 = vmatprep.mubr.bf16.mxu1 %v17058_v18  ;;  %v16909_v18 = vld [vmem:[%s17119_s11 + $0x3088] ss:$16 sps:$4 sm:$0xff]  }
 0x61c   : > { %v11796_v59 = vadd.f32 %v11795_v4, %v19177_v41  ;;  %v16929_v41 = vld [vmem:[%s17119_s11 + $0x302c] ss:$16 sps:$4 sm:$0xff]  }
 0x61d   : > { %v11797_v44 = vpop.f32.mrf.mxu1  ;;  %12065 = vmatpush2.bf16.msra.mxu0 %v16894_v34 }
 0x61e   : > { %12090 = vmatpush1.bf16.msra.mxu1 %v16897_v17  ;;  %12066 = vmatprep.subr.bf16.mxu0 %v16902_v16 }
 0x61f   : > { %v11798_v52 = vpop.f32.mrf.mxu1  ;;  %12091 = vmatprep.subr.bf16.mxu1 %v16905_v30 }
 0x621   : > { %12067 = vmatpush2.bf16.msra.mxu0 %v16900_v45 }
 0x622   : > { %12092 = vmatpush1.bf16.msra.mxu1 %v16903_v56  ;;  %12068 = vmatprep.subr.bf16.mxu0 %v16908_v60 }
 0x623   : > { %12093 = vmatprep.subr.bf16.mxu1 %v16911_v20 }
 0x625   : > { %12069 = vmatpush2.bf16.msra.mxu0 %v16906_v22 }
 0x626   : > { %12094 = vmatpush1.bf16.msra.mxu1 %v16909_v18  ;;  %12070 = vmatprep.subr.bf16.mxu0 %v16914_v8 }
 0x627   : > { %12095 = vmatprep.subr.bf16.mxu1 %v16917_v49 }
 0x629   : > { %12071 = vmatpush2.bf16.msra.mxu0 %v16912_v1 }
 0x62a   : > { %12096 = vmatpush1.bf16.msra.mxu1 %v16915_v55  ;;  %12072 = vmatprep.subr.bf16.mxu0 %v16920_v39 }
 0x62b   : > { %12097 = vmatprep.subr.bf16.mxu1 %v16923_v42  ;;  %v12140_v42 = vrot.slane %v12132_v43, %v17170_v51 }
 0x62d   : > { %12073 = vmatpush2.bf16.msra.mxu0 %v16918_v21 }
 0x62e   : > { %12098 = vmatpush1.bf16.msra.mxu1 %v16921_v53  ;;  %12074 = vmatprep.subr.bf16.mxu0 %v16926_v25  ;;  %v298_v25 = vld [vmem:[#allocation2] sm:$0xf] }
 0x62f   : > { %12099 = vmatprep.subr.bf16.mxu1 %v16929_v41 }
 0x631   : > { %12075 = vmatpush2.bf16.msra.mxu0 %v16924_v7  ;;  %v19545_v7 = vlaneseq }
 0x632   : > { %12100 = vmatpush1.bf16.msra.mxu1 %v16927_v15  ;;  %12076 = vmatprep.subr.bf16.mxu0 %v16932_v38 }
 0x633   : > { %12101 = vmatprep.subr.bf16.mxu1 %v16935_v26  ;;  %vm12160_vm1 = vcmp.lt.s32.totalorder %v19545_v7, 512 }
 0x635   : > { %12077 = vmatpush2.bf16.msra.mxu0 %v16930_v9 }
 0x636   : > { %12102 = vmatpush1.bf16.msra.mxu1 %v16933_v58 }
 0x638   : > { %v11834_v12 = vpop.f32.mrf.mxu0  ;;  %12079 = vmatmul.mubr.bf16.vlgmr.msra.gmra.mxu0 %v18256_v0 }
 0x639   : > { %12120 = vmatmul.mubr.bf16.vlgmr.msra.gmra.mxu1 %v18302_v28  ;;  %v11835_v47 = vadd.f32 %v11834_v12, %v19210_v37 }
 0x63a   : > { %v11836_v2 = vpop.f32.mrf.mxu0 }
 0x63b   : > { %v11837_v29 = vadd.f32 %v11836_v2, %v11796_v59 }
 0x63c   : > { %v11838_v32 = vpop.f32.mrf.mxu0 }
 0x63e   : > { %v11839_v48 = vpop.f32.mrf.mxu0 }
 0x659   : > { %v11875_v54 = vpop.f32.mrf.mxu1 }
 0x65a   : > { %v11876_v63 = vadd.f32 %v11875_v54, %v11835_v47 }
 0x65b   : > { %v11877_v57 = vpop.f32.mrf.mxu1 }
 0x65c   : > { %v11878_v14 = vadd.f32 %v11877_v57, %v11837_v29 }
 0x65d   : > { %v11879_v10 = vpop.f32.mrf.mxu1 }
 0x65f   : > { %v11880_v6 = vpop.f32.mrf.mxu1 }
 0x678   : > { %v11916_v33 = vpop.f32.mrf.mxu0 }
 0x679   : > { %v11917_v36 = vadd.f32 %v11916_v33, %v11876_v63 }
 0x67a   : > { %v11918_v62 = vpop.f32.mrf.mxu0 }
 0x67b   : > { %v11919_v19 = vadd.f32 %v11918_v62, %v11878_v14 }
 0x67c   : > { %v11920_v5 = vpop.f32.mrf.mxu0 }
 0x67e   : > { %v11921_v0 = vpop.f32.mrf.mxu0 }
 0x699   : > { %v11957_v3 = vpop.f32.mrf.mxu1 }
 0x69a   : > { %v11958_v28 = vadd.f32 %v11957_v3, %v11917_v36 }
 0x69b   : > { %v11959_v27 = vpop.f32.mrf.mxu1 }
 0x69c   : > { %v11960_v24 = vadd.f32 %v11959_v27, %v11919_v19 }
 0x69d   : > { %v11961_v40 = vpop.f32.mrf.mxu1 }
 0x69f   : > { %v11962_v61 = vpop.f32.mrf.mxu1 }
 0x6b8   : > { %v11998_v31 = vpop.f32.mrf.mxu0 }
 0x6b9   : > { %v11999_v4 = vadd.f32 %v11998_v31, %v11958_v28 }
 0x6ba   : > { %v12000_v23 = vpop.f32.mrf.mxu0 }
 0x6bb   : > { %v12001_v16 = vadd.f32 %v12000_v23, %v11960_v24 }
 0x6bc   : > { %v12002_v50 = vpop.f32.mrf.mxu0 }
 0x6be   : > { %v12003_v13 = vpop.f32.mrf.mxu0 }
 0x6d9   : > { %v12039_v11 = vpop.f32.mrf.mxu1 }
 0x6da   : > { %v12040_v30 = vadd.f32 %v12039_v11, %v11999_v4 }
 0x6db   : > { %v12041_v37 = vpop.f32.mrf.mxu1 }
 0x6dc   : > { %v12042_v45 = vadd.f32 %v12041_v37, %v12001_v16 }
 0x6dd   : > { %v12043_v34 = vpop.f32.mrf.mxu1 }
 0x6df   : > { %v12044_v17 = vpop.f32.mrf.mxu1 }
 0x6f8   : > { %v12080_v59 = vpop.f32.mrf.mxu0 }
 0x6f9   : > { %v12121_v44 = vpop.f32.mrf.mxu1  ;;  %v12081_v56 = vadd.f32 %v12080_v59, %v12040_v30 }
 0x6fa   : > { %v12082_v52 = vpop.f32.mrf.mxu0 }
 0x6fb   : > { %v12123_v60 = vpop.f32.mrf.mxu1  ;;  %v12083_v20 = vadd.f32 %v12082_v52, %v12042_v45  ;;  %v12122_v8 = vadd.f32 %v12121_v44, %v12081_v56 }
 0x6fc   : > { %v12084_v22 = vpop.f32.mrf.mxu0 }
 0x6fd   : > { %v12125_v18 = vpop.f32.mrf.mxu1  ;;  %v12124_v49 = vadd.f32 %v12123_v60, %v12083_v20 }
 0x6fe   : > { %v12085_v1 = vpop.f32.mrf.mxu0 }
 0x6ff   : > { %v12126_v55 = vpop.f32.mrf.mxu1  ;;  %v12133_v39 = vcombine.low %v12122_v8, %v12124_v49 }
 0x701   : > { %v12147_v21 = vrot.slane %v12133_v39, %v17170_v51 }
 0x703   : > { %v12148_v53 = vcombine.low %v12140_v42, %v12147_v21 }
 0x705   : > { %v12155_v41 = vrot.slane %v12148_v53, %v17170_v51  ;;  %12166 = sbr.rel (%p14461_p6) target bundleno = 2271 (0x8df), region = 56 }
 0x707   : > { %v12157_v15 = vadd.f32 %v12155_v41, %v298_v25 }
 0x709   : > { %12162 = vst.msk [vmem:[#allocation2] sm:$0xf] %vm12160_vm1, %v12157_v15 }
 0x70a   : > { %v16936_v38 = vld [vmem:[%s19521_s3 + $0x74] ss:$8 sps:$4 sm:$0xff]   ;;  %v16940_v51 = vld [vmem:[%s19521_s3 + $0x70] ss:$8 sps:$4 sm:$0xff]   ;;  %v16942_v43 = vld [vmem:[%s19521_s3 + $0x64] ss:$8 sps:$4 sm:$0xff]  }
 0x70b   : > { %v16938_v35 = vld [vmem:[%s19521_s3 + $0x174] ss:$8 sps:$4 sm:$0xff]   ;;  %12592 = vmatprep.subr.bf16.mxu0 %v16936_v38  ;;  %v16941_v46 = vld [vmem:[%s19521_s3 + $0x170] ss:$8 sps:$4 sm:$0xff]   ;;  %v16944_v26 = vld [vmem:[%s19521_s3 + $0x164] ss:$8 sps:$4 sm:$0xff]  }
 0x70c   : > { %12633 = vmatprep.subr.bf16.mxu1 %v16938_v35  ;;  %12593 = vmatpush1.bf16.msra.mxu0 %v16940_v51  ;;  %v16946_v9 = vld [vmem:[%s19521_s3 + $0x60] ss:$8 sps:$4 sm:$0xff]   ;;  %v16948_v12 = vld [vmem:[%s19521_s3 + $0x54] ss:$8 sps:$4 sm:$0xff]   ;;  %v16952_v2 = vld [vmem:[%s19521_s3 + $0x50] ss:$8 sps:$4 sm:$0xff]  }
 0x70d   : > { %12634 = vmatpush1.bf16.msra.mxu1 %v16941_v46  ;;  %12594 = vmatprep.subr.bf16.mxu0 %v16942_v43  ;;  %v16947_v58 = vld [vmem:[%s19521_s3 + $0x160] ss:$8 sps:$4 sm:$0xff]   ;;  %v16950_v47 = vld [vmem:[%s19521_s3 + $0x154] ss:$8 sps:$4 sm:$0xff]   ;;  %v16953_v29 = vld [vmem:[%s19521_s3 + $0x150] ss:$8 sps:$4 sm:$0xff]  }
 0x70e   : > { %12635 = vmatprep.subr.bf16.mxu1 %v16944_v26  ;;  %v16954_v32 = vld [vmem:[%s19521_s3 + $0x44] ss:$8 sps:$4 sm:$0xff]   ;;  %v16958_v54 = vld [vmem:[%s19521_s3 + $0x40] ss:$8 sps:$4 sm:$0xff]   ;;  %v16960_v57 = vld [vmem:[%s19521_s3 + $0x34] ss:$8 sps:$4 sm:$0xff]  }
 0x70f   : > { %v16956_v48 = vld [vmem:[%s19521_s3 + $0x144] ss:$8 sps:$4 sm:$0xff]   ;;  %v16959_v63 = vld [vmem:[%s19521_s3 + $0x140] ss:$8 sps:$4 sm:$0xff]   ;;  %v16962_v14 = vld [vmem:[%s19521_s3 + $0x134] ss:$8 sps:$4 sm:$0xff]  }
 0x710   : > { %12595 = vmatpush1.bf16.msra.mxu0 %v16946_v9  ;;  %v16964_v10 = vld [vmem:[%s19521_s3 + $0x30] ss:$8 sps:$4 sm:$0xff]   ;;  %v16966_v33 = vld [vmem:[%s19521_s3 + $0x24] ss:$8 sps:$4 sm:$0xff]   ;;  %v16970_v62 = vld [vmem:[%s19521_s3 + $0x20] ss:$8 sps:$4 sm:$0xff]  }
 0x711   : > { %12636 = vmatpush1.bf16.msra.mxu1 %v16947_v58  ;;  %12596 = vmatprep.subr.bf16.mxu0 %v16948_v12  ;;  %v16965_v6 = vld [vmem:[%s19521_s3 + $0x130] ss:$8 sps:$4 sm:$0xff]   ;;  %v16968_v36 = vld [vmem:[%s19521_s3 + $0x124] ss:$8 sps:$4 sm:$0xff]   ;;  %v16971_v19 = vld [vmem:[%s19521_s3 + $0x120] ss:$8 sps:$4 sm:$0xff]  }
 0x712   : > { %12637 = vmatprep.subr.bf16.mxu1 %v16950_v47  ;;  %v16972_v5 = vld [vmem:[%s19521_s3 + $0x14] ss:$8 sps:$4 sm:$0xff]   ;;  %v16976_v3 = vld [vmem:[%s19521_s3 + $0x10] ss:$8 sps:$4 sm:$0xff]   ;;  %v16978_v27 = vld [vmem:[%s19521_s3 + $0x4] ss:$8 sps:$4 sm:$0xff]  }
 0x713   : > { %v16974_v0 = vld [vmem:[%s19521_s3 + $0x114] ss:$8 sps:$4 sm:$0xff]   ;;  %v16977_v28 = vld [vmem:[%s19521_s3 + $0x110] ss:$8 sps:$4 sm:$0xff]   ;;  %v16980_v24 = vld [vmem:[%s19521_s3 + $0x104] ss:$8 sps:$4 sm:$0xff]  }
 0x714   : > { %12597 = vmatpush1.bf16.msra.mxu0 %v16952_v2  ;;  %v16982_v40 = vld [vmem:[%s19521_s3] ss:$8 sps:$4 sm:$0xff]   ;;  %v16984_v31 = vld [vmem:[%s19521_s3 + $0xf4] ss:$8 sps:$4 sm:$0xff]   ;;  %v16988_v50 = vld [vmem:[%s19521_s3 + $0xf0] ss:$8 sps:$4 sm:$0xff]  }
 0x715   : > { %12638 = vmatpush1.bf16.msra.mxu1 %v16953_v29  ;;  %12598 = vmatprep.subr.bf16.mxu0 %v16954_v32  ;;  %v16983_v61 = vld [vmem:[%s19521_s3 + $0x100] ss:$8 sps:$4 sm:$0xff]   ;;  %v16986_v23 = vld [vmem:[%s19521_s3 + $0x1f4] ss:$8 sps:$4 sm:$0xff]   ;;  %v16989_v13 = vld [vmem:[%s19521_s3 + $0x1f0] ss:$8 sps:$4 sm:$0xff]  }
 0x716   : > { %12639 = vmatprep.subr.bf16.mxu1 %v16956_v48  ;;  %v16990_v11 = vld [vmem:[%s19521_s3 + $0xe4] ss:$8 sps:$4 sm:$0xff]   ;;  %v16994_v34 = vld [vmem:[%s19521_s3 + $0xe0] ss:$8 sps:$4 sm:$0xff]   ;;  %v16996_v4 = vld [vmem:[%s19521_s3 + $0xd4] ss:$8 sps:$4 sm:$0xff]  }
 0x717   : > { %v16992_v37 = vld [vmem:[%s19521_s3 + $0x1e4] ss:$8 sps:$4 sm:$0xff]   ;;  %v16995_v17 = vld [vmem:[%s19521_s3 + $0x1e0] ss:$8 sps:$4 sm:$0xff]   ;;  %v16998_v16 = vld [vmem:[%s19521_s3 + $0x1d4] ss:$8 sps:$4 sm:$0xff]  }
 0x718   : > { %12599 = vmatpush1.bf16.msra.mxu0 %v16958_v54  ;;  %v17000_v30 = vld [vmem:[%s19521_s3 + $0xd0] ss:$8 sps:$4 sm:$0xff]   ;;  %v17002_v44 = vld [vmem:[%s19521_s3 + $0xc4] ss:$8 sps:$4 sm:$0xff]   ;;  %v17006_v20 = vld [vmem:[%s19521_s3 + $0xc0] ss:$8 sps:$4 sm:$0xff]  }
 0x719   : > { %12640 = vmatpush1.bf16.msra.mxu1 %v16959_v63  ;;  %12600 = vmatprep.subr.bf16.mxu0 %v16960_v57  ;;  %v17001_v59 = vld [vmem:[%s19521_s3 + $0x1d0] ss:$8 sps:$4 sm:$0xff]   ;;  %v17004_v45 = vld [vmem:[%s19521_s3 + $0x1c4] ss:$8 sps:$4 sm:$0xff]   ;;  %v17007_v22 = vld [vmem:[%s19521_s3 + $0x1c0] ss:$8 sps:$4 sm:$0xff]  }
 0x71a   : > { %12641 = vmatprep.subr.bf16.mxu1 %v16962_v14  ;;  %v19546_v56 = vld [vmem:[#allocation3_spill] sm:$0xff]  ;;  %v12167_v18 = vld [vmem:[#allocation2] sm:$0xf]  ;;  %v17008_v49 = vld [vmem:[%s19521_s3 + $0xb4] ss:$8 sps:$4 sm:$0xff]  }
 0x71b   : > { %v12178_v52 = vsub.s32 1, %v19546_v56  ;;  %v12186_v60 = vsub.s32 3, %v19546_v56  ;;  %v12168_v8 = vld [vmem:[%s19520_s2] sm:$0xf]  ;;  %v17010_v55 = vld [vmem:[%s19521_s3 + $0x1b4] ss:$8 sps:$4 sm:$0xff]  }
 0x71c   : > { %12601 = vmatpush1.bf16.msra.mxu0 %v16964_v10  ;;  %v12169_v1 = vadd.f32 %v12168_v8, %v12167_v18  ;;  %v17012_v39 = vld [vmem:[%s19521_s3 + $0xb0] ss:$8 sps:$4 sm:$0xff]   ;;  %v17014_v53 = vld [vmem:[%s19521_s3 + $0xa4] ss:$8 sps:$4 sm:$0xff]   ;;  %v12174_v35 = vsub.s32 0, %v19546_v56  ;;  %v12182_v51 = vsub.s32 2, %v19546_v56 }
 0x71d   : > { %12642 = vmatpush1.bf16.msra.mxu1 %v16965_v6  ;;  %12602 = vmatprep.subr.bf16.mxu0 %v16966_v33  ;;  %v17013_v21 = vld [vmem:[%s19521_s3 + $0x1b0] ss:$8 sps:$4 sm:$0xff]   ;;  %v17016_v7 = vld [vmem:[%s19521_s3 + $0x1a4] ss:$8 sps:$4 sm:$0xff]   ;;  %v17018_v46 = vld [vmem:[%s19521_s3 + $0xa0] ss:$8 sps:$4 sm:$0xff]  }
 0x71e   : > { %12643 = vmatprep.subr.bf16.mxu1 %v16968_v36  ;;  %v12170_v42 = vmax.f32 %v12169_v1, 0.0  ;;  %v17019_v43 = vld [vmem:[%s19521_s3 + $0x1a0] ss:$8 sps:$4 sm:$0xff]   ;;  %v17020_v26 = vld [vmem:[%s19521_s3 + $0x94] ss:$8 sps:$4 sm:$0xff]  }
 0x71f   : > { %v17022_v9 = vld [vmem:[%s19521_s3 + $0x194] ss:$8 sps:$4 sm:$0xff]   ;;  %v17024_v58 = vld [vmem:[%s19521_s3 + $0x90] ss:$8 sps:$4 sm:$0xff]   ;;  %v17026_v47 = vld [vmem:[%s19521_s3 + $0x84] ss:$8 sps:$4 sm:$0xff]  }
 0x720   : > { %12603 = vmatpush1.bf16.msra.mxu0 %v16970_v62  ;;  %v12179_v25 = vrot.slane %v12170_v42, %v12178_v52  ;;  %v12187_v41 = vrot.slane %v12170_v42, %v12186_v60  ;;  %v17025_v12 = vld [vmem:[%s19521_s3 + $0x190] ss:$8 sps:$4 sm:$0xff]   ;;  %v17028_v2 = vld [vmem:[%s19521_s3 + $0x184] ss:$8 sps:$4 sm:$0xff]   ;;  %v12175_v29 = vrot.slane %v12170_v42, %v12174_v35  ;;  %v12183_v32 = vrot.slane %v12170_v42, %v12182_v51  ;;  %v17030_v48 = vld [vmem:[%s19521_s3 + $0x80] ss:$8 sps:$4 sm:$0xff]  }
 0x721   : > { %12644 = vmatpush1.bf16.msra.mxu1 %v16971_v19  ;;  %12604 = vmatprep.subr.bf16.mxu0 %v16972_v5  ;;  %v17031_v54 = vld [vmem:[%s19521_s3 + $0x180] ss:$8 sps:$4 sm:$0xff]   ;;  %v17032_v63 = vld [vmem:[%s19523_s5 + $0x78] sm:$0xff]   ;;  %v17034_v6 = vld [vmem:[%s19523_s5 + $0x70] sm:$0xff]  }
 0x722   : > { %12645 = vmatprep.subr.bf16.mxu1 %v16974_v0  ;;  %v12193_v15 = vpack.c.bf16 %v12179_v25, %v12179_v25  ;;  %v12195_v38 = vpack.c.bf16 %v12187_v41, %v12187_v41  ;;  %v12192_v57 = vpack.c.bf16 %v12175_v29, %v12175_v29  ;;  %v12194_v14 = vpack.c.bf16 %v12183_v32, %v12183_v32  ;;  %v17033_v10 = vld [vmem:[%s19523_s5 + $0x38] sm:$0xff]   ;;  %v17035_v33 = vld [vmem:[%s19523_s5 + $0x30] sm:$0xff]   ;;  %v17036_v36 = vld [vmem:[%s19523_s5 + $0x68] sm:$0xff]  }
 0x723   : > { %v17037_v62 = vld [vmem:[%s19523_s5 + $0x28] sm:$0xff]   ;;  %v17038_v19 = vld [vmem:[%s19523_s5 + $0x60] sm:$0xff]   ;;  %v17040_v0 = vld [vmem:[%s19523_s5 + $0x58] sm:$0xff]  }
 0x724   : > { %12605 = vmatpush1.bf16.msra.mxu0 %v16976_v3  ;;  %12624 = vmatprep.mubr.bf16.mxu0 %v12193_v15  ;;  %v17039_v5 = vld [vmem:[%s19523_s5 + $0x20] sm:$0xff]   ;;  %v17041_v3 = vld [vmem:[%s19523_s5 + $0x18] sm:$0xff]  }
 0x725   : > { %12646 = vmatpush1.bf16.msra.mxu1 %v16977_v28  ;;  %12606 = vmatprep.subr.bf16.mxu0 %v16978_v27  ;;  %v17042_v28 = vld [vmem:[%s19523_s5 + $0x50] sm:$0xff]  }
 0x726   : > { %12647 = vmatprep.subr.bf16.mxu1 %v16980_v24  ;;  %12665 = vmatprep.mubr.bf16.mxu1 %v12195_v38  ;;  %v17043_v27 = vld [vmem:[%s19523_s5 + $0x10] sm:$0xff]   ;;  %v17044_v24 = vld [vmem:[%s19523_s5 + $0x48] sm:$0xff]  }
 0x728   : > { %12607 = vmatpush1.bf16.msra.mxu0 %v16982_v40  ;;  %v17045_v40 = vld [vmem:[%s19523_s5 + $0x8] sm:$0xff]  }
 0x729   : > { %12648 = vmatpush1.bf16.msra.mxu1 %v16983_v61  ;;  %12608 = vmatprep.subr.bf16.mxu0 %v16984_v31  ;;  %v17046_v61 = vld [vmem:[%s19523_s5 + $0x40] sm:$0xff]  }
 0x72a   : > { %12649 = vmatprep.subr.bf16.mxu1 %v16986_v23  ;;  %v17047_v31 = vld [vmem:[%s19523_s5] sm:$0xff]  }
 0x72b   : > { %v12260_v23 = vld [vmem:[%s19522_s4] sm:$0x3] }
 0x72c   : > { %12609 = vmatpush2.bf16.msra.mxu0 %v16988_v50  ;;  %v12585_v50 = vrot.slane %v12260_v23, %v12174_v35 }
 0x72d   : > { %12650 = vmatpush2.bf16.msra.mxu1 %v16989_v13  ;;  %12610 = vmatprep.subr.bf16.mxu0 %v16990_v11  ;;  %v12589_v13 = vrot.slane %v12260_v23, %v12178_v52  ;;  %v12710_v52 = vld [vmem:[%s19524_s6] sm:$0x1] }
 0x72e   : > { %12651 = vmatprep.subr.bf16.mxu1 %v16992_v37 }
 0x730   : > { %12611 = vmatpush2.bf16.msra.mxu0 %v16994_v34 }
 0x731   : > { %12652 = vmatpush2.bf16.msra.mxu1 %v16995_v17  ;;  %12612 = vmatprep.subr.bf16.mxu0 %v16996_v4 }
 0x732   : > { %12653 = vmatprep.subr.bf16.mxu1 %v16998_v16 }
 0x734   : > { %12613 = vmatpush2.bf16.msra.mxu0 %v17000_v30 }
 0x735   : > { %12654 = vmatpush2.bf16.msra.mxu1 %v17001_v59  ;;  %12614 = vmatprep.subr.bf16.mxu0 %v17002_v44 }
 0x736   : > { %12655 = vmatprep.subr.bf16.mxu1 %v17004_v45 }
 0x738   : > { %12615 = vmatpush2.bf16.msra.mxu0 %v17006_v20 }
 0x739   : > { %12656 = vmatpush2.bf16.msra.mxu1 %v17007_v22  ;;  %12616 = vmatprep.subr.bf16.mxu0 %v17008_v49 }
 0x73a   : > { %12657 = vmatprep.subr.bf16.mxu1 %v17010_v55 }
 0x73c   : > { %12617 = vmatpush2.bf16.msra.mxu0 %v17012_v39 }
 0x73d   : > { %12658 = vmatpush2.bf16.msra.mxu1 %v17013_v21  ;;  %12618 = vmatprep.subr.bf16.mxu0 %v17014_v53 }
 0x73e   : > { %12659 = vmatprep.subr.bf16.mxu1 %v17016_v7 }
 0x740   : > { %12619 = vmatpush2.bf16.msra.mxu0 %v17018_v46 }
 0x741   : > { %12660 = vmatpush2.bf16.msra.mxu1 %v17019_v43  ;;  %12620 = vmatprep.subr.bf16.mxu0 %v17020_v26 }
 0x742   : > { %12661 = vmatprep.subr.bf16.mxu1 %v17022_v9 }
 0x744   : > { %12621 = vmatpush2.bf16.msra.mxu0 %v17024_v58 }
 0x745   : > { %12662 = vmatpush2.bf16.msra.mxu1 %v17025_v12  ;;  %12622 = vmatprep.subr.bf16.mxu0 %v17026_v47 }
 0x746   : > { %12663 = vmatprep.subr.bf16.mxu1 %v17028_v2 }
 0x748   : > { %12623 = vmatpush2.bf16.msra.mxu0 %v17030_v48 }
 0x749   : > { %12664 = vmatpush2.bf16.msra.mxu1 %v17031_v54  ;;  %14545 = vmatprep.subr.bf16.mxu0 %v17032_v63 }
 0x74b   : > { %12625 = vmatmul.mubr.bf16.vlgmr.msra.gmra.mxu0 %v12192_v57 }
 0x74c   : > { %12666 = vmatmul.mubr.bf16.vlgmr.msra.gmra.mxu1 %v12194_v14  ;;  %14546 = vmatpush3.bf16.msra.mxu0 %v17033_v10 }
 0x74d   : > { %14547 = vmatprep.subr.bf16.mxu0 %v17034_v6 }
 0x750   : > { %14548 = vmatpush3.bf16.msra.mxu0 %v17035_v33 }
 0x751   : > { %14549 = vmatprep.subr.bf16.mxu0 %v17036_v36 }
 0x754   : > { %14550 = vmatpush3.bf16.msra.mxu0 %v17037_v62 }
 0x755   : > { %14551 = vmatprep.subr.bf16.mxu0 %v17038_v19 }
 0x758   : > { %14552 = vmatpush3.bf16.msra.mxu0 %v17039_v5 }
 0x759   : > { %14553 = vmatprep.subr.bf16.mxu0 %v17040_v0 }
 0x75c   : > { %14554 = vmatpush3.bf16.msra.mxu0 %v17041_v3 }
 0x75d   : > { %14555 = vmatprep.subr.bf16.mxu0 %v17042_v28 }
 0x760   : > { %14556 = vmatpush3.bf16.msra.mxu0 %v17043_v27 }
 0x761   : > { %14557 = vmatprep.subr.bf16.mxu0 %v17044_v24 }
 0x764   : > { %14558 = vmatpush3.bf16.msra.mxu0 %v17045_v40 }
 0x765   : > { %14559 = vmatprep.subr.bf16.mxu0 %v17046_v61 }
 0x768   : > { %14560 = vmatpush3.bf16.msra.mxu0 %v17047_v31 }
 0x80b   : > { %v12626_v11 = vpop.f32.mrf.mxu0 }
 0x80c   : > { %v12667_v37 = vpop.f32.mrf.mxu1  ;;  %v12627_v34 = vadd.f32 %v12626_v11, %v12585_v50 }
 0x80d   : > { %v12628_v17 = vpop.f32.mrf.mxu0 }
 0x80e   : > { %v12669_v4 = vpop.f32.mrf.mxu1  ;;  %v12668_v16 = vadd.f32 %v12667_v37, %v12627_v34  ;;  %v12629_v30 = vadd.f32 %v12628_v17, %v12589_v13 }
 0x80f   : > { %v12630_v59 = vpop.f32.mrf.mxu0 }
 0x810   : > { %v12671_v44 = vpop.f32.mrf.mxu1  ;;  %v12670_v45 = vadd.f32 %v12669_v4, %v12629_v30  ;;  %v12674_v60 = vmax.f32 %v12668_v16, 0.0 }
 0x811   : > { %v12631_v20 = vpop.f32.mrf.mxu0 }
 0x812   : > { %v12672_v22 = vpop.f32.mrf.mxu1  ;;  %v12675_v18 = vmax.f32 %v12670_v45, 0.0  ;;  %v12676_v49 = vpack.c.bf16 %v12674_v60, %v12674_v60 }
 0x814   : > { %v12677_v8 = vpack.c.bf16 %v12675_v18, %v12675_v18 }
 0x816   : > { %12839 = vmatprep.mubr.bf16.mxu0 %v12677_v8 }
 0x817   : > { %12840 = vmatmul.mubr.bf16.vlgmr.msra.gmra.mxu0 %v12676_v49 }
 0x8d7   : > { %v14561_v56 = vpop.f32.mrf.mxu0 }
 0x8d9   : > { %v14562_v1 = vpop.f32.mrf.mxu0 }
 0x8da   : > { %v14563_v55 = vadd.f32 %v14562_v1, %v14561_v56 }
 0x8db   : > { %v14564_v39 = vpop.f32.mrf.mxu0 }
 0x8dc   : > { %v12842_v42 = vadd.f32 %v14563_v55, %v12710_v52 }
 0x8dd   : > { %v14565_v21 = vpop.f32.mrf.mxu0 }
 0x8de   : > { %12847 = vst [vmem:[%s19525_s7] sm:$0x1] %v12842_v42 }
 0x8df PF: > { %s17_s24 = sadd.s32 1, %s17054_s24  }
 0x8e0   : > { %p14_p7 = scmp.ge.s32.totalorder %s17_s24, 4  }
 0x8e2   :  { %16 = sbr.rel (!%p14_p7) target bundleno = 1 (0x1), region = 85 }

</bundles_post_ra>
